<compile_context>
chip_gen: v6e
topology: v6e:2x2x1
jax: 0.10.0
libtpu: 0.0.40
codegen_flags: <defaults>
</compile_context>

<pallas_src>
import functools

import jax
import jax.numpy as jnp
from jax.experimental import pallas as pl
from jax.experimental.pallas import tpu as pltpu

LEAKY_SLOPE = 0.01
BN_EPS = 1e-5


def _round_up(x, m):
    return -(-x // m) * m


# ----------------------------- Pallas kernel --------------------------------

def _conv_stage_kernel(x_ref, lhs_ref, o_ref, rhs_ref, *,
                       C_in, C_out, KW, NRCp, BHp, Hp_pad, Wp_pad):
    """Fused Conv2d + BatchNorm2d(eval) + LeakyReLU + MaxPool2d(2), one image.

    x_ref   : (2, R_in, Win)          bf16  width-parity-split input, rows = (h, c_in)
    lhs_ref : (M4, Kbig)              bf16  banded conv weights (BN scale folded) + bias col
    o_ref   : (Hp_pad*C_out, Wp_pad)  bf16  pooled output, rows = (hp, c_out)
    rhs_ref : (Kbig, Wp_pad)          bf16  scratch: tap-concatenated RHS for one band

    M4 = 4*BHp*C_out, rows ordered (dw, dh, hp_local, c_out): the 2x2 pool is a
    max over the four M4/4 row blocks.  Kbig = (KW+1)*NRCp + 8; the trailing 8
    RHS rows are a constant ones block whose LHS column carries conv-bias + BN
    shift, so the whole band is ONE matmul (no accumulator round trips).
    """
    T = KW + 1
    Mh = BHp * C_out
    n_bands = Hp_pad // BHp
    row_stride = 2 * BHp * C_in

    # Constant bias rows of the RHS; rewritten every grid step so each core's
    # private scratch is initialized (megacore-safe), cost is negligible.
    rhs_ref[pl.ds(T * NRCp, 8), :] = jnp.ones((8, Wp_pad), jnp.bfloat16)

    def band_body(b, carry):
        row0 = pl.multiple_of(b * row_stride, 8)
        # Gather the lane-shifted, parity-selected input slabs of all taps into
        # one contiguous RHS so the MXU accumulates over taps internally.
        for t in range(T):
            rhs_ref[pl.ds(t * NRCp, NRCp), :] = x_ref[
                t % 2, pl.ds(row0, NRCp), pl.ds(t // 2, Wp_pad)]
        y = jnp.dot(lhs_ref[...], rhs_ref[...],
                    preferred_element_type=jnp.float32)
        # 2x2 max-pool = max over the (dw, dh) row quarters; LeakyReLU is
        # monotone increasing so it commutes with the max (applied once after).
        p = jnp.maximum(jnp.maximum(y[:Mh], y[Mh:2 * Mh]),
                        jnp.maximum(y[2 * Mh:3 * Mh], y[3 * Mh:]))
        p = jnp.maximum(p, LEAKY_SLOPE * p)
        # TODO(synk): nn.Dropout has no effect at inference; omitted (identity).
        o_ref[pl.ds(pl.multiple_of(b * Mh, 8), Mh), :] = p.astype(o_ref.dtype)
        return carry

    jax.lax.fori_loop(0, n_bands, band_body, 0)


# ----------------------------- host-side helpers ----------------------------

def _banded_weights(w, scale_c, shift_c, BHp, NRCp):
    """Banded LHS: L[(dw,dh,hl,co), t*NRCp + j*C_in + ci]
         = scale[co] * w[co, ci, j - (2*hl+dh), t - dw]   (0 where out of range)
       plus a trailing 8-wide bias block whose first column is the BN shift."""
    C_out, C_in, KH, KW = w.shape
    NR = 2 * BHp + KH - 1
    NRC = NR * C_in
    T = KW + 1
    M4 = 4 * BHp * C_out

    dw = jnp.arange(2)
    dh = jnp.arange(2)
    hl = jnp.arange(BHp)
    kh = jnp.arange(KH)
    kw = jnp.arange(KW)
    jj = jnp.arange(NR)
    tt = jnp.arange(T)
    sel_row = (jj[None, None, None, :] ==
               (2 * hl[None, :, None, None] + dh[:, None, None, None]
                + kh[None, None, :, None])).astype(jnp.float32)          # (dh,hl,kh,j)
    sel_tap = (kw[None, None, :] ==
               (tt[None, :, None] - dw[:, None, None])).astype(jnp.float32)  # (dw,t,kw)
    ws = w * scale_c[:, None, None, None]                                # fold BN scale
    L = jnp.einsum('oihw,dlhj,ctw->cdlotji', ws, sel_row, sel_tap)
    L = L.reshape(M4, T, NRC)
    L = jnp.pad(L, ((0, 0), (0, 0), (0, NRCp - NRC))).reshape(M4, T * NRCp)
    bias_col = jnp.zeros((M4, 8), jnp.float32).at[:, 0].set(jnp.tile(shift_c, 4 * BHp))
    return jnp.concatenate([L, bias_col], axis=1).astype(jnp.bfloat16)


def conv_block(x_rows, H_valid, W_valid, w, b, bn, *, BHp):
    """One fused Conv2d + BN2d(eval) + LeakyReLU + MaxPool2d(2) stage.

    x_rows: (N, R, Wc) activation with rows ordered (h, c_in); R >= H_valid*C_in,
            Wc >= W_valid (even).  Extra rows/cols hold finite padding.
    Returns (y, Hp, Wp): y is (N, Hp_pad*C_out, Wp_pad) bf16, rows = (hp, c_out);
    only the first Hp pooled rows / Wp pooled cols are valid.
    """
    gamma, beta, mean, var = bn
    N, R, Wc = x_rows.shape
    C_out, C_in, KH, KW = w.shape
    assert Wc % 2 == 0 and R >= H_valid * C_in and Wc >= W_valid

    Hp, Wp = (H_valid - KH + 1) // 2, (W_valid - KW + 1) // 2
    Hp_pad = _round_up(Hp, BHp)
    Wp_pad = _round_up(Wp, 128)
    NR = 2 * BHp + KH - 1
    NRCp = _round_up(NR * C_in, 8)
    T = KW + 1
    Kbig = T * NRCp + 8
    M4 = 4 * BHp * C_out
    rows_need = 2 * (Hp_pad - BHp) * C_in + NRCp
    Win = Wp_pad + 128                      # shifted slab reads stay in-bounds

    x_rows = x_rows.astype(jnp.bfloat16)
    if R < rows_need:
        x_rows = jnp.pad(x_rows, ((0, 0), (0, rows_need - R), (0, 0)))
    # Width-parity split so the 2x2 pool never needs strided lane selection,
    # then lane-pad so every in-kernel read/store is lane-dense.
    x_par = jnp.stack([x_rows[..., 0::2], x_rows[..., 1::2]], axis=1)
    pad_w = Win - x_par.shape[-1]
    assert pad_w >= 0
    x_par = jnp.pad(x_par, ((0, 0), (0, 0), (0, 0), (0, pad_w)))

    scale_c = gamma / jnp.sqrt(var + BN_EPS)
    shift_c = (b - mean) * scale_c + beta
    lhs = _banded_weights(w, scale_c, shift_c, BHp, NRCp)       # (M4, Kbig) bf16

    R_in = x_par.shape[2]
    kernel = functools.partial(
        _conv_stage_kernel, C_in=C_in, C_out=C_out, KW=KW, NRCp=NRCp,
        BHp=BHp, Hp_pad=Hp_pad, Wp_pad=Wp_pad)
    y = pl.pallas_call(
        kernel,
        out_shape=jax.ShapeDtypeStruct((N, Hp_pad * C_out, Wp_pad), jnp.bfloat16),
        grid=(N,),
        in_specs=[
            pl.BlockSpec((None, 2, R_in, Win), lambda n: (n, 0, 0, 0)),
            pl.BlockSpec((M4, Kbig), lambda n: (0, 0)),
        ],
        out_specs=pl.BlockSpec((None, Hp_pad * C_out, Wp_pad), lambda n: (n, 0, 0)),
        scratch_shapes=[pltpu.VMEM((Kbig, Wp_pad), jnp.bfloat16)],
        compiler_params=pltpu.CompilerParams(dimension_semantics=("parallel",)),
    )(x_par, lhs)
    return y, Hp, Wp


def forward(img_feature, non_spatial_feature, p):
    N, C, H, W = img_feature.shape
    # NCHW -> per-image rows ordered (h, c): shape (N, H*C, W).
    x = jnp.transpose(img_feature, (0, 2, 1, 3)).reshape(N, H * C, W)
    y, Hp, Wp = conv_block(x, H, W, p["w1"], p["b1"], p["bn1"], BHp=8)
    y, Hp, Wp = conv_block(y, Hp, Wp, p["w2"], p["b2"], p["bn2"], BHp=8)
    y, Hp, Wp = conv_block(y, Hp, Wp, p["w3"], p["b3"], p["bn3"], BHp=24)

    C3 = p["w3"].shape[0]
    Hp_pad3, Wp_pad3 = y.shape[1] // C3, y.shape[2]
    # Rows are (hp, c); trim padding and restore PyTorch NCHW flatten order (c, h, w).
    img_flat = jnp.transpose(
        y.reshape(N, Hp_pad3, C3, Wp_pad3)[:, :Hp, :, :Wp], (0, 2, 1, 3)
    ).reshape(N, C3 * Hp * Wp).astype(jnp.float32)
    assert img_flat.shape[1] == 6627, img_flat.shape

    feat = jnp.concatenate([img_flat, non_spatial_feature.reshape(N, -1)], axis=1)
    # Head: Linear(6632->100) -> BN1d(eval) -> Dropout -> Linear(100->1) is a
    # pure affine map; folded to one matvec and left to XLA (per perf review —
    # a dedicated Pallas launch costs more than the math).
    g1, be1, m1, v1 = p["bn1d"]
    s1 = g1 / jnp.sqrt(v1 + BN_EPS)
    w_eff = (p["lw1"].T * s1[None, :]) @ p["lw2"].T                  # (6632, 1)
    b_eff = ((p["lb1"] - m1) * s1 + be1) @ p["lw2"].T + p["lb2"]     # (1,)
    return feat @ w_eff + b_eff[None, :]


# ----------------------------- parameters ------------------------------------

def init_params(key):
    ks = iter(jax.random.split(key, 32))

    def conv(cout, cin, k):
        w = 0.05 * jax.random.normal(next(ks), (cout, cin, k, k), jnp.float32)
        b = 0.05 * jax.random.normal(next(ks), (cout,), jnp.float32)
        return w, b

    def bn(c):
        gamma = 1.0 + 0.1 * jax.random.normal(next(ks), (c,), jnp.float32)
        beta = 0.1 * jax.random.normal(next(ks), (c,), jnp.float32)
        mean = 0.1 * jax.random.normal(next(ks), (c,), jnp.float32)
        var = 1.0 + 0.5 * jax.random.uniform(next(ks), (c,), jnp.float32)
        return gamma, beta, mean, var

    p = {}
    p["w1"], p["b1"] = conv(8, 3, 7)
    p["bn1"] = bn(8)
    p["w2"], p["b2"] = conv(8, 8, 5)
    p["bn2"] = bn(8)
    p["w3"], p["b3"] = conv(3, 8, 3)
    p["bn3"] = bn(3)
    p["lw1"] = 0.01 * jax.random.normal(next(ks), (100, 6632), jnp.float32)
    p["lb1"] = 0.01 * jax.random.normal(next(ks), (100,), jnp.float32)
    p["bn1d"] = bn(100)
    p["lw2"] = 0.1 * jax.random.normal(next(ks), (1, 100), jnp.float32)
    p["lb2"] = 0.1 * jax.random.normal(next(ks), (1,), jnp.float32)
    return p


# ----------------------------- main -------------------------------------------

if __name__ == "__main__":
    key = jax.random.PRNGKey(0)
    k_img, k_ns, k_par = jax.random.split(key, 3)

    # 400x400 spatial size is dictated by IMG_LAYER_OUTPUT_SIZE = 6627 (= 3*47*47).
    img_feature = jax.random.normal(k_img, (2, 3, 400, 400), jnp.float32)
    non_spatial_feature = jax.random.normal(k_ns, (2, 5), jnp.float32)
    params = init_params(k_par)

    fwd = jax.jit(forward)
    out = jax.block_until_ready(fwd(img_feature, non_spatial_feature, params))

    assert out.shape == (2, 1), out.shape
    assert bool(jnp.all(jnp.isfinite(out)))
    print("KERNEL_OK")
</pallas_src>

<mosaic_0001>
module attributes {stable_mosaic.version = 11 : i64} {
  func.func @_conv_stage_kernel(%arg0: i32, %arg1: memref<1x2x1224x384xbf16, #tpu.memory_space<vmem>>, %arg2: memref<256x584xbf16, #tpu.memory_space<vmem>>, %arg3: memref<1x1600x256xbf16, #tpu.memory_space<vmem>>, %arg4: memref<584x256xbf16, #tpu.memory_space<vmem>>) attributes {dimension_semantics = [#tpu.dimension_semantics<parallel>], iteration_bounds = array<i64: 2>, scalar_prefetch = 0 : i64, scratch_operands = 1 : i64, tpu.core_type = #tpu.core_type<tc>, window_params = [{transform_indices = @transform_0, window_bounds = array<i64: 1, 2, 1224, 384>}, {pipeline_mode = #tpu.pipeline_mode<synchronous>, transform_indices = @transform_1, window_bounds = array<i64: 256, 584>}, {transform_indices = @transform_2, window_bounds = array<i64: 1, 1600, 256>}]} {
    %cst = arith.constant 1.000000e+00 : bf16
    %0 = vector.broadcast %cst : bf16 to vector<8x256xbf16>
    %c576 = arith.constant 576 : index
    %c0 = arith.constant 0 : index
    %1 = vector.load %arg4[%c576, %c0] : memref<584x256xbf16, #tpu.memory_space<vmem>>, vector<8x256xbf16>
    tpu.vector_store %arg4[%c576, %c0], %0 {strides = array<i32>} : memref<584x256xbf16, #tpu.memory_space<vmem>>, vector<8x256xbf16>,
    %c0_i32 = arith.constant 0 : i32
    %c25_i32 = arith.constant 25 : i32
    %2 = arith.addi %c0_i32, %c25_i32 : i32
    %c1_i32 = arith.constant 1 : i32
    scf.for %arg5 = %c0_i32 to %2 step %c1_i32  : i32 {
      %c48_i32 = arith.constant 48 : i32
      %3 = arith.muli %arg5, %c48_i32 : i32
      %4 = tpu.assume_multiple %3, 8 : i32
      %c0_1 = arith.constant 0 : index
      %c0_2 = arith.constant 0 : index
      %5 = arith.index_cast %4 : i32 to index
      %c0_3 = arith.constant 0 : index
      %6 = vector.load %arg1[%c0_1, %c0_2, %5, %c0_3] : memref<1x2x1224x384xbf16, #tpu.memory_space<vmem>>, vector<1x1x72x256xbf16>
      %7 = vector.shape_cast %6 : vector<1x1x72x256xbf16> to vector<72x256xbf16>
      %c0_4 = arith.constant 0 : index
      %c0_5 = arith.constant 0 : index
      %8 = vector.load %arg4[%c0_4, %c0_5] : memref<584x256xbf16, #tpu.memory_space<vmem>>, vector<72x256xbf16>
      tpu.vector_store %arg4[%c0_4, %c0_5], %7 {strides = array<i32>} : memref<584x256xbf16, #tpu.memory_space<vmem>>, vector<72x256xbf16>,
      %c0_6 = arith.constant 0 : index
      %c1 = arith.constant 1 : index
      %9 = arith.index_cast %4 : i32 to index
      %c0_7 = arith.constant 0 : index
      %10 = vector.load %arg1[%c0_6, %c1, %9, %c0_7] : memref<1x2x1224x384xbf16, #tpu.memory_space<vmem>>, vector<1x1x72x256xbf16>
      %11 = vector.shape_cast %10 : vector<1x1x72x256xbf16> to vector<72x256xbf16>
      %c72 = arith.constant 72 : index
      %c0_8 = arith.constant 0 : index
      %12 = vector.load %arg4[%c72, %c0_8] : memref<584x256xbf16, #tpu.memory_space<vmem>>, vector<72x256xbf16>
      tpu.vector_store %arg4[%c72, %c0_8], %11 {strides = array<i32>} : memref<584x256xbf16, #tpu.memory_space<vmem>>, vector<72x256xbf16>,
      %c0_9 = arith.constant 0 : index
      %c0_10 = arith.constant 0 : index
      %13 = arith.index_cast %4 : i32 to index
      %c1_11 = arith.constant 1 : index
      %14 = vector.load %arg1[%c0_9, %c0_10, %13, %c1_11] : memref<1x2x1224x384xbf16, #tpu.memory_space<vmem>>, vector<1x1x72x256xbf16>
      %15 = vector.shape_cast %14 : vector<1x1x72x256xbf16> to vector<72x256xbf16>
      %c144 = arith.constant 144 : index
      %c0_12 = arith.constant 0 : index
      %16 = vector.load %arg4[%c144, %c0_12] : memref<584x256xbf16, #tpu.memory_space<vmem>>, vector<72x256xbf16>
      tpu.vector_store %arg4[%c144, %c0_12], %15 {strides = array<i32>} : memref<584x256xbf16, #tpu.memory_space<vmem>>, vector<72x256xbf16>,
      %c0_13 = arith.constant 0 : index
      %c1_14 = arith.constant 1 : index
      %17 = arith.index_cast %4 : i32 to index
      %c1_15 = arith.constant 1 : index
      %18 = vector.load %arg1[%c0_13, %c1_14, %17, %c1_15] : memref<1x2x1224x384xbf16, #tpu.memory_space<vmem>>, vector<1x1x72x256xbf16>
      %19 = vector.shape_cast %18 : vector<1x1x72x256xbf16> to vector<72x256xbf16>
      %c216 = arith.constant 216 : index
      %c0_16 = arith.constant 0 : index
      %20 = vector.load %arg4[%c216, %c0_16] : memref<584x256xbf16, #tpu.memory_space<vmem>>, vector<72x256xbf16>
      tpu.vector_store %arg4[%c216, %c0_16], %19 {strides = array<i32>} : memref<584x256xbf16, #tpu.memory_space<vmem>>, vector<72x256xbf16>,
      %c0_17 = arith.constant 0 : index
      %c0_18 = arith.constant 0 : index
      %21 = arith.index_cast %4 : i32 to index
      %c2 = arith.constant 2 : index
      %22 = vector.load %arg1[%c0_17, %c0_18, %21, %c2] : memref<1x2x1224x384xbf16, #tpu.memory_space<vmem>>, vector<1x1x72x256xbf16>
      %23 = vector.shape_cast %22 : vector<1x1x72x256xbf16> to vector<72x256xbf16>
      %c288 = arith.constant 288 : index
      %c0_19 = arith.constant 0 : index
      %24 = vector.load %arg4[%c288, %c0_19] : memref<584x256xbf16, #tpu.memory_space<vmem>>, vector<72x256xbf16>
      tpu.vector_store %arg4[%c288, %c0_19], %23 {strides = array<i32>} : memref<584x256xbf16, #tpu.memory_space<vmem>>, vector<72x256xbf16>,
      %c0_20 = arith.constant 0 : index
      %c1_21 = arith.constant 1 : index
      %25 = arith.index_cast %4 : i32 to index
      %c2_22 = arith.constant 2 : index
      %26 = vector.load %arg1[%c0_20, %c1_21, %25, %c2_22] : memref<1x2x1224x384xbf16, #tpu.memory_space<vmem>>, vector<1x1x72x256xbf16>
      %27 = vector.shape_cast %26 : vector<1x1x72x256xbf16> to vector<72x256xbf16>
      %c360 = arith.constant 360 : index
      %c0_23 = arith.constant 0 : index
      %28 = vector.load %arg4[%c360, %c0_23] : memref<584x256xbf16, #tpu.memory_space<vmem>>, vector<72x256xbf16>
      tpu.vector_store %arg4[%c360, %c0_23], %27 {strides = array<i32>} : memref<584x256xbf16, #tpu.memory_space<vmem>>, vector<72x256xbf16>,
      %c0_24 = arith.constant 0 : index
      %c0_25 = arith.constant 0 : index
      %29 = arith.index_cast %4 : i32 to index
      %c3 = arith.constant 3 : index
      %30 = vector.load %arg1[%c0_24, %c0_25, %29, %c3] : memref<1x2x1224x384xbf16, #tpu.memory_space<vmem>>, vector<1x1x72x256xbf16>
      %31 = vector.shape_cast %30 : vector<1x1x72x256xbf16> to vector<72x256xbf16>
      %c432 = arith.constant 432 : index
      %c0_26 = arith.constant 0 : index
      %32 = vector.load %arg4[%c432, %c0_26] : memref<584x256xbf16, #tpu.memory_space<vmem>>, vector<72x256xbf16>
      tpu.vector_store %arg4[%c432, %c0_26], %31 {strides = array<i32>} : memref<584x256xbf16, #tpu.memory_space<vmem>>, vector<72x256xbf16>,
      %c0_27 = arith.constant 0 : index
      %c1_28 = arith.constant 1 : index
      %33 = arith.index_cast %4 : i32 to index
      %c3_29 = arith.constant 3 : index
      %34 = vector.load %arg1[%c0_27, %c1_28, %33, %c3_29] : memref<1x2x1224x384xbf16, #tpu.memory_space<vmem>>, vector<1x1x72x256xbf16>
      %35 = vector.shape_cast %34 : vector<1x1x72x256xbf16> to vector<72x256xbf16>
      %c504 = arith.constant 504 : index
      %c0_30 = arith.constant 0 : index
      %36 = vector.load %arg4[%c504, %c0_30] : memref<584x256xbf16, #tpu.memory_space<vmem>>, vector<72x256xbf16>
      tpu.vector_store %arg4[%c504, %c0_30], %35 {strides = array<i32>} : memref<584x256xbf16, #tpu.memory_space<vmem>>, vector<72x256xbf16>,
      %c0_31 = arith.constant 0 : index
      %c0_32 = arith.constant 0 : index
      %37 = vector.load %arg2[%c0_31, %c0_32] : memref<256x584xbf16, #tpu.memory_space<vmem>>, vector<256x584xbf16>
      %c0_33 = arith.constant 0 : index
      %c0_34 = arith.constant 0 : index
      %38 = vector.load %arg4[%c0_33, %c0_34] : memref<584x256xbf16, #tpu.memory_space<vmem>>, vector<584x256xbf16>
      %cst_35 = arith.constant dense<0.000000e+00> : vector<256x256xf32>
      %39 = tpu.matmul %37, %38, %cst_35 {dimension_numbers = #tpu.dot_dimension_numbers<[1], [0], [0], [1], [0, 0, 1, 1], [], []>} : vector<256x584xbf16>, vector<584x256xbf16>, vector<256x256xf32> -> vector<256x256xf32>
      %40 = vector.extract_strided_slice %39 {offsets = [0, 0], sizes = [64, 256], strides = [1, 1]} : vector<256x256xf32> to vector<64x256xf32>
      %41 = vector.extract_strided_slice %39 {offsets = [64, 0], sizes = [64, 256], strides = [1, 1]} : vector<256x256xf32> to vector<64x256xf32>
      %42 = arith.maximumf %40, %41 : vector<64x256xf32>
      %43 = vector.extract_strided_slice %39 {offsets = [128, 0], sizes = [64, 256], strides = [1, 1]} : vector<256x256xf32> to vector<64x256xf32>
      %44 = vector.extract_strided_slice %39 {offsets = [192, 0], sizes = [64, 256], strides = [1, 1]} : vector<256x256xf32> to vector<64x256xf32>
      %45 = arith.maximumf %43, %44 : vector<64x256xf32>
      %46 = arith.maximumf %42, %45 : vector<64x256xf32>
      %cst_36 = arith.constant 0.00999999977 : f32
      %47 = vector.broadcast %cst_36 : f32 to vector<64x256xf32>
      %48 = arith.mulf %47, %46 : vector<64x256xf32>
      %49 = arith.maximumf %46, %48 : vector<64x256xf32>
      %50 = arith.truncf %49 : vector<64x256xf32> to vector<64x256xbf16>
      %c64_i32 = arith.constant 64 : i32
      %51 = arith.muli %arg5, %c64_i32 : i32
      %52 = tpu.assume_multiple %51, 8 : i32
      %c0_37 = arith.constant 0 : index
      %53 = arith.index_cast %52 : i32 to index
      %c0_38 = arith.constant 0 : index
      %54 = vector.load %arg3[%c0_37, %53, %c0_38] : memref<1x1600x256xbf16, #tpu.memory_space<vmem>>, vector<1x64x256xbf16>
      %55 = vector.shape_cast %54 : vector<1x64x256xbf16> to vector<64x256xbf16>
      %56 = vector.shape_cast %50 : vector<64x256xbf16> to vector<1x64x256xbf16>
      tpu.vector_store %arg3[%c0_37, %53, %c0_38], %56 {strides = array<i32>} : memref<1x1600x256xbf16, #tpu.memory_space<vmem>>, vector<1x64x256xbf16>,
    }
    %c25_i32_0 = arith.constant 25 : i32
    return
  }
  func.func @transform_0(%arg0: i32) -> (i32, i32, i32, i32) {
    %c0_i32 = arith.constant 0 : i32
    %c0_i32_0 = arith.constant 0 : i32
    %c0_i32_1 = arith.constant 0 : i32
    %c0_i32_2 = arith.constant 0 : i32
    return %arg0, %c0_i32, %c0_i32_0, %c0_i32_1 : i32, i32, i32, i32
  }
  func.func @transform_1(%arg0: i32) -> (i32, i32) {
    %c0_i32 = arith.constant 0 : i32
    %c0_i32_0 = arith.constant 0 : i32
    %c0_i32_1 = arith.constant 0 : i32
    return %c0_i32, %c0_i32_0 : i32, i32
  }
  func.func @transform_2(%arg0: i32) -> (i32, i32, i32) {
    %c0_i32 = arith.constant 0 : i32
    %c0_i32_0 = arith.constant 0 : i32
    %c0_i32_1 = arith.constant 0 : i32
    return %arg0, %c0_i32, %c0_i32_0 : i32, i32, i32
  }
}

module attributes {stable_mosaic.version = 11 : i64} {
  func.func @_conv_stage_kernel(%arg0: i32, %arg1: memref<1x2x1600x256xbf16, #tpu.memory_space<vmem>>, %arg2: memref<256x968xbf16, #tpu.memory_space<vmem>>, %arg3: memref<1x768x128xbf16, #tpu.memory_space<vmem>>, %arg4: memref<968x128xbf16, #tpu.memory_space<vmem>>) attributes {dimension_semantics = [#tpu.dimension_semantics<parallel>], iteration_bounds = array<i64: 2>, scalar_prefetch = 0 : i64, scratch_operands = 1 : i64, tpu.core_type = #tpu.core_type<tc>, window_params = [{transform_indices = @transform_0, window_bounds = array<i64: 1, 2, 1600, 256>}, {pipeline_mode = #tpu.pipeline_mode<synchronous>, transform_indices = @transform_1, window_bounds = array<i64: 256, 968>}, {transform_indices = @transform_2, window_bounds = array<i64: 1, 768, 128>}]} {
    %cst = arith.constant 1.000000e+00 : bf16
    %0 = vector.broadcast %cst : bf16 to vector<8x128xbf16>
    %c960 = arith.constant 960 : index
    %c0 = arith.constant 0 : index
    %1 = vector.load %arg4[%c960, %c0] : memref<968x128xbf16, #tpu.memory_space<vmem>>, vector<8x128xbf16>
    tpu.vector_store %arg4[%c960, %c0], %0 {strides = array<i32>} : memref<968x128xbf16, #tpu.memory_space<vmem>>, vector<8x128xbf16>,
    %c0_i32 = arith.constant 0 : i32
    %c12_i32 = arith.constant 12 : i32
    %2 = arith.addi %c0_i32, %c12_i32 : i32
    %c1_i32 = arith.constant 1 : i32
    scf.for %arg5 = %c0_i32 to %2 step %c1_i32  : i32 {
      %c128_i32 = arith.constant 128 : i32
      %3 = arith.muli %arg5, %c128_i32 : i32
      %4 = tpu.assume_multiple %3, 8 : i32
      %c0_1 = arith.constant 0 : index
      %c0_2 = arith.constant 0 : index
      %5 = arith.index_cast %4 : i32 to index
      %c0_3 = arith.constant 0 : index
      %6 = vector.load %arg1[%c0_1, %c0_2, %5, %c0_3] : memref<1x2x1600x256xbf16, #tpu.memory_space<vmem>>, vector<1x1x160x128xbf16>
      %7 = vector.shape_cast %6 : vector<1x1x160x128xbf16> to vector<160x128xbf16>
      %c0_4 = arith.constant 0 : index
      %c0_5 = arith.constant 0 : index
      %8 = vector.load %arg4[%c0_4, %c0_5] : memref<968x128xbf16, #tpu.memory_space<vmem>>, vector<160x128xbf16>
      tpu.vector_store %arg4[%c0_4, %c0_5], %7 {strides = array<i32>} : memref<968x128xbf16, #tpu.memory_space<vmem>>, vector<160x128xbf16>,
      %c0_6 = arith.constant 0 : index
      %c1 = arith.constant 1 : index
      %9 = arith.index_cast %4 : i32 to index
      %c0_7 = arith.constant 0 : index
      %10 = vector.load %arg1[%c0_6, %c1, %9, %c0_7] : memref<1x2x1600x256xbf16, #tpu.memory_space<vmem>>, vector<1x1x160x128xbf16>
      %11 = vector.shape_cast %10 : vector<1x1x160x128xbf16> to vector<160x128xbf16>
      %c160 = arith.constant 160 : index
      %c0_8 = arith.constant 0 : index
      %12 = vector.load %arg4[%c160, %c0_8] : memref<968x128xbf16, #tpu.memory_space<vmem>>, vector<160x128xbf16>
      tpu.vector_store %arg4[%c160, %c0_8], %11 {strides = array<i32>} : memref<968x128xbf16, #tpu.memory_space<vmem>>, vector<160x128xbf16>,
      %c0_9 = arith.constant 0 : index
      %c0_10 = arith.constant 0 : index
      %13 = arith.index_cast %4 : i32 to index
      %c1_11 = arith.constant 1 : index
      %14 = vector.load %arg1[%c0_9, %c0_10, %13, %c1_11] : memref<1x2x1600x256xbf16, #tpu.memory_space<vmem>>, vector<1x1x160x128xbf16>
      %15 = vector.shape_cast %14 : vector<1x1x160x128xbf16> to vector<160x128xbf16>
      %c320 = arith.constant 320 : index
      %c0_12 = arith.constant 0 : index
      %16 = vector.load %arg4[%c320, %c0_12] : memref<968x128xbf16, #tpu.memory_space<vmem>>, vector<160x128xbf16>
      tpu.vector_store %arg4[%c320, %c0_12], %15 {strides = array<i32>} : memref<968x128xbf16, #tpu.memory_space<vmem>>, vector<160x128xbf16>,
      %c0_13 = arith.constant 0 : index
      %c1_14 = arith.constant 1 : index
      %17 = arith.index_cast %4 : i32 to index
      %c1_15 = arith.constant 1 : index
      %18 = vector.load %arg1[%c0_13, %c1_14, %17, %c1_15] : memref<1x2x1600x256xbf16, #tpu.memory_space<vmem>>, vector<1x1x160x128xbf16>
      %19 = vector.shape_cast %18 : vector<1x1x160x128xbf16> to vector<160x128xbf16>
      %c480 = arith.constant 480 : index
      %c0_16 = arith.constant 0 : index
      %20 = vector.load %arg4[%c480, %c0_16] : memref<968x128xbf16, #tpu.memory_space<vmem>>, vector<160x128xbf16>
      tpu.vector_store %arg4[%c480, %c0_16], %19 {strides = array<i32>} : memref<968x128xbf16, #tpu.memory_space<vmem>>, vector<160x128xbf16>,
      %c0_17 = arith.constant 0 : index
      %c0_18 = arith.constant 0 : index
      %21 = arith.index_cast %4 : i32 to index
      %c2 = arith.constant 2 : index
      %22 = vector.load %arg1[%c0_17, %c0_18, %21, %c2] : memref<1x2x1600x256xbf16, #tpu.memory_space<vmem>>, vector<1x1x160x128xbf16>
      %23 = vector.shape_cast %22 : vector<1x1x160x128xbf16> to vector<160x128xbf16>
      %c640 = arith.constant 640 : index
      %c0_19 = arith.constant 0 : index
      %24 = vector.load %arg4[%c640, %c0_19] : memref<968x128xbf16, #tpu.memory_space<vmem>>, vector<160x128xbf16>
      tpu.vector_store %arg4[%c640, %c0_19], %23 {strides = array<i32>} : memref<968x128xbf16, #tpu.memory_space<vmem>>, vector<160x128xbf16>,
      %c0_20 = arith.constant 0 : index
      %c1_21 = arith.constant 1 : index
      %25 = arith.index_cast %4 : i32 to index
      %c2_22 = arith.constant 2 : index
      %26 = vector.load %arg1[%c0_20, %c1_21, %25, %c2_22] : memref<1x2x1600x256xbf16, #tpu.memory_space<vmem>>, vector<1x1x160x128xbf16>
      %27 = vector.shape_cast %26 : vector<1x1x160x128xbf16> to vector<160x128xbf16>
      %c800 = arith.constant 800 : index
      %c0_23 = arith.constant 0 : index
      %28 = vector.load %arg4[%c800, %c0_23] : memref<968x128xbf16, #tpu.memory_space<vmem>>, vector<160x128xbf16>
      tpu.vector_store %arg4[%c800, %c0_23], %27 {strides = array<i32>} : memref<968x128xbf16, #tpu.memory_space<vmem>>, vector<160x128xbf16>,
      %c0_24 = arith.constant 0 : index
      %c0_25 = arith.constant 0 : index
      %29 = vector.load %arg2[%c0_24, %c0_25] : memref<256x968xbf16, #tpu.memory_space<vmem>>, vector<256x968xbf16>
      %c0_26 = arith.constant 0 : index
      %c0_27 = arith.constant 0 : index
      %30 = vector.load %arg4[%c0_26, %c0_27] : memref<968x128xbf16, #tpu.memory_space<vmem>>, vector<968x128xbf16>
      %cst_28 = arith.constant dense<0.000000e+00> : vector<256x128xf32>
      %31 = tpu.matmul %29, %30, %cst_28 {dimension_numbers = #tpu.dot_dimension_numbers<[1], [0], [0], [1], [0, 0, 1, 1], [], []>} : vector<256x968xbf16>, vector<968x128xbf16>, vector<256x128xf32> -> vector<256x128xf32>
      %32 = vector.extract_strided_slice %31 {offsets = [0, 0], sizes = [64, 128], strides = [1, 1]} : vector<256x128xf32> to vector<64x128xf32>
      %33 = vector.extract_strided_slice %31 {offsets = [64, 0], sizes = [64, 128], strides = [1, 1]} : vector<256x128xf32> to vector<64x128xf32>
      %34 = arith.maximumf %32, %33 : vector<64x128xf32>
      %35 = vector.extract_strided_slice %31 {offsets = [128, 0], sizes = [64, 128], strides = [1, 1]} : vector<256x128xf32> to vector<64x128xf32>
      %36 = vector.extract_strided_slice %31 {offsets = [192, 0], sizes = [64, 128], strides = [1, 1]} : vector<256x128xf32> to vector<64x128xf32>
      %37 = arith.maximumf %35, %36 : vector<64x128xf32>
      %38 = arith.maximumf %34, %37 : vector<64x128xf32>
      %cst_29 = arith.constant 0.00999999977 : f32
      %39 = vector.broadcast %cst_29 : f32 to vector<64x128xf32>
      %40 = arith.mulf %39, %38 : vector<64x128xf32>
      %41 = arith.maximumf %38, %40 : vector<64x128xf32>
      %42 = arith.truncf %41 : vector<64x128xf32> to vector<64x128xbf16>
      %c64_i32 = arith.constant 64 : i32
      %43 = arith.muli %arg5, %c64_i32 : i32
      %44 = tpu.assume_multiple %43, 8 : i32
      %c0_30 = arith.constant 0 : index
      %45 = arith.index_cast %44 : i32 to index
      %c0_31 = arith.constant 0 : index
      %46 = vector.load %arg3[%c0_30, %45, %c0_31] : memref<1x768x128xbf16, #tpu.memory_space<vmem>>, vector<1x64x128xbf16>
      %47 = vector.shape_cast %46 : vector<1x64x128xbf16> to vector<64x128xbf16>
      %48 = vector.shape_cast %42 : vector<64x128xbf16> to vector<1x64x128xbf16>
      tpu.vector_store %arg3[%c0_30, %45, %c0_31], %48 {strides = array<i32>} : memref<1x768x128xbf16, #tpu.memory_space<vmem>>, vector<1x64x128xbf16>,
    }
    %c12_i32_0 = arith.constant 12 : i32
    return
  }
  func.func @transform_0(%arg0: i32) -> (i32, i32, i32, i32) {
    %c0_i32 = arith.constant 0 : i32
    %c0_i32_0 = arith.constant 0 : i32
    %c0_i32_1 = arith.constant 0 : i32
    %c0_i32_2 = arith.constant 0 : i32
    return %arg0, %c0_i32, %c0_i32_0, %c0_i32_1 : i32, i32, i32, i32
  }
  func.func @transform_1(%arg0: i32) -> (i32, i32) {
    %c0_i32 = arith.constant 0 : i32
    %c0_i32_0 = arith.constant 0 : i32
    %c0_i32_1 = arith.constant 0 : i32
    return %c0_i32, %c0_i32_0 : i32, i32
  }
  func.func @transform_2(%arg0: i32) -> (i32, i32, i32) {
    %c0_i32 = arith.constant 0 : i32
    %c0_i32_0 = arith.constant 0 : i32
    %c0_i32_1 = arith.constant 0 : i32
    return %arg0, %c0_i32, %c0_i32_0 : i32, i32, i32
  }
}

module attributes {stable_mosaic.version = 11 : i64} {
  func.func @_conv_stage_kernel(%arg0: i32, %arg1: memref<1x2x784x256xbf16, #tpu.memory_space<vmem>>, %arg2: memref<288x1608xbf16, #tpu.memory_space<vmem>>, %arg3: memref<1x144x128xbf16, #tpu.memory_space<vmem>>, %arg4: memref<1608x128xbf16, #tpu.memory_space<vmem>>) attributes {dimension_semantics = [#tpu.dimension_semantics<parallel>], iteration_bounds = array<i64: 2>, scalar_prefetch = 0 : i64, scratch_operands = 1 : i64, tpu.core_type = #tpu.core_type<tc>, window_params = [{transform_indices = @transform_0, window_bounds = array<i64: 1, 2, 784, 256>}, {pipeline_mode = #tpu.pipeline_mode<synchronous>, transform_indices = @transform_1, window_bounds = array<i64: 288, 1608>}, {transform_indices = @transform_2, window_bounds = array<i64: 1, 144, 128>}]} {
    %cst = arith.constant 1.000000e+00 : bf16
    %0 = vector.broadcast %cst : bf16 to vector<8x128xbf16>
    %c1600 = arith.constant 1600 : index
    %c0 = arith.constant 0 : index
    %1 = vector.load %arg4[%c1600, %c0] : memref<1608x128xbf16, #tpu.memory_space<vmem>>, vector<8x128xbf16>
    tpu.vector_store %arg4[%c1600, %c0], %0 {strides = array<i32>} : memref<1608x128xbf16, #tpu.memory_space<vmem>>, vector<8x128xbf16>,
    %c0_i32 = arith.constant 0 : i32
    %c2_i32 = arith.constant 2 : i32
    %2 = arith.addi %c0_i32, %c2_i32 : i32
    %c1_i32 = arith.constant 1 : i32
    scf.for %arg5 = %c0_i32 to %2 step %c1_i32  : i32 {
      %c384_i32 = arith.constant 384 : i32
      %3 = arith.muli %arg5, %c384_i32 : i32
      %4 = tpu.assume_multiple %3, 8 : i32
      %c0_1 = arith.constant 0 : index
      %c0_2 = arith.constant 0 : index
      %5 = arith.index_cast %4 : i32 to index
      %c0_3 = arith.constant 0 : index
      %6 = vector.load %arg1[%c0_1, %c0_2, %5, %c0_3] : memref<1x2x784x256xbf16, #tpu.memory_space<vmem>>, vector<1x1x400x128xbf16>
      %7 = vector.shape_cast %6 : vector<1x1x400x128xbf16> to vector<400x128xbf16>
      %c0_4 = arith.constant 0 : index
      %c0_5 = arith.constant 0 : index
      %8 = vector.load %arg4[%c0_4, %c0_5] : memref<1608x128xbf16, #tpu.memory_space<vmem>>, vector<400x128xbf16>
      tpu.vector_store %arg4[%c0_4, %c0_5], %7 {strides = array<i32>} : memref<1608x128xbf16, #tpu.memory_space<vmem>>, vector<400x128xbf16>,
      %c0_6 = arith.constant 0 : index
      %c1 = arith.constant 1 : index
      %9 = arith.index_cast %4 : i32 to index
      %c0_7 = arith.constant 0 : index
      %10 = vector.load %arg1[%c0_6, %c1, %9, %c0_7] : memref<1x2x784x256xbf16, #tpu.memory_space<vmem>>, vector<1x1x400x128xbf16>
      %11 = vector.shape_cast %10 : vector<1x1x400x128xbf16> to vector<400x128xbf16>
      %c400 = arith.constant 400 : index
      %c0_8 = arith.constant 0 : index
      %12 = vector.load %arg4[%c400, %c0_8] : memref<1608x128xbf16, #tpu.memory_space<vmem>>, vector<400x128xbf16>
      tpu.vector_store %arg4[%c400, %c0_8], %11 {strides = array<i32>} : memref<1608x128xbf16, #tpu.memory_space<vmem>>, vector<400x128xbf16>,
      %c0_9 = arith.constant 0 : index
      %c0_10 = arith.constant 0 : index
      %13 = arith.index_cast %4 : i32 to index
      %c1_11 = arith.constant 1 : index
      %14 = vector.load %arg1[%c0_9, %c0_10, %13, %c1_11] : memref<1x2x784x256xbf16, #tpu.memory_space<vmem>>, vector<1x1x400x128xbf16>
      %15 = vector.shape_cast %14 : vector<1x1x400x128xbf16> to vector<400x128xbf16>
      %c800 = arith.constant 800 : index
      %c0_12 = arith.constant 0 : index
      %16 = vector.load %arg4[%c800, %c0_12] : memref<1608x128xbf16, #tpu.memory_space<vmem>>, vector<400x128xbf16>
      tpu.vector_store %arg4[%c800, %c0_12], %15 {strides = array<i32>} : memref<1608x128xbf16, #tpu.memory_space<vmem>>, vector<400x128xbf16>,
      %c0_13 = arith.constant 0 : index
      %c1_14 = arith.constant 1 : index
      %17 = arith.index_cast %4 : i32 to index
      %c1_15 = arith.constant 1 : index
      %18 = vector.load %arg1[%c0_13, %c1_14, %17, %c1_15] : memref<1x2x784x256xbf16, #tpu.memory_space<vmem>>, vector<1x1x400x128xbf16>
      %19 = vector.shape_cast %18 : vector<1x1x400x128xbf16> to vector<400x128xbf16>
      %c1200 = arith.constant 1200 : index
      %c0_16 = arith.constant 0 : index
      %20 = vector.load %arg4[%c1200, %c0_16] : memref<1608x128xbf16, #tpu.memory_space<vmem>>, vector<400x128xbf16>
      tpu.vector_store %arg4[%c1200, %c0_16], %19 {strides = array<i32>} : memref<1608x128xbf16, #tpu.memory_space<vmem>>, vector<400x128xbf16>,
      %c0_17 = arith.constant 0 : index
      %c0_18 = arith.constant 0 : index
      %21 = vector.load %arg2[%c0_17, %c0_18] : memref<288x1608xbf16, #tpu.memory_space<vmem>>, vector<288x1608xbf16>
      %c0_19 = arith.constant 0 : index
      %c0_20 = arith.constant 0 : index
      %22 = vector.load %arg4[%c0_19, %c0_20] : memref<1608x128xbf16, #tpu.memory_space<vmem>>, vector<1608x128xbf16>
      %cst_21 = arith.constant dense<0.000000e+00> : vector<288x128xf32>
      %23 = tpu.matmul %21, %22, %cst_21 {dimension_numbers = #tpu.dot_dimension_numbers<[1], [0], [0], [1], [0, 0, 1, 1], [], []>} : vector<288x1608xbf16>, vector<1608x128xbf16>, vector<288x128xf32> -> vector<288x128xf32>
      %24 = vector.extract_strided_slice %23 {offsets = [0, 0], sizes = [72, 128], strides = [1, 1]} : vector<288x128xf32> to vector<72x128xf32>
      %25 = vector.extract_strided_slice %23 {offsets = [72, 0], sizes = [72, 128], strides = [1, 1]} : vector<288x128xf32> to vector<72x128xf32>
      %26 = arith.maximumf %24, %25 : vector<72x128xf32>
      %27 = vector.extract_strided_slice %23 {offsets = [144, 0], sizes = [72, 128], strides = [1, 1]} : vector<288x128xf32> to vector<72x128xf32>
      %28 = vector.extract_strided_slice %23 {offsets = [216, 0], sizes = [72, 128], strides = [1, 1]} : vector<288x128xf32> to vector<72x128xf32>
      %29 = arith.maximumf %27, %28 : vector<72x128xf32>
      %30 = arith.maximumf %26, %29 : vector<72x128xf32>
      %cst_22 = arith.constant 0.00999999977 : f32
      %31 = vector.broadcast %cst_22 : f32 to vector<72x128xf32>
      %32 = arith.mulf %31, %30 : vector<72x128xf32>
      %33 = arith.maximumf %30, %32 : vector<72x128xf32>
      %34 = arith.truncf %33 : vector<72x128xf32> to vector<72x128xbf16>
      %c72_i32 = arith.constant 72 : i32
      %35 = arith.muli %arg5, %c72_i32 : i32
      %36 = tpu.assume_multiple %35, 8 : i32
      %c0_23 = arith.constant 0 : index
      %37 = arith.index_cast %36 : i32 to index
      %c0_24 = arith.constant 0 : index
      %38 = vector.load %arg3[%c0_23, %37, %c0_24] : memref<1x144x128xbf16, #tpu.memory_space<vmem>>, vector<1x72x128xbf16>
      %39 = vector.shape_cast %38 : vector<1x72x128xbf16> to vector<72x128xbf16>
      %40 = vector.shape_cast %34 : vector<72x128xbf16> to vector<1x72x128xbf16>
      tpu.vector_store %arg3[%c0_23, %37, %c0_24], %40 {strides = array<i32>} : memref<1x144x128xbf16, #tpu.memory_space<vmem>>, vector<1x72x128xbf16>,
    }
    %c2_i32_0 = arith.constant 2 : i32
    return
  }
  func.func @transform_0(%arg0: i32) -> (i32, i32, i32, i32) {
    %c0_i32 = arith.constant 0 : i32
    %c0_i32_0 = arith.constant 0 : i32
    %c0_i32_1 = arith.constant 0 : i32
    %c0_i32_2 = arith.constant 0 : i32
    return %arg0, %c0_i32, %c0_i32_0, %c0_i32_1 : i32, i32, i32, i32
  }
  func.func @transform_1(%arg0: i32) -> (i32, i32) {
    %c0_i32 = arith.constant 0 : i32
    %c0_i32_0 = arith.constant 0 : i32
    %c0_i32_1 = arith.constant 0 : i32
    return %c0_i32, %c0_i32_0 : i32, i32
  }
  func.func @transform_2(%arg0: i32) -> (i32, i32, i32) {
    %c0_i32 = arith.constant 0 : i32
    %c0_i32_0 = arith.constant 0 : i32
    %c0_i32_1 = arith.constant 0 : i32
    return %arg0, %c0_i32, %c0_i32_0 : i32, i32, i32
  }
}

</mosaic_0001>

<bundles_post_ra>
// kernel: forward.3
= control target key start
LH: loop header
LB: loop body
LE: loop exit
PB: predicated region body
PF: predicated region fallthrough
CT: control target
= control target key end

     0   :  { %s3227_s9 = smov 0   ;;  %s4335_s0 = inlined_call_operand.vmem [shape: bf16[2,2,1224,384], index: 0, kind: input, shape index: {}]   ;;  %s4336_s1 = inlined_call_operand.vmem [shape: bf16[256,584], index: 1, kind: input, shape index: {}]   ;;  %s4337_s2 = inlined_call_operand.vmem [shape: bf16[2,1600,256], index: 2, kind: output, shape index: {}]  }
   0x1 LB: > { %s2737_s10 = sadd.s32 4294967295, %s3201_s9   ;;  %p2741_p0 = scmp.ge.s32.totalorder %s3201_s9, 1  ;;  %s3201_s9 = sphi %s3227_s9, %s12_s9  }
   0x2   : > { %p112_p1 = scmp.lt.s32.totalorder %s3201_s9, 3 }
   0x4   : > { %p113_p2 = pnand %p2741_p0, %p112_p1 }
   0x5   : > { %p134_p3 = scmp.lt.s32.totalorder (!%p113_p2), %s2737_s10, 1  ;;  %s3245_s19 = smov (!%p113_p2), 0  }
   0x6   : > { %116 = sbr.rel (%p113_p2) target bundleno = 692 (0x2b4), region = 28 }
   0xb   : > { %v3207_v0 = vmov 1065369472   ;;  %s4478_s10 = smov (!%p134_p3, %s2737_s10), 1 }
   0xc   : > { %146 = vst [vmem:[#allocation2 + $0xc0] sm:$0xff] %v3207_v0  ;;  %s3035_s11 = smul.u32 3672, %s4478_s10 }
   0xd   : > { %s3036_s12 = smul.u32 1600, %s4478_s10 }
   0xe   : > { %s3238_s15 = scalar_lea.vmem %s4335_s0, %s3035_s11 }
   0xf   : > { %s3243_s18 = scalar_lea.vmem %s4337_s2, %s3036_s12 }
  0x10 LB: >> { %s153_s20 = smul.u32 48, %s3205_s19  ;;  %s3208_s24 = smov 127   ;;  %v3078_v49 = vld [vmem:[%s4336_s1 + $0x144] ss:$20 sps:$4 sm:$0xff]   ;;  %vm288_vm0 = vcmask 1043456   ;;  %vm290_vm1 = vcmask 1039360   ;;  %s3205_s19 = sphi %s3245_s19, %s152_s19  }
  0x11   : >> { %2060 = vmatprep.mubr.bf16.mxu1 %v3078_v49  ;;  %s3209_s27 = smov 126   ;;  %s3210_s28 = smov 125   ;;  %vm543_vm2 = vcmask 1031168   ;;  %vm796_vm3 = vcmask 1022976   ;;  %vm1892_vm4 = vcmask 588800  }
  0x12   : >> { %s154_s21 = sshra.s32 %s153_s20, 3 }
  0x13   : >> { %s2993_s22 = smul.u32 12, %s154_s21  ;;  %s2980_s21 = sshll.u32 %s3205_s19, 6 }
  0x14   : >> { %s152_s19 = sadd.s32 1, %s3205_s19  }
  0x15   : >> { %s3252_s23 = scalar_lea.vmem %s3238_s15, %s2993_s22  ;;  %s4251_s22 = scalar_lea.vmem %s3243_s18, %s2980_s21 }
  0x16   : >> { %v2763_v1 = vld [vmem:[%s3252_s23 + $0x75c] sm:$0xff]  ;;  %v2761_v2 = vld [vmem:[%s3252_s23 + $0x750] sm:$0xff]  ;;  %v2764_v3 = vld [vmem:[%s3252_s23 + $0x764] sm:$0xf]  ;;  %p149_p4 = scmp.ge.s32.totalorder %s152_s19, 25  }
  0x17   : >> { %378 = vrot.lane.b32.xlu1 %v2763_v1, %s3208_s24  ;;  %374 = vrot.lane.b32.xlu0 %v2761_v2, %s3208_s24  ;;  %192 = vst [vmem:[#allocation2 + $0x108] sm:$0xff] %v2761_v2  ;;  %v2762_v4 = vld [vmem:[%s3252_s23 + $0x758] sm:$0xf]  ;;  %v3264_v6 = vld [vmem:[%s3252_s23 + $0x744] sm:$0xff]  ;;  %v2902_v25 = vcombine.high %v2761_v2, %v2763_v1  ;;  %v2901_v28 = vcombine.low %v2761_v2, %v2763_v1 }
  0x18   : >> { %v3261_v5 = vld [vmem:[%s3252_s23 + $0x738] sm:$0xff]  ;;  %v3267_v7 = vld [vmem:[%s3252_s23 + $0x60] sm:$0xff]  ;;  %v3270_v8 = vld [vmem:[%s3252_s23 + $0x72c] sm:$0xff] }
  0x19   : >> { %v3273_v9 = vld [vmem:[%s3252_s23 + $0x48] sm:$0xff]  ;;  %v3278_v10 = vld [vmem:[%s3252_s23 + $0x54] sm:$0xff]  ;;  %v2758_v11 = vld [vmem:[%s3252_s23 + $0x740] sm:$0xf]  ;;  %v2900_v30 = vcombine.high %v3261_v5, %v3264_v6  ;;  %v2899_v31 = vcombine.low %v3261_v5, %v3264_v6  ;;  %v2898_v33 = vcombine.high %v3267_v7, %v3270_v8  ;;  %v2897_v34 = vcombine.low %v3267_v7, %v3270_v8 }
  0x1a   : >> { %v3282_v12 = vld [vmem:[%s3252_s23 + $0x30] sm:$0xff]  ;;  %v3285_v13 = vld [vmem:[%s3252_s23 + $0x3c] sm:$0xff]  ;;  %v3291_v15 = vld [vmem:[%s3252_s23 + $0x24] sm:$0xff]  ;;  %v2896_v36 = vcombine.high %v3273_v9, %v3278_v10  ;;  %v2895_v37 = vcombine.low %v3273_v9, %v3278_v10 }
  0x1b   : >> { %380 = vrot.lane.b32.xlu1 %v2764_v3, %s3208_s24  ;;  %376 = vrot.lane.b32.xlu0 %v2762_v4, %s3208_s24  ;;  %v3288_v14 = vld [vmem:[%s3252_s23 + $0x18] sm:$0xff]  ;;  %v3297_v16 = vld [vmem:[%s3252_s23] sm:$0xff]  ;;  %v2894_v39 = vcombine.high %v3282_v12, %v3285_v13  ;;  %v2893_v40 = vcombine.low %v3282_v12, %v3285_v13 }
  0x1c   : >> { %v2760_v17 = vld [vmem:[%s3252_s23 + $0x74c] sm:$0xf]  ;;  %v215_v19 = vld [vmem:[%s3252_s23 + $0x68] sm:$0xf]  ;;  %v3311_v21 = vld [vmem:[%s3252_s23 + $0x774] sm:$0xff]  ;;  %v2892_v42 = vcombine.high %v3288_v14, %v3291_v15  ;;  %v2891_v43 = vcombine.low %v3288_v14, %v3291_v15 }
  0x1d   : >> { %v3301_v18 = vld [vmem:[%s3252_s23 + $0xc] sm:$0xff]  ;;  %v3314_v22 = vld [vmem:[%s3252_s23 + $0x780] sm:$0xff]  ;;  %v2756_v27 = vld [vmem:[%s3252_s23 + $0x734] sm:$0xf] }
  0x1e   : >> { %v3308_v20 = vld [vmem:[%s3252_s23 + $0x768] sm:$0xff]  ;;  %v211_v29 = vld [vmem:[%s3252_s23 + $0x50] sm:$0xf]  ;;  %v213_v32 = vld [vmem:[%s3252_s23 + $0x5c] sm:$0xf]  ;;  %v2890_v45 = vcombine.high %v3297_v16, %v3301_v18  ;;  %v2889_v46 = vcombine.low %v3297_v16, %v3301_v18 }
  0x1f   : >> { %368 = vrot.lane.b32.xlu1 %v2758_v11, %s3208_s24  ;;  %366 = vrot.lane.b32.xlu0 %v3261_v5, %s3208_s24  ;;  %v2904_v23 = vcombine.high %v3308_v20, %v3311_v21  ;;  %v2903_v24 = vcombine.low %v3308_v20, %v3311_v21  ;;  %v3321_v26 = vld [vmem:[%s3252_s23 + $0x78c] sm:$0xff]  ;;  %v207_v35 = vld [vmem:[%s3252_s23 + $0x38] sm:$0xf] }
  0x20   : >> { %v209_v38 = vld [vmem:[%s3252_s23 + $0x44] sm:$0xf]  ;;  %v203_v41 = vld [vmem:[%s3252_s23 + $0x20] sm:$0xf]  ;;  %v205_v44 = vld [vmem:[%s3252_s23 + $0x2c] sm:$0xf] }
  0x21   : >> { %1948 = vmatprep.subr.bf16.mxu0 %v2904_v23  ;;  %3003 = vmatprep.subr.bf16.mxu1 %v2904_v23  ;;  %v199_v47 = vld [vmem:[%s3252_s23 + $0x8] sm:$0xf]  ;;  %v201_v48 = vld [vmem:[%s3252_s23 + $0x14] sm:$0xf]  ;;  %v2776_v50 = vld [vmem:[%s3252_s23 + $0x740] sm:$0xf] }
  0x22   : >> { %1949 = vmatpush1.bf16.msra.mxu0 %v2903_v24  ;;  %3019 = vmatpush1.bf16.msra.mxu1 %v2903_v24  ;;  %v2778_v51 = vld [vmem:[%s3252_s23 + $0x74c] sm:$0xf]  ;;  %v469_v52 = vld [vmem:[%s3252_s23 + $0x68] sm:$0xf]  ;;  %v2774_v53 = vld [vmem:[%s3252_s23 + $0x734] sm:$0xf] }
  0x23   : >> { %372 = vrot.lane.b32.xlu1 %v2760_v17, %s3208_s24  ;;  %370 = vrot.lane.b32.xlu0 %v3264_v6, %s3208_s24  ;;  %v465_v54 = vld [vmem:[%s3252_s23 + $0x50] sm:$0xf]  ;;  %v467_v55 = vld [vmem:[%s3252_s23 + $0x5c] sm:$0xf] }
  0x24   : >> { %1950 = vmatprep.subr.bf16.mxu0 %v2902_v25  ;;  %3004 = vmatprep.subr.bf16.mxu1 %v2902_v25  ;;  %v461_v56 = vld [vmem:[%s3252_s23 + $0x38] sm:$0xf]  ;;  %v463_v57 = vld [vmem:[%s3252_s23 + $0x44] sm:$0xf]  ;;  %v457_v58 = vld [vmem:[%s3252_s23 + $0x20] sm:$0xf] }
  0x25   : >> { %v459_v59 = vld [vmem:[%s3252_s23 + $0x2c] sm:$0xf]  ;;  %v453_v60 = vld [vmem:[%s3252_s23 + $0x8] sm:$0xf]  ;;  %v455_v61 = vld [vmem:[%s3252_s23 + $0x14] sm:$0xf] }
  0x26   : >> { %1951 = vmatpush1.bf16.msra.mxu0 %v2901_v28  ;;  %3020 = vmatpush1.bf16.msra.mxu1 %v2901_v28  ;;  %v2770_v62 = vld [vmem:[%s3252_s23 + $0x788] sm:$0xf]  ;;  %v2772_v63 = vld [vmem:[%s3252_s23 + $0x794] sm:$0xf]  ;;  %v2766_v0 = vld [vmem:[%s3252_s23 + $0x770] sm:$0xf] }
  0x27   : >> { %268 = vrot.lane.b32.xlu1 %v215_v19, %s3208_s24  ;;  %266 = vrot.lane.b32.xlu0 %v3267_v7, %s3208_s24  ;;  %v2768_v1 = vld [vmem:[%s3252_s23 + $0x77c] sm:$0xf]  ;;  %v722_v4 = vld [vmem:[%s3252_s23 + $0x68] sm:$0xf] }
  0x28   : >> { %1952 = vmatprep.subr.bf16.mxu0 %v2900_v30  ;;  %3005 = vmatprep.subr.bf16.mxu1 %v2900_v30 }
  0x2a   : >> { %1953 = vmatpush1.bf16.msra.mxu0 %v2899_v31  ;;  %3021 = vmatpush1.bf16.msra.mxu1 %v2899_v31 }
  0x2b   : >> { %364 = vrot.lane.b32.xlu1 %v2756_v27, %s3208_s24  ;;  %362 = vrot.lane.b32.xlu0 %v3270_v8, %s3208_s24  ;;  %v2792_v27 = vld [vmem:[%s3252_s23 + $0x734] sm:$0xf] }
  0x2c   : >> { %1954 = vmatprep.subr.bf16.mxu0 %v2898_v33  ;;  %3006 = vmatprep.subr.bf16.mxu1 %v2898_v33 }
  0x2e   : >> { %1955 = vmatpush1.bf16.msra.mxu0 %v2897_v34  ;;  %3022 = vmatpush1.bf16.msra.mxu1 %v2897_v34 }
  0x2f   : >> { %260 = vrot.lane.b32.xlu1 %v211_v29, %s3208_s24  ;;  %258 = vrot.lane.b32.xlu0 %v3273_v9, %s3208_s24 }
  0x30   : >> { %1956 = vmatprep.subr.bf16.mxu0 %v2896_v36  ;;  %3007 = vmatprep.subr.bf16.mxu1 %v2896_v36  ;;  %v718_v36 = vld [vmem:[%s3252_s23 + $0x50] sm:$0xf] }
  0x32   : >> { %1957 = vmatpush1.bf16.msra.mxu0 %v2895_v37  ;;  %3023 = vmatpush1.bf16.msra.mxu1 %v2895_v37 }
  0x33   : >> { %264 = vrot.lane.b32.xlu1 %v213_v32, %s3208_s24  ;;  %262 = vrot.lane.b32.xlu0 %v3278_v10, %s3208_s24 }
  0x34   : >> { %1958 = vmatprep.subr.bf16.mxu0 %v2894_v39  ;;  %3008 = vmatprep.subr.bf16.mxu1 %v2894_v39 }
  0x36   : >> { %1959 = vmatpush1.bf16.msra.mxu0 %v2893_v40  ;;  %3024 = vmatpush1.bf16.msra.mxu1 %v2893_v40 }
  0x37   : >> { %252 = vrot.lane.b32.xlu1 %v207_v35, %s3208_s24  ;;  %250 = vrot.lane.b32.xlu0 %v3282_v12, %s3208_s24 }
  0x38   : >> { %1960 = vmatprep.subr.bf16.mxu0 %v2892_v42  ;;  %3009 = vmatprep.subr.bf16.mxu1 %v2892_v42  ;;  %v720_v42 = vld [vmem:[%s3252_s23 + $0x5c] sm:$0xf] }
  0x3a   : >> { %1961 = vmatpush1.bf16.msra.mxu0 %v2891_v43  ;;  %3025 = vmatpush1.bf16.msra.mxu1 %v2891_v43 }
  0x3b   : >> { %256 = vrot.lane.b32.xlu1 %v209_v38, %s3208_s24  ;;  %254 = vrot.lane.b32.xlu0 %v3285_v13, %s3208_s24 }
  0x3c   : >> { %1962 = vmatprep.subr.bf16.mxu0 %v2890_v45  ;;  %3010 = vmatprep.subr.bf16.mxu1 %v2890_v45 }
  0x3e   : >> { %1963 = vmatpush1.bf16.msra.mxu0 %v2889_v46  ;;  %3026 = vmatpush1.bf16.msra.mxu1 %v2889_v46 }
  0x3f   : >> { %244 = vrot.lane.b32.xlu1 %v203_v41, %s3208_s24  ;;  %242 = vrot.lane.b32.xlu0 %v3288_v14, %s3208_s24 }
  0x43   : >> { %248 = vrot.lane.b32.xlu1 %v205_v44, %s3208_s24  ;;  %246 = vrot.lane.b32.xlu0 %v3291_v15, %s3208_s24 }
  0x47   : >> { %236 = vrot.lane.b32.xlu1 %v199_v47, %s3208_s24  ;;  %234 = vrot.lane.b32.xlu0 %v3297_v16, %s3208_s24 }
  0x4b   : >> { %240 = vrot.lane.b32.xlu1 %v201_v48, %s3208_s24  ;;  %238 = vrot.lane.b32.xlu0 %v3301_v18, %s3208_s24 }
  0x4f   : >> { %621 = vrot.lane.b32.xlu1 %v2776_v50, %s3209_s27  ;;  %619 = vrot.lane.b32.xlu0 %v3261_v5, %s3209_s27 }
  0x53   : >> { %625 = vrot.lane.b32.xlu1 %v2778_v51, %s3209_s27  ;;  %623 = vrot.lane.b32.xlu0 %v3264_v6, %s3209_s27 }
  0x57   : >> { %522 = vrot.lane.b32.xlu1 %v469_v52, %s3209_s27  ;;  %520 = vrot.lane.b32.xlu0 %v3267_v7, %s3209_s27 }
  0x5b   : >> { %617 = vrot.lane.b32.xlu1 %v2774_v53, %s3209_s27  ;;  %615 = vrot.lane.b32.xlu0 %v3270_v8, %s3209_s27 }
  0x5f   : >> { %514 = vrot.lane.b32.xlu1 %v465_v54, %s3209_s27  ;;  %512 = vrot.lane.b32.xlu0 %v3273_v9, %s3209_s27 }
  0x63   : >> { %518 = vrot.lane.b32.xlu1 %v467_v55, %s3209_s27  ;;  %516 = vrot.lane.b32.xlu0 %v3278_v10, %s3209_s27 }
  0x67   : >> { %506 = vrot.lane.b32.xlu1 %v461_v56, %s3209_s27  ;;  %504 = vrot.lane.b32.xlu0 %v3282_v12, %s3209_s27 }
  0x6b   : >> { %510 = vrot.lane.b32.xlu1 %v463_v57, %s3209_s27  ;;  %508 = vrot.lane.b32.xlu0 %v3285_v13, %s3209_s27  ;;  %v716_v57 = vld [vmem:[%s3252_s23 + $0x44] sm:$0xf] }
  0x6f   : >> { %498 = vrot.lane.b32.xlu1 %v457_v58, %s3209_s27  ;;  %496 = vrot.lane.b32.xlu0 %v3288_v14, %s3209_s27 }
  0x73   : >> { %502 = vrot.lane.b32.xlu1 %v459_v59, %s3209_s27  ;;  %500 = vrot.lane.b32.xlu0 %v3291_v15, %s3209_s27 }
  0x77   : >> { %490 = vrot.lane.b32.xlu1 %v453_v60, %s3209_s27  ;;  %488 = vrot.lane.b32.xlu0 %v3297_v16, %s3209_s27 }
  0x7b   : >> { %494 = vrot.lane.b32.xlu1 %v455_v61, %s3209_s27  ;;  %492 = vrot.lane.b32.xlu0 %v3301_v18, %s3209_s27 }
  0x7f   : >> { %392 = vrot.lane.b32.xlu1 %v2770_v62, %s3208_s24  ;;  %390 = vrot.lane.b32.xlu0 %v3314_v22, %s3208_s24 }
  0x83   : >> { %396 = vrot.lane.b32.xlu1 %v2772_v63, %s3208_s24  ;;  %394 = vrot.lane.b32.xlu0 %v3321_v26, %s3208_s24 }
  0x87   : >> { %384 = vrot.lane.b32.xlu1 %v2766_v0, %s3208_s24  ;;  %382 = vrot.lane.b32.xlu0 %v3308_v20, %s3208_s24 }
  0x89   : >> { %v379_v2 = vpop.permute.xlu1 %378  ;;  %v375_v3 = vpop.permute.xlu0 %374 }
  0x8a   : >> { %v406_v11 = vrot.slane %v379_v2, 4  ;;  %v404_v17 = vrot.slane %v375_v3, 4 }
  0x8b   : >> { %388 = vrot.lane.b32.xlu1 %v2768_v1, %s3208_s24  ;;  %386 = vrot.lane.b32.xlu0 %v3311_v21, %s3208_s24  ;;  %v710_v1 = vld [vmem:[%s3252_s23 + $0x20] sm:$0xf] }
  0x8d   : >> { %v381_v5 = vpop.permute.xlu1 %380  ;;  %v377_v6 = vpop.permute.xlu0 %376 }
  0x8e   : >> { %v407_v19 = vrot.slane %v381_v5, 4  ;;  %v405_v23 = vrot.slane %v377_v6, 4 }
  0x8f   : >> { %775 = vrot.lane.b32.xlu1 %v722_v4, %s3210_s28  ;;  %773 = vrot.lane.b32.xlu0 %v3267_v7, %s3210_s28 }
  0x90   : >> { %v424_v24 = vsel %vm288_vm0, %v406_v11, %v407_v19  ;;  %v422_v25 = vsel %vm288_vm0, %v404_v17, %v405_v23  ;;  %v712_v11 = vld [vmem:[%s3252_s23 + $0x2c] sm:$0xf] }
  0x91   : >> { %v425_v28 = vsel %vm290_vm1, %v379_v2, %v424_v24  ;;  %v423_v29 = vsel %vm290_vm1, %v375_v3, %v422_v25  ;;  %v369_v30 = vpop.permute.xlu1 %368  ;;  %v367_v31 = vpop.permute.xlu0 %366 }
  0x92   : >> { %v401_v32 = vrot.slane %v369_v30, 4  ;;  %v400_v33 = vrot.slane %v367_v31, 4  ;;  %v2920_v34 = vcombine.high %v423_v29, %v425_v28  ;;  %v2919_v35 = vcombine.low %v423_v29, %v425_v28 }
  0x93   : >> { %870 = vrot.lane.b32.xlu1 %v2792_v27, %s3210_s28  ;;  %868 = vrot.lane.b32.xlu0 %v3270_v8, %s3210_s28 }
  0x94   : >> { %v418_v7 = vsel %vm288_vm0, %v400_v33, %v401_v32  ;;  %1964 = vmatprep.subr.bf16.mxu0 %v2920_v34  ;;  %3011 = vmatprep.subr.bf16.mxu1 %v2920_v34 }
  0x95   : >> { %v419_v37 = vsel %vm290_vm1, %v367_v31, %v418_v7  ;;  %v373_v38 = vpop.permute.xlu1 %372  ;;  %v371_v39 = vpop.permute.xlu0 %370  ;;  %1965 = vmatpush2.bf16.msra.mxu0 %v2919_v35  ;;  %3027 = vmatpush2.bf16.msra.mxu1 %v2919_v35  ;;  %v708_v35 = vld [vmem:[%s3252_s23 + $0x14] sm:$0xf] }
  0x96   : >> { %v403_v40 = vrot.slane %v373_v38, 4  ;;  %v402_v41 = vrot.slane %v371_v39, 4 }
  0x97   : >> { %767 = vrot.lane.b32.xlu1 %v718_v36, %s3210_s28  ;;  %765 = vrot.lane.b32.xlu0 %v3273_v9, %s3210_s28  ;;  %v714_v9 = vld [vmem:[%s3252_s23 + $0x38] sm:$0xf] }
  0x98   : >> { %v420_v8 = vsel %vm288_vm0, %v402_v41, %v403_v40 }
  0x99   : >> { %v421_v43 = vsel %vm290_vm1, %v371_v39, %v420_v8  ;;  %v269_v44 = vpop.permute.xlu1 %268  ;;  %v267_v45 = vpop.permute.xlu0 %266 }
  0x9a   : >> { %v287_v46 = vrot.slane %v269_v44, 4  ;;  %v286_v47 = vrot.slane %v267_v45, 4  ;;  %v2918_v48 = vcombine.high %v419_v37, %v421_v43  ;;  %v2917_v49 = vcombine.low %v419_v37, %v421_v43 }
  0x9b   : >> { %771 = vrot.lane.b32.xlu1 %v720_v42, %s3210_s28  ;;  %769 = vrot.lane.b32.xlu0 %v3278_v10, %s3210_s28  ;;  %v3081_v10 = vld [vmem:[%s4336_s1 + $0x4] ss:$20 sps:$4 sm:$0xff]  }
  0x9c   : >> { %v306_v50 = vsel %vm288_vm0, %v286_v47, %v287_v46  ;;  %1966 = vmatprep.subr.bf16.mxu0 %v2918_v48  ;;  %3012 = vmatprep.subr.bf16.mxu1 %v2918_v48  ;;  %v2808_v47 = vld [vmem:[%s3252_s23 + $0x794] sm:$0xf] }
  0x9d   : >> { %v307_v51 = vsel %vm290_vm1, %v267_v45, %v306_v50  ;;  %v365_v52 = vpop.permute.xlu1 %364  ;;  %v363_v53 = vpop.permute.xlu0 %362  ;;  %1967 = vmatpush2.bf16.msra.mxu0 %v2917_v49  ;;  %3028 = vmatpush2.bf16.msra.mxu1 %v2917_v49 }
  0x9e   : >> { %v399_v54 = vrot.slane %v365_v52, 4  ;;  %v398_v55 = vrot.slane %v363_v53, 4  ;;  %1980 = vmatprep.mubr.bf16.mxu0 %v3081_v10 }
  0x9f   : >> { %759 = vrot.lane.b32.xlu1 %v714_v9, %s3210_s28  ;;  %757 = vrot.lane.b32.xlu0 %v3282_v12, %s3210_s28 }
  0xa0   : >> { %v416_v56 = vsel %vm288_vm0, %v398_v55, %v399_v54  ;;  %v2788_v55 = vld [vmem:[%s3252_s23 + $0x788] sm:$0xf] }
  0xa1   : >> { %v417_v58 = vsel %vm290_vm1, %v363_v53, %v416_v56  ;;  %v261_v59 = vpop.permute.xlu1 %260  ;;  %v259_v60 = vpop.permute.xlu0 %258 }
  0xa2   : >> { %v283_v61 = vrot.slane %v261_v59, 4  ;;  %v282_v62 = vrot.slane %v259_v60, 4  ;;  %v2916_v63 = vcombine.high %v307_v51, %v417_v58  ;;  %v2915_v0 = vcombine.low %v307_v51, %v417_v58 }
  0xa3   : >> { %763 = vrot.lane.b32.xlu1 %v716_v57, %s3210_s28  ;;  %761 = vrot.lane.b32.xlu0 %v3285_v13, %s3210_s28 }
  0xa4   : >> { %v302_v12 = vsel %vm288_vm0, %v282_v62, %v283_v61  ;;  %1968 = vmatprep.subr.bf16.mxu0 %v2916_v63  ;;  %3013 = vmatprep.subr.bf16.mxu1 %v2916_v63  ;;  %v2790_v61 = vld [vmem:[%s3252_s23 + $0x794] sm:$0xf] }
  0xa5   : >> { %v303_v2 = vsel %vm290_vm1, %v259_v60, %v302_v12  ;;  %v265_v3 = vpop.permute.xlu1 %264  ;;  %v263_v4 = vpop.permute.xlu0 %262  ;;  %1969 = vmatpush2.bf16.msra.mxu0 %v2915_v0  ;;  %3029 = vmatpush2.bf16.msra.mxu1 %v2915_v0  ;;  %v2906_v12 = vcombine.high %v3314_v22, %v3321_v26 }
  0xa6   : >> { %v285_v5 = vrot.slane %v265_v3, 4  ;;  %v284_v6 = vrot.slane %v263_v4, 4 }
  0xa7   : >> { %751 = vrot.lane.b32.xlu1 %v710_v1, %s3210_s28  ;;  %749 = vrot.lane.b32.xlu0 %v3288_v14, %s3210_s28  ;;  %v706_v14 = vld [vmem:[%s3252_s23 + $0x8] sm:$0xf] }
  0xa8   : >> { %v304_v13 = vsel %vm288_vm0, %v284_v6, %v285_v5  ;;  %v1126_v5 = vld [vmem:[#allocation2 + $0xc0] sm:$0xff] }
  0xa9   : >> { %v305_v17 = vsel %vm290_vm1, %v263_v4, %v304_v13  ;;  %v253_v19 = vpop.permute.xlu1 %252  ;;  %v251_v23 = vpop.permute.xlu0 %250  ;;  %v2802_v13 = vld [vmem:[%s3252_s23 + $0x770] sm:$0xf] }
  0xaa   : >> { %v279_v24 = vrot.slane %v253_v19, 4  ;;  %v278_v25 = vrot.slane %v251_v23, 4  ;;  %v2914_v27 = vcombine.high %v303_v2, %v305_v17  ;;  %v2913_v28 = vcombine.low %v303_v2, %v305_v17 }
  0xab   : >> { %755 = vrot.lane.b32.xlu1 %v712_v11, %s3210_s28  ;;  %753 = vrot.lane.b32.xlu0 %v3291_v15, %s3210_s28 }
  0xac   : >> { %v298_v29 = vsel %vm288_vm0, %v278_v25, %v279_v24  ;;  %1970 = vmatprep.subr.bf16.mxu0 %v2914_v27  ;;  %3014 = vmatprep.subr.bf16.mxu1 %v2914_v27  ;;  %v2962_v27 = vcombine.high %v1126_v5, %v1126_v5 }
  0xad   : >> { %v299_v30 = vsel %vm290_vm1, %v251_v23, %v298_v29  ;;  %v257_v31 = vpop.permute.xlu1 %256  ;;  %v255_v32 = vpop.permute.xlu0 %254  ;;  %1971 = vmatpush2.bf16.msra.mxu0 %v2913_v28  ;;  %3030 = vmatpush2.bf16.msra.mxu1 %v2913_v28  ;;  %v2905_v23 = vcombine.low %v3314_v22, %v3321_v26  ;;  %v2804_v29 = vld [vmem:[%s3252_s23 + $0x77c] sm:$0xf] }
  0xae   : >> { %v281_v33 = vrot.slane %v257_v31, 4  ;;  %v280_v34 = vrot.slane %v255_v32, 4  ;;  %v3082_v31 = vld [vmem:[%s4336_s1 + $0x16c] ss:$20 sps:$4 sm:$0xff]  }
  0xaf   : >> { %743 = vrot.lane.b32.xlu1 %v706_v14, %s3210_s28  ;;  %741 = vrot.lane.b32.xlu0 %v3297_v16, %s3210_s28  ;;  %v2806_v16 = vld [vmem:[%s3252_s23 + $0x788] sm:$0xf]  ;;  %v3076_v14 = vld [vmem:[%s4336_s1 + $0x140] ss:$20 sps:$4 sm:$0xff]  }
  0xb0   : >> { %v300_v15 = vsel %vm288_vm0, %v280_v34, %v281_v33 }
  0xb1   : >> { %v301_v7 = vsel %vm290_vm1, %v255_v32, %v300_v15  ;;  %v245_v36 = vpop.permute.xlu1 %244  ;;  %v243_v37 = vpop.permute.xlu0 %242  ;;  %v2961_v32 = vcombine.low %v1126_v5, %v1126_v5 }
  0xb2   : >> { %v275_v38 = vrot.slane %v245_v36, 4  ;;  %v274_v39 = vrot.slane %v243_v37, 4  ;;  %v2912_v40 = vcombine.high %v299_v30, %v301_v7  ;;  %v2911_v41 = vcombine.low %v299_v30, %v301_v7  ;;  %v3079_v7 = vld [vmem:[%s4336_s1] ss:$20 sps:$4 sm:$0xff]  }
  0xb3   : >> { %747 = vrot.lane.b32.xlu1 %v708_v35, %s3210_s28  ;;  %745 = vrot.lane.b32.xlu0 %v3301_v18, %s3210_s28 }
  0xb4   : >> { %v294_v8 = vsel %vm288_vm0, %v274_v39, %v275_v38  ;;  %1972 = vmatprep.subr.bf16.mxu0 %v2912_v40  ;;  %3015 = vmatprep.subr.bf16.mxu1 %v2912_v40  ;;  %v3085_v38 = vld [vmem:[%s4336_s1 + $0x2c] ss:$20 sps:$4 sm:$0xff]  }
  0xb5   : >> { %v295_v42 = vsel %vm290_vm1, %v243_v37, %v294_v8  ;;  %v249_v43 = vpop.permute.xlu1 %248  ;;  %v247_v44 = vpop.permute.xlu0 %246  ;;  %1973 = vmatpush2.bf16.msra.mxu0 %v2911_v41  ;;  %3031 = vmatpush2.bf16.msra.mxu1 %v2911_v41  ;;  %v2784_v37 = vld [vmem:[%s3252_s23 + $0x770] sm:$0xf]  ;;  %v1943_v8 = vsel %vm288_vm0, %v2961_v32, 0  ;;  %v3101_v32 = vld [vmem:[%s4336_s1 + $0x1e4] ss:$20 sps:$4 sm:$0xff]  }
  0xb6   : >> { %v277_v45 = vrot.slane %v249_v43, 4  ;;  %v276_v46 = vrot.slane %v247_v44, 4 }
  0xb7   : >> { %898 = vrot.lane.b32.xlu1 %v2806_v16, %s3210_s28  ;;  %896 = vrot.lane.b32.xlu0 %v3314_v22, %s3210_s28 }
  0xb8   : >> { %v296_v18 = vsel %vm288_vm0, %v276_v46, %v277_v45  ;;  %v3084_v45 = vld [vmem:[%s4336_s1 + $0x168] ss:$20 sps:$4 sm:$0xff]  }
  0xb9   : >> { %v297_v48 = vsel %vm290_vm1, %v247_v44, %v296_v18  ;;  %v237_v49 = vpop.permute.xlu1 %236  ;;  %v235_v50 = vpop.permute.xlu0 %234  ;;  %v2786_v44 = vld [vmem:[%s3252_s23 + $0x77c] sm:$0xf] }
  0xba   : >> { %v271_v9 = vrot.slane %v237_v49, 4  ;;  %v270_v51 = vrot.slane %v235_v50, 4  ;;  %v2910_v52 = vcombine.high %v295_v42, %v297_v48  ;;  %v2909_v53 = vcombine.low %v295_v42, %v297_v48  ;;  %v3087_v48 = vld [vmem:[%s4336_s1 + $0x194] ss:$20 sps:$4 sm:$0xff]  }
  0xbb   : >> { %902 = vrot.lane.b32.xlu1 %v2808_v47, %s3210_s28  ;;  %900 = vrot.lane.b32.xlu0 %v3321_v26, %s3210_s28 }
  0xbc   : >> { %v289_v54 = vsel %vm288_vm0, %v270_v51, %v271_v9  ;;  %1974 = vmatprep.subr.bf16.mxu0 %v2910_v52  ;;  %3016 = vmatprep.subr.bf16.mxu1 %v2910_v52  ;;  %v3089_v51 = vld [vmem:[%s4336_s1 + $0x28] ss:$20 sps:$4 sm:$0xff]  }
  0xbd   : >> { %v291_v10 = vsel %vm290_vm1, %v235_v50, %v289_v54  ;;  %v241_v56 = vpop.permute.xlu1 %240  ;;  %v239_v57 = vpop.permute.xlu0 %238  ;;  %1975 = vmatpush2.bf16.msra.mxu0 %v2909_v53  ;;  %3032 = vmatpush2.bf16.msra.mxu1 %v2909_v53  ;;  %v2798_v53 = vld [vmem:[%s3252_s23 + $0x758] sm:$0xf]  ;;  %v3093_v54 = vld [vmem:[%s4336_s1 + $0x54] ss:$20 sps:$4 sm:$0xff]  }
  0xbe   : >> { %v273_v58 = vrot.slane %v241_v56, 4  ;;  %v272_v59 = vrot.slane %v239_v57, 4 }
  0xbf   : >> { %645 = vrot.lane.b32.xlu1 %v2788_v55, %s3209_s27  ;;  %643 = vrot.lane.b32.xlu0 %v3314_v22, %s3209_s27 }
  0xc0   : >> { %v292_v60 = vsel %vm288_vm0, %v272_v59, %v273_v58 }
  0xc1   : >> { %v293_v62 = vsel %vm290_vm1, %v239_v57, %v292_v60  ;;  %v622_v63 = vpop.permute.xlu1 %621  ;;  %v620_v0 = vpop.permute.xlu0 %619  ;;  %v2800_v60 = vld [vmem:[%s3252_s23 + $0x764] sm:$0xf] }
  0xc2   : >> { %v654_v1 = vrot.slane %v622_v63, 4  ;;  %v653_v2 = vrot.slane %v620_v0, 4  ;;  %v2908_v3 = vcombine.high %v291_v10, %v293_v62  ;;  %v2907_v4 = vcombine.low %v291_v10, %v293_v62  ;;  %v3090_v62 = vld [vmem:[%s4336_s1 + $0x190] ss:$20 sps:$4 sm:$0xff]  }
  0xc3   : >> { %649 = vrot.lane.b32.xlu1 %v2790_v61, %s3209_s27  ;;  %647 = vrot.lane.b32.xlu0 %v3321_v26, %s3209_s27  ;;  %v2799_v61 = vld [vmem:[%s3252_s23 + $0x75c] sm:$0xff] }
  0xc4   : >> { %v671_v6 = vsel %vm288_vm0, %v653_v2, %v654_v1  ;;  %1976 = vmatprep.subr.bf16.mxu0 %v2908_v3  ;;  %3017 = vmatprep.subr.bf16.mxu1 %v2908_v3  ;;  %v3095_v1 = vld [vmem:[%s4336_s1 + $0x1bc] ss:$20 sps:$4 sm:$0xff]  }
  0xc5   : >> { %v672_v11 = vsel %vm543_vm2, %v620_v0, %v671_v6  ;;  %v626_v17 = vpop.permute.xlu1 %625  ;;  %v624_v19 = vpop.permute.xlu0 %623  ;;  %1977 = vmatpush2.bf16.msra.mxu0 %v2907_v4  ;;  %3033 = vmatpush2.bf16.msra.mxu1 %v2907_v4  ;;  %v3097_v6 = vld [vmem:[%s4336_s1 + $0x50] ss:$20 sps:$4 sm:$0xff]  }
  0xc6   : >> { %v656_v24 = vrot.slane %v626_v17, 4  ;;  %v655_v25 = vrot.slane %v624_v19, 4  ;;  %3018 = vmatprep.subr.bf16.mxu1 %v2906_v12  ;;  %1978 = vmatprep.subr.bf16.mxu0 %v2906_v12  ;;  %v2779_v17 = vld [vmem:[%s3252_s23 + $0x750] sm:$0xff] }
  0xc7   : >> { %890 = vrot.lane.b32.xlu1 %v2802_v13, %s3210_s28  ;;  %888 = vrot.lane.b32.xlu0 %v3308_v20, %s3210_s28 }
  0xc8   : >> { %v673_v28 = vsel %vm288_vm0, %v655_v25, %v656_v24 }
  0xc9   : >> { %v674_v30 = vsel %vm543_vm2, %v624_v19, %v673_v28  ;;  %v523_v22 = vpop.permute.xlu1 %522  ;;  %v521_v26 = vpop.permute.xlu0 %520  ;;  %3034 = vmatpush2.bf16.msra.mxu1 %v2905_v23  ;;  %1979 = vmatpush2.bf16.msra.mxu0 %v2905_v23  ;;  %v3099_v19 = vld [vmem:[%s4336_s1 + $0x7c] ss:$20 sps:$4 sm:$0xff]  }
  0xca   : >> { %v541_v33 = vrot.slane %v523_v22, 4  ;;  %v540_v34 = vrot.slane %v521_v26, 4  ;;  %v2935_v15 = vcombine.low %v672_v11, %v674_v30  ;;  %v2936_v35 = vcombine.high %v672_v11, %v674_v30  ;;  %2963 = vmatprep.subr.msk.bf16.mxu0 %vm288_vm0, %v2962_v27  ;;  %v2780_v11 = vld [vmem:[%s3252_s23 + $0x758] sm:$0xf] }
  0xcb   : >> { %894 = vrot.lane.b32.xlu1 %v2804_v29, %s3210_s28  ;;  %892 = vrot.lane.b32.xlu0 %v3311_v21, %s3210_s28  ;;  %v3098_v30 = vld [vmem:[%s4336_s1 + $0x1b8] ss:$20 sps:$4 sm:$0xff]  }
  0xcc   : >> { %v559_v36 = vsel %vm288_vm0, %v540_v34, %v541_v33  ;;  %2141 = vmatprep.subr.bf16.mxu1 %v2936_v35  ;;  %2061 = vmatmul.mubr.bf16.vlgmr.msra.gmra.mxu1 %v3076_v14  ;;  %v2782_v14 = vld [vmem:[%s3252_s23 + $0x764] sm:$0xf] }
  0xcd   : >> { %v560_v39 = vsel %vm543_vm2, %v521_v26, %v559_v36  ;;  %v618_v40 = vpop.permute.xlu1 %617  ;;  %v616_v41 = vpop.permute.xlu0 %615  ;;  %2142 = vmatpush1.bf16.msra.mxu1 %v2935_v15  ;;  %2070 = vmatprep.mubr.bf16.mxu1 %v3082_v31 }
  0xce   : >> { %v652_v16 = vrot.slane %v618_v40, 4  ;;  %v651_v42 = vrot.slane %v616_v41, 4  ;;  %1981 = vmatmul.mubr.bf16.vlgmr.msra.gmra.mxu0 %v3079_v7  ;;  %v3103_v7 = vld [vmem:[%s4336_s1 + $0x78] ss:$20 sps:$4 sm:$0xff]  }
  0xcf   : >> { %637 = vrot.lane.b32.xlu1 %v2784_v37, %s3209_s27  ;;  %635 = vrot.lane.b32.xlu0 %v3308_v20, %s3209_s27  ;;  %v2794_v37 = vld [vmem:[%s3252_s23 + $0x740] sm:$0xf] }
  0xd0   : >> { %v669_v43 = vsel %vm288_vm0, %v651_v42, %v652_v16  ;;  %1990 = vmatprep.mubr.bf16.mxu0 %v3085_v38  ;;  %2341 = vmatpush1.bf16.msra.mxu0 %v1943_v8  ;;  %v2793_v38 = vld [vmem:[%s3252_s23 + $0x738] sm:$0xff] }
  0xd1   : >> { %v670_v46 = vsel %vm543_vm2, %v616_v41, %v669_v43  ;;  %v515_v18 = vpop.permute.xlu1 %514  ;;  %v513_v47 = vpop.permute.xlu0 %512 }
  0xd2   : >> { %v537_v49 = vrot.slane %v515_v18, 4  ;;  %v536_v20 = vrot.slane %v513_v47, 4  ;;  %v2933_v50 = vcombine.low %v560_v39, %v670_v46  ;;  %v2934_v9 = vcombine.high %v560_v39, %v670_v46  ;;  %v3105_v39 = vld [vmem:[%s4336_s1 + $0xa4] ss:$20 sps:$4 sm:$0xff]   ;;  %v3104_v46 = vld [vmem:[%s4336_s1 + $0x1e0] ss:$20 sps:$4 sm:$0xff]  }
  0xd3   : >> { %641 = vrot.lane.b32.xlu1 %v2786_v44, %s3209_s27  ;;  %639 = vrot.lane.b32.xlu0 %v3311_v21, %s3209_s27  ;;  %v3190_v21 = vld [vmem:[#allocation2 + $0x108] sm:$0xff] }
  0xd4   : >> { %v555_v52 = vsel %vm288_vm0, %v536_v20, %v537_v49  ;;  %2143 = vmatprep.subr.bf16.mxu1 %v2934_v9  ;;  %2071 = vmatmul.mubr.bf16.gmra.mxu1 %v3084_v45  ;;  %v2796_v44 = vld [vmem:[%s3252_s23 + $0x74c] sm:$0xf]  ;;  %v2795_v45 = vld [vmem:[%s3252_s23 + $0x744] sm:$0xff] }
  0xd5   : >> { %v556_v55 = vsel %vm543_vm2, %v513_v47, %v555_v52  ;;  %v519_v10 = vpop.permute.xlu1 %518  ;;  %v517_v56 = vpop.permute.xlu0 %516  ;;  %2144 = vmatpush1.bf16.msra.mxu1 %v2933_v50  ;;  %2080 = vmatprep.mubr.bf16.mxu1 %v3087_v48  ;;  %v3107_v49 = vld [vmem:[%s4336_s1 + $0x20c] ss:$20 sps:$4 sm:$0xff]  }
  0xd6   : >> { %v539_v57 = vrot.slane %v519_v10, 4  ;;  %v538_v58 = vrot.slane %v517_v56, 4  ;;  %1991 = vmatmul.mubr.bf16.gmra.mxu0 %v3089_v51  ;;  %v3109_v52 = vld [vmem:[%s4336_s1 + $0xa0] ss:$20 sps:$4 sm:$0xff]  }
  0xd7   : >> { %882 = vrot.lane.b32.xlu1 %v2798_v53, %s3210_s28  ;;  %880 = vrot.lane.b32.xlu0 %v3190_v21, %s3210_s28  ;;  %v3111_v53 = vld [vmem:[%s4336_s1 + $0xcc] ss:$20 sps:$4 sm:$0xff]  }
  0xd8   : >> { %v557_v59 = vsel %vm288_vm0, %v538_v58, %v539_v57  ;;  %2000 = vmatprep.mubr.bf16.mxu0 %v3093_v54 }
  0xd9   : >> { %v558_v63 = vsel %vm543_vm2, %v517_v56, %v557_v59  ;;  %v507_v0 = vpop.permute.xlu1 %506  ;;  %v505_v12 = vpop.permute.xlu0 %504  ;;  %v3110_v59 = vld [vmem:[%s4336_s1 + $0x208] ss:$20 sps:$4 sm:$0xff]  }
  0xda   : >> { %v533_v2 = vrot.slane %v507_v0, 4  ;;  %v532_v3 = vrot.slane %v505_v12, 4  ;;  %v2931_v4 = vcombine.low %v556_v55, %v558_v63  ;;  %v2932_v5 = vcombine.high %v556_v55, %v558_v63  ;;  %v3113_v63 = vld [vmem:[%s4336_s1 + $0x234] ss:$20 sps:$4 sm:$0xff]  }
  0xdb   : >> { %886 = vrot.lane.b32.xlu1 %v2800_v60, %s3210_s28  ;;  %884 = vrot.lane.b32.xlu0 %v2799_v61, %s3210_s28 }
  0xdc   : >> { %v551_v13 = vsel %vm288_vm0, %v532_v3, %v533_v2  ;;  %2145 = vmatprep.subr.bf16.mxu1 %v2932_v5  ;;  %2081 = vmatmul.mubr.bf16.gmra.mxu1 %v3090_v62  ;;  %v3115_v3 = vld [vmem:[%s4336_s1 + $0xc8] ss:$20 sps:$4 sm:$0xff]  }
  0xdd   : >> { %v552_v23 = vsel %vm543_vm2, %v505_v12, %v551_v13  ;;  %v511_v24 = vpop.permute.xlu1 %510  ;;  %v509_v25 = vpop.permute.xlu0 %508  ;;  %2146 = vmatpush1.bf16.msra.mxu1 %v2931_v4  ;;  %2090 = vmatprep.mubr.bf16.mxu1 %v3095_v1  ;;  %v3117_v4 = vld [vmem:[%s4336_s1 + $0xf4] ss:$20 sps:$4 sm:$0xff]  }
  0xde   : >> { %v535_v27 = vrot.slane %v511_v24, 4  ;;  %v534_v28 = vrot.slane %v509_v25, 4  ;;  %2001 = vmatmul.mubr.bf16.gmra.mxu0 %v3097_v6  ;;  %v3116_v24 = vld [vmem:[%s4336_s1 + $0x230] ss:$20 sps:$4 sm:$0xff]  }
  0xdf   : >> { %629 = vrot.lane.b32.xlu1 %v2780_v11, %s3209_s27  ;;  %627 = vrot.lane.b32.xlu0 %v2779_v17, %s3209_s27 }
  0xe0   : >> { %v553_v29 = vsel %vm288_vm0, %v534_v28, %v535_v27  ;;  %2010 = vmatprep.mubr.bf16.mxu0 %v3099_v19 }
  0xe1   : >> { %v554_v22 = vsel %vm543_vm2, %v509_v25, %v553_v29  ;;  %v499_v26 = vpop.permute.xlu1 %498  ;;  %v497_v31 = vpop.permute.xlu0 %496  ;;  %v3119_v29 = vld [vmem:[%s4336_s1 + $0x25c] ss:$20 sps:$4 sm:$0xff]  }
  0xe2   : >> { %v529_v33 = vrot.slane %v499_v26, 4  ;;  %v528_v34 = vrot.slane %v497_v31, 4  ;;  %v2929_v15 = vcombine.low %v552_v23, %v554_v22  ;;  %v2930_v35 = vcombine.high %v552_v23, %v554_v22 }
  0xe3   : >> { %633 = vrot.lane.b32.xlu1 %v2782_v14, %s3209_s27  ;;  %631 = vrot.lane.b32.xlu0 %v2799_v61, %s3209_s27 }
  0xe4   : >> { %v547_v36 = vsel %vm288_vm0, %v528_v34, %v529_v33  ;;  %2147 = vmatprep.subr.bf16.mxu1 %v2930_v35  ;;  %2091 = vmatmul.mubr.bf16.gmra.mxu1 %v3098_v30 }
  0xe5   : >> { %v548_v40 = vsel %vm543_vm2, %v497_v31, %v547_v36  ;;  %v503_v41 = vpop.permute.xlu1 %502  ;;  %v501_v8 = vpop.permute.xlu0 %500  ;;  %2148 = vmatpush1.bf16.msra.mxu1 %v2929_v15  ;;  %2100 = vmatprep.mubr.bf16.mxu1 %v3101_v32  ;;  %v3121_v31 = vld [vmem:[%s4336_s1 + $0xf0] ss:$20 sps:$4 sm:$0xff]  }
  0xe6   : >> { %v531_v16 = vrot.slane %v503_v41, 4  ;;  %v530_v42 = vrot.slane %v501_v8, 4  ;;  %2011 = vmatmul.mubr.bf16.gmra.mxu0 %v3103_v7  ;;  %v3123_v32 = vld [vmem:[%s4336_s1 + $0x11c] ss:$20 sps:$4 sm:$0xff]  }
  0xe7   : >> { %874 = vrot.lane.b32.xlu1 %v2794_v37, %s3210_s28  ;;  %872 = vrot.lane.b32.xlu0 %v2793_v38, %s3210_s28  ;;  %v3122_v38 = vld [vmem:[%s4336_s1 + $0x258] ss:$20 sps:$4 sm:$0xff]  }
  0xe8   : >> { %v549_v43 = vsel %vm288_vm0, %v530_v42, %v531_v16  ;;  %2020 = vmatprep.mubr.bf16.mxu0 %v3105_v39 }
  0xe9   : >> { %v550_v18 = vsel %vm543_vm2, %v501_v8, %v549_v43  ;;  %v491_v47 = vpop.permute.xlu1 %490  ;;  %v489_v48 = vpop.permute.xlu0 %488  ;;  %v3127_v8 = vld [vmem:[%s4336_s1 + $0xc] ss:$20 sps:$4 sm:$0xff]  }
  0xea   : >> { %v525_v20 = vrot.slane %v491_v47, 4  ;;  %v524_v50 = vrot.slane %v489_v48, 4  ;;  %v2927_v9 = vcombine.low %v548_v40, %v550_v18  ;;  %v2928_v51 = vcombine.high %v548_v40, %v550_v18 }
  0xeb   : >> { %878 = vrot.lane.b32.xlu1 %v2796_v44, %s3210_s28  ;;  %876 = vrot.lane.b32.xlu0 %v2795_v45, %s3210_s28  ;;  %v3128_v45 = vld [vmem:[%s4336_s1 + $0x118] ss:$20 sps:$4 sm:$0xff]  }
  0xec   : >> { %v542_v54 = vsel %vm288_vm0, %v524_v50, %v525_v20  ;;  %2149 = vmatprep.subr.bf16.mxu1 %v2928_v51  ;;  %2101 = vmatmul.mubr.bf16.gmra.mxu1 %v3104_v46  ;;  %v3211_v50 = vmov 0  }
  0xed   : >> { %v544_v55 = vsel %vm543_vm2, %v489_v48, %v542_v54  ;;  %v495_v10 = vpop.permute.xlu1 %494  ;;  %v493_v56 = vpop.permute.xlu0 %492  ;;  %2150 = vmatpush1.bf16.msra.mxu1 %v2927_v9  ;;  %2110 = vmatprep.mubr.bf16.mxu1 %v3107_v49 }
  0xee   : >> { %v527_v57 = vrot.slane %v495_v10, 4  ;;  %v526_v58 = vrot.slane %v493_v56, 4  ;;  %2021 = vmatmul.mubr.bf16.gmra.mxu0 %v3109_v52 }
  0xef   : >> { %2030 = vmatprep.mubr.bf16.mxu0 %v3111_v53 }
  0xf0   : >> { %v545_v21 = vsel %vm288_vm0, %v526_v58, %v527_v57 }
  0xf1   : >> { %v546_v60 = vsel %vm543_vm2, %v493_v56, %v545_v21  ;;  %v393_v61 = vpop.permute.xlu1 %392  ;;  %v391_v62 = vpop.permute.xlu0 %390 }
  0xf2   : >> { %v413_v0 = vrot.slane %v393_v61, 4  ;;  %v412_v12 = vrot.slane %v391_v62, 4  ;;  %v2925_v1 = vcombine.low %v544_v55, %v546_v60  ;;  %v2926_v2 = vcombine.high %v544_v55, %v546_v60 }
  0xf4   : >> { %v430_v5 = vsel %vm288_vm0, %v412_v12, %v413_v0  ;;  %2151 = vmatprep.subr.bf16.mxu1 %v2926_v2  ;;  %2111 = vmatmul.mubr.bf16.gmra.mxu1 %v3110_v59 }
  0xf5   : >> { %v431_v6 = vsel %vm290_vm1, %v391_v62, %v430_v5  ;;  %v397_v13 = vpop.permute.xlu1 %396  ;;  %v395_v11 = vpop.permute.xlu0 %394  ;;  %2152 = vmatpush1.bf16.msra.mxu1 %v2925_v1  ;;  %2120 = vmatprep.mubr.bf16.mxu1 %v3113_v63 }
  0xf6   : >> { %v415_v17 = vrot.slane %v397_v13, 4  ;;  %v414_v19 = vrot.slane %v395_v11, 4  ;;  %2031 = vmatmul.mubr.bf16.gmra.mxu0 %v3115_v3 }
  0xf7   : >> { %2040 = vmatprep.mubr.bf16.mxu0 %v3117_v4 }
  0xf8   : >> { %v432_v23 = vsel %vm288_vm0, %v414_v19, %v415_v17 }
  0xf9   : >> { %v433_v25 = vsel %vm290_vm1, %v395_v11, %v432_v23  ;;  %v385_v27 = vpop.permute.xlu1 %384  ;;  %v383_v28 = vpop.permute.xlu0 %382 }
  0xfa   : >> { %v409_v14 = vrot.slane %v385_v27, 4  ;;  %v408_v30 = vrot.slane %v383_v28, 4  ;;  %v2923_v22 = vcombine.low %v431_v6, %v433_v25  ;;  %v2924_v26 = vcombine.high %v431_v6, %v433_v25 }
  0xfc   : >> { %v426_v33 = vsel %vm288_vm0, %v408_v30, %v409_v14  ;;  %2153 = vmatprep.subr.bf16.mxu1 %v2924_v26  ;;  %2121 = vmatmul.mubr.bf16.gmra.mxu1 %v3116_v24 }
  0xfd   : >> { %v427_v34 = vsel %vm290_vm1, %v383_v28, %v426_v33  ;;  %v389_v15 = vpop.permute.xlu1 %388  ;;  %v387_v35 = vpop.permute.xlu0 %386  ;;  %2154 = vmatpush1.bf16.msra.mxu1 %v2923_v22  ;;  %2130 = vmatprep.mubr.bf16.mxu1 %v3119_v29 }
  0xfe   : >> { %v411_v7 = vrot.slane %v389_v15, 4  ;;  %v410_v36 = vrot.slane %v387_v35, 4  ;;  %2041 = vmatmul.mubr.bf16.gmra.mxu0 %v3121_v31 }
  0xff   : >> { %2050 = vmatprep.mubr.bf16.mxu0 %v3123_v32 }
 0x100   : >> { %v428_v37 = vsel %vm288_vm0, %v410_v36, %v411_v7 }
 0x101   : >> { %v429_v39 = vsel %vm290_vm1, %v387_v35, %v428_v37  ;;  %v776_v40 = vpop.permute.xlu1 %775  ;;  %v774_v41 = vpop.permute.xlu0 %773 }
 0x102   : >> { %v794_v16 = vrot.slane %v776_v40, 4  ;;  %v793_v42 = vrot.slane %v774_v41, 4  ;;  %v2921_v43 = vcombine.low %v427_v34, %v429_v39  ;;  %v2922_v44 = vcombine.high %v427_v34, %v429_v39 }
 0x104   : >> { %v812_v46 = vsel %vm288_vm0, %v793_v42, %v794_v16  ;;  %2155 = vmatprep.subr.bf16.mxu1 %v2922_v44  ;;  %2131 = vmatmul.mubr.bf16.gmra.mxu1 %v3122_v38 }
 0x105   : >> { %v813_v18 = vsel %vm796_vm3, %v774_v41, %v812_v46  ;;  %v871_v47 = vpop.permute.xlu1 %870  ;;  %v869_v48 = vpop.permute.xlu0 %868  ;;  %2156 = vmatpush1.bf16.msra.mxu1 %v2921_v43  ;;  %2173 = vmatprep.mubr.bf16.mxu1 %v3127_v8 }
 0x106   : >> { %v905_v49 = vrot.slane %v871_v47, 4  ;;  %v904_v20 = vrot.slane %v869_v48, 4  ;;  %2051 = vmatmul.mubr.bf16.gmra.mxu0 %v3128_v45 }
 0x107   : >> { %2366 = vmatprep.mubr.bf16.mxu0 %v3211_v50 }
 0x108   : >> { %v922_v9 = vsel %vm288_vm0, %v904_v20, %v905_v49 }
 0x109   : >> { %v923_v51 = vsel %vm796_vm3, %v869_v48, %v922_v9  ;;  %v768_v52 = vpop.permute.xlu1 %767  ;;  %v766_v53 = vpop.permute.xlu0 %765 }
 0x10a   : >> { %v790_v54 = vrot.slane %v768_v52, 4  ;;  %v789_v55 = vrot.slane %v766_v53, 4  ;;  %v2951_v10 = vcombine.low %v813_v18, %v923_v51  ;;  %v2952_v56 = vcombine.high %v813_v18, %v923_v51 }
 0x10c   : >> { %v808_v57 = vsel %vm288_vm0, %v789_v55, %v790_v54  ;;  %2157 = vmatprep.subr.bf16.mxu1 %v2952_v56 }
 0x10d   : >> { %v809_v58 = vsel %vm796_vm3, %v766_v53, %v808_v57  ;;  %v772_v21 = vpop.permute.xlu1 %771  ;;  %v770_v59 = vpop.permute.xlu0 %769  ;;  %2158 = vmatpush2.bf16.msra.mxu1 %v2951_v10 }
 0x10e   : >> { %v792_v60 = vrot.slane %v772_v21, 4  ;;  %v791_v61 = vrot.slane %v770_v59, 4 }
 0x110   : >> { %v810_v62 = vsel %vm288_vm0, %v791_v61, %v792_v60 }
 0x111   : >> { %v811_v63 = vsel %vm796_vm3, %v770_v59, %v810_v62  ;;  %v760_v0 = vpop.permute.xlu1 %759  ;;  %v758_v12 = vpop.permute.xlu0 %757 }
 0x112   : >> { %v786_v1 = vrot.slane %v760_v0, 4  ;;  %v785_v2 = vrot.slane %v758_v12, 4  ;;  %v2949_v3 = vcombine.low %v809_v58, %v811_v63  ;;  %v2950_v4 = vcombine.high %v809_v58, %v811_v63 }
 0x114   : >> { %v804_v5 = vsel %vm288_vm0, %v785_v2, %v786_v1  ;;  %2159 = vmatprep.subr.bf16.mxu1 %v2950_v4 }
 0x115   : >> { %v805_v6 = vsel %vm796_vm3, %v758_v12, %v804_v5  ;;  %v764_v13 = vpop.permute.xlu1 %763  ;;  %v762_v11 = vpop.permute.xlu0 %761  ;;  %2160 = vmatpush2.bf16.msra.mxu1 %v2949_v3 }
 0x116   : >> { %v788_v17 = vrot.slane %v764_v13, 4  ;;  %v787_v19 = vrot.slane %v762_v11, 4 }
 0x118   : >> { %v806_v23 = vsel %vm288_vm0, %v787_v19, %v788_v17 }
 0x119   : >> { %v807_v24 = vsel %vm796_vm3, %v762_v11, %v806_v23  ;;  %v752_v25 = vpop.permute.xlu1 %751  ;;  %v750_v27 = vpop.permute.xlu0 %749 }
 0x11a   : >> { %v782_v28 = vrot.slane %v752_v25, 4  ;;  %v781_v29 = vrot.slane %v750_v27, 4  ;;  %v2947_v14 = vcombine.low %v805_v6, %v807_v24  ;;  %v2948_v30 = vcombine.high %v805_v6, %v807_v24 }
 0x11c   : >> { %v800_v22 = vsel %vm288_vm0, %v781_v29, %v782_v28  ;;  %2161 = vmatprep.subr.bf16.mxu1 %v2948_v30 }
 0x11d   : >> { %v801_v26 = vsel %vm796_vm3, %v750_v27, %v800_v22  ;;  %v756_v31 = vpop.permute.xlu1 %755  ;;  %v754_v32 = vpop.permute.xlu0 %753  ;;  %2162 = vmatpush2.bf16.msra.mxu1 %v2947_v14 }
 0x11e   : >> { %v784_v33 = vrot.slane %v756_v31, 4  ;;  %v783_v34 = vrot.slane %v754_v32, 4 }
 0x120   : >> { %v802_v15 = vsel %vm288_vm0, %v783_v34, %v784_v33 }
 0x121   : >> { %v803_v35 = vsel %vm796_vm3, %v754_v32, %v802_v15  ;;  %v744_v7 = vpop.permute.xlu1 %743  ;;  %v742_v36 = vpop.permute.xlu0 %741 }
 0x122   : >> { %v778_v37 = vrot.slane %v744_v7, 4  ;;  %v777_v38 = vrot.slane %v742_v36, 4  ;;  %v2945_v39 = vcombine.low %v801_v26, %v803_v35  ;;  %v2946_v40 = vcombine.high %v801_v26, %v803_v35 }
 0x124   : >> { %v795_v41 = vsel %vm288_vm0, %v777_v38, %v778_v37  ;;  %2163 = vmatprep.subr.bf16.mxu1 %v2946_v40 }
 0x125   : >> { %v797_v8 = vsel %vm796_vm3, %v742_v36, %v795_v41  ;;  %v748_v16 = vpop.permute.xlu1 %747  ;;  %v746_v42 = vpop.permute.xlu0 %745  ;;  %2164 = vmatpush2.bf16.msra.mxu1 %v2945_v39 }
 0x126   : >> { %v780_v43 = vrot.slane %v748_v16, 4  ;;  %v779_v44 = vrot.slane %v746_v42, 4 }
 0x128   : >> { %v798_v45 = vsel %vm288_vm0, %v779_v44, %v780_v43 }
 0x129   : >> { %v799_v46 = vsel %vm796_vm3, %v746_v42, %v798_v45  ;;  %v899_v18 = vpop.permute.xlu1 %898  ;;  %v897_v47 = vpop.permute.xlu0 %896 }
 0x12a   : >> { %v919_v48 = vrot.slane %v899_v18, 4  ;;  %v918_v49 = vrot.slane %v897_v47, 4  ;;  %v2943_v20 = vcombine.low %v797_v8, %v799_v46  ;;  %v2944_v9 = vcombine.high %v797_v8, %v799_v46 }
 0x12c   : >> { %v936_v51 = vsel %vm288_vm0, %v918_v49, %v919_v48  ;;  %2165 = vmatprep.subr.bf16.mxu1 %v2944_v9 }
 0x12d   : >> { %v937_v52 = vsel %vm796_vm3, %v897_v47, %v936_v51  ;;  %v903_v53 = vpop.permute.xlu1 %902  ;;  %v901_v54 = vpop.permute.xlu0 %900  ;;  %2166 = vmatpush2.bf16.msra.mxu1 %v2943_v20 }
 0x12e   : >> { %v921_v55 = vrot.slane %v903_v53, 4  ;;  %v920_v10 = vrot.slane %v901_v54, 4 }
 0x130   : >> { %v938_v56 = vsel %vm288_vm0, %v920_v10, %v921_v55 }
 0x131   : >> { %v939_v57 = vsel %vm796_vm3, %v901_v54, %v938_v56  ;;  %v646_v58 = vpop.permute.xlu1 %645  ;;  %v644_v21 = vpop.permute.xlu0 %643 }
 0x132   : >> { %v666_v59 = vrot.slane %v646_v58, 4  ;;  %v665_v60 = vrot.slane %v644_v21, 4  ;;  %v2959_v61 = vcombine.low %v937_v52, %v939_v57  ;;  %v2960_v62 = vcombine.high %v937_v52, %v939_v57 }
 0x134   : >> { %v683_v63 = vsel %vm288_vm0, %v665_v60, %v666_v59  ;;  %2342 = vmatprep.subr.bf16.mxu0 %v2960_v62 }
 0x135   : >> { %v684_v0 = vsel %vm543_vm2, %v644_v21, %v683_v63  ;;  %v650_v12 = vpop.permute.xlu1 %649  ;;  %v648_v1 = vpop.permute.xlu0 %647  ;;  %2343 = vmatpush1.bf16.msra.mxu0 %v2959_v61 }
 0x136   : >> { %v668_v2 = vrot.slane %v650_v12, 4  ;;  %v667_v3 = vrot.slane %v648_v1, 4 }
 0x138   : >> { %v685_v4 = vsel %vm288_vm0, %v667_v3, %v668_v2 }
 0x139   : >> { %v686_v5 = vsel %vm543_vm2, %v648_v1, %v685_v4  ;;  %v891_v6 = vpop.permute.xlu1 %890  ;;  %v889_v13 = vpop.permute.xlu0 %888 }
 0x13a   : >> { %v915_v11 = vrot.slane %v891_v6, 4  ;;  %v914_v17 = vrot.slane %v889_v13, 4  ;;  %v2941_v19 = vcombine.low %v684_v0, %v686_v5  ;;  %v2942_v23 = vcombine.high %v684_v0, %v686_v5  ;;  %v3125_v6 = vld [vmem:[%s4336_s1 + $0x8] ss:$20 sps:$4 sm:$0xff]  }
 0x13c   : >> { %v932_v24 = vsel %vm288_vm0, %v914_v17, %v915_v11  ;;  %2167 = vmatprep.subr.bf16.mxu1 %v2942_v23 }
 0x13d   : >> { %v933_v25 = vsel %vm796_vm3, %v889_v13, %v932_v24  ;;  %v895_v27 = vpop.permute.xlu1 %894  ;;  %v893_v28 = vpop.permute.xlu0 %892  ;;  %2168 = vmatpush2.bf16.msra.mxu1 %v2941_v19  ;;  %v3129_v19 = vld [vmem:[%s4336_s1 + $0x34] ss:$20 sps:$4 sm:$0xff]  }
 0x13e   : >> { %v917_v29 = vrot.slane %v895_v27, 4  ;;  %v916_v14 = vrot.slane %v893_v28, 4 }
 0x140   : >> { %v934_v30 = vsel %vm288_vm0, %v916_v14, %v917_v29  ;;  %v3131_v14 = vld [vmem:[%s4336_s1 + $0x30] ss:$20 sps:$4 sm:$0xff]  }
 0x141   : >> { %v935_v22 = vsel %vm796_vm3, %v893_v28, %v934_v30  ;;  %v638_v26 = vpop.permute.xlu1 %637  ;;  %v636_v31 = vpop.permute.xlu0 %635  ;;  %v3132_v30 = vld [vmem:[%s4336_s1 + $0x10] ss:$20 sps:$4 sm:$0xff]  }
 0x142   : >> { %v662_v32 = vrot.slane %v638_v26, 4  ;;  %v661_v33 = vrot.slane %v636_v31, 4  ;;  %v2957_v34 = vcombine.low %v933_v25, %v935_v22  ;;  %v2958_v15 = vcombine.high %v933_v25, %v935_v22  ;;  %v3133_v22 = vld [vmem:[%s4336_s1 + $0x5c] ss:$20 sps:$4 sm:$0xff]   ;;  %v3135_v26 = vld [vmem:[%s4336_s1 + $0x58] ss:$20 sps:$4 sm:$0xff]  }
 0x144   : >> { %v679_v35 = vsel %vm288_vm0, %v661_v33, %v662_v32  ;;  %2344 = vmatprep.subr.bf16.mxu0 %v2958_v15  ;;  %v3137_v32 = vld [vmem:[%s4336_s1 + $0x84] ss:$20 sps:$4 sm:$0xff]   ;;  %v3139_v33 = vld [vmem:[%s4336_s1 + $0x80] ss:$20 sps:$4 sm:$0xff]  }
 0x145   : >> { %v680_v7 = vsel %vm543_vm2, %v636_v31, %v679_v35  ;;  %v642_v36 = vpop.permute.xlu1 %641  ;;  %v640_v37 = vpop.permute.xlu0 %639  ;;  %2345 = vmatpush1.bf16.msra.mxu0 %v2957_v34  ;;  %v3136_v31 = vld [vmem:[%s4336_s1 + $0x38] ss:$20 sps:$4 sm:$0xff]   ;;  %v3140_v34 = vld [vmem:[%s4336_s1 + $0x60] ss:$20 sps:$4 sm:$0xff]   ;;  %v3143_v35 = vld [vmem:[%s4336_s1 + $0xa8] ss:$20 sps:$4 sm:$0xff]  }
 0x146   : >> { %v664_v38 = vrot.slane %v642_v36, 4  ;;  %v663_v39 = vrot.slane %v640_v37, 4  ;;  %v3141_v15 = vld [vmem:[%s4336_s1 + $0xac] ss:$20 sps:$4 sm:$0xff]   ;;  %v3145_v36 = vld [vmem:[%s4336_s1 + $0xd4] ss:$20 sps:$4 sm:$0xff]  }
 0x148   : >> { %v681_v40 = vsel %vm288_vm0, %v663_v39, %v664_v38  ;;  %v3148_v38 = vld [vmem:[%s4336_s1 + $0xb0] ss:$20 sps:$4 sm:$0xff]  }
 0x149   : >> { %v682_v41 = vsel %vm543_vm2, %v640_v37, %v681_v40  ;;  %v883_v8 = vpop.permute.xlu1 %882  ;;  %v881_v16 = vpop.permute.xlu0 %880  ;;  %v3147_v37 = vld [vmem:[%s4336_s1 + $0xd0] ss:$20 sps:$4 sm:$0xff]   ;;  %v3151_v40 = vld [vmem:[%s4336_s1 + $0xf8] ss:$20 sps:$4 sm:$0xff]  }
 0x14a   : >> { %v911_v42 = vrot.slane %v883_v8, 4  ;;  %v910_v43 = vrot.slane %v881_v16, 4  ;;  %v2939_v44 = vcombine.low %v680_v7, %v682_v41  ;;  %v2940_v45 = vcombine.high %v680_v7, %v682_v41  ;;  %v3144_v7 = vld [vmem:[%s4336_s1 + $0x88] ss:$20 sps:$4 sm:$0xff]   ;;  %v3152_v41 = vld [vmem:[%s4336_s1 + $0xd8] ss:$20 sps:$4 sm:$0xff]  }
 0x14b   : >> { %v3149_v39 = vld [vmem:[%s4336_s1 + $0xfc] ss:$20 sps:$4 sm:$0xff]   ;;  %v3153_v8 = vld [vmem:[%s4336_s1 + $0x124] ss:$20 sps:$4 sm:$0xff]  }
 0x14c   : >> { %v928_v46 = vsel %vm288_vm0, %v910_v43, %v911_v42  ;;  %2169 = vmatprep.subr.bf16.mxu1 %v2940_v45  ;;  %v3156_v42 = vld [vmem:[%s4336_s1 + $0x100] ss:$20 sps:$4 sm:$0xff]   ;;  %v3160_v45 = vld [vmem:[%s4336_s1 + $0x128] ss:$20 sps:$4 sm:$0xff]  }
 0x14d   : >> { %v929_v18 = vsel %vm796_vm3, %v881_v16, %v928_v46  ;;  %v887_v47 = vpop.permute.xlu1 %886  ;;  %v885_v48 = vpop.permute.xlu0 %884  ;;  %2170 = vmatpush2.bf16.msra.mxu1 %v2939_v44  ;;  %v3155_v16 = vld [vmem:[%s4336_s1 + $0x120] ss:$20 sps:$4 sm:$0xff]   ;;  %v3159_v44 = vld [vmem:[%s4336_s1 + $0x148] ss:$20 sps:$4 sm:$0xff]  }
 0x14e   : >> { %v913_v49 = vrot.slane %v887_v47, 4  ;;  %v912_v20 = vrot.slane %v885_v48, 4  ;;  %v3157_v43 = vld [vmem:[%s4336_s1 + $0x14c] ss:$20 sps:$4 sm:$0xff]   ;;  %v3161_v46 = vld [vmem:[%s4336_s1 + $0x174] ss:$20 sps:$4 sm:$0xff]  }
 0x14f   : >> { %v3163_v47 = vld [vmem:[%s4336_s1 + $0x170] ss:$20 sps:$4 sm:$0xff]  }
 0x150   : >> { %v930_v9 = vsel %vm288_vm0, %v912_v20, %v913_v49  ;;  %v3165_v20 = vld [vmem:[%s4336_s1 + $0x19c] ss:$20 sps:$4 sm:$0xff]  }
 0x151   : >> { %v931_v51 = vsel %vm796_vm3, %v885_v48, %v930_v9  ;;  %v630_v52 = vpop.permute.xlu1 %629  ;;  %v628_v53 = vpop.permute.xlu0 %627  ;;  %v3164_v48 = vld [vmem:[%s4336_s1 + $0x150] ss:$20 sps:$4 sm:$0xff]  }
 0x152   : >> { %v658_v54 = vrot.slane %v630_v52, 4  ;;  %v657_v55 = vrot.slane %v628_v53, 4  ;;  %v2955_v10 = vcombine.low %v929_v18, %v931_v51  ;;  %v2956_v56 = vcombine.high %v929_v18, %v931_v51  ;;  %v3167_v52 = vld [vmem:[%s4336_s1 + $0x198] ss:$20 sps:$4 sm:$0xff]  }
 0x154   : >> { %v675_v57 = vsel %vm288_vm0, %v657_v55, %v658_v54  ;;  %2346 = vmatprep.subr.bf16.mxu0 %v2956_v56  ;;  %v3169_v55 = vld [vmem:[%s4336_s1 + $0x1c4] ss:$20 sps:$4 sm:$0xff]  }
 0x155   : >> { %v676_v58 = vsel %vm543_vm2, %v628_v53, %v675_v57  ;;  %v634_v21 = vpop.permute.xlu1 %633  ;;  %v632_v59 = vpop.permute.xlu0 %631  ;;  %2347 = vmatpush1.bf16.msra.mxu0 %v2955_v10  ;;  %v3168_v53 = vld [vmem:[%s4336_s1 + $0x178] ss:$20 sps:$4 sm:$0xff]  }
 0x156   : >> { %v660_v60 = vrot.slane %v634_v21, 4  ;;  %v659_v61 = vrot.slane %v632_v59, 4  ;;  %v3172_v21 = vld [vmem:[%s4336_s1 + $0x1a0] ss:$20 sps:$4 sm:$0xff]  }
 0x158   : >> { %v677_v62 = vsel %vm288_vm0, %v659_v61, %v660_v60  ;;  %v3173_v60 = vld [vmem:[%s4336_s1 + $0x1ec] ss:$20 sps:$4 sm:$0xff]  }
 0x159   : >> { %v678_v63 = vsel %vm543_vm2, %v632_v59, %v677_v62  ;;  %v875_v0 = vpop.permute.xlu1 %874  ;;  %v873_v12 = vpop.permute.xlu0 %872 }
 0x15a   : >> { %v907_v1 = vrot.slane %v875_v0, 4  ;;  %v906_v2 = vrot.slane %v873_v12, 4  ;;  %v2937_v3 = vcombine.low %v676_v58, %v678_v63  ;;  %v2938_v4 = vcombine.high %v676_v58, %v678_v63  ;;  %v3171_v58 = vld [vmem:[%s4336_s1 + $0x1c0] ss:$20 sps:$4 sm:$0xff]   ;;  %v3175_v0 = vld [vmem:[%s4336_s1 + $0x1e8] ss:$20 sps:$4 sm:$0xff]  }
 0x15c   : >> { %v924_v5 = vsel %vm288_vm0, %v906_v2, %v907_v1  ;;  %2171 = vmatprep.subr.bf16.mxu1 %v2938_v4  ;;  %v3177_v2 = vld [vmem:[%s4336_s1 + $0x214] ss:$20 sps:$4 sm:$0xff]  }
 0x15d   : >> { %v925_v13 = vsel %vm796_vm3, %v873_v12, %v924_v5  ;;  %v879_v11 = vpop.permute.xlu1 %878  ;;  %v877_v17 = vpop.permute.xlu0 %876  ;;  %2172 = vmatpush2.bf16.msra.mxu1 %v2937_v3  ;;  %v3176_v12 = vld [vmem:[%s4336_s1 + $0x1c8] ss:$20 sps:$4 sm:$0xff]  }
 0x15e   : >> { %v909_v23 = vrot.slane %v879_v11, 4  ;;  %v908_v24 = vrot.slane %v877_v17, 4 }
 0x160   : >> { %v926_v25 = vsel %vm288_vm0, %v908_v24, %v909_v23  ;;  %2174 = vmatmul.mubr.bf16.vlgmr.msra.gmra.mxu1 %v3125_v6  ;;  %v3179_v6 = vld [vmem:[%s4336_s1 + $0x210] ss:$20 sps:$4 sm:$0xff]  }
 0x161   : >> { %v927_v27 = vsel %vm796_vm3, %v877_v17, %v926_v25  ;;  %2183 = vmatprep.mubr.bf16.mxu1 %v3129_v19  ;;  %v3181_v17 = vld [vmem:[%s4336_s1 + $0x23c] ss:$20 sps:$4 sm:$0xff]   ;;  %v3183_v25 = vld [vmem:[%s4336_s1 + $0x238] ss:$20 sps:$4 sm:$0xff]  }
 0x162   : >> { %v2953_v28 = vcombine.low %v925_v13, %v927_v27  ;;  %v2954_v29 = vcombine.high %v925_v13, %v927_v27  ;;  %v3180_v13 = vld [vmem:[%s4336_s1 + $0x1f0] ss:$20 sps:$4 sm:$0xff]   ;;  %v3184_v27 = vld [vmem:[%s4336_s1 + $0x218] ss:$20 sps:$4 sm:$0xff]  }
 0x164   : >> { %2348 = vmatprep.subr.bf16.mxu0 %v2954_v29  ;;  %v3185_v29 = vld [vmem:[%s4336_s1 + $0x264] ss:$20 sps:$4 sm:$0xff]  }
 0x165   : >> { %2349 = vmatpush1.bf16.msra.mxu0 %v2953_v28 }
 0x168   : >> { %2184 = vmatmul.mubr.bf16.gmra.mxu1 %v3131_v14  ;;  %2964 = vmatmul.mubr.msk.bf16.vlgmr.msra.gmra.mxu0 %vm1892_vm4, %v3132_v30 }
 0x169   : >> { %2193 = vmatprep.mubr.bf16.mxu1 %v3133_v22  ;;  %2376 = vmatprep.mubr.bf16.mxu0 %v3211_v50 }
 0x170   : >> { %2194 = vmatmul.mubr.bf16.gmra.mxu1 %v3135_v26  ;;  %2965 = vmatmul.mubr.msk.bf16.gmra.mxu0 %vm1892_vm4, %v3136_v31  ;;  %v3187_v26 = vld [vmem:[%s4336_s1 + $0x260] ss:$20 sps:$4 sm:$0xff]  }
 0x171   : >> { %2203 = vmatprep.mubr.bf16.mxu1 %v3137_v32  ;;  %2386 = vmatprep.mubr.bf16.mxu0 %v3211_v50  ;;  %v3188_v31 = vld [vmem:[%s4336_s1 + $0x240] ss:$20 sps:$4 sm:$0xff]  }
 0x178   : >> { %2204 = vmatmul.mubr.bf16.gmra.mxu1 %v3139_v33  ;;  %2966 = vmatmul.mubr.msk.bf16.gmra.mxu0 %vm1892_vm4, %v3140_v34 }
 0x179   : >> { %2213 = vmatprep.mubr.bf16.mxu1 %v3141_v15  ;;  %2396 = vmatprep.mubr.bf16.mxu0 %v3211_v50 }
 0x180   : >> { %2214 = vmatmul.mubr.bf16.gmra.mxu1 %v3143_v35  ;;  %2967 = vmatmul.mubr.msk.bf16.gmra.mxu0 %vm1892_vm4, %v3144_v7  ;;  %v3189_v35 = vld [vmem:[%s4336_s1 + $0x268] ss:$20 sps:$4 sm:$0xff]  }
 0x181   : >> { %2223 = vmatprep.mubr.bf16.mxu1 %v3145_v36  ;;  %2406 = vmatprep.mubr.bf16.mxu0 %v3211_v50 }
 0x188   : >> { %2224 = vmatmul.mubr.bf16.gmra.mxu1 %v3147_v37  ;;  %2968 = vmatmul.mubr.msk.bf16.gmra.mxu0 %vm1892_vm4, %v3148_v38 }
 0x189   : >> { %2233 = vmatprep.mubr.bf16.mxu1 %v3149_v39  ;;  %2416 = vmatprep.mubr.bf16.mxu0 %v3211_v50 }
 0x18c   : >> { %v3851_v18 = vpop.f32.mrf.mxu1 }
 0x18e   : >> { %v3860_v49 = vpop.f32.mrf.mxu1  ;;  %v3869_v51 = vpop.f32.mrf.mxu0 }
 0x190   : >> { %2234 = vmatmul.mubr.bf16.gmra.mxu1 %v3151_v40  ;;  %2969 = vmatmul.mubr.msk.bf16.gmra.mxu0 %vm1892_vm4, %v3152_v41  ;;  %v3866_v9 = vpop.f32.mrf.mxu1  ;;  %v3882_v10 = vpop.f32.mrf.mxu0 }
 0x191   : >> { %2243 = vmatprep.mubr.bf16.mxu1 %v3153_v8  ;;  %2426 = vmatprep.mubr.bf16.mxu0 %v3211_v50 }
 0x192   : >> { %v3877_v54 = vpop.f32.mrf.mxu1  ;;  %v3888_v57 = vpop.f32.mrf.mxu0 }
 0x194   : >> { %v3885_v56 = vpop.f32.mrf.mxu1  ;;  %v3901_v61 = vpop.f32.mrf.mxu0 }
 0x196   : >> { %v3896_v59 = vpop.f32.mrf.mxu1  ;;  %v3907_v63 = vpop.f32.mrf.mxu0 }
 0x198   : >> { %2244 = vmatmul.mubr.bf16.gmra.mxu1 %v3155_v16  ;;  %2970 = vmatmul.mubr.msk.bf16.gmra.mxu0 %vm1892_vm4, %v3156_v42  ;;  %v3904_v62 = vpop.f32.mrf.mxu1  ;;  %v3920_v3 = vpop.f32.mrf.mxu0 }
 0x199   : >> { %2253 = vmatprep.mubr.bf16.mxu1 %v3157_v43  ;;  %2436 = vmatprep.mubr.bf16.mxu0 %v3211_v50 }
 0x19a   : >> { %v3915_v1 = vpop.f32.mrf.mxu1  ;;  %v3926_v5 = vpop.f32.mrf.mxu0 }
 0x19c   : >> { %v3923_v4 = vpop.f32.mrf.mxu1  ;;  %v3939_v19 = vpop.f32.mrf.mxu0 }
 0x19e   : >> { %v3934_v11 = vpop.f32.mrf.mxu1  ;;  %v3945_v24 = vpop.f32.mrf.mxu0 }
 0x19f   : >> { %4359 = vst [vmem:[#allocation3_spill] sm:$0xff] %v3934_v11 }
 0x1a0   : >> { %2254 = vmatmul.mubr.bf16.gmra.mxu1 %v3159_v44  ;;  %2971 = vmatmul.mubr.msk.bf16.gmra.mxu0 %vm1892_vm4, %v3160_v45  ;;  %v3942_v23 = vpop.f32.mrf.mxu1  ;;  %v3958_v14 = vpop.f32.mrf.mxu0 }
 0x1a1   : >> { %2263 = vmatprep.mubr.bf16.mxu1 %v3161_v46  ;;  %2446 = vmatprep.mubr.bf16.mxu0 %v3211_v50  ;;  %4360 = vst [vmem:[#allocation4_spill] sm:$0xff] %v3942_v23 }
 0x1a2   : >> { %v3953_v28 = vpop.f32.mrf.mxu1  ;;  %v3964_v22 = vpop.f32.mrf.mxu0 }
 0x1a3   : >> { %4361 = vst [vmem:[#allocation5_spill] sm:$0xff] %v3953_v28 }
 0x1a4   : >> { %v3961_v30 = vpop.f32.mrf.mxu1  ;;  %v3974_v33 = vpop.f32.mrf.mxu0 }
 0x1a5   : >> { %4362 = vst [vmem:[#allocation6_spill] sm:$0xff] %v3961_v30 }
 0x1a6   : >> { %v3972_v32 = vpop.f32.mrf.mxu1  ;;  %v3980_v15 = vpop.f32.mrf.mxu0 }
 0x1a7   : >> { %4363 = vst [vmem:[#allocation7_spill] sm:$0xff] %v3972_v32 }
 0x1a8   : >> { %2264 = vmatmul.mubr.bf16.gmra.mxu1 %v3163_v47  ;;  %2972 = vmatmul.mubr.msk.bf16.gmra.mxu0 %vm1892_vm4, %v3164_v48  ;;  %v3977_v34 = vpop.f32.mrf.mxu1  ;;  %v3987_v36 = vpop.f32.mrf.mxu0 }
 0x1a9   : >> { %2273 = vmatprep.mubr.bf16.mxu1 %v3165_v20  ;;  %2456 = vmatprep.mubr.bf16.mxu0 %v3211_v50  ;;  %4364 = vst [vmem:[#allocation8_spill] sm:$0xff] %v3977_v34 }
 0x1aa   : >> { %v3985_v7 = vpop.f32.mrf.mxu1  ;;  %v3992_v38 = vpop.f32.mrf.mxu0 }
 0x1ab   : >> { %4365 = vst [vmem:[#allocation9_spill] sm:$0xff] %v3985_v7 }
 0x1ac   : >> { %v3990_v37 = vpop.f32.mrf.mxu1  ;;  %v3996_v40 = vpop.f32.mrf.mxu0 }
 0x1ae   : >> { %v3994_v39 = vpop.f32.mrf.mxu1  ;;  %v4000_v41 = vpop.f32.mrf.mxu0 }
 0x1b0   : >> { %2274 = vmatmul.mubr.bf16.gmra.mxu1 %v3167_v52  ;;  %2973 = vmatmul.mubr.msk.bf16.gmra.mxu0 %vm1892_vm4, %v3168_v53  ;;  %v4004_v16 = vpop.f32.mrf.mxu0 }
 0x1b1   : >> { %2283 = vmatprep.mubr.bf16.mxu1 %v3169_v55  ;;  %2466 = vmatprep.mubr.bf16.mxu0 %v3211_v50 }
 0x1b2   : >> { %v4008_v43 = vpop.f32.mrf.mxu0 }
 0x1b4   : >> { %v4012_v45 = vpop.f32.mrf.mxu0 }
 0x1b6   : >> { %v4016_v47 = vpop.f32.mrf.mxu0 }
 0x1b8   : >> { %2284 = vmatmul.mubr.bf16.gmra.mxu1 %v3171_v58  ;;  %2974 = vmatmul.mubr.msk.bf16.gmra.mxu0 %vm1892_vm4, %v3172_v21  ;;  %v4020_v20 = vpop.f32.mrf.mxu0 }
 0x1b9   : >> { %2293 = vmatprep.mubr.bf16.mxu1 %v3173_v60  ;;  %2476 = vmatprep.mubr.bf16.mxu0 %v3211_v50 }
 0x1ba   : >> { %v4024_v53 = vpop.f32.mrf.mxu0 }
 0x1bc   : >> { %v4028_v58 = vpop.f32.mrf.mxu0 }
 0x1be   : >> { %v4032_v60 = vpop.f32.mrf.mxu0 }
 0x1c0   : >> { %2294 = vmatmul.mubr.bf16.gmra.mxu1 %v3175_v0  ;;  %2975 = vmatmul.mubr.msk.bf16.gmra.mxu0 %vm1892_vm4, %v3176_v12  ;;  %v4036_v12 = vpop.f32.mrf.mxu0 }
 0x1c1   : >> { %2303 = vmatprep.mubr.bf16.mxu1 %v3177_v2  ;;  %2486 = vmatprep.mubr.bf16.mxu0 %v3211_v50 }
 0x1c8   : >> { %2304 = vmatmul.mubr.bf16.gmra.mxu1 %v3179_v6  ;;  %2976 = vmatmul.mubr.msk.bf16.gmra.mxu0 %vm1892_vm4, %v3180_v13  ;;  %v4040_v6 = vpop.f32.mrf.mxu0 }
 0x1c9   : >> { %2313 = vmatprep.mubr.bf16.mxu1 %v3181_v17  ;;  %2496 = vmatprep.mubr.bf16.mxu0 %v3211_v50 }
 0x1ca   : >> { %v4044_v17 = vpop.f32.mrf.mxu0 }
 0x1d0   : >> { %2314 = vmatmul.mubr.bf16.gmra.mxu1 %v3183_v25  ;;  %2977 = vmatmul.mubr.msk.bf16.gmra.mxu0 %vm1892_vm4, %v3184_v27  ;;  %v4048_v27 = vpop.f32.mrf.mxu0 }
 0x1d1   : >> { %2323 = vmatprep.mubr.bf16.mxu1 %v3185_v29  ;;  %2506 = vmatprep.mubr.bf16.mxu0 %v3211_v50 }
 0x1d8   : >> { %2324 = vmatmul.mubr.bf16.gmra.mxu1 %v3187_v26  ;;  %2978 = vmatmul.mubr.msk.bf16.gmra.mxu0 %vm1892_vm4, %v3188_v31  ;;  %v4052_v26 = vpop.f32.mrf.mxu0 }
 0x1d9   : >> { %2516 = vmatprep.mubr.bf16.mxu0 %v3211_v50  ;;  %v3998_v50 = vpop.f32.mrf.mxu1 }
 0x1da   : >> { %v4054_v7 = vpop.f32.mrf.mxu0 }
 0x1db   : >> { %v4002_v8 = vpop.f32.mrf.mxu1 }
 0x1dd   : >> { %v4006_v42 = vpop.f32.mrf.mxu1 }
 0x1de   : >> { %4366 = vst [vmem:[#allocation10_spill] sm:$0xff] %v4006_v42 }
 0x1df   : >> { %v4010_v44 = vpop.f32.mrf.mxu1 }
 0x1e0   : >> { %2979 = vmatmul.mubr.msk.bf16.gmra.mxu0 %vm1892_vm4, %v3189_v35  ;;  %4367 = vst [vmem:[#allocation11_spill] sm:$0xff] %v4010_v44 }
 0x1e1   : >> { %v4014_v46 = vpop.f32.mrf.mxu1 }
 0x1e2   : >> { %4368 = vst [vmem:[#allocation12_spill] sm:$0xff] %v4014_v46 }
 0x1e3   : >> { %v4018_v48 = vpop.f32.mrf.mxu1 }
 0x1e4   : >> { %4369 = vst [vmem:[#allocation13_spill] sm:$0xff] %v4018_v48 }
 0x1e5   : >> { %v4022_v52 = vpop.f32.mrf.mxu1 }
 0x1e6   : >> { %4370 = vst [vmem:[#allocation14_spill] sm:$0xff] %v4022_v52 }
 0x1e7   : >> { %v4026_v55 = vpop.f32.mrf.mxu1 }
 0x1e8   : >> { %4371 = vst [vmem:[#allocation15_spill] sm:$0xff] %v4026_v55 }
 0x1e9   : >> { %v4030_v21 = vpop.f32.mrf.mxu1 }
 0x1ea   : >> { %4372 = vst [vmem:[#allocation16_spill] sm:$0xff] %v4030_v21 }
 0x1eb   : >> { %v4034_v0 = vpop.f32.mrf.mxu1 }
 0x1ec   : >> { %4373 = vst [vmem:[#allocation17_spill] sm:$0xff] %v4034_v0 }
 0x1ed   : >> { %v4038_v2 = vpop.f32.mrf.mxu1 }
 0x1ee   : >> { %4374 = vst [vmem:[#allocation18_spill] sm:$0xff] %v4038_v2  ;;  %v4056_v2 = vpop.f32.mrf.mxu0 }
 0x1ef   : >> { %v4042_v13 = vpop.f32.mrf.mxu1 }
 0x1f0   : >> { %4375 = vst [vmem:[#allocation19_spill] sm:$0xff] %v4042_v13 }
 0x1f1   : >> { %v4046_v25 = vpop.f32.mrf.mxu1 }
 0x1f2   : >> { %4376 = vst [vmem:[#allocation20_spill] sm:$0xff] %v4046_v25 }
 0x1f3   : >> { %v4050_v29 = vpop.f32.mrf.mxu1 }
 0x1f4   : >> { %4377 = vst [vmem:[#allocation21_spill] sm:$0xff] %v4050_v29 }
 0x220   : >> { %v2175_v31 = vpop.f32.mrf.mxu1 }
 0x221   : >> { %v2176_v13 = vadd.f32 %v2175_v31, %v3869_v51 }
 0x222   : >> { %v2177_v35 = vpop.f32.mrf.mxu1 }
 0x223   : >> { %v2178_v25 = vadd.f32 %v2177_v35, %v3882_v10 }
 0x224   : >> { %v2179_v34 = vpop.f32.mrf.mxu1 }
 0x225   : >> { %v2180_v30 = vadd.f32 %v2179_v34, %v3888_v57 }
 0x226   : >> { %v2181_v0 = vpop.f32.mrf.mxu1 }
 0x227   : >> { %v2182_v23 = vadd.f32 %v2181_v0, %v3901_v61 }
 0x228   : >> { %v2185_v21 = vpop.f32.mrf.mxu1  ;;  %v2368_v55 = vpop.f32.mrf.mxu0 }
 0x229   : >> { %v4060_v32 = vadd.f32 %v2368_v55, %v2176_v13  ;;  %v2186_v31 = vadd.f32 %v2185_v21, %v3907_v63 }
 0x22a   : >> { %v2187_v52 = vpop.f32.mrf.mxu1  ;;  %v2370_v29 = vpop.f32.mrf.mxu0 }
 0x22b   : >> { %v4063_v48 = vadd.f32 %v2370_v29, %v2178_v25  ;;  %v2188_v13 = vadd.f32 %v2187_v52, %v3920_v3 }
 0x22c   : >> { %v2189_v28 = vpop.f32.mrf.mxu1  ;;  %v2372_v46 = vpop.f32.mrf.mxu0 }
 0x22d   : >> { %v4066_v44 = vadd.f32 %v2372_v46, %v2180_v30  ;;  %v2190_v25 = vadd.f32 %v2189_v28, %v3926_v5 }
 0x22e   : >> { %v2191_v11 = vpop.f32.mrf.mxu1  ;;  %v2374_v51 = vpop.f32.mrf.mxu0 }
 0x22f   : >> { %v4069_v42 = vadd.f32 %v2374_v51, %v2182_v23  ;;  %v2192_v46 = vadd.f32 %v2191_v11, %v3939_v19 }
 0x230   : >> { %v2195_v10 = vpop.f32.mrf.mxu1  ;;  %v2378_v55 = vpop.f32.mrf.mxu0 }
 0x231   : >> { %v4072_v35 = vadd.f32 %v2378_v55, %v2186_v31  ;;  %v2196_v21 = vadd.f32 %v2195_v10, %v3945_v24 }
 0x232   : >> { %v2197_v57 = vpop.f32.mrf.mxu1  ;;  %v2380_v34 = vpop.f32.mrf.mxu0 }
 0x233   : >> { %v4075_v29 = vadd.f32 %v2380_v34, %v2188_v13  ;;  %v2198_v31 = vadd.f32 %v2197_v57, %v3958_v14 }
 0x234   : >> { %v2199_v61 = vpop.f32.mrf.mxu1  ;;  %v2382_v30 = vpop.f32.mrf.mxu0 }
 0x235   : >> { %v4078_v0 = vadd.f32 %v2382_v30, %v2190_v25  ;;  %v2200_v13 = vadd.f32 %v2199_v61, %v3964_v22 }
 0x236   : >> { %v2201_v63 = vpop.f32.mrf.mxu1  ;;  %v2384_v23 = vpop.f32.mrf.mxu0 }
 0x237   : >> { %4378 = vst [vmem:[#allocation22_spill] sm:$0xff] %v4078_v0  ;;  %v4081_v51 = vadd.f32 %v2384_v23, %v2192_v46  ;;  %v2202_v25 = vadd.f32 %v2201_v63, %v3974_v33 }
 0x238   : >> { %v2205_v3 = vpop.f32.mrf.mxu1  ;;  %v2388_v52 = vpop.f32.mrf.mxu0 }
 0x239   : >> { %4379 = vst [vmem:[#allocation23_spill] sm:$0xff] %v4081_v51  ;;  %v4084_v55 = vadd.f32 %v2388_v52, %v2196_v21  ;;  %v2206_v46 = vadd.f32 %v2205_v3, %v3980_v15 }
 0x23a   : >> { %v2207_v5 = vpop.f32.mrf.mxu1  ;;  %v2390_v28 = vpop.f32.mrf.mxu0 }
 0x23b   : >> { %4380 = vst [vmem:[#allocation24_spill] sm:$0xff] %v4084_v55  ;;  %v4087_v34 = vadd.f32 %v2390_v28, %v2198_v31  ;;  %v2208_v21 = vadd.f32 %v2207_v5, %v3987_v36 }
 0x23c   : >> { %v2209_v11 = vpop.f32.mrf.mxu1  ;;  %v2392_v19 = vpop.f32.mrf.mxu0 }
 0x23d   : >> { %4381 = vst [vmem:[#allocation25_spill] sm:$0xff] %v4087_v34  ;;  %v4090_v30 = vadd.f32 %v2392_v19, %v2200_v13  ;;  %v2210_v31 = vadd.f32 %v2209_v11, %v3992_v38 }
 0x23e   : >> { %v2211_v24 = vpop.f32.mrf.mxu1  ;;  %v2394_v10 = vpop.f32.mrf.mxu0 }
 0x23f   : >> { %4382 = vst [vmem:[#allocation26_spill] sm:$0xff] %v4090_v30  ;;  %v4093_v23 = vadd.f32 %v2394_v10, %v2202_v25  ;;  %v2212_v13 = vadd.f32 %v2211_v24, %v3996_v40 }
 0x240   : >> { %v2215_v14 = vpop.f32.mrf.mxu1  ;;  %v2398_v57 = vpop.f32.mrf.mxu0 }
 0x241   : >> { %4383 = vst [vmem:[#allocation27_spill] sm:$0xff] %v4093_v23  ;;  %v4096_v52 = vadd.f32 %v2398_v57, %v2206_v46  ;;  %v2216_v25 = vadd.f32 %v2215_v14, %v4000_v41 }
 0x242   : >> { %v2217_v22 = vpop.f32.mrf.mxu1  ;;  %v2400_v61 = vpop.f32.mrf.mxu0 }
 0x243   : >> { %4384 = vst [vmem:[#allocation28_spill] sm:$0xff] %v4096_v52  ;;  %v4099_v28 = vadd.f32 %v2400_v61, %v2208_v21  ;;  %v2218_v46 = vadd.f32 %v2217_v22, %v4004_v16 }
 0x244   : >> { %v2219_v33 = vpop.f32.mrf.mxu1  ;;  %v2402_v63 = vpop.f32.mrf.mxu0 }
 0x245   : >> { %4385 = vst [vmem:[#allocation29_spill] sm:$0xff] %v4099_v28  ;;  %v4102_v19 = vadd.f32 %v2402_v63, %v2210_v31  ;;  %v2220_v21 = vadd.f32 %v2219_v33, %v4008_v43 }
 0x246   : >> { %v2221_v15 = vpop.f32.mrf.mxu1  ;;  %v2404_v3 = vpop.f32.mrf.mxu0 }
 0x247   : >> { %4386 = vst [vmem:[#allocation30_spill] sm:$0xff] %v4102_v19  ;;  %v4105_v10 = vadd.f32 %v2404_v3, %v2212_v13  ;;  %v2222_v41 = vadd.f32 %v2221_v15, %v4012_v45 }
 0x248   : >> { %v2225_v36 = vpop.f32.mrf.mxu1  ;;  %v2408_v5 = vpop.f32.mrf.mxu0 }
 0x249   : >> { %4387 = vst [vmem:[#allocation31_spill] sm:$0xff] %v4105_v10  ;;  %v4108_v57 = vadd.f32 %v2408_v5, %v2216_v25  ;;  %v2226_v13 = vadd.f32 %v2225_v36, %v4016_v47 }
 0x24a   : >> { %v2227_v38 = vpop.f32.mrf.mxu1  ;;  %v2410_v11 = vpop.f32.mrf.mxu0 }
 0x24b   : >> { %v4113_v24 = vadd.f32 %v2410_v11, %v2218_v46  ;;  %v2228_v5 = vadd.f32 %v2227_v38, %v4020_v20 }
 0x24c   : >> { %v2229_v61 = vpop.f32.mrf.mxu1  ;;  %v2412_v31 = vpop.f32.mrf.mxu0 }
 0x24d   : >> { %v4118_v63 = vadd.f32 %v2412_v31, %v2220_v21  ;;  %v2230_v21 = vadd.f32 %v2229_v61, %v4024_v53 }
 0x24e   : >> { %v2231_v16 = vpop.f32.mrf.mxu1  ;;  %v2414_v22 = vpop.f32.mrf.mxu0 }
 0x24f   : >> { %v4123_v33 = vadd.f32 %v2414_v22, %v2222_v41  ;;  %v2232_v22 = vadd.f32 %v2231_v16, %v4028_v58 }
 0x250   : >> { %v2235_v3 = vpop.f32.mrf.mxu1  ;;  %v2418_v25 = vpop.f32.mrf.mxu0 }
 0x251   : >> { %v4128_v15 = vadd.f32 %v2418_v25, %v2226_v13  ;;  %v2236_v45 = vadd.f32 %v2235_v3, %v4032_v60 }
 0x252   : >> { %v2237_v46 = vpop.f32.mrf.mxu1  ;;  %v2420_v11 = vpop.f32.mrf.mxu0 }
 0x253   : >> { %v4133_v36 = vadd.f32 %v2420_v11, %v2228_v5  ;;  %v2238_v47 = vadd.f32 %v2237_v46, %v4036_v12 }
 0x254   : >> { %v2239_v31 = vpop.f32.mrf.mxu1  ;;  %v2422_v41 = vpop.f32.mrf.mxu0 }
 0x255   : >> { %4388 = vst [vmem:[#allocation32_spill] sm:$0xff] %v4133_v36  ;;  %v4138_v38 = vadd.f32 %v2422_v41, %v2230_v21  ;;  %v2240_v20 = vadd.f32 %v2239_v31, %v4040_v6 }
 0x256   : >> { %v2241_v13 = vpop.f32.mrf.mxu1  ;;  %v2424_v25 = vpop.f32.mrf.mxu0 }
 0x257   : >> { %4389 = vst [vmem:[#allocation33_spill] sm:$0xff] %v4138_v38  ;;  %v4143_v61 = vadd.f32 %v2424_v25, %v2232_v22  ;;  %v2242_v53 = vadd.f32 %v2241_v13, %v4044_v17 }
 0x258   : >> { %v2245_v5 = vpop.f32.mrf.mxu1  ;;  %v2428_v11 = vpop.f32.mrf.mxu0 }
 0x259   : >> { %4390 = vst [vmem:[#allocation34_spill] sm:$0xff] %v4143_v61  ;;  %v4148_v16 = vadd.f32 %v2428_v11, %v2236_v45  ;;  %v2246_v58 = vadd.f32 %v2245_v5, %v4048_v27 }
 0x25a   : >> { %v2247_v21 = vpop.f32.mrf.mxu1  ;;  %v2430_v41 = vpop.f32.mrf.mxu0 }
 0x25b   : >> { %4391 = vst [vmem:[#allocation35_spill] sm:$0xff] %v4148_v16  ;;  %v4153_v3 = vadd.f32 %v2430_v41, %v2238_v47  ;;  %v2248_v17 = vadd.f32 %v2247_v21, %v4052_v26 }
 0x25c   : >> { %v2249_v22 = vpop.f32.mrf.mxu1  ;;  %v2432_v25 = vpop.f32.mrf.mxu0 }
 0x25d   : >> { %4392 = vst [vmem:[#allocation36_spill] sm:$0xff] %v4153_v3  ;;  %v4158_v46 = vadd.f32 %v2432_v25, %v2240_v20  ;;  %v2250_v27 = vadd.f32 %v2249_v22, %v4054_v7 }
 0x25e   : >> { %v2251_v45 = vpop.f32.mrf.mxu1  ;;  %v2434_v11 = vpop.f32.mrf.mxu0 }
 0x25f   : >> { %4393 = vst [vmem:[#allocation37_spill] sm:$0xff] %v4158_v46  ;;  %v2252_v31 = vadd.f32 %v2251_v45, %v4056_v2  ;;  %v4164_v47 = vadd.f32 %v2434_v11, %v2242_v53 }
 0x260   : >> { %v2255_v41 = vpop.f32.mrf.mxu1  ;;  %v2438_v60 = vpop.f32.mrf.mxu0 }
 0x261   : >> { %4394 = vst [vmem:[#allocation38_spill] sm:$0xff] %v4164_v47  ;;  %v4169_v20 = vadd.f32 %v2438_v60, %v2246_v58 }
 0x262   : >> { %v2257_v25 = vpop.f32.mrf.mxu1  ;;  %v2440_v12 = vpop.f32.mrf.mxu0 }
 0x263   : >> { %4395 = vst [vmem:[#allocation39_spill] sm:$0xff] %v4169_v20  ;;  %v4174_v6 = vadd.f32 %v2440_v12, %v2248_v17 }
 0x264   : >> { %v2259_v2 = vpop.f32.mrf.mxu1  ;;  %v2442_v53 = vpop.f32.mrf.mxu0 }
 0x265   : >> { %4396 = vst [vmem:[#allocation40_spill] sm:$0xff] %v4174_v6  ;;  %v4178_v26 = vadd.f32 %v2442_v53, %v2250_v27 }
 0x266   : >> { %v2261_v21 = vpop.f32.mrf.mxu1  ;;  %v2444_v11 = vpop.f32.mrf.mxu0 }
 0x267   : >> { %4397 = vst [vmem:[#allocation41_spill] sm:$0xff] %v4178_v26  ;;  %v4182_v60 = vadd.f32 %v2444_v11, %v2252_v31 }
 0x268   : >> { %v2265_v7 = vpop.f32.mrf.mxu1  ;;  %v2448_v22 = vpop.f32.mrf.mxu0 }
 0x269   : >> { %4398 = vst [vmem:[#allocation42_spill] sm:$0xff] %v4182_v60 }
 0x26a   : >> { %v2267_v17 = vpop.f32.mrf.mxu1  ;;  %v2450_v5 = vpop.f32.mrf.mxu0 }
 0x26c   : >> { %v2269_v13 = vpop.f32.mrf.mxu1  ;;  %v2452_v43 = vpop.f32.mrf.mxu0 }
 0x26e   : >> { %v2271_v14 = vpop.f32.mrf.mxu1  ;;  %v2454_v45 = vpop.f32.mrf.mxu0 }
 0x270   : >> { %v2275_v27 = vpop.f32.mrf.mxu1  ;;  %v2458_v53 = vpop.f32.mrf.mxu0 }
 0x272   : >> { %v2277_v40 = vpop.f32.mrf.mxu1  ;;  %v4186_v6 = vpop.f32.mrf.mxu0 }
 0x274   : >> { %v4188_v28 = vpop.f32.mrf.mxu1  ;;  %v4190_v31 = vpop.f32.mrf.mxu0 }
 0x276   : >> { %v4192_v11 = vpop.f32.mrf.mxu1  ;;  %v4194_v58 = vpop.f32.mrf.mxu0 }
 0x278   : >> { %v4196_v12 = vpop.f32.mrf.mxu1  ;;  %v4198_v60 = vpop.f32.mrf.mxu0 }
 0x279   : >> { %4399 = vst [vmem:[#allocation43_spill] sm:$0xff] %v4198_v60 }
 0x27a   : >> { %v4200_v10 = vpop.f32.mrf.mxu1  ;;  %v4202_v26 = vpop.f32.mrf.mxu0 }
 0x27b   : >> { %4400 = vst [vmem:[#allocation44_spill] sm:$0xff] %v4200_v10  ;;  %4401 = vst [vmem:[#allocation45_spill] sm:$0xff] %v4202_v26 }
 0x27c   : >> { %v4204_v19 = vpop.f32.mrf.mxu1  ;;  %v4206_v20 = vpop.f32.mrf.mxu0 }
 0x27d   : >> { %4402 = vst [vmem:[#allocation46_spill] sm:$0xff] %v4204_v19  ;;  %4403 = vst [vmem:[#allocation47_spill] sm:$0xff] %v4206_v20  ;;  %v2256_v19 = vadd.f32 %v2255_v41, %v3851_v18  ;;  %v2262_v18 = vadd.f32 %v2261_v21, %v3877_v54 }
 0x27e   : >> { %v4208_v52 = vpop.f32.mrf.mxu1  ;;  %v4210_v47 = vpop.f32.mrf.mxu0 }
 0x27f   : >> { %4404 = vst [vmem:[#allocation48_spill] sm:$0xff] %v4208_v52  ;;  %4405 = vst [vmem:[#allocation49_spill] sm:$0xff] %v4210_v47  ;;  %v2258_v47 = vadd.f32 %v2257_v25, %v3860_v49  ;;  %v2449_v51 = vadd.f32 %v2448_v22, %v2256_v19  ;;  %v2268_v19 = vadd.f32 %v2267_v17, %v3896_v59  ;;  %v4412_v59 = vld [vmem:[#allocation10_spill] sm:$0xff] }
 0x280   : >> { %v2295_v23 = vpop.f32.mrf.mxu1  ;;  %v4212_v46 = vpop.f32.mrf.mxu0 }
 0x281   : >> { %4406 = vst [vmem:[#allocation50_spill] sm:$0xff] %v4212_v46  ;;  %v2296_v20 = vadd.f32 %v2295_v23, %v3990_v37  ;;  %v2266_v37 = vadd.f32 %v2265_v7, %v3885_v56 }
 0x282   : >> { %v2297_v30 = vpop.f32.mrf.mxu1  ;;  %v4214_v3 = vpop.f32.mrf.mxu0 }
 0x283   : >> { %4407 = vst [vmem:[#allocation51_spill] sm:$0xff] %v4214_v3  ;;  %v2298_v46 = vadd.f32 %v2297_v30, %v3994_v39  ;;  %v2260_v3 = vadd.f32 %v2259_v2, %v3866_v9  ;;  %v4410_v39 = vmax.f32 %v4060_v32, %v4108_v57 }
 0x284   : >> { %v2299_v34 = vpop.f32.mrf.mxu1  ;;  %v4216_v16 = vpop.f32.mrf.mxu0 }
 0x285   : >> { %4408 = vst [vmem:[#allocation52_spill] sm:$0xff] %v4216_v16  ;;  %v2451_v16 = vadd.f32 %v2450_v5, %v2258_v47  ;;  %v2300_v60 = vadd.f32 %v2299_v34, %v3998_v50  ;;  %v2453_v49 = vadd.f32 %v2452_v43, %v2260_v3  ;;  %v2270_v47 = vadd.f32 %v2269_v13, %v3904_v62 }
 0x286   : >> { %v2301_v55 = vpop.f32.mrf.mxu1  ;;  %v4218_v61 = vpop.f32.mrf.mxu0  ;;  %v2272_v50 = vadd.f32 %v2271_v14, %v3915_v1  ;;  %v2455_v34 = vadd.f32 %v2454_v45, %v2262_v18  ;;  %v4411_v43 = vmax.f32 %v4063_v48, %v4113_v24  ;;  %v4413_v14 = vld [vmem:[#allocation3_spill] sm:$0xff]  ;;  %v4415_v48 = vmax.f32 %v4066_v44, %v4118_v63  ;;  %v4420_v18 = vld [vmem:[#allocation13_spill] sm:$0xff] }
 0x287   : >> { %4409 = vst [vmem:[#allocation53_spill] sm:$0xff] %v4218_v61  ;;  %v2461_v13 = vadd.f32 %v4186_v6, %v2268_v19  ;;  %v4418_v63 = vmax.f32 %v4069_v42, %v4123_v33 }
 0x288   : >> { %v2305_v26 = vpop.f32.mrf.mxu1  ;;  %v2488_v52 = vpop.f32.mrf.mxu0 }
 0x289   : >> { %v2489_v38 = vadd.f32 %v2488_v52, %v2296_v20 }
 0x28a   : >> { %v2307_v0 = vpop.f32.mrf.mxu1  ;;  %v2490_v10 = vpop.f32.mrf.mxu0 }
 0x28b   : >> { %v2543_v61 = vmax.f32 %v2449_v51, %v2489_v38  ;;  %v2491_v36 = vadd.f32 %v2490_v10, %v2298_v46  ;;  %v2302_v51 = vadd.f32 %v2301_v55, %v4002_v8  ;;  %v2459_v38 = vadd.f32 %v2458_v53, %v2266_v37  ;;  %v4414_v55 = vld [vmem:[#allocation11_spill] sm:$0xff] }
 0x28c   : >> { %v2309_v23 = vpop.f32.mrf.mxu1  ;;  %v2492_v41 = vpop.f32.mrf.mxu0  ;;  %v2278_v8 = vadd.f32 %v2277_v40, %v4413_v14  ;;  %v2308_v3 = vadd.f32 %v2307_v0, %v4414_v55  ;;  %v4429_v14 = vld [vmem:[#allocation15_spill] sm:$0xff]  ;;  %v4430_v55 = vld [vmem:[#allocation22_spill] sm:$0xff] }
 0x28d   : >> { %v2559_v30 = vmax.f32 %v4410_v39, %v2543_v61  ;;  %v2544_v52 = vmax.f32 %v2451_v16, %v2491_v36  ;;  %v2493_v9 = vadd.f32 %v2492_v41, %v2300_v60  ;;  %v2276_v36 = vadd.f32 %v2275_v27, %v3923_v4  ;;  %v4416_v4 = vld [vmem:[#allocation4_spill] sm:$0xff]  ;;  %v4419_v27 = vld [vmem:[#allocation5_spill] sm:$0xff] }
 0x28e   : >> { %v2311_v54 = vpop.f32.mrf.mxu1  ;;  %v2494_v56 = vpop.f32.mrf.mxu0  ;;  %v2306_v61 = vadd.f32 %v2305_v26, %v4412_v59  ;;  %v2280_v20 = vadd.f32 %v4188_v28, %v4416_v4  ;;  %v2463_v26 = vadd.f32 %v4190_v31, %v2270_v47  ;;  %v4417_v60 = vld [vmem:[#allocation12_spill] sm:$0xff]  ;;  %v2282_v53 = vadd.f32 %v4192_v11, %v4419_v27  ;;  %v4423_v47 = vld [vmem:[#allocation14_spill] sm:$0xff] }
 0x28f   : >> { %v2575_v10 = vmul.f32 0.01, %v2559_v30  ;;  %v2560_v32 = vmax.f32 %v4411_v43, %v2544_v52  ;;  %v2545_v57 = vmax.f32 %v2453_v49, %v2493_v9  ;;  %v2495_v62 = vadd.f32 %v2494_v56, %v2302_v51  ;;  %v4422_v9 = vld [vmem:[#allocation6_spill] sm:$0xff]  ;;  %v4424_v51 = vld [vmem:[#allocation32_spill] sm:$0xff] }
 0x290   : >> { %v2315_v16 = vpop.f32.mrf.mxu1  ;;  %v2498_v1 = vpop.f32.mrf.mxu0  ;;  %v2310_v7 = vadd.f32 %v2309_v23, %v4417_v60  ;;  %v2312_v37 = vadd.f32 %v2311_v54, %v4420_v18  ;;  %v2465_v49 = vadd.f32 %v4194_v58, %v2272_v50  ;;  %v4421_v23 = vmax.f32 %v4072_v35, %v4128_v15  ;;  %v4437_v60 = vld [vmem:[#allocation16_spill] sm:$0xff]  ;;  %v4440_v18 = vld [vmem:[#allocation35_spill] sm:$0xff] }
 0x291   : >> { %v2576_v46 = vmul.f32 0.01, %v2560_v32  ;;  %v2561_v24 = vmax.f32 %v4415_v48, %v2545_v57  ;;  %v2546_v25 = vmax.f32 %v2455_v34, %v2495_v62  ;;  %v2499_v5 = vadd.f32 %v2498_v1, %v2306_v61  ;;  %v4427_v61 = vld [vmem:[#allocation7_spill] sm:$0xff]  ;;  %v4428_v62 = vld [vmem:[#allocation44_spill] sm:$0xff] }
 0x292   : >> { %v2317_v2 = vpop.f32.mrf.mxu1  ;;  %v2500_v45 = vpop.f32.mrf.mxu0  ;;  %v2591_v40 = vmax.f32 %v2559_v30, %v2575_v10  ;;  %v2286_v19 = vadd.f32 %v4196_v12, %v4422_v9  ;;  %v2316_v11 = vadd.f32 %v2315_v16, %v4423_v47  ;;  %v4425_v54 = vmax.f32 %v4075_v29, %v4424_v51  ;;  %v4444_v47 = vld [vmem:[#allocation18_spill] sm:$0xff] }
 0x293   : >> { %v2592_v21 = vmax.f32 %v2560_v32, %v2576_v46  ;;  %v2501_v0 = vadd.f32 %v2500_v45, %v2308_v3  ;;  %v2577_v44 = vmul.f32 0.01, %v2561_v24  ;;  %v2562_v6 = vmax.f32 %v4418_v63, %v2546_v25  ;;  %v4426_v32 = vld [vmem:[#allocation43_spill] sm:$0xff]  ;;  %v4431_v3 = vld [vmem:[#allocation33_spill] sm:$0xff] }
 0x294   : >> { %v2547_v28 = vmax.f32 %v2459_v38, %v2499_v5  ;;  %v2319_v22 = vpop.f32.mrf.mxu1  ;;  %v2502_v17 = vpop.f32.mrf.mxu0  ;;  %v2469_v57 = vadd.f32 %v4426_v32, %v2276_v36  ;;  %v2288_v16 = vadd.f32 %v4428_v62, %v4427_v61  ;;  %v2318_v29 = vadd.f32 %v2317_v2, %v4429_v14  ;;  %v4433_v25 = vld [vmem:[#allocation23_spill] sm:$0xff]  ;;  %v4434_v5 = vld [vmem:[#allocation34_spill] sm:$0xff] }
 0x295   : >> { %v2994_v31 = vpack.c.bf16 %v2592_v21, %v2591_v40  ;;  %v2548_v41 = vmax.f32 %v2461_v13, %v2501_v0  ;;  %v2578_v39 = vmul.f32 0.01, %v2562_v6  ;;  %v2503_v42 = vadd.f32 %v2502_v17, %v2310_v7  ;;  %v4436_v21 = vld [vmem:[#allocation45_spill] sm:$0xff]  ;;  %v4449_v32 = vld [vmem:[#allocation19_spill] sm:$0xff]  ;;  %v4451_v61 = vld [vmem:[#allocation46_spill] sm:$0xff] }
 0x296   : >> { %v2563_v30 = vmax.f32 %v4421_v23, %v2547_v28  ;;  %v2321_v33 = vpop.f32.mrf.mxu1  ;;  %v2504_v52 = vpop.f32.mrf.mxu0  ;;  %v2593_v58 = vmax.f32 %v2561_v24, %v2577_v44  ;;  %v4432_v46 = vmax.f32 %v4430_v55, %v4431_v3  ;;  %v4435_v45 = vmax.f32 %v4433_v25, %v4434_v5  ;;  %v4438_v28 = vld [vmem:[#allocation17_spill] sm:$0xff]  ;;  %v4452_v62 = vld [vmem:[#allocation51_spill] sm:$0xff]  ;;  %v4458_v25 = vld [vmem:[#allocation38_spill] sm:$0xff] }
 0x297   : >> { %2661 = vst [vmem:[%s4251_s22] sm:$0xff] %v2994_v31  ;;  %v2564_v56 = vmax.f32 %v4425_v54, %v2548_v41  ;;  %v2505_v34 = vadd.f32 %v2504_v52, %v2312_v37  ;;  %v2594_v50 = vmax.f32 %v2562_v6, %v2578_v39  ;;  %v2549_v43 = vmax.f32 %v2463_v26, %v2503_v42  ;;  %v4439_v31 = vld [vmem:[#allocation24_spill] sm:$0xff]  ;;  %v4443_v23 = vld [vmem:[#allocation49_spill] sm:$0xff]  ;;  %v4445_v54 = vld [vmem:[#allocation50_spill] sm:$0xff] }
 0x298   : >> { %v2579_v10 = vmul.f32 0.01, %v2563_v30  ;;  %v2325_v35 = vpop.f32.mrf.mxu1  ;;  %v2508_v15 = vpop.f32.mrf.mxu0  ;;  %v2471_v0 = vadd.f32 %v4436_v21, %v2278_v8  ;;  %v2320_v7 = vadd.f32 %v2319_v22, %v4437_v60  ;;  %v2322_v17 = vadd.f32 %v2321_v33, %v4438_v28 }
 0x299   : >> { %v2580_v38 = vmul.f32 0.01, %v2564_v56  ;;  %v2550_v59 = vmax.f32 %v2465_v49, %v2505_v34  ;;  %v2509_v12 = vadd.f32 %v2508_v15, %v2316_v11  ;;  %v2995_v1 = vpack.c.bf16 %v2594_v50, %v2593_v58  ;;  %v4442_v49 = vld [vmem:[#allocation47_spill] sm:$0xff]  ;;  %v4446_v58 = vld [vmem:[#allocation25_spill] sm:$0xff]  ;;  %v4447_v50 = vld [vmem:[#allocation36_spill] sm:$0xff] }
 0x29a   : >> { %v2565_v48 = vmax.f32 %v4432_v46, %v2549_v43  ;;  %v2510_v24 = vpop.f32.mrf.mxu0  ;;  %v2595_v13 = vmax.f32 %v2563_v30, %v2579_v10  ;;  %v2327_v40 = vpop.f32.mrf.mxu1  ;;  %v4441_v37 = vmax.f32 %v4439_v31, %v4440_v18  ;;  %v2473_v39 = vadd.f32 %v4442_v49, %v2280_v20  ;;  %v4464_v31 = vld [vmem:[#allocation9_spill] sm:$0xff]  ;;  %v4465_v18 = vld [vmem:[#allocation48_spill] sm:$0xff] }
 0x29b   : >> { %v2596_v4 = vmax.f32 %v2564_v56, %v2580_v38  ;;  %v2566_v36 = vmax.f32 %v4435_v45, %v2550_v59  ;;  %v2551_v26 = vmax.f32 %v2469_v57, %v2509_v12  ;;  %2662 = vst [vmem:[%s4251_s22 + $0x8] sm:$0xff] %v2995_v1  ;;  %v2511_v44 = vadd.f32 %v2510_v24, %v2318_v29  ;;  %v4450_v12 = vld [vmem:[#allocation8_spill] sm:$0xff]  ;;  %v4453_v29 = vld [vmem:[#allocation26_spill] sm:$0xff] }
 0x29c   : >> { %v2581_v2 = vmul.f32 0.01, %v2565_v48  ;;  %v2512_v63 = vpop.f32.mrf.mxu0  ;;  %v2475_v30 = vadd.f32 %v4443_v23, %v2282_v53  ;;  %v2326_v11 = vadd.f32 %v2325_v35, %v4444_v47  ;;  %v2329_v51 = vpop.f32.mrf.mxu1  ;;  %v2479_v56 = vadd.f32 %v4445_v54, %v2286_v19  ;;  %v4454_v19 = vld [vmem:[#allocation37_spill] sm:$0xff] }
 0x29d   : >> { %v2996_v6 = vpack.c.bf16 %v2596_v4, %v2595_v13  ;;  %v2582_v27 = vmul.f32 0.01, %v2566_v36  ;;  %v2567_v41 = vmax.f32 %v4441_v37, %v2551_v26  ;;  %v2552_v42 = vmax.f32 %v2471_v0, %v2511_v44  ;;  %v4457_v4 = vld [vmem:[#allocation27_spill] sm:$0xff]  ;;  %v4461_v44 = vld [vmem:[#allocation28_spill] sm:$0xff]  ;;  %v4466_v23 = vld [vmem:[#allocation21_spill] sm:$0xff] }
 0x29e   : >> { %v2513_v8 = vadd.f32 %v2512_v63, %v2320_v7  ;;  %v2514_v52 = vpop.f32.mrf.mxu0  ;;  %v2597_v22 = vmax.f32 %v2565_v48, %v2581_v2  ;;  %v4448_v10 = vmax.f32 %v4446_v58, %v4447_v50  ;;  %v2328_v57 = vadd.f32 %v2327_v40, %v4449_v32  ;;  %v4456_v48 = vld [vmem:[#allocation20_spill] sm:$0xff]  ;;  %v2331_v13 = vpop.f32.mrf.mxu1  ;;  %v4462_v63 = vld [vmem:[#allocation39_spill] sm:$0xff]  ;;  %v4471_v58 = vld [vmem:[#allocation30_spill] sm:$0xff] }
 0x29f   : >> { %2663 = vst [vmem:[%s4251_s22 + $0x10] sm:$0xff] %v2996_v6  ;;  %v2598_v9 = vmax.f32 %v2566_v36, %v2582_v27  ;;  %v2515_v33 = vadd.f32 %v2514_v52, %v2322_v17  ;;  %v2583_v34 = vmul.f32 0.01, %v2567_v41  ;;  %v2290_v35 = vadd.f32 %v4451_v61, %v4450_v12  ;;  %v4460_v40 = vld [vmem:[#allocation52_spill] sm:$0xff]  ;;  %v4467_v52 = vld [vmem:[#allocation29_spill] sm:$0xff] }
 0x2a0   : >> { %v2568_v20 = vmax.f32 %v4448_v10, %v2552_v42  ;;  %v2553_v43 = vmax.f32 %v2473_v39, %v2513_v8  ;;  %v2518_v53 = vpop.f32.mrf.mxu0  ;;  %v2481_v1 = vadd.f32 %v4452_v62, %v2288_v16  ;;  %v4455_v55 = vmax.f32 %v4453_v29, %v4454_v19  ;;  %v4472_v50 = vld [vmem:[#allocation41_spill] sm:$0xff] }
 0x2a1   : >> { %v2997_v15 = vpack.c.bf16 %v2598_v9, %v2597_v22  ;;  %v2554_v38 = vmax.f32 %v2475_v30, %v2515_v33  ;;  %v2519_v59 = vadd.f32 %v2518_v53, %v2326_v11  ;;  %v2330_v24 = vadd.f32 %v2329_v51, %v4456_v48  ;;  %v4468_v22 = vld [vmem:[#allocation40_spill] sm:$0xff]  ;;  %v4470_v51 = vld [vmem:[#allocation53_spill] sm:$0xff] }
 0x2a2   : >> { %v2584_v14 = vmul.f32 0.01, %v2568_v20  ;;  %v2569_v3 = vmax.f32 %v4455_v55, %v2553_v43  ;;  %v2520_v46 = vpop.f32.mrf.mxu0  ;;  %v4459_v5 = vmax.f32 %v4457_v4, %v4458_v25  ;;  %v2483_v21 = vadd.f32 %v4460_v40, %v2290_v35 }
 0x2a3   : >> { %2664 = vst [vmem:[%s4251_s22 + $0x18] sm:$0xff] %v2997_v15  ;;  %v2555_v36 = vmax.f32 %v2479_v56, %v2519_v59  ;;  %v2521_v26 = vadd.f32 %v2520_v46, %v2328_v57  ;;  %v2599_v0 = vmax.f32 %v2567_v41, %v2583_v34  ;;  %v4463_v6 = vmax.f32 %v4461_v44, %v4462_v63  ;;  %v4474_v57 = vld [vmem:[#allocation31_spill] sm:$0xff] }
 0x2a4   : >> { %v2570_v45 = vmax.f32 %v4459_v5, %v2554_v38  ;;  %v2600_v16 = vmax.f32 %v2568_v20, %v2584_v14  ;;  %v2585_v60 = vmul.f32 0.01, %v2569_v3  ;;  %v2522_v7 = vpop.f32.mrf.mxu0  ;;  %v2292_v37 = vadd.f32 %v4465_v18, %v4464_v31  ;;  %v4475_v38 = vld [vmem:[#allocation42_spill] sm:$0xff] }
 0x2a5   : >> { %v2571_v28 = vmax.f32 %v4463_v6, %v2555_v36  ;;  %v2556_v17 = vmax.f32 %v2481_v1, %v2521_v26  ;;  %v2523_v27 = vadd.f32 %v2522_v7, %v2330_v24  ;;  %v2332_v30 = vadd.f32 %v2331_v13, %v4466_v23 }
 0x2a6   : >> { %v2586_v2 = vmul.f32 0.01, %v2570_v45  ;;  %v2998_v49 = vpack.c.bf16 %v2600_v16, %v2599_v0  ;;  %v2601_v39 = vmax.f32 %v2569_v3, %v2585_v60  ;;  %v2524_v41 = vpop.f32.mrf.mxu0  ;;  %v4469_v9 = vmax.f32 %v4467_v52, %v4468_v22 }
 0x2a7   : >> { %v2587_v8 = vmul.f32 0.01, %v2571_v28  ;;  %v2557_v11 = vmax.f32 %v2483_v21, %v2523_v27  ;;  %v2485_v33 = vadd.f32 %v4470_v51, %v2292_v37  ;;  %v2525_v54 = vadd.f32 %v2524_v41, %v2332_v30 }
 0x2a8   : >> { %v2602_v42 = vmax.f32 %v2570_v45, %v2586_v2  ;;  %v2572_v47 = vmax.f32 %v4469_v9, %v2556_v17  ;;  %2665 = vst [vmem:[%s4251_s22 + $0x20] sm:$0xff] %v2998_v49  ;;  %v4473_v10 = vmax.f32 %v4471_v58, %v4472_v50  ;;  %v4476_v59 = vmax.f32 %v4474_v57, %v4475_v38 }
 0x2a9   : >> { %v2558_v43 = vmax.f32 %v2485_v33, %v2525_v54  ;;  %v2603_v53 = vmax.f32 %v2571_v28, %v2587_v8 }
 0x2aa   : >> { %v2999_v56 = vpack.c.bf16 %v2602_v42, %v2601_v39  ;;  %v2588_v34 = vmul.f32 0.01, %v2572_v47  ;;  %v2573_v20 = vmax.f32 %v4473_v10, %v2557_v11 }
 0x2ab   : >> { %v2574_v12 = vmax.f32 %v4476_v59, %v2558_v43 }
 0x2ac   : >> { %2666 = vst [vmem:[%s4251_s22 + $0x28] sm:$0xff] %v2999_v56  ;;  %v2604_v15 = vmax.f32 %v2572_v47, %v2588_v34  ;;  %v2589_v32 = vmul.f32 0.01, %v2573_v20 }
 0x2ad   : >> { %v2590_v35 = vmul.f32 0.01, %v2574_v12 }
 0x2ae   : >> { %v3000_v61 = vpack.c.bf16 %v2604_v15, %v2603_v53  ;;  %v2605_v62 = vmax.f32 %v2573_v20, %v2589_v32 }
 0x2af   : >> { %v2606_v1 = vmax.f32 %v2574_v12, %v2590_v35  ;;  %151 = sbr.rel (!%p149_p4) target bundleno = 16 (0x10), region = 68 }
 0x2b0   : >> { %2667 = vst [vmem:[%s4251_s22 + $0x30] sm:$0xff] %v3000_v61 }
 0x2b1   : >> { %v3001_v14 = vpack.c.bf16 %v2606_v1, %v2605_v62 }
 0x2b3   : >> { %2668 = vst [vmem:[%s4251_s22 + $0x38] sm:$0xff] %v3001_v14 }
 0x2b4 PF: > { %s12_s9 = sadd.s32 1, %s3201_s9  }
 0x2b5   : > { %p9_p5 = scmp.ge.s32.totalorder %s12_s9, 4  }
 0x2b7   :  { %11 = sbr.rel (!%p9_p5) target bundleno = 1 (0x1), region = 79 }

// kernel: forward.4
= control target key start
LH: loop header
LB: loop body
LE: loop exit
PB: predicated region body
PF: predicated region fallthrough
CT: control target
= control target key end

     0   :  { %s3746_s9 = smov 0   ;;  %s4954_s0 = inlined_call_operand.vmem [shape: bf16[2,2,1600,256], index: 0, kind: input, shape index: {}]   ;;  %s4955_s1 = inlined_call_operand.vmem [shape: bf16[256,968], index: 1, kind: input, shape index: {}]   ;;  %s4956_s2 = inlined_call_operand.vmem [shape: bf16[2,768,128], index: 2, kind: output, shape index: {}]  }
   0x1 LB: > { %s2970_s10 = sadd.s32 4294967295, %s3721_s9   ;;  %p2974_p0 = scmp.ge.s32.totalorder %s3721_s9, 1  ;;  %s3721_s9 = sphi %s3746_s9, %s12_s9  }
   0x2   : > { %p112_p1 = scmp.lt.s32.totalorder %s3721_s9, 3 }
   0x4   : > { %p113_p2 = pnand %p2974_p0, %p112_p1 }
   0x5   : > { %p134_p3 = scmp.lt.s32.totalorder (!%p113_p2), %s2970_s10, 1  ;;  %s3764_s19 = smov (!%p113_p2), 0  }
   0x6   : > { %116 = sbr.rel (%p113_p2) target bundleno = 652 (0x28c), region = 28 }
   0xb   : > { %v3727_v0 = vmov 1065369472   ;;  %s5004_s10 = smov (!%p134_p3, %s2970_s10), 1 }
   0xc   : > { %146 = vst [vmem:[#allocation2 + $0x1e0] sm:$0xf] %v3727_v0  ;;  %s3628_s11 = smul.u32 3200, %s5004_s10 }
   0xd   : > { %s3629_s12 = smul.u32 384, %s5004_s10 }
   0xe   : > { %s3757_s15 = scalar_lea.vmem %s4954_s0, %s3628_s11 }
   0xf   : > { %s3762_s18 = scalar_lea.vmem %s4956_s2, %s3629_s12 }
  0x10 LB: >> { %s2977_s20 = sshll.u32 %s3725_s19, 7  ;;  %s3728_s22 = smov 127   ;;  %v3911_v63 = vld [vmem:[%s4955_s1] sm:$0xff]  ;;  %vm342_vm0 = vcmask 1039360   ;;  %vm663_vm1 = vcmask 1031168   ;;  %vm2169_vm2 = vcmask 1043456   ;;  %s3725_s19 = sphi %s3764_s19, %s152_s19  }
  0x11   : >> { %s3771_s21 = scalar_lea.vmem %s3757_s15, %s2977_s20  ;;  %v3916_v0 = vld [vmem:[%s4955_s1 + $0x20] sm:$0xff]  ;;  %s3729_s27 = smov 126   ;;  %vm2120_vm3 = vcmask 588800  }
  0x12   : >> { %v3774_v1 = vld [vmem:[%s3771_s21 + $0x650] sm:$0xff]  ;;  %v3784_v3 = vld [vmem:[%s3771_s21 + $0x658] sm:$0xff]  ;;  %v3794_v5 = vld [vmem:[%s3771_s21 + $0x640] sm:$0xff] }
  0x13   : >> { %v3777_v2 = vld [vmem:[%s3771_s21 + $0x30] sm:$0xff]  ;;  %447 = vrot.lane.b32.xlu0 %v3774_v1, %s3728_s22  ;;  %v3787_v4 = vld [vmem:[%s3771_s21 + $0x38] sm:$0xff]  ;;  %v3797_v6 = vld [vmem:[%s3771_s21 + $0x648] sm:$0xff] }
  0x14   : >> { %294 = vrot.lane.b32.xlu1 %v3777_v2, %s3728_s22  ;;  %v3804_v7 = vld [vmem:[%s3771_s21 + $0x28] sm:$0xff]  ;;  %v3807_v8 = vld [vmem:[%s3771_s21 + $0x20] sm:$0xff]  ;;  %v3814_v9 = vld [vmem:[%s3771_s21 + $0x98] sm:$0xff] }
  0x15   : >> { %v3817_v10 = vld [vmem:[%s3771_s21 + $0x90] sm:$0xff]  ;;  %v2993_v12 = vld [vmem:[%s3771_s21 + $0x698] sm:$0xf]  ;;  %v2990_v17 = vld [vmem:[%s3771_s21 + $0x680] sm:$0xf] }
  0x16   : >> { %v2992_v11 = vld [vmem:[%s3771_s21 + $0x690] sm:$0xf]  ;;  %v174_v14 = vld [vmem:[%s3771_s21 + $0x78] sm:$0xf]  ;;  %233 = vst [vmem:[#allocation2 + $0x7c] sm:$0xf] %v2993_v12 }
  0x17   : >> { %449 = vrot.lane.b32.xlu0 %v3784_v3, %s3728_s22  ;;  %232 = vst [vmem:[#allocation2 + $0x78] sm:$0xf] %v2992_v11  ;;  %v173_v13 = vld [vmem:[%s3771_s21 + $0x70] sm:$0xf]  ;;  %v3824_v15 = vld [vmem:[%s3771_s21 + $0x18] sm:$0xff]  ;;  %v3845_v28 = vld [vmem:[%s3771_s21 + $0x88] sm:$0xff] }
  0x18   : >> { %296 = vrot.lane.b32.xlu1 %v3787_v4, %s3728_s22  ;;  %v3827_v16 = vld [vmem:[%s3771_s21 + $0x10] sm:$0xff]  ;;  %193 = vst [vmem:[#allocation2 + $0x38] sm:$0xf] %v173_v13  ;;  %194 = vst [vmem:[#allocation2 + $0x3c] sm:$0xf] %v174_v14  ;;  %v3848_v29 = vld [vmem:[%s3771_s21 + $0x80] sm:$0xff]  ;;  %v3043_v13 = vcombine.high %v3911_v63, %v3916_v0 }
  0x19   : >> { %v2991_v18 = vld [vmem:[%s3771_s21 + $0x688] sm:$0xf]  ;;  %v171_v19 = vld [vmem:[%s3771_s21 + $0x60] sm:$0xf]  ;;  %230 = vst [vmem:[#allocation2 + $0x70] sm:$0xf] %v2990_v17 }
  0x1a   : >> { %231 = vst [vmem:[#allocation2 + $0x74] sm:$0xf] %v2991_v18  ;;  %v172_v20 = vld [vmem:[%s3771_s21 + $0x68] sm:$0xf]  ;;  %191 = vst [vmem:[#allocation2 + $0x30] sm:$0xf] %v171_v19  ;;  %2205 = vmatprep.mubr.bf16.mxu0 %v3043_v13 }
  0x1b   : >> { %443 = vrot.lane.b32.xlu0 %v3794_v5, %s3728_s22  ;;  %v2988_v21 = vld [vmem:[%s3771_s21 + $0x670] sm:$0xf]  ;;  %192 = vst [vmem:[#allocation2 + $0x34] sm:$0xf] %v172_v20  ;;  %v2989_v22 = vld [vmem:[%s3771_s21 + $0x678] sm:$0xf] }
  0x1c   : >> { %445 = vrot.lane.b32.xlu1 %v3797_v6, %s3728_s22  ;;  %228 = vst [vmem:[#allocation2 + $0x68] sm:$0xf] %v2988_v21  ;;  %v169_v23 = vld [vmem:[%s3771_s21 + $0x50] sm:$0xf]  ;;  %v170_v24 = vld [vmem:[%s3771_s21 + $0x58] sm:$0xf] }
  0x1d   : >> { %229 = vst [vmem:[#allocation2 + $0x6c] sm:$0xf] %v2989_v22  ;;  %189 = vst [vmem:[#allocation2 + $0x28] sm:$0xf] %v169_v23  ;;  %v2986_v25 = vld [vmem:[%s3771_s21 + $0x660] sm:$0xf] }
  0x1e   : >> { %190 = vst [vmem:[#allocation2 + $0x2c] sm:$0xf] %v170_v24  ;;  %v2987_v26 = vld [vmem:[%s3771_s21 + $0x668] sm:$0xf]  ;;  %v167_v27 = vld [vmem:[%s3771_s21 + $0x40] sm:$0xf] }
  0x1f   : >> { %290 = vrot.lane.b32.xlu0 %v3807_v8, %s3728_s22  ;;  %226 = vst [vmem:[#allocation2 + $0x60] sm:$0xf] %v2986_v25  ;;  %227 = vst [vmem:[#allocation2 + $0x64] sm:$0xf] %v2987_v26  ;;  %v168_v30 = vld [vmem:[%s3771_s21 + $0x48] sm:$0xf] }
  0x20   : >> { %292 = vrot.lane.b32.xlu1 %v3804_v7, %s3728_s22  ;;  %187 = vst [vmem:[#allocation2 + $0x20] sm:$0xf] %v167_v27  ;;  %v2984_v31 = vld [vmem:[%s3771_s21 + $0x650] sm:$0xf]  ;;  %v2985_v32 = vld [vmem:[%s3771_s21 + $0x658] sm:$0xf] }
  0x21   : >> { %188 = vst [vmem:[#allocation2 + $0x24] sm:$0xf] %v168_v30  ;;  %224 = vst [vmem:[#allocation2 + $0x58] sm:$0xf] %v2984_v31  ;;  %v165_v33 = vld [vmem:[%s3771_s21 + $0x30] sm:$0xf] }
  0x22   : >> { %225 = vst [vmem:[#allocation2 + $0x5c] sm:$0xf] %v2985_v32  ;;  %v166_v34 = vld [vmem:[%s3771_s21 + $0x38] sm:$0xf]  ;;  %185 = vst [vmem:[#allocation2 + $0x18] sm:$0xf] %v165_v33 }
  0x23   : >> { %318 = vrot.lane.b32.xlu0 %v3817_v10, %s3728_s22  ;;  %186 = vst [vmem:[#allocation2 + $0x1c] sm:$0xf] %v166_v34  ;;  %v2982_v35 = vld [vmem:[%s3771_s21 + $0x640] sm:$0xf]  ;;  %v2983_v36 = vld [vmem:[%s3771_s21 + $0x648] sm:$0xf] }
  0x24   : >> { %320 = vrot.lane.b32.xlu1 %v3814_v9, %s3728_s22  ;;  %v3650_v37 = vld [vmem:[#allocation2 + $0x78] sm:$0xff]   ;;  %222 = vst [vmem:[#allocation2 + $0x50] sm:$0xf] %v2982_v35  ;;  %223 = vst [vmem:[#allocation2 + $0x54] sm:$0xf] %v2983_v36  ;;  %v3862_v38 = vld [vmem:[%s3771_s21 + $0x8] sm:$0xff] }
  0x25   : >> { %v3651_v39 = vld [vmem:[#allocation2 + $0x38] sm:$0xff]   ;;  %v3652_v40 = vld [vmem:[#allocation2 + $0x70] sm:$0xff]   ;;  %v3869_v41 = vld [vmem:[%s3771_s21] sm:$0xff]  ;;  %3292 = vmatprep.subr.bf16.mxu0 %v3650_v37 }
  0x26   : >> { %3293 = vmatpush3.bf16.msra.mxu0 %v3651_v39  ;;  %v3653_v42 = vld [vmem:[#allocation2 + $0x30] sm:$0xff]   ;;  %v3654_v43 = vld [vmem:[#allocation2 + $0x68] sm:$0xff]   ;;  %v3876_v44 = vld [vmem:[%s3771_s21 + $0x78] sm:$0xff] }
  0x27   : >> { %286 = vrot.lane.b32.xlu0 %v3827_v16, %s3728_s22  ;;  %3294 = vmatprep.subr.bf16.mxu0 %v3652_v40  ;;  %v3879_v45 = vld [vmem:[%s3771_s21 + $0x70] sm:$0xff]  ;;  %v3655_v46 = vld [vmem:[#allocation2 + $0x28] sm:$0xff]   ;;  %v3885_v48 = vld [vmem:[%s3771_s21 + $0x60] sm:$0xff] }
  0x28   : >> { %288 = vrot.lane.b32.xlu1 %v3824_v15, %s3728_s22  ;;  %v3882_v47 = vld [vmem:[%s3771_s21 + $0x68] sm:$0xff]  ;;  %v3656_v49 = vld [vmem:[#allocation2 + $0x60] sm:$0xff]   ;;  %v177_v54 = vld [vmem:[%s3771_s21 + $0x90] sm:$0xf] }
  0x29   : >> { %v3658_v50 = vld [vmem:[#allocation2 + $0x20] sm:$0xff]   ;;  %v3660_v52 = vld [vmem:[#allocation2 + $0x58] sm:$0xff]   ;;  %v164_v53 = vld [vmem:[%s3771_s21 + $0x28] sm:$0xf]  ;;  %197 = vst [vmem:[#allocation2 + $0x48] sm:$0xf] %v177_v54 }
  0x2a   : >> { %3295 = vmatpush3.bf16.msra.mxu0 %v3653_v42  ;;  %v163_v51 = vld [vmem:[%s3771_s21 + $0x20] sm:$0xf]  ;;  %v178_v55 = vld [vmem:[%s3771_s21 + $0x98] sm:$0xf]  ;;  %184 = vst [vmem:[#allocation2 + $0x14] sm:$0xf] %v164_v53 }
  0x2b   : >> { %314 = vrot.lane.b32.xlu0 %v3848_v29, %s3728_s22  ;;  %3296 = vmatprep.subr.bf16.mxu0 %v3654_v43  ;;  %183 = vst [vmem:[#allocation2 + $0x10] sm:$0xf] %v163_v51  ;;  %198 = vst [vmem:[#allocation2 + $0x4c] sm:$0xf] %v178_v55  ;;  %v161_v56 = vld [vmem:[%s3771_s21 + $0x10] sm:$0xf] }
  0x2c   : >> { %316 = vrot.lane.b32.xlu1 %v3845_v28, %s3728_s22  ;;  %v162_v57 = vld [vmem:[%s3771_s21 + $0x18] sm:$0xf]  ;;  %v175_v58 = vld [vmem:[%s3771_s21 + $0x80] sm:$0xf]  ;;  %181 = vst [vmem:[#allocation2 + $0x8] sm:$0xf] %v161_v56 }
  0x2d   : >> { %v3899_v59 = vld [vmem:[%s3771_s21 + $0x58] sm:$0xff]  ;;  %182 = vst [vmem:[#allocation2 + $0xc] sm:$0xf] %v162_v57  ;;  %v176_v60 = vld [vmem:[%s3771_s21 + $0x88] sm:$0xf]  ;;  %v3919_v11 = vld [vmem:[%s3771_s21 + $0x50] sm:$0xff] }
  0x2e   : >> { %3297 = vmatpush3.bf16.msra.mxu0 %v3655_v46  ;;  %195 = vst [vmem:[#allocation2 + $0x40] sm:$0xf] %v175_v58  ;;  %v159_v61 = vld [vmem:[%s3771_s21] sm:$0xf]  ;;  %v160_v62 = vld [vmem:[%s3771_s21 + $0x8] sm:$0xf] }
  0x2f   : >> { %282 = vrot.lane.b32.xlu0 %v3869_v41, %s3728_s22  ;;  %3298 = vmatprep.subr.bf16.mxu0 %v3656_v49  ;;  %196 = vst [vmem:[#allocation2 + $0x44] sm:$0xf] %v176_v60  ;;  %179 = vst [vmem:[#allocation2] sm:$0xf] %v159_v61  ;;  %v3662_v12 = vld [vmem:[#allocation2 + $0x18] sm:$0xff]   ;;  %v3928_v20 = vld [vmem:[%s3771_s21 + $0x48] sm:$0xff] }
  0x30   : >> { %284 = vrot.lane.b32.xlu1 %v3862_v38, %s3728_s22  ;;  %180 = vst [vmem:[#allocation2 + $0x4] sm:$0xf] %v160_v62  ;;  %v3000_v14 = vld [vmem:[%s3771_s21 + $0x6d0] sm:$0xf]  ;;  %v3001_v17 = vld [vmem:[%s3771_s21 + $0x6d8] sm:$0xf] }
  0x31   : >> { %240 = vst [vmem:[#allocation2 + $0x98] sm:$0xf] %v3000_v14  ;;  %v2998_v18 = vld [vmem:[%s3771_s21 + $0x6c0] sm:$0xf]  ;;  %v2999_v19 = vld [vmem:[%s3771_s21 + $0x6c8] sm:$0xf] }
  0x32   : >> { %3299 = vmatpush3.bf16.msra.mxu0 %v3658_v50  ;;  %v3663_v21 = vld [vmem:[#allocation2 + $0x50] sm:$0xff]   ;;  %241 = vst [vmem:[#allocation2 + $0x9c] sm:$0xf] %v3001_v17  ;;  %238 = vst [vmem:[#allocation2 + $0x90] sm:$0xf] %v2998_v18  ;;  %v3938_v25 = vld [vmem:[%s3771_s21 + $0x40] sm:$0xff] }
  0x33   : >> { %310 = vrot.lane.b32.xlu0 %v3879_v45, %s3728_s22  ;;  %3300 = vmatprep.subr.bf16.mxu0 %v3660_v52  ;;  %239 = vst [vmem:[#allocation2 + $0x94] sm:$0xf] %v2999_v19  ;;  %v2996_v22 = vld [vmem:[%s3771_s21 + $0x6b0] sm:$0xf]  ;;  %v2997_v23 = vld [vmem:[%s3771_s21 + $0x6b8] sm:$0xf]  ;;  %v3042_v52 = vcombine.low %v3911_v63, %v3916_v0 }
  0x34   : >> { %312 = vrot.lane.b32.xlu1 %v3876_v44, %s3728_s22  ;;  %236 = vst [vmem:[#allocation2 + $0x88] sm:$0xf] %v2996_v22  ;;  %v2994_v24 = vld [vmem:[%s3771_s21 + $0x6a0] sm:$0xf]  ;;  %237 = vst [vmem:[#allocation2 + $0x8c] sm:$0xf] %v2997_v23 }
  0x35   : >> { %234 = vst [vmem:[#allocation2 + $0x80] sm:$0xf] %v2994_v24  ;;  %v3665_v26 = vld [vmem:[#allocation2 + $0x10] sm:$0xff]   ;;  %v3666_v27 = vld [vmem:[#allocation2 + $0x48] sm:$0xff]   ;;  %v3945_v30 = vld [vmem:[%s3771_s21 + $0x698] sm:$0xff] }
  0x36   : >> { %3301 = vmatpush3.bf16.msra.mxu0 %v3662_v12  ;;  %v3948_v31 = vld [vmem:[%s3771_s21 + $0x690] sm:$0xff]  ;;  %v3668_v32 = vld [vmem:[#allocation2 + $0x8] sm:$0xff]   ;;  %v3669_v33 = vld [vmem:[#allocation2 + $0x40] sm:$0xff]  }
  0x37   : >> { %306 = vrot.lane.b32.xlu0 %v3885_v48, %s3728_s22  ;;  %3302 = vmatprep.subr.bf16.mxu0 %v3663_v21  ;;  %v2995_v34 = vld [vmem:[%s3771_s21 + $0x6a8] sm:$0xf]  ;;  %v3959_v36 = vld [vmem:[%s3771_s21 + $0x680] sm:$0xff]  ;;  %v3986_v50 = vld [vmem:[%s3771_s21 + $0x678] sm:$0xff] }
  0x38   : >> { %308 = vrot.lane.b32.xlu1 %v3882_v47, %s3728_s22  ;;  %v3956_v35 = vld [vmem:[%s3771_s21 + $0x688] sm:$0xff]  ;;  %235 = vst [vmem:[#allocation2 + $0x84] sm:$0xf] %v2995_v34  ;;  %v3671_v37 = vld [vmem:[#allocation2] sm:$0xff]   ;;  %v3989_v51 = vld [vmem:[%s3771_s21 + $0x670] sm:$0xff] }
  0x39   : >> { %v3964_v39 = vld [vmem:[%s4955_s1 + $0x8] sm:$0xff]  ;;  %v892_v42 = vld [vmem:[%s4955_s1 + $0x40] sm:$0xff]  ;;  %v4018_v61 = vld [vmem:[%s3771_s21 + $0x6d8] sm:$0xff] }
  0x3a   : >> { %3303 = vmatpush3.bf16.msra.mxu0 %v3665_v26  ;;  %v3969_v40 = vld [vmem:[%s4955_s1 + $0x28] sm:$0xff]  ;;  %v896_v43 = vld [vmem:[%s4955_s1 + $0x60] sm:$0xff]  ;;  %v4021_v62 = vld [vmem:[%s3771_s21 + $0x6d0] sm:$0xff] }
  0x3b   : >> { %302 = vrot.lane.b32.xlu0 %v3919_v11, %s3728_s22  ;;  %3304 = vmatprep.subr.bf16.mxu0 %v3666_v27  ;;  %v3044_v46 = vcombine.low %v3964_v39, %v3969_v40  ;;  %v3045_v49 = vcombine.high %v3964_v39, %v3969_v40  ;;  %v3051_v53 = vcombine.high %v892_v42, %v896_v43  ;;  %v3998_v54 = vld [vmem:[%s3771_s21 + $0x668] sm:$0xff]  ;;  %v4001_v55 = vld [vmem:[%s3771_s21 + $0x660] sm:$0xff]  ;;  %v4072_v21 = vld [vmem:[%s3771_s21 + $0x6b8] sm:$0xff] }
  0x3c   : >> { %304 = vrot.lane.b32.xlu1 %v3899_v59, %s3728_s22  ;;  %v900_v56 = vld [vmem:[%s4955_s1 + $0x80] sm:$0xff]  ;;  %v3050_v58 = vcombine.low %v892_v42, %v896_v43  ;;  %v4075_v22 = vld [vmem:[%s3771_s21 + $0x6b0] sm:$0xff] }
  0x3d   : >> { %2366 = vmatprep.mubr.bf16.mxu1 %v3045_v49  ;;  %v904_v57 = vld [vmem:[%s4955_s1 + $0xa0] sm:$0xff] }
  0x3e   : >> { %3305 = vmatpush3.bf16.msra.mxu0 %v3668_v32  ;;  %v3059_v60 = vcombine.high %v900_v56, %v904_v57  ;;  %v908_v63 = vld [vmem:[%s4955_s1 + $0xc0] sm:$0xff] }
  0x3f   : >> { %298 = vrot.lane.b32.xlu0 %v3938_v25, %s3728_s22  ;;  %3306 = vmatprep.subr.bf16.mxu0 %v3669_v33  ;;  %v912_v0 = vld [vmem:[%s4955_s1 + $0xe0] sm:$0xff] }
  0x40   : >> { %300 = vrot.lane.b32.xlu1 %v3928_v20, %s3728_s22  ;;  %v916_v12 = vld [vmem:[%s4955_s1 + $0x100] sm:$0xff]  ;;  %v3066_v14 = vcombine.low %v908_v63, %v912_v0 }
  0x41   : >> { %v920_v13 = vld [vmem:[%s4955_s1 + $0x120] sm:$0xff] }
  0x42   : >> { %3307 = vmatpush3.bf16.msra.mxu0 %v3671_v37  ;;  %v3075_v17 = vcombine.high %v916_v12, %v920_v13  ;;  %v3074_v18 = vcombine.low %v916_v12, %v920_v13  ;;  %v940_v23 = vld [vmem:[%s4955_s1 + $0x1c0] sm:$0xff] }
  0x43   : >> { %784 = vrot.lane.b32.xlu0 %v3948_v31, %s3729_s27  ;;  %v944_v24 = vld [vmem:[%s4955_s1 + $0x1e0] sm:$0xff] }
  0x44   : >> { %786 = vrot.lane.b32.xlu1 %v3945_v30, %s3729_s27  ;;  %v4105_v26 = vld [vmem:[%s3771_s21 + $0x6a0] sm:$0xff]  ;;  %v3099_v27 = vcombine.high %v940_v23, %v944_v24  ;;  %v3098_v32 = vcombine.low %v940_v23, %v944_v24 }
  0x45   : >> { %2206 = vmatmul.mubr.bf16.vlgmr.msra.gmra.mxu0 %v3042_v52 }
  0x46   : >> { %2213 = vmatprep.mubr.bf16.mxu0 %v3051_v53 }
  0x47   : >> { %780 = vrot.lane.b32.xlu0 %v3959_v36, %s3729_s27 }
  0x48   : >> { %782 = vrot.lane.b32.xlu1 %v3956_v35, %s3729_s27 }
  0x4b   : >> { %776 = vrot.lane.b32.xlu0 %v3989_v51, %s3729_s27 }
  0x4c   : >> { %778 = vrot.lane.b32.xlu1 %v3986_v50, %s3729_s27 }
  0x4d   : >> { %2214 = vmatmul.mubr.bf16.gmra.mxu0 %v3050_v58 }
  0x4e   : >> { %2221 = vmatprep.mubr.bf16.mxu0 %v3059_v60 }
  0x4f   : >> { %772 = vrot.lane.b32.xlu0 %v4001_v55, %s3729_s27 }
  0x50   : >> { %774 = vrot.lane.b32.xlu1 %v3998_v54, %s3729_s27 }
  0x53   : >> { %631 = vrot.lane.b32.xlu0 %v3879_v45, %s3729_s27  ;;  %v3067_v45 = vcombine.high %v908_v63, %v912_v0 }
  0x54   : >> { %633 = vrot.lane.b32.xlu1 %v3876_v44, %s3729_s27  ;;  %v3058_v44 = vcombine.low %v900_v56, %v904_v57 }
  0x56   : >> { %2222 = vmatmul.mubr.bf16.gmra.mxu0 %v3058_v44 }
  0x57   : >> { %479 = vrot.lane.b32.xlu0 %v4021_v62, %s3728_s22  ;;  %2229 = vmatprep.mubr.bf16.mxu0 %v3067_v45  ;;  %v964_v45 = vld [vmem:[%s4955_s1 + $0x280] sm:$0xff] }
  0x58   : >> { %481 = vrot.lane.b32.xlu1 %v4018_v61, %s3728_s22 }
  0x5b   : >> { %768 = vrot.lane.b32.xlu0 %v3774_v1, %s3729_s27  ;;  %v4051_v1 = vld [vmem:[%s3771_s21 + $0x6c0] sm:$0xff] }
  0x5c   : >> { %770 = vrot.lane.b32.xlu1 %v3784_v3, %s3729_s27  ;;  %v4048_v3 = vld [vmem:[%s3771_s21 + $0x6c8] sm:$0xff] }
  0x5e   : >> { %2230 = vmatmul.mubr.bf16.gmra.mxu0 %v3066_v14 }
  0x5f   : >> { %627 = vrot.lane.b32.xlu0 %v3885_v48, %s3729_s27  ;;  %2237 = vmatprep.mubr.bf16.mxu0 %v3075_v17  ;;  %v928_v48 = vld [vmem:[%s4955_s1 + $0x160] sm:$0xff] }
  0x60   : >> { %629 = vrot.lane.b32.xlu1 %v3882_v47, %s3729_s27  ;;  %v924_v47 = vld [vmem:[%s4955_s1 + $0x140] sm:$0xff] }
  0x61   : >> { %v3083_v19 = vcombine.high %v924_v47, %v928_v48 }
  0x63   : >> { %475 = vrot.lane.b32.xlu0 %v4051_v1, %s3728_s22 }
  0x64   : >> { %477 = vrot.lane.b32.xlu1 %v4048_v3, %s3728_s22 }
  0x66   : >> { %2238 = vmatmul.mubr.bf16.gmra.mxu0 %v3074_v18 }
  0x67   : >> { %764 = vrot.lane.b32.xlu0 %v3794_v5, %s3729_s27  ;;  %2245 = vmatprep.mubr.bf16.mxu0 %v3083_v19  ;;  %v932_v5 = vld [vmem:[%s4955_s1 + $0x180] sm:$0xff] }
  0x68   : >> { %766 = vrot.lane.b32.xlu1 %v3797_v6, %s3729_s27  ;;  %v936_v6 = vld [vmem:[%s4955_s1 + $0x1a0] sm:$0xff] }
  0x6b   : >> { %623 = vrot.lane.b32.xlu0 %v3919_v11, %s3729_s27  ;;  %v3091_v11 = vcombine.high %v932_v5, %v936_v6 }
  0x6c   : >> { %625 = vrot.lane.b32.xlu1 %v3899_v59, %s3729_s27  ;;  %v3082_v59 = vcombine.low %v924_v47, %v928_v48 }
  0x6e   : >> { %2246 = vmatmul.mubr.bf16.gmra.mxu0 %v3082_v59 }
  0x6f   : >> { %471 = vrot.lane.b32.xlu0 %v4075_v22, %s3728_s22  ;;  %2253 = vmatprep.mubr.bf16.mxu0 %v3091_v11 }
  0x70   : >> { %473 = vrot.lane.b32.xlu1 %v4072_v21, %s3728_s22 }
  0x73   : >> { %639 = vrot.lane.b32.xlu0 %v3817_v10, %s3729_s27  ;;  %v3090_v10 = vcombine.low %v932_v5, %v936_v6 }
  0x74   : >> { %641 = vrot.lane.b32.xlu1 %v3814_v9, %s3729_s27  ;;  %v4102_v9 = vld [vmem:[%s3771_s21 + $0x6a8] sm:$0xff] }
  0x76   : >> { %2254 = vmatmul.mubr.bf16.gmra.mxu0 %v3090_v10 }
  0x77   : >> { %619 = vrot.lane.b32.xlu0 %v3938_v25, %s3729_s27  ;;  %2261 = vmatprep.mubr.bf16.mxu0 %v3099_v27  ;;  %v952_v25 = vld [vmem:[%s4955_s1 + $0x220] sm:$0xff] }
  0x78   : >> { %621 = vrot.lane.b32.xlu1 %v3928_v20, %s3729_s27  ;;  %v948_v20 = vld [vmem:[%s4955_s1 + $0x200] sm:$0xff] }
  0x79   : >> { %v3107_v33 = vcombine.high %v948_v20, %v952_v25  ;;  %v3106_v49 = vcombine.low %v948_v20, %v952_v25 }
  0x7b   : >> { %467 = vrot.lane.b32.xlu0 %v4105_v26, %s3728_s22 }
  0x7c   : >> { %469 = vrot.lane.b32.xlu1 %v4102_v9, %s3728_s22 }
  0x7e   : >> { %2262 = vmatmul.mubr.bf16.gmra.mxu0 %v3098_v32 }
  0x7f   : >> { %635 = vrot.lane.b32.xlu0 %v3848_v29, %s3729_s27  ;;  %2269 = vmatprep.mubr.bf16.mxu0 %v3107_v33  ;;  %v960_v29 = vld [vmem:[%s4955_s1 + $0x260] sm:$0xff] }
  0x80   : >> { %637 = vrot.lane.b32.xlu1 %v3845_v28, %s3729_s27  ;;  %v956_v28 = vld [vmem:[%s4955_s1 + $0x240] sm:$0xff] }
  0x81   : >> { %v3115_v56 = vcombine.high %v956_v28, %v960_v29  ;;  %v3114_v13 = vcombine.low %v956_v28, %v960_v29 }
  0x83   : >> { %615 = vrot.lane.b32.xlu0 %v3777_v2, %s3729_s27 }
  0x84   : >> { %617 = vrot.lane.b32.xlu1 %v3787_v4, %s3729_s27 }
  0x85   : >> { %v448_v34 = vpop.permute.xlu0 %447 }
  0x86   : >> { %v295_v37 = vpop.permute.xlu1 %294  ;;  %v485_v42 = vrot.slane %v448_v34, 4  ;;  %2270 = vmatmul.mubr.bf16.gmra.mxu0 %v3106_v49 }
  0x87   : >> { %v328_v43 = vrot.slane %v295_v37, 4  ;;  %463 = vrot.lane.b32.xlu0 %v3948_v31, %s3728_s22  ;;  %2277 = vmatprep.mubr.bf16.mxu0 %v3115_v56 }
  0x88   : >> { %465 = vrot.lane.b32.xlu1 %v3945_v30, %s3728_s22  ;;  %v505_v2 = vsel %vm342_vm0, %v448_v34, %v485_v42 }
  0x89   : >> { %v349_v4 = vsel %vm342_vm0, %v295_v37, %v328_v43  ;;  %545 = vst [vmem:[#allocation2 + $0xf8] sm:$0xf] %v505_v2  ;;  %v450_v52 = vpop.permute.xlu0 %449 }
  0x8a   : >> { %389 = vst [vmem:[#allocation2 + $0xb8] sm:$0xf] %v349_v4  ;;  %v297_v53 = vpop.permute.xlu1 %296  ;;  %v486_v57 = vrot.slane %v450_v52, 4 }
  0x8b   : >> { %v329_v58 = vrot.slane %v297_v53, 4  ;;  %611 = vrot.lane.b32.xlu0 %v3807_v8, %s3729_s27 }
  0x8c   : >> { %613 = vrot.lane.b32.xlu1 %v3804_v7, %s3729_s27  ;;  %v506_v30 = vsel %vm342_vm0, %v450_v52, %v486_v57  ;;  %v968_v7 = vld [vmem:[%s4955_s1 + $0x2a0] sm:$0xff] }
  0x8d   : >> { %v350_v31 = vsel %vm342_vm0, %v297_v53, %v329_v58  ;;  %546 = vst [vmem:[#allocation2 + $0xfc] sm:$0xf] %v506_v30  ;;  %v444_v60 = vpop.permute.xlu0 %443  ;;  %v3123_v47 = vcombine.high %v964_v45, %v968_v7  ;;  %v3122_v20 = vcombine.low %v964_v45, %v968_v7  ;;  %v4206_v7 = vld [vmem:[%s4955_s1 + $0x10] sm:$0xff] }
  0x8e   : >> { %390 = vst [vmem:[#allocation2 + $0xbc] sm:$0xf] %v350_v31  ;;  %v446_v63 = vpop.permute.xlu1 %445  ;;  %v483_v0 = vrot.slane %v444_v60, 4  ;;  %2278 = vmatmul.mubr.bf16.gmra.mxu0 %v3114_v13 }
  0x8f   : >> { %v484_v44 = vrot.slane %v446_v63, 4  ;;  %459 = vrot.lane.b32.xlu0 %v3959_v36, %s3728_s22  ;;  %2285 = vmatprep.mubr.bf16.mxu0 %v3123_v47 }
  0x90   : >> { %461 = vrot.lane.b32.xlu1 %v3956_v35, %s3728_s22  ;;  %v503_v8 = vsel %vm342_vm0, %v444_v60, %v483_v0 }
  0x91   : >> { %v504_v12 = vsel %vm342_vm0, %v446_v63, %v484_v44  ;;  %543 = vst [vmem:[#allocation2 + $0xf0] sm:$0xf] %v503_v8  ;;  %v291_v17 = vpop.permute.xlu0 %290  ;;  %v988_v44 = vld [vmem:[%s4955_s1 + $0x340] sm:$0xff]  ;;  %v4211_v8 = vld [vmem:[%s4955_s1 + $0x30] sm:$0xff] }
  0x92   : >> { %544 = vst [vmem:[#allocation2 + $0xf4] sm:$0xf] %v504_v12  ;;  %v293_v14 = vpop.permute.xlu1 %292  ;;  %v326_v18 = vrot.slane %v291_v17, 4  ;;  %v3046_v12 = vcombine.low %v4206_v7, %v4211_v8 }
  0x93   : >> { %v327_v48 = vrot.slane %v293_v14, 4  ;;  %800 = vrot.lane.b32.xlu0 %v4021_v62, %s3729_s27  ;;  %v976_v62 = vld [vmem:[%s4955_s1 + $0x2e0] sm:$0xff] }
  0x94   : >> { %802 = vrot.lane.b32.xlu1 %v4018_v61, %s3729_s27  ;;  %v347_v36 = vsel %vm342_vm0, %v291_v17, %v326_v18  ;;  %v3657_v19 = vld [vmem:[#allocation2 + $0xf8] sm:$0xff]   ;;  %v972_v61 = vld [vmem:[%s4955_s1 + $0x2c0] sm:$0xff] }
  0x95   : >> { %v348_v35 = vsel %vm342_vm0, %v293_v14, %v327_v48  ;;  %387 = vst [vmem:[#allocation2 + $0xb0] sm:$0xf] %v347_v36  ;;  %v319_v6 = vpop.permute.xlu0 %318  ;;  %v3659_v59 = vld [vmem:[#allocation2 + $0xb8] sm:$0xff]   ;;  %3404 = vmatprep.subr.bf16.mxu1 %v3657_v19  ;;  %v3131_v33 = vcombine.high %v972_v61, %v976_v62  ;;  %v3130_v53 = vcombine.low %v972_v61, %v976_v62 }
  0x96   : >> { %388 = vst [vmem:[#allocation2 + $0xb4] sm:$0xf] %v348_v35  ;;  %v321_v5 = vpop.permute.xlu1 %320  ;;  %v340_v23 = vrot.slane %v319_v6, 4  ;;  %3405 = vmatpush3.bf16.msra.mxu1 %v3659_v59  ;;  %2286 = vmatmul.mubr.bf16.gmra.mxu0 %v3122_v20  ;;  %v3675_v61 = vld [vmem:[#allocation2 + $0x98] sm:$0xff]  }
  0x97   : >> { %v341_v11 = vrot.slane %v321_v5, 4  ;;  %607 = vrot.lane.b32.xlu0 %v3827_v16, %s3729_s27  ;;  %2293 = vmatprep.mubr.bf16.mxu0 %v3131_v33 }
  0x98   : >> { %609 = vrot.lane.b32.xlu1 %v3824_v15, %s3729_s27  ;;  %v361_v10 = vsel %vm342_vm0, %v319_v6, %v340_v23 }
  0x99   : >> { %v362_v24 = vsel %vm342_vm0, %v321_v5, %v341_v11  ;;  %v3661_v27 = vld [vmem:[#allocation2 + $0xf0] sm:$0xff]   ;;  %401 = vst [vmem:[#allocation2 + $0xe8] sm:$0xf] %v361_v10  ;;  %v287_v32 = vpop.permute.xlu0 %286 }
  0x9a   : >> { %402 = vst [vmem:[#allocation2 + $0xec] sm:$0xf] %v362_v24  ;;  %v289_v25 = vpop.permute.xlu1 %288  ;;  %v324_v37 = vrot.slane %v287_v32, 4  ;;  %3406 = vmatprep.subr.bf16.mxu1 %v3661_v27 }
  0x9b   : >> { %v325_v34 = vrot.slane %v289_v25, 4  ;;  %455 = vrot.lane.b32.xlu0 %v3989_v51, %s3728_s22  ;;  %v984_v51 = vld [vmem:[%s4955_s1 + $0x320] sm:$0xff] }
  0x9c   : >> { %457 = vrot.lane.b32.xlu1 %v3986_v50, %s3728_s22  ;;  %v345_v16 = vsel %vm342_vm0, %v287_v32, %v324_v37  ;;  %v980_v50 = vld [vmem:[%s4955_s1 + $0x300] sm:$0xff]  ;;  %v3677_v37 = vld [vmem:[#allocation2 + $0x90] sm:$0xff]  }
  0x9d   : >> { %v346_v15 = vsel %vm342_vm0, %v289_v25, %v325_v34  ;;  %v3664_v42 = vld [vmem:[#allocation2 + $0xb0] sm:$0xff]   ;;  %385 = vst [vmem:[#allocation2 + $0xa8] sm:$0xf] %v345_v16  ;;  %v315_v28 = vpop.permute.xlu0 %314  ;;  %v3139_v58 = vcombine.high %v980_v50, %v984_v51  ;;  %v3138_v47 = vcombine.low %v980_v50, %v984_v51  ;;  %v3679_v50 = vld [vmem:[#allocation2 + $0x88] sm:$0xff]  }
  0x9e   : >> { %386 = vst [vmem:[#allocation2 + $0xac] sm:$0xf] %v346_v15  ;;  %v317_v43 = vpop.permute.xlu1 %316  ;;  %v338_v2 = vrot.slane %v315_v28, 4  ;;  %3407 = vmatpush3.bf16.msra.mxu1 %v3664_v42  ;;  %2294 = vmatmul.mubr.bf16.gmra.mxu0 %v3130_v53 }
  0x9f   : >> { %v339_v29 = vrot.slane %v317_v43, 4  ;;  %796 = vrot.lane.b32.xlu0 %v4051_v1, %s3729_s27  ;;  %2301 = vmatprep.mubr.bf16.mxu0 %v3139_v58 }
  0xa0   : >> { %798 = vrot.lane.b32.xlu1 %v4048_v3, %s3729_s27  ;;  %v359_v49 = vsel %vm342_vm0, %v315_v28, %v338_v2  ;;  %v1008_v2 = vld [vmem:[%s4955_s1 + $0x3e0] sm:$0xff] }
  0xa1   : >> { %v360_v4 = vsel %vm342_vm0, %v317_v43, %v339_v29  ;;  %v3667_v52 = vld [vmem:[#allocation2 + $0xe8] sm:$0xff]   ;;  %399 = vst [vmem:[#allocation2 + $0xe0] sm:$0xf] %v359_v49  ;;  %v283_v57 = vpop.permute.xlu0 %282  ;;  %v1004_v29 = vld [vmem:[%s4955_s1 + $0x3c0] sm:$0xff] }
  0xa2   : >> { %400 = vst [vmem:[#allocation2 + $0xe4] sm:$0xf] %v360_v4  ;;  %v285_v56 = vpop.permute.xlu1 %284  ;;  %v322_v31 = vrot.slane %v283_v57, 4  ;;  %3408 = vmatprep.subr.bf16.mxu1 %v3667_v52 }
  0xa3   : >> { %v323_v30 = vrot.slane %v285_v56, 4  ;;  %603 = vrot.lane.b32.xlu0 %v3869_v41, %s3729_s27  ;;  %v992_v41 = vld [vmem:[%s4955_s1 + $0x360] sm:$0xff] }
  0xa4   : >> { %605 = vrot.lane.b32.xlu1 %v3862_v38, %s3729_s27  ;;  %v343_v1 = vsel %vm342_vm0, %v283_v57, %v322_v31  ;;  %v3147_v35 = vcombine.high %v988_v44, %v992_v41  ;;  %v3146_v27 = vcombine.low %v988_v44, %v992_v41  ;;  %v3163_v57 = vcombine.high %v1004_v29, %v1008_v2  ;;  %v3681_v31 = vld [vmem:[#allocation2 + $0x80] sm:$0xff]  }
  0xa5   : >> { %v344_v3 = vsel %vm342_vm0, %v285_v56, %v323_v30  ;;  %v3670_v60 = vld [vmem:[#allocation2 + $0xa8] sm:$0xff]   ;;  %383 = vst [vmem:[#allocation2 + $0xa0] sm:$0xf] %v343_v1  ;;  %v311_v0 = vpop.permute.xlu0 %310 }
  0xa6   : >> { %384 = vst [vmem:[#allocation2 + $0xa4] sm:$0xf] %v344_v3  ;;  %v313_v63 = vpop.permute.xlu1 %312  ;;  %v336_v38 = vrot.slane %v311_v0, 4  ;;  %3409 = vmatpush3.bf16.msra.mxu1 %v3670_v60  ;;  %2302 = vmatmul.mubr.bf16.gmra.mxu0 %v3138_v47  ;;  %v893_v3 = vld [vmem:[%s4955_s1 + $0x48] sm:$0xff]  ;;  %v3730_v47 = vmov 0  }
  0xa7   : >> { %v337_v45 = vrot.slane %v313_v63, 4  ;;  %451 = vrot.lane.b32.xlu0 %v4001_v55, %s3728_s22  ;;  %2309 = vmatprep.mubr.bf16.mxu0 %v3147_v35  ;;  %v897_v1 = vld [vmem:[%s4955_s1 + $0x68] sm:$0xff] }
  0xa8   : >> { %453 = vrot.lane.b32.xlu1 %v3998_v54, %s3728_s22  ;;  %v357_v14 = vsel %vm342_vm0, %v311_v0, %v336_v38  ;;  %s3247_s22 = sshll.u32 %s3725_s19, 6  ;;  %s152_s19 = sadd.s32 1, %s3725_s19  }
  0xa9   : >> { %v358_v13 = vsel %vm342_vm0, %v313_v63, %v337_v45  ;;  %v3672_v17 = vld [vmem:[#allocation2 + $0xe0] sm:$0xff]   ;;  %397 = vst [vmem:[#allocation2 + $0xd8] sm:$0xf] %v357_v14  ;;  %v307_v18 = vpop.permute.xlu0 %306  ;;  %s2890_s20 = sshra.s32 %s3247_s22, 3  ;;  %p149_p4 = scmp.ge.s32.totalorder %s152_s19, 12  }
  0xaa   : >> { %398 = vst [vmem:[#allocation2 + $0xdc] sm:$0xf] %v358_v13  ;;  %v309_v48 = vpop.permute.xlu1 %308  ;;  %v334_v19 = vrot.slane %v307_v18, 4  ;;  %3410 = vmatprep.subr.bf16.mxu1 %v3672_v17  ;;  %v3053_v13 = vcombine.high %v893_v3, %v897_v1  ;;  %s3256_s23 = sshll.u32 %s2890_s20, 2 }
  0xab   : >> { %v335_v36 = vrot.slane %v309_v48, 4  ;;  %792 = vrot.lane.b32.xlu0 %v4075_v22, %s3729_s27  ;;  %v1000_v22 = vld [vmem:[%s4955_s1 + $0x3a0] sm:$0xff]  ;;  %s4912_s24 = scalar_lea.vmem %s3762_s18, %s3256_s23 }
  0xac   : >> { %794 = vrot.lane.b32.xlu1 %v4072_v21, %s3729_s27  ;;  %v355_v55 = vsel %vm342_vm0, %v307_v18, %v334_v19  ;;  %v996_v21 = vld [vmem:[%s4955_s1 + $0x380] sm:$0xff]  ;;  %v3162_v18 = vcombine.low %v1004_v29, %v1008_v2  ;;  %v3047_v19 = vcombine.high %v4206_v7, %v4211_v8  ;;  %v1009_v7 = vld [vmem:[%s4955_s1 + $0x3e8] sm:$0xff] }
  0xad   : >> { %v356_v54 = vsel %vm342_vm0, %v309_v48, %v335_v36  ;;  %v3673_v5 = vld [vmem:[#allocation2 + $0xa0] sm:$0xff]   ;;  %395 = vst [vmem:[#allocation2 + $0xd0] sm:$0xf] %v355_v55  ;;  %v303_v59 = vpop.permute.xlu0 %302  ;;  %v3155_v32 = vcombine.high %v996_v21, %v1000_v22  ;;  %v3154_v52 = vcombine.low %v996_v21, %v1000_v22  ;;  %v3052_v22 = vcombine.low %v893_v3, %v897_v1 }
  0xae   : >> { %396 = vst [vmem:[#allocation2 + $0xd4] sm:$0xf] %v356_v54  ;;  %v305_v6 = vpop.permute.xlu1 %304  ;;  %v332_v23 = vrot.slane %v303_v59, 4  ;;  %3411 = vmatpush3.bf16.msra.mxu1 %v3673_v5  ;;  %2310 = vmatmul.mubr.bf16.gmra.mxu0 %v3146_v27  ;;  %v901_v5 = vld [vmem:[%s4955_s1 + $0x88] sm:$0xff] }
  0xaf   : >> { %v333_v11 = vrot.slane %v305_v6, 4  ;;  %788 = vrot.lane.b32.xlu0 %v4105_v26, %s3729_s27  ;;  %2317 = vmatprep.mubr.bf16.mxu0 %v3155_v32 }
  0xb0   : >> { %790 = vrot.lane.b32.xlu1 %v4102_v9, %s3729_s27  ;;  %v353_v24 = vsel %vm342_vm0, %v303_v59, %v332_v23 }
  0xb1   : >> { %v354_v62 = vsel %vm342_vm0, %v305_v6, %v333_v11  ;;  %v3674_v10 = vld [vmem:[#allocation2 + $0xd8] sm:$0xff]   ;;  %393 = vst [vmem:[#allocation2 + $0xc8] sm:$0xf] %v353_v24  ;;  %v299_v25 = vpop.permute.xlu0 %298  ;;  %v905_v6 = vld [vmem:[%s4955_s1 + $0xa8] sm:$0xff] }
  0xb2   : >> { %394 = vst [vmem:[#allocation2 + $0xcc] sm:$0xf] %v354_v62  ;;  %v301_v20 = vpop.permute.xlu1 %300  ;;  %v330_v34 = vrot.slane %v299_v25, 4  ;;  %3412 = vmatprep.subr.bf16.mxu1 %v3674_v10 }
  0xb3   : >> { %v331_v33 = vrot.slane %v301_v20, 4  ;;  %3413 = vmatpush3.bf16.msra.mxu1 %v3675_v61  ;;  %v3061_v61 = vcombine.high %v901_v5, %v905_v6 }
  0xb4   : >> { %v351_v26 = vsel %vm342_vm0, %v299_v25, %v330_v34  ;;  %v913_v34 = vld [vmem:[%s4955_s1 + $0xe8] sm:$0xff] }
  0xb5   : >> { %v352_v9 = vsel %vm342_vm0, %v301_v20, %v331_v33  ;;  %v3676_v15 = vld [vmem:[#allocation2 + $0xd0] sm:$0xff]   ;;  %391 = vst [vmem:[#allocation2 + $0xc0] sm:$0xf] %v351_v26  ;;  %v785_v42 = vpop.permute.xlu0 %784  ;;  %v909_v33 = vld [vmem:[%s4955_s1 + $0xc8] sm:$0xff] }
  0xb6   : >> { %392 = vst [vmem:[#allocation2 + $0xc4] sm:$0xf] %v352_v9  ;;  %v787_v16 = vpop.permute.xlu1 %786  ;;  %v814_v28 = vrot.slane %v785_v42, 4  ;;  %3414 = vmatprep.subr.bf16.mxu1 %v3676_v15  ;;  %2318 = vmatmul.mubr.bf16.gmra.mxu0 %v3154_v52  ;;  %v3069_v29 = vcombine.high %v909_v33, %v913_v34 }
  0xb7   : >> { %v815_v43 = vrot.slane %v787_v16, 4  ;;  %3415 = vmatpush3.bf16.msra.mxu1 %v3677_v37  ;;  %2325 = vmatprep.mubr.bf16.mxu0 %v3163_v57  ;;  %v921_v57 = vld [vmem:[%s4955_s1 + $0x128] sm:$0xff] }
  0xb8   : >> { %v834_v4 = vsel %vm663_vm1, %v785_v42, %v814_v28  ;;  %v3060_v28 = vcombine.low %v901_v5, %v905_v6 }
  0xb9   : >> { %v835_v51 = vsel %vm663_vm1, %v787_v16, %v815_v43  ;;  %v3678_v49 = vld [vmem:[#allocation2 + $0xc8] sm:$0xff]   ;;  %874 = vst [vmem:[#allocation2 + $0x1b8] sm:$0xf] %v834_v4  ;;  %v781_v56 = vpop.permute.xlu0 %780 }
  0xba   : >> { %875 = vst [vmem:[#allocation2 + $0x1bc] sm:$0xf] %v835_v51  ;;  %v783_v53 = vpop.permute.xlu1 %782  ;;  %v812_v30 = vrot.slane %v781_v56, 4  ;;  %3416 = vmatprep.subr.bf16.mxu1 %v3678_v49 }
  0xbb   : >> { %v813_v58 = vrot.slane %v783_v53, 4  ;;  %3417 = vmatpush3.bf16.msra.mxu1 %v3679_v50 }
  0xbc   : >> { %v832_v63 = vsel %vm663_vm1, %v781_v56, %v812_v30  ;;  %v917_v56 = vld [vmem:[%s4955_s1 + $0x108] sm:$0xff] }
  0xbd   : >> { %v833_v60 = vsel %vm663_vm1, %v783_v53, %v813_v58  ;;  %v3680_v0 = vld [vmem:[#allocation2 + $0xc0] sm:$0xff]   ;;  %872 = vst [vmem:[#allocation2 + $0x1b0] sm:$0xf] %v832_v63  ;;  %v777_v45 = vpop.permute.xlu0 %776 }
  0xbe   : >> { %873 = vst [vmem:[#allocation2 + $0x1b4] sm:$0xf] %v833_v60  ;;  %v779_v44 = vpop.permute.xlu1 %778  ;;  %v810_v41 = vrot.slane %v777_v45, 4  ;;  %3418 = vmatprep.subr.bf16.mxu1 %v3680_v0  ;;  %2326 = vmatmul.mubr.bf16.gmra.mxu0 %v3162_v18  ;;  %v3068_v0 = vcombine.low %v909_v33, %v913_v34  ;;  %v925_v18 = vld [vmem:[%s4955_s1 + $0x148] sm:$0xff] }
  0xbf   : >> { %v811_v38 = vrot.slane %v779_v44, 4  ;;  %3419 = vmatpush3.bf16.msra.mxu1 %v3681_v31  ;;  %2527 = vmatprep.mubr.bf16.mxu0 %v3047_v19 }
  0xc0   : >> { %v830_v17 = vsel %vm663_vm1, %v777_v45, %v810_v41  ;;  %2656 = vmatprep.subr.bf16.mxu1 %v3730_v47 }
  0xc1   : >> { %v831_v14 = vsel %vm663_vm1, %v779_v44, %v811_v38  ;;  %v3682_v48 = vld [vmem:[#allocation2 + $0x1b8] sm:$0xff]   ;;  %870 = vst [vmem:[#allocation2 + $0x1a8] sm:$0xf] %v830_v17  ;;  %v773_v36 = vpop.permute.xlu0 %772  ;;  %v3077_v44 = vcombine.high %v917_v56, %v921_v57 }
  0xc2   : >> { %871 = vst [vmem:[#allocation2 + $0x1ac] sm:$0xf] %v831_v14  ;;  %v775_v35 = vpop.permute.xlu1 %774  ;;  %v808_v55 = vrot.slane %v773_v36, 4  ;;  %2367 = vmatmul.mubr.bf16.vlgmr.msra.gmra.mxu1 %v3044_v46 }
  0xc3   : >> { %v809_v54 = vrot.slane %v775_v35, 4  ;;  %2657 = vmatpush1.bf16.msra.mxu1 %v3682_v48  ;;  %2374 = vmatprep.mubr.bf16.mxu1 %v3053_v13 }
  0xc4   : >> { %v828_v11 = vsel %vm663_vm1, %v773_v36, %v808_v55  ;;  %2658 = vmatprep.subr.bf16.mxu1 %v3730_v47 }
  0xc5   : >> { %v829_v59 = vsel %vm663_vm1, %v775_v35, %v809_v54  ;;  %v3683_v23 = vld [vmem:[#allocation2 + $0x1b0] sm:$0xff]   ;;  %868 = vst [vmem:[#allocation2 + $0x1a0] sm:$0xf] %v828_v11  ;;  %v632_v40 = vpop.permute.xlu0 %631  ;;  %v929_v35 = vld [vmem:[%s4955_s1 + $0x168] sm:$0xff]  ;;  %v3076_v11 = vcombine.low %v917_v56, %v921_v57 }
  0xc6   : >> { %869 = vst [vmem:[#allocation2 + $0x1a4] sm:$0xf] %v829_v59  ;;  %v634_v39 = vpop.permute.xlu1 %633  ;;  %v657_v21 = vrot.slane %v632_v40, 4 }
  0xc7   : >> { %v658_v46 = vrot.slane %v634_v39, 4  ;;  %2659 = vmatpush1.bf16.msra.mxu1 %v3683_v23  ;;  %v3085_v23 = vcombine.high %v925_v18, %v929_v35 }
  0xc8   : >> { %v678_v24 = vsel %vm663_vm1, %v632_v40, %v657_v21  ;;  %2660 = vmatprep.subr.bf16.mxu1 %v3730_v47 }
  0xc9   : >> { %v679_v62 = vsel %vm663_vm1, %v634_v39, %v658_v46  ;;  %v3684_v10 = vld [vmem:[#allocation2 + $0x1a8] sm:$0xff]   ;;  %718 = vst [vmem:[#allocation2 + $0x178] sm:$0xf] %v678_v24  ;;  %v480_v20 = vpop.permute.xlu0 %479 }
  0xca   : >> { %719 = vst [vmem:[#allocation2 + $0x17c] sm:$0xf] %v679_v62  ;;  %v482_v27 = vpop.permute.xlu1 %481  ;;  %v501_v32 = vrot.slane %v480_v20, 4  ;;  %2375 = vmatmul.mubr.bf16.gmra.mxu1 %v3052_v22  ;;  %v933_v24 = vld [vmem:[%s4955_s1 + $0x188] sm:$0xff] }
  0xcb   : >> { %v502_v25 = vrot.slane %v482_v27, 4  ;;  %2661 = vmatpush1.bf16.msra.mxu1 %v3684_v10  ;;  %2382 = vmatprep.mubr.bf16.mxu1 %v3061_v61  ;;  %v937_v10 = vld [vmem:[%s4955_s1 + $0x1a8] sm:$0xff] }
  0xcc   : >> { %v521_v9 = vsel %vm342_vm0, %v480_v20, %v501_v32  ;;  %2662 = vmatprep.subr.bf16.mxu1 %v3730_v47 }
  0xcd   : >> { %v522_v37 = vsel %vm342_vm0, %v482_v27, %v502_v25  ;;  %v3685_v26 = vld [vmem:[#allocation2 + $0x1a0] sm:$0xff]   ;;  %561 = vst [vmem:[#allocation2 + $0x138] sm:$0xf] %v521_v9  ;;  %v769_v16 = vpop.permute.xlu0 %768  ;;  %v3084_v9 = vcombine.low %v925_v18, %v929_v35 }
  0xce   : >> { %562 = vst [vmem:[#allocation2 + $0x13c] sm:$0xf] %v522_v37  ;;  %v771_v15 = vpop.permute.xlu1 %770  ;;  %v806_v43 = vrot.slane %v769_v16, 4 }
  0xcf   : >> { %v807_v42 = vrot.slane %v771_v15, 4  ;;  %2663 = vmatpush1.bf16.msra.mxu1 %v3685_v26  ;;  %v3093_v26 = vcombine.high %v933_v24, %v937_v10 }
  0xd0   : >> { %v826_v50 = vsel %vm663_vm1, %v769_v16, %v806_v43  ;;  %2664 = vmatprep.subr.bf16.mxu1 %v3730_v47 }
  0xd1   : >> { %v827_v2 = vsel %vm663_vm1, %v771_v15, %v807_v42  ;;  %v3686_v51 = vld [vmem:[#allocation2 + $0x178] sm:$0xff]   ;;  %866 = vst [vmem:[#allocation2 + $0x198] sm:$0xf] %v826_v50  ;;  %v628_v49 = vpop.permute.xlu0 %627  ;;  %v941_v50 = vld [vmem:[%s4955_s1 + $0x1c8] sm:$0xff] }
  0xd2   : >> { %867 = vst [vmem:[#allocation2 + $0x19c] sm:$0xf] %v827_v2  ;;  %v630_v4 = vpop.permute.xlu1 %629  ;;  %v655_v53 = vrot.slane %v628_v49, 4  ;;  %2383 = vmatmul.mubr.bf16.gmra.mxu1 %v3060_v28  ;;  %3516 = vmatprep.subr.bf16.mxu0 %v3686_v51  ;;  %v945_v51 = vld [vmem:[%s4955_s1 + $0x1e8] sm:$0xff] }
  0xd3   : >> { %v656_v52 = vrot.slane %v630_v4, 4  ;;  %2390 = vmatprep.mubr.bf16.mxu1 %v3069_v29 }
  0xd4   : >> { %v676_v30 = vsel %vm663_vm1, %v628_v49, %v655_v53 }
  0xd5   : >> { %v677_v58 = vsel %vm663_vm1, %v630_v4, %v656_v52  ;;  %v3687_v31 = vld [vmem:[#allocation2 + $0x138] sm:$0xff]   ;;  %716 = vst [vmem:[#allocation2 + $0x170] sm:$0xf] %v676_v30  ;;  %v476_v1 = vpop.permute.xlu0 %475  ;;  %v3092_v30 = vcombine.low %v933_v24, %v937_v10 }
  0xd6   : >> { %717 = vst [vmem:[#allocation2 + $0x174] sm:$0xf] %v677_v58  ;;  %v478_v3 = vpop.permute.xlu1 %477  ;;  %v499_v63 = vrot.slane %v476_v1, 4  ;;  %3517 = vmatpush3.bf16.msra.mxu0 %v3687_v31  ;;  %v3101_v31 = vcombine.high %v941_v50, %v945_v51 }
  0xd7   : >> { %v500_v60 = vrot.slane %v478_v3, 4 }
  0xd8   : >> { %v519_v38 = vsel %vm342_vm0, %v476_v1, %v499_v63 }
  0xd9   : >> { %v520_v45 = vsel %vm342_vm0, %v478_v3, %v500_v60  ;;  %v3688_v41 = vld [vmem:[#allocation2 + $0x198] sm:$0xff]   ;;  %559 = vst [vmem:[#allocation2 + $0x130] sm:$0xf] %v519_v38  ;;  %v765_v14 = vpop.permute.xlu0 %764  ;;  %v949_v38 = vld [vmem:[%s4955_s1 + $0x208] sm:$0xff] }
  0xda   : >> { %560 = vst [vmem:[#allocation2 + $0x134] sm:$0xf] %v520_v45  ;;  %v767_v13 = vpop.permute.xlu1 %766  ;;  %v804_v48 = vrot.slane %v765_v14, 4  ;;  %2391 = vmatmul.mubr.bf16.gmra.mxu1 %v3068_v0 }
  0xdb   : >> { %v805_v17 = vrot.slane %v767_v13, 4  ;;  %2665 = vmatpush1.bf16.msra.mxu1 %v3688_v41  ;;  %2398 = vmatprep.mubr.bf16.mxu1 %v3077_v44  ;;  %v953_v41 = vld [vmem:[%s4955_s1 + $0x228] sm:$0xff] }
  0xdc   : >> { %v824_v19 = vsel %vm663_vm1, %v765_v14, %v804_v48  ;;  %2666 = vmatprep.subr.bf16.mxu1 %v3730_v47 }
  0xdd   : >> { %v825_v36 = vsel %vm663_vm1, %v767_v13, %v805_v17  ;;  %v3689_v54 = vld [vmem:[#allocation2 + $0x170] sm:$0xff]   ;;  %864 = vst [vmem:[#allocation2 + $0x190] sm:$0xf] %v824_v19  ;;  %v624_v5 = vpop.permute.xlu0 %623  ;;  %v3100_v19 = vcombine.low %v941_v50, %v945_v51 }
  0xde   : >> { %865 = vst [vmem:[#allocation2 + $0x194] sm:$0xf] %v825_v36  ;;  %v626_v55 = vpop.permute.xlu1 %625  ;;  %v653_v59 = vrot.slane %v624_v5, 4  ;;  %3518 = vmatprep.subr.bf16.mxu0 %v3689_v54  ;;  %v3109_v54 = vcombine.high %v949_v38, %v953_v41 }
  0xdf   : >> { %v654_v6 = vrot.slane %v626_v55, 4 }
  0xe0   : >> { %v674_v40 = vsel %vm663_vm1, %v624_v5, %v653_v59 }
  0xe1   : >> { %v675_v39 = vsel %vm663_vm1, %v626_v55, %v654_v6  ;;  %v3690_v46 = vld [vmem:[#allocation2 + $0x130] sm:$0xff]   ;;  %714 = vst [vmem:[#allocation2 + $0x168] sm:$0xf] %v674_v40  ;;  %v472_v22 = vpop.permute.xlu0 %471  ;;  %v957_v40 = vld [vmem:[%s4955_s1 + $0x248] sm:$0xff] }
  0xe2   : >> { %715 = vst [vmem:[#allocation2 + $0x16c] sm:$0xf] %v675_v39  ;;  %v474_v21 = vpop.permute.xlu1 %473  ;;  %v497_v62 = vrot.slane %v472_v22, 4  ;;  %2399 = vmatmul.mubr.bf16.gmra.mxu1 %v3076_v11  ;;  %3519 = vmatpush3.bf16.msra.mxu0 %v3690_v46  ;;  %v961_v46 = vld [vmem:[%s4955_s1 + $0x268] sm:$0xff] }
  0xe3   : >> { %v498_v61 = vrot.slane %v474_v21, 4  ;;  %2406 = vmatprep.mubr.bf16.mxu1 %v3085_v23 }
  0xe4   : >> { %v517_v20 = vsel %vm342_vm0, %v472_v22, %v497_v62 }
  0xe5   : >> { %v518_v27 = vsel %vm342_vm0, %v474_v21, %v498_v61  ;;  %v3691_v25 = vld [vmem:[#allocation2 + $0x190] sm:$0xff]   ;;  %557 = vst [vmem:[#allocation2 + $0x128] sm:$0xf] %v517_v20  ;;  %v640_v33 = vpop.permute.xlu0 %639  ;;  %v3706_v21 = vld [vmem:[#allocation2 + $0x1e0] ss:$0 sps:$4 sm:$0xff]  }
  0xe6   : >> { %558 = vst [vmem:[#allocation2 + $0x12c] sm:$0xf] %v518_v27  ;;  %v642_v32 = vpop.permute.xlu1 %641  ;;  %v661_v37 = vrot.slane %v640_v33, 4  ;;  %2667 = vmatpush1.bf16.msra.mxu1 %v3691_v25  ;;  %v3108_v25 = vcombine.low %v949_v38, %v953_v41 }
  0xe7   : >> { %v662_v34 = vrot.slane %v642_v32, 4  ;;  %2668 = vmatprep.subr.bf16.mxu1 %v3730_v47 }
  0xe8   : >> { %v682_v16 = vsel %vm663_vm1, %v640_v33, %v661_v37 }
  0xe9   : >> { %v683_v15 = vsel %vm663_vm1, %v642_v32, %v662_v34  ;;  %v3692_v42 = vld [vmem:[#allocation2 + $0x168] sm:$0xff]   ;;  %722 = vst [vmem:[#allocation2 + $0x188] sm:$0xf] %v682_v16  ;;  %v620_v28 = vpop.permute.xlu0 %619  ;;  %v3117_v32 = vcombine.high %v957_v40, %v961_v46 }
  0xea   : >> { %723 = vst [vmem:[#allocation2 + $0x18c] sm:$0xf] %v683_v15  ;;  %v622_v43 = vpop.permute.xlu1 %621  ;;  %v651_v2 = vrot.slane %v620_v28, 4  ;;  %2407 = vmatmul.mubr.bf16.gmra.mxu1 %v3084_v9  ;;  %3520 = vmatprep.subr.bf16.mxu0 %v3692_v42  ;;  %v2171_v9 = vsel %vm2169_vm2, %v3706_v21, 0  ;;  %v985_v21 = vld [vmem:[%s4955_s1 + $0x328] sm:$0xff] }
  0xeb   : >> { %v652_v29 = vrot.slane %v622_v43, 4  ;;  %2414 = vmatprep.mubr.bf16.mxu1 %v3093_v26 }
  0xec   : >> { %v672_v49 = vsel %vm663_vm1, %v620_v28, %v651_v2  ;;  %v969_v28 = vld [vmem:[%s4955_s1 + $0x2a8] sm:$0xff] }
  0xed   : >> { %v673_v4 = vsel %vm663_vm1, %v622_v43, %v652_v29  ;;  %v3693_v52 = vld [vmem:[#allocation2 + $0x128] sm:$0xff]   ;;  %712 = vst [vmem:[#allocation2 + $0x160] sm:$0xf] %v672_v49  ;;  %v468_v56 = vpop.permute.xlu0 %467 }
  0xee   : >> { %713 = vst [vmem:[#allocation2 + $0x164] sm:$0xf] %v673_v4  ;;  %v470_v53 = vpop.permute.xlu1 %469  ;;  %v495_v58 = vrot.slane %v468_v56, 4  ;;  %3521 = vmatpush3.bf16.msra.mxu0 %v3693_v52  ;;  %v965_v43 = vld [vmem:[%s4955_s1 + $0x288] sm:$0xff] }
  0xef   : >> { %v496_v57 = vrot.slane %v470_v53, 4 }
  0xf0   : >> { %v515_v1 = vsel %vm342_vm0, %v468_v56, %v495_v58  ;;  %v3125_v56 = vcombine.high %v965_v43, %v969_v28 }
  0xf1   : >> { %v516_v3 = vsel %vm342_vm0, %v470_v53, %v496_v57  ;;  %v3694_v60 = vld [vmem:[#allocation2 + $0x188] sm:$0xff]   ;;  %555 = vst [vmem:[#allocation2 + $0x120] sm:$0xf] %v515_v1  ;;  %v636_v0 = vpop.permute.xlu0 %635  ;;  %v3116_v53 = vcombine.low %v957_v40, %v961_v46 }
  0xf2   : >> { %556 = vst [vmem:[#allocation2 + $0x124] sm:$0xf] %v516_v3  ;;  %v638_v63 = vpop.permute.xlu1 %637  ;;  %v659_v45 = vrot.slane %v636_v0, 4  ;;  %2415 = vmatmul.mubr.bf16.gmra.mxu1 %v3092_v30  ;;  %v981_v46 = vld [vmem:[%s4955_s1 + $0x308] sm:$0xff] }
  0xf3   : >> { %v660_v44 = vrot.slane %v638_v63, 4  ;;  %2422 = vmatprep.mubr.bf16.mxu1 %v3101_v31  ;;  %2669 = vmatpush1.bf16.msra.mxu1 %v3694_v60 }
  0xf4   : >> { %v680_v14 = vsel %vm663_vm1, %v636_v0, %v659_v45  ;;  %2670 = vmatprep.subr.bf16.mxu1 %v3730_v47  ;;  %v977_v0 = vld [vmem:[%s4955_s1 + $0x2e8] sm:$0xff] }
  0xf5   : >> { %v681_v13 = vsel %vm663_vm1, %v638_v63, %v660_v44  ;;  %v3695_v17 = vld [vmem:[#allocation2 + $0x160] sm:$0xff]   ;;  %720 = vst [vmem:[#allocation2 + $0x180] sm:$0xf] %v680_v14  ;;  %v616_v18 = vpop.permute.xlu0 %615  ;;  %v973_v63 = vld [vmem:[%s4955_s1 + $0x2c8] sm:$0xff] }
  0xf6   : >> { %721 = vst [vmem:[#allocation2 + $0x184] sm:$0xf] %v681_v13  ;;  %v618_v48 = vpop.permute.xlu1 %617  ;;  %v649_v36 = vrot.slane %v616_v18, 4  ;;  %3522 = vmatprep.subr.bf16.mxu0 %v3695_v17 }
  0xf7   : >> { %v650_v35 = vrot.slane %v618_v48, 4 }
  0xf8   : >> { %v670_v5 = vsel %vm663_vm1, %v616_v18, %v649_v36  ;;  %v3124_v18 = vcombine.low %v965_v43, %v969_v28  ;;  %v3133_v36 = vcombine.high %v973_v63, %v977_v0 }
  0xf9   : >> { %v671_v55 = vsel %vm663_vm1, %v618_v48, %v650_v35  ;;  %v3696_v6 = vld [vmem:[#allocation2 + $0x120] sm:$0xff]   ;;  %710 = vst [vmem:[#allocation2 + $0x158] sm:$0xf] %v670_v5  ;;  %v464_v11 = vpop.permute.xlu0 %463 }
  0xfa   : >> { %711 = vst [vmem:[#allocation2 + $0x15c] sm:$0xf] %v671_v55  ;;  %v466_v59 = vpop.permute.xlu1 %465  ;;  %v493_v39 = vrot.slane %v464_v11, 4  ;;  %2423 = vmatmul.mubr.bf16.gmra.mxu1 %v3100_v19  ;;  %3523 = vmatpush3.bf16.msra.mxu0 %v3696_v6 }
  0xfb   : >> { %v494_v23 = vrot.slane %v466_v59, 4  ;;  %2430 = vmatprep.mubr.bf16.mxu1 %v3109_v54 }
  0xfc   : >> { %v513_v61 = vsel %vm342_vm0, %v464_v11, %v493_v39 }
  0xfd   : >> { %v514_v22 = vsel %vm342_vm0, %v466_v59, %v494_v23  ;;  %v3697_v62 = vld [vmem:[#allocation2 + $0x180] sm:$0xff]   ;;  %553 = vst [vmem:[#allocation2 + $0x118] sm:$0xf] %v513_v61  ;;  %v612_v10 = vpop.permute.xlu0 %611 }
  0xfe   : >> { %554 = vst [vmem:[#allocation2 + $0x11c] sm:$0xf] %v514_v22  ;;  %v614_v24 = vpop.permute.xlu1 %613  ;;  %v647_v20 = vrot.slane %v612_v10, 4  ;;  %2671 = vmatpush1.bf16.msra.mxu1 %v3697_v62 }
  0xff   : >> { %v648_v27 = vrot.slane %v614_v24, 4  ;;  %2678 = vmatprep.subr.bf16.mxu1 %v3730_v47 }
 0x100   : >> { %v668_v34 = vsel %vm663_vm1, %v612_v10, %v647_v20 }
 0x101   : >> { %v669_v33 = vsel %vm663_vm1, %v614_v24, %v648_v27  ;;  %v3698_v37 = vld [vmem:[#allocation2 + $0x158] sm:$0xff]   ;;  %708 = vst [vmem:[#allocation2 + $0x150] sm:$0xf] %v668_v34  ;;  %v460_v15 = vpop.permute.xlu0 %459  ;;  %v3141_v34 = vcombine.high %v981_v46, %v985_v21 }
 0x102   : >> { %709 = vst [vmem:[#allocation2 + $0x154] sm:$0xf] %v669_v33  ;;  %v462_v26 = vpop.permute.xlu1 %461  ;;  %v491_v42 = vrot.slane %v460_v15, 4  ;;  %2431 = vmatmul.mubr.bf16.gmra.mxu1 %v3108_v25  ;;  %3524 = vmatprep.subr.bf16.mxu0 %v3698_v37 }
 0x103   : >> { %v492_v16 = vrot.slane %v462_v26, 4  ;;  %2438 = vmatprep.mubr.bf16.mxu1 %v3117_v32  ;;  %2679 = vmatpush2.bf16.msra.mxu1 %v2171_v9  ;;  %v3132_v32 = vcombine.low %v973_v63, %v977_v0 }
 0x104   : >> { %v511_v2 = vsel %vm342_vm0, %v460_v15, %v491_v42  ;;  %2680 = vmatprep.subr.bf16.mxu1 %v3730_v47 }
 0x105   : >> { %v512_v29 = vsel %vm342_vm0, %v462_v26, %v492_v16  ;;  %v3699_v50 = vld [vmem:[#allocation2 + $0x118] sm:$0xff]   ;;  %551 = vst [vmem:[#allocation2 + $0x110] sm:$0xf] %v511_v2  ;;  %v801_v4 = vpop.permute.xlu0 %800  ;;  %v3308_v41 = vpop.f32.mrf.mxu0 }
 0x106   : >> { %552 = vst [vmem:[#allocation2 + $0x114] sm:$0xf] %v512_v29  ;;  %v803_v51 = vpop.permute.xlu1 %802  ;;  %v822_v52 = vrot.slane %v801_v4, 4  ;;  %3525 = vmatpush3.bf16.msra.mxu0 %v3699_v50  ;;  %v989_v50 = vld [vmem:[%s4955_s1 + $0x348] sm:$0xff] }
 0x107   : >> { %v823_v49 = vrot.slane %v803_v51, 4  ;;  %v3309_v35 = vpop.f32.mrf.mxu0 }
 0x108   : >> { %v842_v58 = vsel %vm663_vm1, %v801_v4, %v822_v52  ;;  %v4372_v19 = vadd.f32 %v3309_v35, %v3308_v41  ;;  %v997_v35 = vld [vmem:[%s4955_s1 + $0x388] sm:$0xff] }
 0x109   : >> { %v843_v57 = vsel %vm663_vm1, %v803_v51, %v823_v49  ;;  %v3700_v30 = vld [vmem:[#allocation2 + $0x150] sm:$0xff]   ;;  %882 = vst [vmem:[#allocation2 + $0x1d8] sm:$0xf] %v842_v58  ;;  %v608_v3 = vpop.permute.xlu0 %607  ;;  %v4376_v6 = vpop.f32.mrf.mxu0  ;;  %v993_v51 = vld [vmem:[%s4955_s1 + $0x368] sm:$0xff]  ;;  %v3140_v58 = vcombine.low %v981_v46, %v985_v21 }
 0x10a   : >> { %883 = vst [vmem:[#allocation2 + $0x1dc] sm:$0xf] %v843_v57  ;;  %v610_v31 = vpop.permute.xlu1 %609  ;;  %v645_v60 = vrot.slane %v608_v3, 4  ;;  %2439 = vmatmul.mubr.bf16.gmra.mxu1 %v3116_v53  ;;  %3526 = vmatprep.subr.bf16.mxu0 %v3700_v30 }
 0x10b   : >> { %v646_v1 = vrot.slane %v610_v31, 4  ;;  %2446 = vmatprep.mubr.bf16.mxu1 %v3125_v56  ;;  %v4378_v40 = vpop.f32.mrf.mxu0 }
 0x10c   : >> { %v666_v45 = vsel %vm663_vm1, %v608_v3, %v645_v60 }
 0x10d   : >> { %v667_v44 = vsel %vm663_vm1, %v610_v31, %v646_v1  ;;  %v3701_v38 = vld [vmem:[#allocation2 + $0x110] sm:$0xff]   ;;  %706 = vst [vmem:[#allocation2 + $0x148] sm:$0xf] %v666_v45  ;;  %v456_v14 = vpop.permute.xlu0 %455  ;;  %v3314_v24 = vpop.f32.mrf.mxu0  ;;  %v3149_v1 = vcombine.high %v989_v50, %v993_v51 }
 0x10e   : >> { %707 = vst [vmem:[#allocation2 + $0x14c] sm:$0xf] %v667_v44  ;;  %v458_v13 = vpop.permute.xlu1 %457  ;;  %v489_v48 = vrot.slane %v456_v14, 4  ;;  %3527 = vmatpush3.bf16.msra.mxu0 %v3701_v38 }
 0x10f   : >> { %v490_v17 = vrot.slane %v458_v13, 4  ;;  %v3315_v33 = vpop.f32.mrf.mxu0 }
 0x110   : >> { %v509_v55 = vsel %vm342_vm0, %v456_v14, %v489_v48  ;;  %v4389_v37 = vadd.f32 %v3315_v33, %v3314_v24 }
 0x111   : >> { %v510_v54 = vsel %vm342_vm0, %v458_v13, %v490_v17  ;;  %v3707_v5 = vld [vmem:[#allocation2 + $0x1d8] sm:$0xff]   ;;  %549 = vst [vmem:[#allocation2 + $0x108] sm:$0xf] %v509_v55  ;;  %v797_v11 = vpop.permute.xlu0 %796  ;;  %v4393_v16 = vpop.f32.mrf.mxu0  ;;  %v894_v13 = vld [vmem:[%s4955_s1 + $0x50] sm:$0xff] }
 0x112   : >> { %550 = vst [vmem:[#allocation2 + $0x10c] sm:$0xf] %v510_v54  ;;  %v799_v59 = vpop.permute.xlu1 %798  ;;  %v820_v39 = vrot.slane %v797_v11, 4  ;;  %2447 = vmatmul.mubr.bf16.gmra.mxu1 %v3124_v18  ;;  %v898_v18 = vld [vmem:[%s4955_s1 + $0x70] sm:$0xff] }
 0x113   : >> { %v821_v23 = vrot.slane %v799_v59, 4  ;;  %2454 = vmatprep.mubr.bf16.mxu1 %v3133_v36  ;;  %2681 = vmatpush2.bf16.msra.mxu1 %v3707_v5  ;;  %v4395_v2 = vpop.f32.mrf.mxu0  ;;  %v1001_v36 = vld [vmem:[%s4955_s1 + $0x3a8] sm:$0xff] }
 0x114   : >> { %v840_v61 = vsel %vm663_vm1, %v797_v11, %v820_v39  ;;  %2682 = vmatprep.subr.bf16.mxu1 %v3730_v47  ;;  %v3148_v11 = vcombine.low %v989_v50, %v993_v51  ;;  %v3157_v46 = vcombine.high %v997_v35, %v1001_v36 }
 0x115   : >> { %v841_v22 = vsel %vm663_vm1, %v799_v59, %v821_v23  ;;  %v3702_v62 = vld [vmem:[#allocation2 + $0x148] sm:$0xff]   ;;  %880 = vst [vmem:[#allocation2 + $0x1d0] sm:$0xf] %v840_v61  ;;  %v604_v27 = vpop.permute.xlu0 %603  ;;  %v3055_v23 = vcombine.high %v894_v13, %v898_v18 }
 0x116   : >> { %881 = vst [vmem:[#allocation2 + $0x1d4] sm:$0xf] %v841_v22  ;;  %v606_v10 = vpop.permute.xlu1 %605  ;;  %v643_v25 = vrot.slane %v604_v27, 4  ;;  %3528 = vmatprep.subr.bf16.mxu0 %v3702_v62  ;;  %v3320_v53 = vpop.f32.mrf.mxu0  ;;  %v902_v62 = vld [vmem:[%s4955_s1 + $0x90] sm:$0xff] }
 0x117   : >> { %v644_v20 = vrot.slane %v606_v10, 4 }
 0x118   : >> { %v664_v26 = vsel %vm663_vm1, %v604_v27, %v643_v25  ;;  %v3321_v3 = vpop.f32.mrf.mxu0  ;;  %v1005_v27 = vld [vmem:[%s4955_s1 + $0x3c8] sm:$0xff]  ;;  %v3156_v25 = vcombine.low %v997_v35, %v1001_v36  ;;  %v926_v36 = vld [vmem:[%s4955_s1 + $0x150] sm:$0xff] }
 0x119   : >> { %v665_v9 = vsel %vm663_vm1, %v606_v10, %v644_v20  ;;  %v3703_v15 = vld [vmem:[#allocation2 + $0x108] sm:$0xff]   ;;  %704 = vst [vmem:[#allocation2 + $0x140] sm:$0xf] %v664_v26  ;;  %v452_v43 = vpop.permute.xlu0 %451  ;;  %v4406_v60 = vadd.f32 %v3321_v3, %v3320_v53  ;;  %v906_v10 = vld [vmem:[%s4955_s1 + $0xb0] sm:$0xff]  ;;  %v3054_v20 = vcombine.low %v894_v13, %v898_v18 }
 0x11a   : >> { %705 = vst [vmem:[#allocation2 + $0x144] sm:$0xf] %v665_v9  ;;  %v454_v42 = vpop.permute.xlu1 %453  ;;  %v487_v29 = vrot.slane %v452_v43, 4  ;;  %2455 = vmatmul.mubr.bf16.gmra.mxu1 %v3132_v32  ;;  %3529 = vmatpush3.bf16.msra.mxu0 %v3703_v15  ;;  %v4410_v45 = vpop.f32.mrf.mxu0  ;;  %v3063_v32 = vcombine.high %v902_v62, %v906_v10  ;;  %v3062_v51 = vcombine.low %v902_v62, %v906_v10 }
 0x11b   : >> { %v488_v28 = vrot.slane %v454_v42, 4  ;;  %2462 = vmatprep.mubr.bf16.mxu1 %v3141_v34  ;;  %v3165_v34 = vcombine.high %v1005_v27, %v1009_v7 }
 0x11c   : >> { %v507_v49 = vsel %vm342_vm0, %v452_v43, %v487_v29  ;;  %v4415_v48 = vpop.f32.mrf.mxu0  ;;  %v891_v29 = vld [vmem:[%s4955_s1 + $0x38] sm:$0xff] }
 0x11d   : >> { %v508_v4 = vsel %vm342_vm0, %v454_v42, %v488_v28  ;;  %v3708_v52 = vld [vmem:[#allocation2 + $0x1d0] sm:$0xff]   ;;  %547 = vst [vmem:[#allocation2 + $0x100] sm:$0xf] %v507_v49  ;;  %v793_v57 = vpop.permute.xlu0 %792  ;;  %v887_v28 = vld [vmem:[%s4955_s1 + $0x18] sm:$0xff] }
 0x11e   : >> { %548 = vst [vmem:[#allocation2 + $0x104] sm:$0xf] %v508_v4  ;;  %v795_v56 = vpop.permute.xlu1 %794  ;;  %v818_v31 = vrot.slane %v793_v57, 4  ;;  %2683 = vmatpush2.bf16.msra.mxu1 %v3708_v52  ;;  %v3326_v59 = vpop.f32.mrf.mxu0  ;;  %v914_v42 = vld [vmem:[%s4955_s1 + $0xf0] sm:$0xff]  ;;  %v3164_v4 = vcombine.low %v1005_v27, %v1009_v7  ;;  %v3049_v53 = vcombine.high %v887_v28, %v891_v29 }
 0x11f   : >> { %v819_v30 = vrot.slane %v795_v56, 4  ;;  %2684 = vmatprep.subr.bf16.mxu1 %v3730_v47 }
 0x120   : >> { %v838_v44 = vsel %vm663_vm1, %v793_v57, %v818_v31  ;;  %v3327_v39 = vpop.f32.mrf.mxu0  ;;  %v922_v31 = vld [vmem:[%s4955_s1 + $0x130] sm:$0xff] }
 0x121   : >> { %v3704_v63 = vld [vmem:[#allocation2 + $0x140] sm:$0xff]   ;;  %v839_v0 = vsel %vm663_vm1, %v795_v56, %v819_v30  ;;  %878 = vst [vmem:[#allocation2 + $0x1c8] sm:$0xf] %v838_v44  ;;  %v789_v41 = vpop.permute.xlu0 %788  ;;  %v4428_v21 = vadd.f32 %v3327_v39, %v3326_v59  ;;  %v918_v30 = vld [vmem:[%s4955_s1 + $0x110] sm:$0xff]  ;;  %v907_v59 = vld [vmem:[%s4955_s1 + $0xb8] sm:$0xff] }
 0x122   : >> { %879 = vst [vmem:[#allocation2 + $0x1cc] sm:$0xf] %v839_v0  ;;  %v791_v38 = vpop.permute.xlu1 %790  ;;  %2463 = vmatmul.mubr.bf16.gmra.mxu1 %v3140_v58  ;;  %3530 = vmatprep.subr.bf16.mxu0 %v3704_v63  ;;  %v816_v17 = vrot.slane %v789_v41, 4  ;;  %v4430_v61 = vpop.f32.mrf.mxu0  ;;  %v899_v63 = vld [vmem:[%s4955_s1 + $0x78] sm:$0xff] }
 0x123   : >> { %v817_v14 = vrot.slane %v791_v38, 4  ;;  %2470 = vmatprep.mubr.bf16.mxu1 %v3149_v1  ;;  %v895_v1 = vld [vmem:[%s4955_s1 + $0x58] sm:$0xff] }
 0x124   : >> { %v836_v5 = vsel %vm663_vm1, %v789_v41, %v816_v17  ;;  %v4438_v24 = vpop.f32.mrf.mxu0  ;;  %v3079_v41 = vcombine.high %v918_v30, %v922_v31  ;;  %v3056_v39 = vcombine.low %v895_v1, %v899_v63 }
 0x125   : >> { %v3705_v54 = vld [vmem:[#allocation2 + $0x100] sm:$0xff]   ;;  %v837_v55 = vsel %vm663_vm1, %v791_v38, %v817_v14  ;;  %876 = vst [vmem:[#allocation2 + $0x1c0] sm:$0xf] %v836_v5  ;;  %v3048_v38 = vcombine.low %v887_v28, %v891_v29  ;;  %v3057_v14 = vcombine.high %v895_v1, %v899_v63  ;;  %v903_v5 = vld [vmem:[%s4955_s1 + $0x98] sm:$0xff] }
 0x126   : >> { %877 = vst [vmem:[#allocation2 + $0x1c4] sm:$0xf] %v837_v55  ;;  %3531 = vmatpush3.bf16.msra.mxu0 %v3705_v54  ;;  %v930_v54 = vld [vmem:[%s4955_s1 + $0x170] sm:$0xff]  ;;  %v3065_v62 = vcombine.high %v903_v5, %v907_v59 }
 0x129   : >> { %v3709_v22 = vld [vmem:[#allocation2 + $0x1c8] sm:$0xff]   ;;  %2528 = vmatmul.mubr.bf16.vlgmr.msra.gmra.mxu0 %v3046_v12  ;;  %v3332_v12 = vpop.f32.mrf.mxu0 }
 0x12a   : >> { %2471 = vmatmul.mubr.bf16.gmra.mxu1 %v3148_v11  ;;  %2535 = vmatprep.mubr.bf16.mxu0 %v3055_v23  ;;  %v3078_v23 = vcombine.low %v918_v30, %v922_v31 }
 0x12b   : >> { %2478 = vmatprep.mubr.bf16.mxu1 %v3157_v46  ;;  %2685 = vmatpush2.bf16.msra.mxu1 %v3709_v22  ;;  %v3333_v33 = vpop.f32.mrf.mxu0  ;;  %v3087_v46 = vcombine.high %v926_v36, %v930_v54 }
 0x12c   : >> { %2686 = vmatprep.subr.bf16.mxu1 %v3730_v47  ;;  %v4450_v9 = vadd.f32 %v3333_v33, %v3332_v12  ;;  %v910_v47 = vld [vmem:[%s4955_s1 + $0xd0] sm:$0xff] }
 0x12d   : >> { %v3710_v8 = vld [vmem:[#allocation2 + $0x1c0] sm:$0xff]   ;;  %v3335_v26 = vpop.f32.mrf.mxu0  ;;  %v3071_v49 = vcombine.high %v910_v47, %v914_v42  ;;  %v3070_v44 = vcombine.low %v910_v47, %v914_v42  ;;  %v938_v12 = vld [vmem:[%s4955_s1 + $0x1b0] sm:$0xff] }
 0x12f   : >> { %2687 = vmatpush2.bf16.msra.mxu1 %v3710_v8  ;;  %v3336_v15 = vpop.f32.mrf.mxu0  ;;  %v934_v8 = vld [vmem:[%s4955_s1 + $0x190] sm:$0xff] }
 0x130   : >> { %v4458_v43 = vadd.f32 %v3336_v15, %v3335_v26  ;;  %v3064_v26 = vcombine.low %v903_v5, %v907_v59  ;;  %v3095_v15 = vcombine.high %v934_v8, %v938_v12 }
 0x131   : >> { %2536 = vmatmul.mubr.bf16.gmra.mxu0 %v3054_v20  ;;  %v3338_v50 = vpop.f32.mrf.mxu0 }
 0x132   : >> { %2479 = vmatmul.mubr.bf16.gmra.mxu1 %v3156_v25  ;;  %2543 = vmatprep.mubr.bf16.mxu0 %v3063_v32  ;;  %v911_v25 = vld [vmem:[%s4955_s1 + $0xd8] sm:$0xff] }
 0x133   : >> { %2486 = vmatprep.mubr.bf16.mxu1 %v3165_v34  ;;  %v3339_v52 = vpop.f32.mrf.mxu0  ;;  %v915_v32 = vld [vmem:[%s4955_s1 + $0xf8] sm:$0xff]  ;;  %v3086_v34 = vcombine.low %v926_v36, %v930_v54 }
 0x134   : >> { %v4466_v56 = vadd.f32 %v3339_v52, %v3338_v50  ;;  %v3073_v42 = vcombine.high %v911_v25, %v915_v32  ;;  %v919_v52 = vld [vmem:[%s4955_s1 + $0x118] sm:$0xff]  ;;  %v3072_v30 = vcombine.low %v911_v25, %v915_v32 }
 0x135   : >> { %v3341_v57 = vpop.f32.mrf.mxu0 }
 0x137   : >> { %v3342_v58 = vpop.f32.mrf.mxu0 }
 0x138   : >> { %v4475_v3 = vadd.f32 %v3342_v58, %v3341_v57  ;;  %v3094_v58 = vcombine.low %v934_v8, %v938_v12  ;;  %v935_v8 = vld [vmem:[%s4955_s1 + $0x198] sm:$0xff] }
 0x139   : >> { %2544 = vmatmul.mubr.bf16.gmra.mxu0 %v3062_v51  ;;  %v3344_v0 = vpop.f32.mrf.mxu0  ;;  %v942_v51 = vld [vmem:[%s4955_s1 + $0x1d0] sm:$0xff]  ;;  %v939_v12 = vld [vmem:[%s4955_s1 + $0x1b8] sm:$0xff] }
 0x13a   : >> { %2487 = vmatmul.mubr.bf16.gmra.mxu1 %v3164_v4  ;;  %2551 = vmatprep.mubr.bf16.mxu0 %v3071_v49  ;;  %v946_v4 = vld [vmem:[%s4955_s1 + $0x1f0] sm:$0xff] }
 0x13b   : >> { %3231 = vmatprep.mubr.msk.bf16.mxu1 %vm2120_vm3, %v3049_v53  ;;  %v3345_v13 = vpop.f32.mrf.mxu0  ;;  %v923_v53 = vld [vmem:[%s4955_s1 + $0x138] sm:$0xff]  ;;  %v3103_v31 = vcombine.high %v942_v51, %v946_v4  ;;  %v3102_v54 = vcombine.low %v942_v51, %v946_v4  ;;  %v970_v51 = vld [vmem:[%s4955_s1 + $0x2b0] sm:$0xff] }
 0x13c   : >> { %v4483_v17 = vadd.f32 %v3345_v13, %v3344_v0  ;;  %v3081_v63 = vcombine.high %v919_v52, %v923_v53  ;;  %v954_v13 = vld [vmem:[%s4955_s1 + $0x230] sm:$0xff]  ;;  %v3080_v5 = vcombine.low %v919_v52, %v923_v53  ;;  %v943_v52 = vld [vmem:[%s4955_s1 + $0x1d8] sm:$0xff] }
 0x13d   : >> { %v3347_v18 = vpop.f32.mrf.mxu0  ;;  %v947_v53 = vld [vmem:[%s4955_s1 + $0x1f8] sm:$0xff] }
 0x13f   : >> { %v3348_v35 = vpop.f32.mrf.mxu0 }
 0x140   : >> { %v4492_v55 = vadd.f32 %v3348_v35, %v3347_v18  ;;  %v927_v18 = vld [vmem:[%s4955_s1 + $0x158] sm:$0xff] }
 0x141   : >> { %2552 = vmatmul.mubr.bf16.gmra.mxu0 %v3070_v44  ;;  %v3350_v11 = vpop.f32.mrf.mxu0  ;;  %v931_v35 = vld [vmem:[%s4955_s1 + $0x178] sm:$0xff] }
 0x142   : >> { %2689 = vmatmul.mubr.bf16.vlgmr.msra.gmra.mxu1 %v3048_v38  ;;  %2559 = vmatprep.mubr.bf16.mxu0 %v3079_v41  ;;  %v950_v41 = vld [vmem:[%s4955_s1 + $0x210] sm:$0xff] }
 0x143   : >> { %3232 = vmatprep.mubr.msk.bf16.mxu1 %vm2120_vm3, %v3057_v14  ;;  %v3351_v22 = vpop.f32.mrf.mxu0  ;;  %v3111_v59 = vcombine.high %v950_v41, %v954_v13  ;;  %v3110_v32 = vcombine.low %v950_v41, %v954_v13  ;;  %v974_v13 = vld [vmem:[%s4955_s1 + $0x2d0] sm:$0xff] }
 0x144   : >> { %v4500_v10 = vadd.f32 %v3351_v22, %v3350_v11 }
 0x145   : >> { %v3353_v27 = vpop.f32.mrf.mxu0 }
 0x147   : >> { %v3354_v7 = vpop.f32.mrf.mxu0 }
 0x148   : >> { %v4509_v20 = vadd.f32 %v3354_v7, %v3353_v27  ;;  %v962_v27 = vld [vmem:[%s4955_s1 + $0x270] sm:$0xff] }
 0x149   : >> { %2560 = vmatmul.mubr.bf16.gmra.mxu0 %v3078_v23  ;;  %v3356_v33 = vpop.f32.mrf.mxu0  ;;  %v3089_v23 = vcombine.high %v927_v18, %v931_v35 }
 0x14a   : >> { %2697 = vmatmul.mubr.bf16.gmra.mxu1 %v3056_v39  ;;  %2567 = vmatprep.mubr.bf16.mxu0 %v3087_v46 }
 0x14b   : >> { %3233 = vmatprep.mubr.msk.bf16.mxu1 %vm2120_vm3, %v3065_v62  ;;  %v3357_v47 = vpop.f32.mrf.mxu0  ;;  %v958_v62 = vld [vmem:[%s4955_s1 + $0x250] sm:$0xff] }
 0x14c   : >> { %v4517_v28 = vadd.f32 %v3357_v47, %v3356_v33  ;;  %v3088_v33 = vcombine.low %v927_v18, %v931_v35  ;;  %v978_v18 = vld [vmem:[%s4955_s1 + $0x2f0] sm:$0xff] }
 0x14d   : >> { %v3359_v29 = vpop.f32.mrf.mxu0 }
 0x14f   : >> { %v3360_v50 = vpop.f32.mrf.mxu0 }
 0x150   : >> { %v4526_v49 = vadd.f32 %v3360_v50, %v3359_v29  ;;  %v966_v50 = vld [vmem:[%s4955_s1 + $0x290] sm:$0xff] }
 0x151   : >> { %2568 = vmatmul.mubr.bf16.gmra.mxu0 %v3086_v34  ;;  %v3362_v57 = vpop.f32.mrf.mxu0  ;;  %v3119_v34 = vcombine.high %v958_v62, %v962_v27 }
 0x152   : >> { %2705 = vmatmul.mubr.bf16.gmra.mxu1 %v3064_v26  ;;  %2575 = vmatprep.mubr.bf16.mxu0 %v3095_v15  ;;  %v3097_v15 = vcombine.high %v935_v8, %v939_v12 }
 0x153   : >> { %3234 = vmatprep.mubr.msk.bf16.mxu1 %vm2120_vm3, %v3073_v42  ;;  %v3363_v1 = vpop.f32.mrf.mxu0 }
 0x154   : >> { %v4534_v0 = vadd.f32 %v3363_v1, %v3362_v57 }
 0x155   : >> { %v3365_v44 = vpop.f32.mrf.mxu0 }
 0x157   : >> { %v3366_v38 = vpop.f32.mrf.mxu0 }
 0x158   : >> { %v4543_v14 = vadd.f32 %v3366_v38, %v3365_v44 }
 0x159   : >> { %2576 = vmatmul.mubr.bf16.gmra.mxu0 %v3094_v58  ;;  %v3368_v36 = vpop.f32.mrf.mxu0  ;;  %v3118_v58 = vcombine.low %v958_v62, %v962_v27 }
 0x15a   : >> { %2713 = vmatmul.mubr.bf16.gmra.mxu1 %v3072_v30  ;;  %2583 = vmatprep.mubr.bf16.mxu0 %v3103_v31  ;;  %v3096_v30 = vcombine.low %v935_v8, %v939_v12  ;;  %v3127_v31 = vcombine.high %v966_v50, %v970_v51  ;;  %v982_v12 = vld [vmem:[%s4955_s1 + $0x310] sm:$0xff] }
 0x15b   : >> { %3235 = vmatprep.mubr.msk.bf16.mxu1 %vm2120_vm3, %v3081_v63  ;;  %v3369_v11 = vpop.f32.mrf.mxu0  ;;  %v3105_v63 = vcombine.high %v943_v52, %v947_v53 }
 0x15c   : >> { %v4551_v39 = vadd.f32 %v3369_v11, %v3368_v36  ;;  %v951_v36 = vld [vmem:[%s4955_s1 + $0x218] sm:$0xff]  ;;  %v3104_v11 = vcombine.low %v943_v52, %v947_v53 }
 0x15d   : >> { %v3371_v46 = vpop.f32.mrf.mxu0 }
 0x15f   : >> { %v3372_v22 = vpop.f32.mrf.mxu0 }
 0x160   : >> { %v4560_v7 = vadd.f32 %v3372_v22, %v3371_v46 }
 0x161   : >> { %2584 = vmatmul.mubr.bf16.gmra.mxu0 %v3102_v54  ;;  %v3374_v25 = vpop.f32.mrf.mxu0  ;;  %v955_v54 = vld [vmem:[%s4955_s1 + $0x238] sm:$0xff] }
 0x162   : >> { %2721 = vmatmul.mubr.bf16.gmra.mxu1 %v3080_v5  ;;  %2591 = vmatprep.mubr.bf16.mxu0 %v3111_v59  ;;  %v3126_v59 = vcombine.low %v966_v50, %v970_v51  ;;  %v3113_v22 = vcombine.high %v951_v36, %v955_v54 }
 0x163   : >> { %3236 = vmatprep.mubr.msk.bf16.mxu1 %vm2120_vm3, %v3089_v23  ;;  %v3375_v26 = vpop.f32.mrf.mxu0  ;;  %v3135_v23 = vcombine.high %v974_v13, %v978_v18 }
 0x164   : >> { %v4568_v47 = vadd.f32 %v3375_v26, %v3374_v25  ;;  %v986_v25 = vld [vmem:[%s4955_s1 + $0x330] sm:$0xff] }
 0x165   : >> { %v3377_v42 = vpop.f32.mrf.mxu0 }
 0x167   : >> { %v3378_v29 = vpop.f32.mrf.mxu0 }
 0x168   : >> { %v4577_v4 = vadd.f32 %v3378_v29, %v3377_v42  ;;  %v3112_v42 = vcombine.low %v951_v36, %v955_v54  ;;  %v3143_v29 = vcombine.high %v982_v12, %v986_v25  ;;  %v3142_v36 = vcombine.low %v982_v12, %v986_v25  ;;  %v1002_v25 = vld [vmem:[%s4955_s1 + $0x3b0] sm:$0xff] }
 0x169   : >> { %2592 = vmatmul.mubr.bf16.gmra.mxu0 %v3110_v32  ;;  %v3380_v57 = vpop.f32.mrf.mxu0 }
 0x16a   : >> { %2729 = vmatmul.mubr.bf16.gmra.mxu1 %v3088_v33  ;;  %2599 = vmatprep.mubr.bf16.mxu0 %v3119_v34  ;;  %v959_v33 = vld [vmem:[%s4955_s1 + $0x258] sm:$0xff] }
 0x16b   : >> { %3237 = vmatprep.mubr.msk.bf16.mxu1 %vm2120_vm3, %v3097_v15  ;;  %v3381_v1 = vpop.f32.mrf.mxu0  ;;  %v963_v34 = vld [vmem:[%s4955_s1 + $0x278] sm:$0xff]  ;;  %v3134_v15 = vcombine.low %v974_v13, %v978_v18 }
 0x16c   : >> { %v4585_v44 = vadd.f32 %v3381_v1, %v3380_v57  ;;  %v3121_v51 = vcombine.high %v959_v33, %v963_v34 }
 0x16d   : >> { %v3383_v38 = vpop.f32.mrf.mxu0 }
 0x16f   : >> { %v3384_v41 = vpop.f32.mrf.mxu0 }
 0x170   : >> { %v4594_v35 = vadd.f32 %v3384_v41, %v3383_v38  ;;  %v967_v38 = vld [vmem:[%s4955_s1 + $0x298] sm:$0xff] }
 0x171   : >> { %2600 = vmatmul.mubr.bf16.gmra.mxu0 %v3118_v58  ;;  %v3386_v5 = vpop.f32.mrf.mxu0  ;;  %v971_v41 = vld [vmem:[%s4955_s1 + $0x2b8] sm:$0xff] }
 0x172   : >> { %2737 = vmatmul.mubr.bf16.gmra.mxu1 %v3096_v30  ;;  %2607 = vmatprep.mubr.bf16.mxu0 %v3127_v31  ;;  %v990_v30 = vld [vmem:[%s4955_s1 + $0x350] sm:$0xff] }
 0x173   : >> { %3238 = vmatprep.mubr.msk.bf16.mxu1 %vm2120_vm3, %v3105_v63  ;;  %v3387_v46 = vpop.f32.mrf.mxu0  ;;  %v994_v31 = vld [vmem:[%s4955_s1 + $0x370] sm:$0xff] }
 0x174   : >> { %v4602_v62 = vadd.f32 %v3387_v46, %v3386_v5  ;;  %v3120_v5 = vcombine.low %v959_v33, %v963_v34  ;;  %v3129_v46 = vcombine.high %v967_v38, %v971_v41 }
 0x175   : >> { %v3389_v27 = vpop.f32.mrf.mxu0 }
 0x177   : >> { %v3390_v8 = vpop.f32.mrf.mxu0 }
 0x178   : >> { %v4611_v32 = vadd.f32 %v3390_v8, %v3389_v27  ;;  %v3313_v8 = vadd.f32 %v4378_v40, %v4376_v6  ;;  %v975_v6 = vld [vmem:[%s4955_s1 + $0x2d8] sm:$0xff] }
 0x179   : >> { %2608 = vmatmul.mubr.bf16.gmra.mxu0 %v3126_v59  ;;  %v3392_v26 = vpop.f32.mrf.mxu0  ;;  %v3151_v59 = vcombine.high %v990_v30, %v994_v31  ;;  %v979_v40 = vld [vmem:[%s4955_s1 + $0x2f8] sm:$0xff] }
 0x17a   : >> { %2745 = vmatmul.mubr.bf16.gmra.mxu1 %v3104_v11  ;;  %2615 = vmatprep.mubr.bf16.mxu0 %v3135_v23 }
 0x17b   : >> { %3239 = vmatprep.mubr.msk.bf16.mxu1 %vm2120_vm3, %v3113_v22  ;;  %v3393_v50 = vpop.f32.mrf.mxu0 }
 0x17c   : >> { %v4619_v52 = vadd.f32 %v3393_v50, %v3392_v26  ;;  %v3128_v50 = vcombine.low %v967_v38, %v971_v41 }
 0x17d   : >> { %v3395_v53 = vpop.f32.mrf.mxu0 }
 0x17f   : >> { %v3396_v58 = vpop.f32.mrf.mxu0 }
 0x180   : >> { %v4628_v1 = vadd.f32 %v3396_v58, %v3395_v53 }
 0x181   : >> { %2616 = vmatmul.mubr.bf16.gmra.mxu0 %v3134_v15  ;;  %v3398_v13 = vpop.f32.mrf.mxu0 }
 0x182   : >> { %v3420_v57 = vpop.f32.mrf.mxu1  ;;  %2753 = vmatmul.mubr.bf16.gmra.mxu1 %v3112_v42  ;;  %2623 = vmatprep.mubr.bf16.mxu0 %v3143_v29  ;;  %v3150_v42 = vcombine.low %v990_v30, %v994_v31  ;;  %v1006_v30 = vld [vmem:[%s4955_s1 + $0x3d0] sm:$0xff] }
 0x183   : >> { %3240 = vmatprep.mubr.msk.bf16.mxu1 %vm2120_vm3, %v3121_v51  ;;  %v3399_v11 = vpop.f32.mrf.mxu0 }
 0x184   : >> { %v3421_v63 = vpop.f32.mrf.mxu1  ;;  %v4639_v22 = vadd.f32 %v3399_v11, %v3398_v13 }
 0x185   : >> { %v3422_v18 = vadd.f32 %v3421_v63, %v3420_v57  ;;  %v3137_v57 = vcombine.high %v975_v6, %v979_v40  ;;  %v3319_v63 = vadd.f32 %v4395_v2, %v4393_v16  ;;  %v983_v16 = vld [vmem:[%s4955_s1 + $0x318] sm:$0xff] }
 0x186   : >> { %v3423_v54 = vpop.f32.mrf.mxu1  ;;  %v987_v2 = vld [vmem:[%s4955_s1 + $0x338] sm:$0xff] }
 0x187   : >> { %v4637_v23 = vadd.f32 %v3422_v18, %v4372_v19  ;;  %v998_v19 = vld [vmem:[%s4955_s1 + $0x390] sm:$0xff] }
 0x188   : >> { %v3424_v27 = vpop.f32.mrf.mxu1  ;;  %v3159_v51 = vcombine.high %v998_v19, %v1002_v25  ;;  %v3158_v41 = vcombine.low %v998_v19, %v1002_v25  ;;  %v995_v25 = vld [vmem:[%s4955_s1 + $0x378] sm:$0xff] }
 0x189   : >> { %v3425_v26 = vadd.f32 %v3424_v27, %v3423_v54  ;;  %2624 = vmatmul.mubr.bf16.gmra.mxu0 %v3142_v36 }
 0x18a   : >> { %v3426_v15 = vpop.f32.mrf.mxu1  ;;  %2761 = vmatmul.mubr.bf16.gmra.mxu1 %v3120_v5  ;;  %2631 = vmatprep.mubr.bf16.mxu0 %v3151_v59  ;;  %v3136_v5 = vcombine.low %v975_v6, %v979_v40  ;;  %v3144_v40 = vcombine.low %v983_v16, %v987_v2 }
 0x18b   : >> { %v4643_v12 = vadd.f32 %v3425_v26, %v3313_v8  ;;  %3241 = vmatprep.mubr.msk.bf16.mxu1 %vm2120_vm3, %v3129_v46  ;;  %v3145_v46 = vcombine.high %v983_v16, %v987_v2  ;;  %v3325_v8 = vadd.f32 %v4415_v48, %v4410_v45 }
 0x18c   : >> { %v3427_v33 = vpop.f32.mrf.mxu1 }
 0x18d   : >> { %v3428_v34 = vadd.f32 %v3427_v33, %v3426_v15 }
 0x18e   : >> { %v3429_v29 = vpop.f32.mrf.mxu1 }
 0x18f   : >> { %v4659_v53 = vadd.f32 %v3428_v34, %v4389_v37  ;;  %v1010_v37 = vld [vmem:[%s4955_s1 + $0x3f0] sm:$0xff] }
 0x190   : >> { %v3430_v58 = vpop.f32.mrf.mxu1  ;;  %v3167_v59 = vcombine.high %v1006_v30, %v1010_v37  ;;  %v3166_v45 = vcombine.low %v1006_v30, %v1010_v37 }
 0x191   : >> { %v3431_v13 = vadd.f32 %v3430_v58, %v3429_v29  ;;  %2632 = vmatmul.mubr.bf16.gmra.mxu0 %v3150_v42 }
 0x192   : >> { %v3432_v18 = vpop.f32.mrf.mxu1  ;;  %2769 = vmatmul.mubr.bf16.gmra.mxu1 %v3128_v50  ;;  %2639 = vmatprep.mubr.bf16.mxu0 %v3159_v51  ;;  %v3331_v50 = vadd.f32 %v4438_v24, %v4430_v61 }
 0x193   : >> { %v4663_v36 = vadd.f32 %v3431_v13, %v3319_v63  ;;  %3242 = vmatprep.mubr.msk.bf16.mxu1 %vm2120_vm3, %v3137_v57  ;;  %v999_v13 = vld [vmem:[%s4955_s1 + $0x398] sm:$0xff] }
 0x194   : >> { %v3433_v31 = vpop.f32.mrf.mxu1 }
 0x195   : >> { %v3434_v38 = vadd.f32 %v3433_v31, %v3432_v18 }
 0x196   : >> { %v3435_v54 = vpop.f32.mrf.mxu1 }
 0x197   : >> { %v4679_v11 = vadd.f32 %v3434_v38, %v4406_v60  ;;  %v991_v60 = vld [vmem:[%s4955_s1 + $0x358] sm:$0xff] }
 0x198   : >> { %v3436_v27 = vpop.f32.mrf.mxu1  ;;  %v3153_v42 = vcombine.high %v991_v60, %v995_v25  ;;  %v3152_v61 = vcombine.low %v991_v60, %v995_v25 }
 0x199   : >> { %v3437_v26 = vadd.f32 %v3436_v27, %v3435_v54  ;;  %2640 = vmatmul.mubr.bf16.gmra.mxu0 %v3158_v41  ;;  %v1007_v54 = vld [vmem:[%s4955_s1 + $0x3d8] sm:$0xff] }
 0x19a   : >> { %v3438_v15 = vpop.f32.mrf.mxu1  ;;  %2777 = vmatmul.mubr.bf16.gmra.mxu1 %v3136_v5  ;;  %2647 = vmatprep.mubr.bf16.mxu0 %v3167_v59 }
 0x19b   : >> { %v4683_v33 = vadd.f32 %v3437_v26, %v3325_v8  ;;  %3243 = vmatprep.mubr.msk.bf16.mxu1 %vm2120_vm3, %v3145_v46 }
 0x19c   : >> { %v3439_v19 = vpop.f32.mrf.mxu1 }
 0x19d   : >> { %v3440_v6 = vadd.f32 %v3439_v19, %v3438_v15 }
 0x19e   : >> { %v3441_v48 = vpop.f32.mrf.mxu1 }
 0x19f   : >> { %v4693_v34 = vadd.f32 %v3440_v6, %v4428_v21  ;;  %v1003_v21 = vld [vmem:[%s4955_s1 + $0x3b8] sm:$0xff] }
 0x1a0   : >> { %v3442_v29 = vpop.f32.mrf.mxu1  ;;  %v3161_v37 = vcombine.high %v999_v13, %v1003_v21  ;;  %v3160_v46 = vcombine.low %v999_v13, %v1003_v21 }
 0x1a1   : >> { %v3443_v51 = vadd.f32 %v3442_v29, %v3441_v48  ;;  %2648 = vmatmul.mubr.bf16.gmra.mxu0 %v3166_v45 }
 0x1a2   : >> { %v3444_v57 = vpop.f32.mrf.mxu1  ;;  %2785 = vmatmul.mubr.bf16.gmra.mxu1 %v3144_v40 }
 0x1a3   : >> { %v4697_v58 = vadd.f32 %v3443_v51, %v3331_v50  ;;  %3244 = vmatprep.mubr.msk.bf16.mxu1 %vm2120_vm3, %v3153_v42 }
 0x1a4   : >> { %v3445_v63 = vpop.f32.mrf.mxu1 }
 0x1a5   : >> { %v3446_v18 = vadd.f32 %v3445_v63, %v3444_v57 }
 0x1a6   : >> { %v3447_v30 = vpop.f32.mrf.mxu1 }
 0x1a7   : >> { %v4707_v24 = vadd.f32 %v3446_v18, %v4450_v9  ;;  %v1011_v9 = vld [vmem:[%s4955_s1 + $0x3f8] sm:$0xff] }
 0x1a8   : >> { %v3448_v31 = vpop.f32.mrf.mxu1  ;;  %v3169_v8 = vcombine.high %v1007_v54, %v1011_v9  ;;  %v3168_v45 = vcombine.low %v1007_v54, %v1011_v9 }
 0x1a9   : >> { %v3449_v16 = vadd.f32 %v3448_v31, %v3447_v30 }
 0x1aa   : >> { %v3450_v2 = vpop.f32.mrf.mxu1  ;;  %2793 = vmatmul.mubr.bf16.gmra.mxu1 %v3152_v61 }
 0x1ab   : >> { %v4710_v38 = vadd.f32 %v3449_v16, %v4458_v43  ;;  %3245 = vmatprep.mubr.msk.bf16.mxu1 %vm2120_vm3, %v3161_v37 }
 0x1ac   : >> { %v3451_v41 = vpop.f32.mrf.mxu1 }
 0x1ad   : >> { %v3452_v5 = vadd.f32 %v3451_v41, %v3450_v2 }
 0x1ae   : >> { %v3453_v59 = vpop.f32.mrf.mxu1 }
 0x1af   : >> { %v4720_v27 = vadd.f32 %v3452_v5, %v4466_v56 }
 0x1b0   : >> { %v3454_v43 = vpop.f32.mrf.mxu1 }
 0x1b1   : >> { %v3455_v26 = vadd.f32 %v3454_v43, %v3453_v59 }
 0x1b2   : >> { %v3456_v15 = vpop.f32.mrf.mxu1  ;;  %2801 = vmatmul.mubr.bf16.gmra.mxu1 %v3160_v46 }
 0x1b3   : >> { %v4723_v19 = vadd.f32 %v3455_v26, %v4475_v3  ;;  %3246 = vmatprep.mubr.msk.bf16.mxu1 %vm2120_vm3, %v3169_v8 }
 0x1b4   : >> { %v3457_v60 = vpop.f32.mrf.mxu1 }
 0x1b5   : >> { %v3458_v25 = vadd.f32 %v3457_v60, %v3456_v15 }
 0x1b6   : >> { %v3459_v6 = vpop.f32.mrf.mxu1 }
 0x1b7   : >> { %v4727_v48 = vadd.f32 %v3458_v25, %v4483_v17 }
 0x1b8   : >> { %v3460_v40 = vpop.f32.mrf.mxu1 }
 0x1b9   : >> { %v3461_v56 = vadd.f32 %v3460_v40, %v3459_v6 }
 0x1ba   : >> { %v3462_v42 = vpop.f32.mrf.mxu1  ;;  %2809 = vmatmul.mubr.bf16.gmra.mxu1 %v3168_v45 }
 0x1bb   : >> { %v4730_v29 = vadd.f32 %v3461_v56, %v4492_v55 }
 0x1bc   : >> { %v3463_v50 = vpop.f32.mrf.mxu1 }
 0x1bd   : >> { %v3464_v51 = vadd.f32 %v3463_v50, %v3462_v42  ;;  %v3401_v42 = vpop.f32.mrf.mxu0 }
 0x1be   : >> { %v3465_v3 = vpop.f32.mrf.mxu1 }
 0x1bf   : >> { %v4733_v57 = vadd.f32 %v3464_v51, %v4500_v10 }
 0x1c0   : >> { %v3466_v63 = vpop.f32.mrf.mxu1 }
 0x1c1   : >> { %v3467_v13 = vadd.f32 %v3466_v63, %v3465_v3  ;;  %v3402_v63 = vpop.f32.mrf.mxu0 }
 0x1c2   : >> { %v3468_v21 = vpop.f32.mrf.mxu1 }
 0x1c3   : >> { %v4736_v18 = vadd.f32 %v3467_v13, %v4509_v20 }
 0x1c4   : >> { %v3469_v17 = vpop.f32.mrf.mxu1 }
 0x1c5   : >> { %v3470_v30 = vadd.f32 %v3469_v17, %v3468_v21 }
 0x1c6   : >> { %v3471_v61 = vpop.f32.mrf.mxu1 }
 0x1c7   : >> { %v4739_v37 = vadd.f32 %v3470_v30, %v4517_v28 }
 0x1c8   : >> { %v3472_v55 = vpop.f32.mrf.mxu1 }
 0x1c9   : >> { %v3473_v31 = vadd.f32 %v3472_v55, %v3471_v61 }
 0x1ca   : >> { %v3474_v16 = vpop.f32.mrf.mxu1 }
 0x1cb   : >> { %v4742_v2 = vadd.f32 %v3473_v31, %v4526_v49 }
 0x1cc   : >> { %v3475_v10 = vpop.f32.mrf.mxu1 }
 0x1cd   : >> { %v3476_v41 = vadd.f32 %v3475_v10, %v3474_v16 }
 0x1ce   : >> { %v3477_v54 = vpop.f32.mrf.mxu1 }
 0x1cf   : >> { %v4745_v9 = vadd.f32 %v3476_v41, %v4534_v0 }
 0x1d0   : >> { %v3478_v20 = vpop.f32.mrf.mxu1 }
 0x1d1   : >> { %v3479_v5 = vadd.f32 %v3478_v20, %v3477_v54 }
 0x1d2   : >> { %v3480_v59 = vpop.f32.mrf.mxu1 }
 0x1d3   : >> { %v4748_v46 = vadd.f32 %v3479_v5, %v4543_v14 }
 0x1d4   : >> { %v3481_v28 = vpop.f32.mrf.mxu1 }
 0x1d5   : >> { %v3482_v8 = vadd.f32 %v3481_v28, %v3480_v59 }
 0x1d6   : >> { %v3483_v43 = vpop.f32.mrf.mxu1 }
 0x1d7   : >> { %v4751_v26 = vadd.f32 %v3482_v8, %v4551_v39 }
 0x1d8   : >> { %v3484_v49 = vpop.f32.mrf.mxu1 }
 0x1d9   : >> { %v3485_v15 = vadd.f32 %v3484_v49, %v3483_v43 }
 0x1da   : >> { %v3486_v60 = vpop.f32.mrf.mxu1 }
 0x1db   : >> { %v4754_v25 = vadd.f32 %v3485_v15, %v4560_v7 }
 0x1dc   : >> { %v3487_v0 = vpop.f32.mrf.mxu1 }
 0x1dd   : >> { %v3488_v6 = vadd.f32 %v3487_v0, %v3486_v60 }
 0x1de   : >> { %v3489_v45 = vpop.f32.mrf.mxu1 }
 0x1df   : >> { %v4757_v40 = vadd.f32 %v3488_v6, %v4568_v47 }
 0x1e0   : >> { %v3490_v14 = vpop.f32.mrf.mxu1 }
 0x1e1   : >> { %4965 = vst [vmem:[#allocation3_spill] sm:$0xff] %v4757_v40  ;;  %v3491_v56 = vadd.f32 %v3490_v14, %v3489_v45 }
 0x1e2   : >> { %v3492_v50 = vpop.f32.mrf.mxu1 }
 0x1e3   : >> { %v4760_v51 = vadd.f32 %v3491_v56, %v4577_v4 }
 0x1e4   : >> { %v3493_v39 = vpop.f32.mrf.mxu1 }
 0x1e5   : >> { %4966 = vst [vmem:[#allocation4_spill] sm:$0xff] %v4760_v51  ;;  %v3494_v3 = vadd.f32 %v3493_v39, %v3492_v50 }
 0x1e6   : >> { %v3495_v13 = vpop.f32.mrf.mxu1 }
 0x1e7   : >> { %v4763_v7 = vadd.f32 %v3494_v3, %v4585_v44 }
 0x1e8   : >> { %v3496_v21 = vpop.f32.mrf.mxu1 }
 0x1e9   : >> { %v3497_v17 = vadd.f32 %v3496_v21, %v3495_v13  ;;  %v3532_v30 = vpop.f32.mrf.mxu0 }
 0x1ea   : >> { %v3498_v61 = vpop.f32.mrf.mxu1 }
 0x1eb   : >> { %v4766_v47 = vadd.f32 %v3497_v17, %v4594_v35  ;;  %v3533_v55 = vpop.f32.mrf.mxu0 }
 0x1ec   : >> { %v3534_v31 = vadd.f32 %v3533_v55, %v3532_v30  ;;  %v3499_v16 = vpop.f32.mrf.mxu1 }
 0x1ed   : >> { %v3500_v10 = vadd.f32 %v3499_v16, %v3498_v61  ;;  %v3535_v4 = vpop.f32.mrf.mxu0 }
 0x1ee   : >> { %v3501_v41 = vpop.f32.mrf.mxu1  ;;  %v2530_v54 = vadd.f32 %v3534_v31, %v4637_v23 }
 0x1ef   : >> { %v4770_v20 = vadd.f32 %v3500_v10, %v4602_v62  ;;  %v3536_v44 = vpop.f32.mrf.mxu0 }
 0x1f0   : >> { %v3537_v5 = vadd.f32 %v3536_v44, %v3535_v4  ;;  %v3502_v59 = vpop.f32.mrf.mxu1  ;;  %v3403_v44 = vadd.f32 %v3402_v63, %v3401_v42 }
 0x1f1   : >> { %v3503_v28 = vadd.f32 %v3502_v59, %v3501_v41  ;;  %v3538_v8 = vpop.f32.mrf.mxu0 }
 0x1f2   : >> { %v3504_v43 = vpop.f32.mrf.mxu1  ;;  %v2533_v35 = vadd.f32 %v3537_v5, %v4643_v12 }
 0x1f3   : >> { %v4774_v49 = vadd.f32 %v3503_v28, %v4611_v32  ;;  %v3539_v15 = vpop.f32.mrf.mxu0 }
 0x1f4   : >> { %v3540_v60 = vadd.f32 %v3539_v15, %v3538_v8  ;;  %v3505_v0 = vpop.f32.mrf.mxu1 }
 0x1f5   : >> { %v3506_v6 = vadd.f32 %v3505_v0, %v3504_v43  ;;  %v3541_v45 = vpop.f32.mrf.mxu0 }
 0x1f6   : >> { %v3507_v23 = vpop.f32.mrf.mxu1  ;;  %v2538_v62 = vadd.f32 %v3540_v60, %v4659_v53 }
 0x1f7   : >> { %v4778_v14 = vadd.f32 %v3506_v6, %v4619_v52  ;;  %v3542_v56 = vpop.f32.mrf.mxu0 }
 0x1f8   : >> { %v3543_v50 = vadd.f32 %v3542_v56, %v3541_v45  ;;  %v3508_v39 = vpop.f32.mrf.mxu1 }
 0x1f9   : >> { %v3509_v3 = vadd.f32 %v3508_v39, %v3507_v23  ;;  %v3544_v13 = vpop.f32.mrf.mxu0 }
 0x1fa   : >> { %v3510_v12 = vpop.f32.mrf.mxu1  ;;  %v2541_v32 = vadd.f32 %v3543_v50, %v4663_v36 }
 0x1fb   : >> { %v4782_v21 = vadd.f32 %v3509_v3, %v4628_v1  ;;  %v3545_v17 = vpop.f32.mrf.mxu0 }
 0x1fc   : >> { %v3546_v30 = vadd.f32 %v3545_v17, %v3544_v13  ;;  %v3511_v61 = vpop.f32.mrf.mxu1 }
 0x1fd   : >> { %v3512_v55 = vadd.f32 %v3511_v61, %v3510_v12  ;;  %v3547_v31 = vpop.f32.mrf.mxu0 }
 0x1fe   : >> { %v3513_v53 = vpop.f32.mrf.mxu1  ;;  %v2546_v52 = vadd.f32 %v3546_v30, %v4679_v11 }
 0x1ff   : >> { %v4786_v16 = vadd.f32 %v3512_v55, %v4639_v22  ;;  %v3548_v10 = vpop.f32.mrf.mxu0 }
 0x200   : >> { %v3549_v4 = vadd.f32 %v3548_v10, %v3547_v31  ;;  %v3514_v41 = vpop.f32.mrf.mxu1 }
 0x201   : >> { %4967 = vst [vmem:[#allocation5_spill] sm:$0xff] %v4786_v16  ;;  %v3515_v5 = vadd.f32 %v3514_v41, %v3513_v53  ;;  %v3550_v36 = vpop.f32.mrf.mxu0 }
 0x202   : >> { %v2690_v59 = vpop.f32.mrf.mxu1  ;;  %v2549_v1 = vadd.f32 %v3549_v4, %v4683_v33 }
 0x203   : >> { %v4789_v28 = vadd.f32 %v3515_v5, %v3403_v44  ;;  %v4791_v8 = vadd.f32 %v2690_v59, %v2530_v54  ;;  %v3551_v43 = vpop.f32.mrf.mxu0 }
 0x204   : >> { %v3552_v15 = vadd.f32 %v3551_v43, %v3550_v36  ;;  %v2692_v60 = vpop.f32.mrf.mxu1 }
 0x205   : >> { %4968 = vst [vmem:[#allocation6_spill] sm:$0xff] %v4789_v28  ;;  %v3553_v11 = vpop.f32.mrf.mxu0 }
 0x206   : >> { %v2693_v0 = vpop.f32.mrf.mxu1  ;;  %v2554_v22 = vadd.f32 %v3552_v15, %v4693_v34 }
 0x207   : >> { %v4794_v6 = vadd.f32 %v2693_v0, %v2533_v35  ;;  %v3554_v45 = vpop.f32.mrf.mxu0 }
 0x208   : >> { %v3555_v42 = vadd.f32 %v3554_v45, %v3553_v11  ;;  %v2695_v63 = vpop.f32.mrf.mxu1 }
 0x209   : >> { %v3556_v23 = vpop.f32.mrf.mxu0 }
 0x20a   : >> { %v2698_v56 = vpop.f32.mrf.mxu1  ;;  %v2557_v33 = vadd.f32 %v3555_v42, %v4697_v58 }
 0x20b   : >> { %v4797_v50 = vadd.f32 %v2698_v56, %v2538_v62  ;;  %v3557_v54 = vpop.f32.mrf.mxu0 }
 0x20c   : >> { %v3558_v39 = vadd.f32 %v3557_v54, %v3556_v23  ;;  %v2700_v3 = vpop.f32.mrf.mxu1 }
 0x20d   : >> { %v3559_v13 = vpop.f32.mrf.mxu0 }
 0x20e   : >> { %v2701_v12 = vpop.f32.mrf.mxu1  ;;  %v2562_v17 = vadd.f32 %v3558_v39, %v4707_v24 }
 0x20f   : >> { %v4800_v30 = vadd.f32 %v2701_v12, %v2541_v32  ;;  %v3560_v34 = vpop.f32.mrf.mxu0 }
 0x210   : >> { %v3561_v35 = vadd.f32 %v3560_v34, %v3559_v13  ;;  %v2703_v61 = vpop.f32.mrf.mxu1 }
 0x211   : >> { %v3562_v55 = vpop.f32.mrf.mxu0 }
 0x212   : >> { %v2706_v31 = vpop.f32.mrf.mxu1  ;;  %v2565_v53 = vadd.f32 %v3561_v35, %v4710_v38 }
 0x213   : >> { %v4803_v10 = vadd.f32 %v2706_v31, %v2546_v52  ;;  %v3563_v58 = vpop.f32.mrf.mxu0 }
 0x214   : >> { %v3564_v62 = vadd.f32 %v3563_v58, %v3562_v55  ;;  %v2708_v4 = vpop.f32.mrf.mxu1 }
 0x215   : >> { %4969 = vst [vmem:[#allocation7_spill] sm:$0xff] %v4803_v10  ;;  %v3565_v41 = vpop.f32.mrf.mxu0 }
 0x216   : >> { %v2709_v44 = vpop.f32.mrf.mxu1  ;;  %v2570_v5 = vadd.f32 %v3564_v62, %v4720_v27 }
 0x217   : >> { %v4806_v36 = vadd.f32 %v2709_v44, %v2549_v1  ;;  %v3566_v24 = vpop.f32.mrf.mxu0 }
 0x218   : >> { %v3567_v32 = vadd.f32 %v3566_v24, %v3565_v41  ;;  %v2711_v59 = vpop.f32.mrf.mxu1 }
 0x219   : >> { %4970 = vst [vmem:[#allocation8_spill] sm:$0xff] %v4806_v36  ;;  %v3568_v43 = vpop.f32.mrf.mxu0 }
 0x21a   : >> { %v2714_v15 = vpop.f32.mrf.mxu1  ;;  %v2573_v60 = vadd.f32 %v3567_v32, %v4723_v19 }
 0x21b   : >> { %v4809_v11 = vadd.f32 %v2714_v15, %v2554_v22  ;;  %v3569_v38 = vpop.f32.mrf.mxu0 }
 0x21c   : >> { %v3570_v52 = vadd.f32 %v3569_v38, %v3568_v43  ;;  %v2716_v0 = vpop.f32.mrf.mxu1 }
 0x21d   : >> { %4971 = vst [vmem:[#allocation9_spill] sm:$0xff] %v4809_v11  ;;  %v3571_v45 = vpop.f32.mrf.mxu0 }
 0x21e   : >> { %v2717_v42 = vpop.f32.mrf.mxu1  ;;  %v2578_v63 = vadd.f32 %v3570_v52, %v4727_v48 }
 0x21f   : >> { %v4812_v23 = vadd.f32 %v2717_v42, %v2557_v33  ;;  %v3572_v27 = vpop.f32.mrf.mxu0 }
 0x220   : >> { %v3573_v1 = vadd.f32 %v3572_v27, %v3571_v45  ;;  %v2719_v56 = vpop.f32.mrf.mxu1 }
 0x221   : >> { %4972 = vst [vmem:[#allocation10_spill] sm:$0xff] %v4812_v23  ;;  %v3574_v54 = vpop.f32.mrf.mxu0 }
 0x222   : >> { %v2722_v39 = vpop.f32.mrf.mxu1  ;;  %v2581_v3 = vadd.f32 %v3573_v1, %v4730_v29 }
 0x223   : >> { %v4815_v13 = vadd.f32 %v2722_v39, %v2562_v17  ;;  %v3575_v19 = vpop.f32.mrf.mxu0 }
 0x224   : >> { %v3576_v22 = vadd.f32 %v3575_v19, %v3574_v54  ;;  %v2724_v12 = vpop.f32.mrf.mxu1 }
 0x225   : >> { %v3577_v35 = vpop.f32.mrf.mxu0 }
 0x226   : >> { %v2725_v61 = vpop.f32.mrf.mxu1  ;;  %v2586_v48 = vadd.f32 %v3576_v22, %v4733_v57 }
 0x227   : >> { %v4820_v33 = vadd.f32 %v2725_v61, %v2565_v53  ;;  %v3578_v55 = vpop.f32.mrf.mxu0 }
 0x228   : >> { %v3579_v31 = vadd.f32 %v3578_v55, %v3577_v35  ;;  %v2727_v58 = vpop.f32.mrf.mxu1 }
 0x229   : >> { %v4824_v17 = vpop.f32.mrf.mxu0 }
 0x22a   : >> { %v2730_v62 = vpop.f32.mrf.mxu1  ;;  %v2589_v4 = vadd.f32 %v3579_v31, %v4736_v18 }
 0x22b   : >> { %v4827_v41 = vadd.f32 %v2730_v62, %v2570_v5  ;;  %v3581_v44 = vpop.f32.mrf.mxu0 }
 0x22c   : >> { %v2732_v24 = vpop.f32.mrf.mxu1 }
 0x22d   : >> { %v3583_v53 = vpop.f32.mrf.mxu0 }
 0x22e   : >> { %v2733_v32 = vpop.f32.mrf.mxu1 }
 0x22f   : >> { %v4831_v59 = vadd.f32 %v2733_v32, %v2573_v60  ;;  %v3584_v43 = vpop.f32.mrf.mxu0 }
 0x230   : >> { %v2735_v15 = vpop.f32.mrf.mxu1 }
 0x231   : >> { %v4835_v52 = vpop.f32.mrf.mxu0 }
 0x232   : >> { %v2738_v0 = vpop.f32.mrf.mxu1 }
 0x233   : >> { %v4837_v18 = vadd.f32 %v2738_v0, %v2578_v63  ;;  %v4839_v5 = vpop.f32.mrf.mxu0 }
 0x234   : >> { %v2740_v45 = vpop.f32.mrf.mxu1 }
 0x235   : >> { %4973 = vst [vmem:[#allocation11_spill] sm:$0xff] %v4837_v18  ;;  %v4843_v27 = vpop.f32.mrf.mxu0 }
 0x236   : >> { %v2741_v60 = vpop.f32.mrf.mxu1 }
 0x237   : >> { %v4845_v1 = vadd.f32 %v2741_v60, %v2581_v3  ;;  %v4847_v56 = vpop.f32.mrf.mxu0 }
 0x238   : >> { %v2743_v54 = vpop.f32.mrf.mxu1 }
 0x239   : >> { %4974 = vst [vmem:[#allocation12_spill] sm:$0xff] %v4845_v1  ;;  %v4851_v19 = vpop.f32.mrf.mxu0 }
 0x23a   : >> { %v2746_v63 = vpop.f32.mrf.mxu1 }
 0x23b   : >> { %v4853_v22 = vadd.f32 %v2746_v63, %v2586_v48  ;;  %v4855_v12 = vpop.f32.mrf.mxu0 }
 0x23c   : >> { %v2748_v35 = vpop.f32.mrf.mxu1 }
 0x23d   : >> { %4975 = vst [vmem:[#allocation13_spill] sm:$0xff] %v4853_v22  ;;  %v4859_v55 = vpop.f32.mrf.mxu0 }
 0x23e   : >> { %v2749_v3 = vpop.f32.mrf.mxu1 }
 0x23f   : >> { %v4861_v31 = vadd.f32 %v2749_v3, %v2589_v4  ;;  %v4863_v58 = vpop.f32.mrf.mxu0 }
 0x240   : >> { %v2751_v62 = vpop.f32.mrf.mxu1 }
 0x241   : >> { %4976 = vst [vmem:[#allocation14_spill] sm:$0xff] %v4861_v31  ;;  %v4867_v32 = vpop.f32.mrf.mxu0 }
 0x242   : >> { %v2754_v48 = vpop.f32.mrf.mxu1 }
 0x243   : >> { %v4869_v15 = vpop.f32.mrf.mxu0 }
 0x244   : >> { %v2756_v0 = vpop.f32.mrf.mxu1 }
 0x245   : >> { %v4871_v45 = vpop.f32.mrf.mxu0 }
 0x246   : >> { %4977 = vst [vmem:[#allocation15_spill] sm:$0xff] %v4871_v45  ;;  %v2757_v60 = vpop.f32.mrf.mxu1 }
 0x247   : >> { %v4873_v54 = vpop.f32.mrf.mxu0 }
 0x248   : >> { %4978 = vst [vmem:[#allocation16_spill] sm:$0xff] %v4873_v54  ;;  %v2759_v63 = vpop.f32.mrf.mxu1 }
 0x249   : >> { %v3604_v4 = vpop.f32.mrf.mxu0 }
 0x24a   : >> { %v2762_v35 = vpop.f32.mrf.mxu1 }
 0x24b   : >> { %v3605_v3 = vpop.f32.mrf.mxu0 }
 0x24c   : >> { %v2764_v61 = vpop.f32.mrf.mxu1  ;;  %v3606_v51 = vadd.f32 %v3605_v3, %v3604_v4 }
 0x24d   : >> { %v3607_v62 = vpop.f32.mrf.mxu0  ;;  %v3582_v61 = vadd.f32 %v3581_v44, %v4824_v17  ;;  %v3588_v17 = vadd.f32 %v4839_v5, %v4835_v52 }
 0x24e   : >> { %v2765_v39 = vpop.f32.mrf.mxu1  ;;  %v2626_v54 = vadd.f32 %v3606_v51, %v4763_v7  ;;  %v4980_v51 = vmax.f32 %v4791_v8, %v4815_v13  ;;  %v4981_v8 = vmax.f32 %v4794_v6, %v4820_v33  ;;  %v4982_v33 = vmax.f32 %v4797_v50, %v4827_v41 }
 0x24f   : >> { %v3608_v42 = vpop.f32.mrf.mxu0  ;;  %v2594_v40 = vadd.f32 %v3582_v61, %v4739_v37 }
 0x250   : >> { %v2767_v24 = vpop.f32.mrf.mxu1 }
 0x251   : >> { %v3610_v38 = vpop.f32.mrf.mxu0  ;;  %v3585_v24 = vadd.f32 %v3584_v43, %v3583_v53  ;;  %v2755_v18 = vadd.f32 %v2754_v48, %v2594_v40  ;;  %v2602_v48 = vadd.f32 %v3588_v17, %v4745_v9 }
 0x252   : >> { %v4875_v57 = vpop.f32.mrf.mxu1 }
 0x253   : >> { %v3611_v29 = vpop.f32.mrf.mxu0 }
 0x254   : >> { %v2772_v34 = vpop.f32.mrf.mxu1  ;;  %v3612_v44 = vadd.f32 %v3611_v29, %v3610_v38 }
 0x255   : >> { %v3613_v0 = vpop.f32.mrf.mxu0  ;;  %v3609_v34 = vadd.f32 %v3608_v42, %v3607_v62 }
 0x256   : >> { %v4877_v31 = vpop.f32.mrf.mxu1 }
 0x257   : >> { %v3614_v23 = vpop.f32.mrf.mxu0 }
 0x258   : >> { %v2775_v22 = vpop.f32.mrf.mxu1  ;;  %v3615_v52 = vadd.f32 %v3614_v23, %v3613_v0 }
 0x259   : >> { %v3616_v11 = vpop.f32.mrf.mxu0 }
 0x25a   : >> { %v4879_v63 = vpop.f32.mrf.mxu1  ;;  %v2637_v3 = vadd.f32 %v3615_v52, %v4774_v49 }
 0x25b   : >> { %4979 = vst [vmem:[#allocation17_spill] sm:$0xff] %v4879_v63  ;;  %v3617_v1 = vpop.f32.mrf.mxu0 }
 0x25c   : >> { %v2780_v28 = vpop.f32.mrf.mxu1  ;;  %v3618_v23 = vadd.f32 %v3617_v1, %v3616_v11 }
 0x25d   : >> { %v3619_v45 = vpop.f32.mrf.mxu0  ;;  %v2597_v28 = vadd.f32 %v3585_v24, %v4742_v2  ;;  %v3591_v2 = vadd.f32 %v4847_v56, %v4843_v27  ;;  %v3594_v27 = vadd.f32 %v4855_v12, %v4851_v19 }
 0x25e   : >> { %v4882_v36 = vpop.f32.mrf.mxu1  ;;  %v2642_v24 = vadd.f32 %v3618_v23, %v4778_v14  ;;  %v4995_v23 = vld [vmem:[#allocation4_spill] sm:$0xff] }
 0x25f   : >> { %v3620_v53 = vpop.f32.mrf.mxu0  ;;  %v2758_v43 = vadd.f32 %v2757_v60, %v2597_v28  ;;  %v2605_v56 = vadd.f32 %v3591_v2, %v4748_v46  ;;  %v3597_v46 = vadd.f32 %v4863_v58, %v4859_v55  ;;  %v2610_v11 = vadd.f32 %v3594_v27, %v4751_v26 }
 0x260   : >> { %v2783_v16 = vpop.f32.mrf.mxu1  ;;  %v3621_v49 = vadd.f32 %v3620_v53, %v3619_v45  ;;  %v4983_v55 = vmax.f32 %v4800_v30, %v4831_v59  ;;  %v3600_v28 = vadd.f32 %v4869_v15, %v4867_v32  ;;  %v4984_v59 = vld [vmem:[#allocation7_spill] sm:$0xff] }
 0x261   : >> { %v2629_v16 = vadd.f32 %v3609_v34, %v4766_v47  ;;  %v3622_v47 = vpop.f32.mrf.mxu0  ;;  %v2771_v50 = vadd.f32 %v4875_v57, %v2610_v11  ;;  %v2613_v45 = vadd.f32 %v3597_v46, %v4754_v25  ;;  %v4987_v15 = vld [vmem:[#allocation15_spill] sm:$0xff]  ;;  %v4988_v25 = vld [vmem:[#allocation16_spill] sm:$0xff]  ;;  %v4998_v46 = vld [vmem:[#allocation13_spill] sm:$0xff] }
 0x262   : >> { %v2786_v22 = vpop.f32.mrf.mxu1  ;;  %v3603_v2 = vadd.f32 %v4988_v25, %v4987_v15 }
 0x263   : >> { %v2787_v10 = vadd.f32 %v2786_v22, %v2626_v54  ;;  %v3623_v62 = vpop.f32.mrf.mxu0  ;;  %v2774_v57 = vadd.f32 %v4877_v31, %v2613_v45  ;;  %v4990_v31 = vld [vmem:[#allocation5_spill] sm:$0xff] }
 0x264   : >> { %v2788_v63 = vpop.f32.mrf.mxu1 }
 0x265   : >> { %v2825_v4 = vmax.f32 %v2755_v18, %v2787_v10  ;;  %v2634_v10 = vadd.f32 %v3612_v44, %v4770_v20  ;;  %v2763_v18 = vadd.f32 %v2762_v35, %v2602_v48  ;;  %v2766_v35 = vadd.f32 %v2765_v39, %v2605_v56  ;;  %v3625_v34 = vpop.f32.mrf.mxu0 }
 0x266   : >> { %v2789_v37 = vpop.f32.mrf.mxu1  ;;  %v3624_v44 = vadd.f32 %v3623_v62, %v3622_v47  ;;  %v4996_v62 = vld [vmem:[#allocation6_spill] sm:$0xff] }
 0x267   : >> { %v2833_v7 = vmax.f32 %v4980_v51, %v2825_v4  ;;  %v2790_v42 = vadd.f32 %v2789_v37, %v2629_v16  ;;  %v2645_v16 = vadd.f32 %v3621_v49, %v4782_v21  ;;  %v3626_v53 = vpop.f32.mrf.mxu0  ;;  %v4985_v51 = vld [vmem:[#allocation11_spill] sm:$0xff] }
 0x268   : >> { %v2791_v40 = vpop.f32.mrf.mxu1  ;;  %v2650_v47 = vadd.f32 %v3624_v44, %v4990_v31 }
 0x269   : >> { %v2826_v29 = vmax.f32 %v2758_v43, %v2790_v42  ;;  %v2841_v5 = vmul.f32 0.01, %v2833_v7  ;;  %v4989_v40 = vld [vmem:[#allocation3_spill] sm:$0xff] }
 0x26a   : >> { %v2794_v38 = vpop.f32.mrf.mxu1  ;;  %v2618_v48 = vadd.f32 %v3600_v28, %v4989_v40 }
 0x26b   : >> { %v2834_v13 = vmax.f32 %v4981_v8, %v2826_v29  ;;  %v2795_v60 = vadd.f32 %v2794_v38, %v2634_v10  ;;  %v2849_v63 = vmax.f32 %v2833_v7, %v2841_v5  ;;  %v4986_v7 = vmax.f32 %v4984_v59, %v4985_v51 }
 0x26c   : >> { %v2796_v9 = vpop.f32.mrf.mxu1  ;;  %v3627_v29 = vadd.f32 %v3626_v53, %v3625_v34 }
 0x26d   : >> { %v2842_v54 = vmul.f32 0.01, %v2834_v13  ;;  %v2827_v20 = vmax.f32 %v2763_v18, %v2795_v60  ;;  %v4991_v18 = vld [vmem:[#allocation17_spill] sm:$0xff]  ;;  %v4993_v60 = vld [vmem:[#allocation12_spill] sm:$0xff] }
 0x26e   : >> { %v2797_v0 = vpop.f32.mrf.mxu1  ;;  %v2779_v5 = vadd.f32 %v4991_v18, %v2618_v48 }
 0x26f   : >> { %v2850_v6 = vmax.f32 %v2834_v13, %v2842_v54  ;;  %v2835_v61 = vmax.f32 %v4982_v33, %v2827_v20  ;;  %v2798_v19 = vadd.f32 %v2797_v0, %v2637_v3  ;;  %v4992_v13 = vld [vmem:[#allocation8_spill] sm:$0xff]  ;;  %v2621_v54 = vadd.f32 %v3603_v2, %v4995_v23 }
 0x270   : >> { %v2799_v1 = vpop.f32.mrf.mxu1  ;;  %v4994_v27 = vmax.f32 %v4992_v13, %v4993_v60  ;;  %v2653_v0 = vadd.f32 %v3627_v29, %v4996_v62 }
 0x271   : >> { %v3272_v39 = vpack.c.bf16 %v2850_v6, %v2849_v63  ;;  %v2828_v12 = vmax.f32 %v2766_v35, %v2798_v19  ;;  %v2843_v41 = vmul.f32 0.01, %v2835_v61  ;;  %v2782_v63 = vadd.f32 %v4882_v36, %v2621_v54  ;;  %v4997_v19 = vld [vmem:[#allocation9_spill] sm:$0xff] }
 0x272   : >> { %v2802_v22 = vpop.f32.mrf.mxu1  ;;  %v4999_v11 = vmax.f32 %v4997_v19, %v4998_v46 }
 0x273   : >> { %3273 = vst [vmem:[%s4912_s24] sm:$0xff] %v3272_v39   ;;  %v2836_v58 = vmax.f32 %v4983_v55, %v2828_v12  ;;  %v2803_v26 = vadd.f32 %v2802_v22, %v2642_v24  ;;  %v2851_v43 = vmax.f32 %v2835_v61, %v2843_v41  ;;  %v5000_v22 = vld [vmem:[#allocation10_spill] sm:$0xff] }
 0x274   : >> { %v2804_v17 = vpop.f32.mrf.mxu1 }
 0x275   : >> { %v2844_v4 = vmul.f32 0.01, %v2836_v58  ;;  %v2829_v14 = vmax.f32 %v2771_v50, %v2803_v26  ;;  %v5001_v50 = vld [vmem:[#allocation14_spill] sm:$0xff] }
 0x276   : >> { %v2805_v37 = vpop.f32.mrf.mxu1  ;;  %v5002_v41 = vmax.f32 %v5000_v22, %v5001_v50 }
 0x277   : >> { %v2852_v30 = vmax.f32 %v2836_v58, %v2844_v4  ;;  %v2837_v42 = vmax.f32 %v4986_v7, %v2829_v14  ;;  %v2806_v32 = vadd.f32 %v2805_v37, %v2645_v16 }
 0x278   : >> { %v2807_v52 = vpop.f32.mrf.mxu1 }
 0x279   : >> { %v3277_v21 = vpack.c.bf16 %v2852_v30, %v2851_v43  ;;  %v2830_v10 = vmax.f32 %v2774_v57, %v2806_v32  ;;  %v2845_v8 = vmul.f32 0.01, %v2837_v42 }
 0x27a   : >> { %v2810_v38 = vpop.f32.mrf.mxu1 }
 0x27b   : >> { %3289 = vst [vmem:[%s4912_s24 + $0x8] sm:$0xff] %v3277_v21   ;;  %v2838_v56 = vmax.f32 %v4994_v27, %v2830_v10  ;;  %v2811_v9 = vadd.f32 %v2810_v38, %v2650_v47  ;;  %v2853_v33 = vmax.f32 %v2837_v42, %v2845_v8 }
 0x27c   : >> { %v2812_v20 = vpop.f32.mrf.mxu1 }
 0x27d   : >> { %v2846_v3 = vmul.f32 0.01, %v2838_v56  ;;  %v2831_v35 = vmax.f32 %v2779_v5, %v2811_v9 }
 0x27e   : >> { %v2813_v6 = vpop.f32.mrf.mxu1 }
 0x27f   : >> { %v2854_v61 = vmax.f32 %v2838_v56, %v2846_v3  ;;  %v2839_v1 = vmax.f32 %v4999_v11, %v2831_v35  ;;  %v2814_v49 = vadd.f32 %v2813_v6, %v2653_v0 }
 0x280   : >> { %v2815_v39 = vpop.f32.mrf.mxu1 }
 0x281   : >> { %v3282_v12 = vpack.c.bf16 %v2854_v61, %v2853_v33  ;;  %v2832_v24 = vmax.f32 %v2782_v63, %v2814_v49  ;;  %v2847_v34 = vmul.f32 0.01, %v2839_v1 }
 0x283   : >> { %3290 = vst [vmem:[%s4912_s24 + $0x10] sm:$0xff] %v3282_v12   ;;  %v2840_v55 = vmax.f32 %v5002_v41, %v2832_v24  ;;  %v2855_v36 = vmax.f32 %v2839_v1, %v2847_v34 }
 0x285   : >> { %v2848_v58 = vmul.f32 0.01, %v2840_v55 }
 0x287   : >> { %v2856_v26 = vmax.f32 %v2840_v55, %v2848_v58  ;;  %151 = sbr.rel (!%p149_p4) target bundleno = 16 (0x10), region = 68 }
 0x289   : >> { %v3287_v28 = vpack.c.bf16 %v2856_v26, %v2855_v36 }
 0x28b   : >> { %3291 = vst [vmem:[%s4912_s24 + $0x18] sm:$0xff] %v3287_v28  }
 0x28c PF: > { %s12_s9 = sadd.s32 1, %s3721_s9  }
 0x28d   : > { %p9_p5 = scmp.ge.s32.totalorder %s12_s9, 4  }
 0x28f   :  { %11 = sbr.rel (!%p9_p5) target bundleno = 1 (0x1), region = 79 }

// kernel: forward.5
= control target key start
LH: loop header
LB: loop body
LE: loop exit
PB: predicated region body
PF: predicated region fallthrough
CT: control target
= control target key end

     0   :  { %s5940_s9 = smov 0   ;;  %s7578_s0 = inlined_call_operand.vmem [shape: bf16[2,2,784,256], index: 0, kind: input, shape index: {}]   ;;  %s7579_s1 = inlined_call_operand.vmem [shape: bf16[288,1608], index: 1, kind: input, shape index: {}]   ;;  %s7580_s2 = inlined_call_operand.vmem [shape: bf16[2,144,128], index: 2, kind: output, shape index: {}]  }
   0x1 LB: > { %s4851_s10 = sadd.s32 4294967295, %s5916_s9   ;;  %p4855_p0 = scmp.ge.s32.totalorder %s5916_s9, 1  ;;  %s5916_s9 = sphi %s5940_s9, %s12_s9  }
   0x2   : > { %p112_p1 = scmp.lt.s32.totalorder %s5916_s9, 3 }
   0x4   : > { %p113_p2 = pnand %p4855_p0, %p112_p1 }
   0x5   : > { %p134_p3 = scmp.lt.s32.totalorder (!%p113_p2), %s4851_s10, 1  ;;  %s5958_s19 = smov (!%p113_p2), 0  }
   0x6   : > { %116 = sbr.rel (%p113_p2) target bundleno = 776 (0x308), region = 28 }
   0xb   : > { %v5922_v0 = vmov 1065369472   ;;  %s7604_s10 = smov (!%p134_p3, %s4851_s10), 1 }
   0xc   : > { %146 = vst [vmem:[#allocation2 + $0x320] sm:$0xf] %v5922_v0  ;;  %s5442_s11 = smul.u32 1568, %s7604_s10 }
   0xd   : > { %s5443_s12 = smul.u32 72, %s7604_s10 }
   0xe   : > { %s5951_s15 = scalar_lea.vmem %s7578_s0, %s5442_s11 }
   0xf   : > { %s5956_s18 = scalar_lea.vmem %s7580_s2, %s5443_s12 }
  0x10 LB: >> { %v5923_v1 = vmov 0   ;;  %v5497_v2 = vld [vmem:[%s7579_s1 + $0x4] ss:$52 sps:$4 sm:$0xff]   ;;  %s153_s22 = smul.u32 384, %s5920_s19  ;;  %v5500_v3 = vld [vmem:[%s7579_s1 + $0xc] ss:$52 sps:$4 sm:$0xff]   ;;  %s5920_s19 = sphi %s5958_s19, %s152_s19  }
  0x11   : >> { %3448 = vmatprep.subr.bf16.mxu0 %v5923_v1  ;;  %3625 = vmatprep.subr.bf16.mxu1 %v5923_v1  ;;  %s5924_s28 = smov 127   ;;  %vm612_vm0 = vcmask 1039360   ;;  %vm3444_vm1 = vcmask 1043456   ;;  %vm3389_vm2 = vcmask 588800   ;;  %s4737_s29 = smul.u32 72, %s5920_s19 }
  0x12   : >> { %3480 = vmatprep.mubr.bf16.mxu0 %v5497_v2  ;;  %s154_s25 = sshra.s32 %s153_s22, 3  ;;  %3657 = vmatprep.mubr.bf16.mxu1 %v5500_v3  ;;  %s152_s19 = sadd.s32 1, %s5920_s19  }
  0x13   : >> { %s5327_s26 = sshll.u32 %s154_s25, 3  ;;  %s7541_s30 = sshra.s32 %s4737_s29, 3 }
  0x14   : >> { %s5973_s27 = scalar_lea.vmem %s5951_s15, %s5327_s26  ;;  %s5324_s3 = sshll.u32 %s7541_s30, 2 }
  0x15   : >> { %v372_v4 = vld [vmem:[%s5973_s27 + $0x50] sm:$0xff]  ;;  %v370_v5 = vld [vmem:[%s5973_s27 + $0x40] sm:$0xff]  ;;  %v373_v6 = vld [vmem:[%s5973_s27 + $0x58] sm:$0xff]  ;;  %s7556_s4 = scalar_lea.vmem %s5956_s18, %s5324_s3  ;;  %p149_p4 = scmp.ge.s32.totalorder %s152_s19, 2  }
  0x16   : >> { %482 = vrot.lane.b32.xlu0 %v372_v4, %s5924_s28  ;;  %478 = vrot.lane.b32.xlu1 %v370_v5, %s5924_s28  ;;  %v371_v7 = vld [vmem:[%s5973_s27 + $0x48] sm:$0xff]  ;;  %v173_v8 = vld [vmem:[%s5973_s27 + $0x70] sm:$0xf] }
  0x17   : >> { %v174_v9 = vld [vmem:[%s5973_s27 + $0x78] sm:$0xf]  ;;  %223 = vst [vmem:[#allocation2 + $0x38] sm:$0xf] %v173_v8  ;;  %v205_v10 = vld [vmem:[%s5973_s27 + $0x170] sm:$0xf] }
  0x18   : >> { %v206_v11 = vld [vmem:[%s5973_s27 + $0x178] sm:$0xf]  ;;  %224 = vst [vmem:[#allocation2 + $0x3c] sm:$0xf] %v174_v9  ;;  %255 = vst [vmem:[#allocation2 + $0xb8] sm:$0xf] %v205_v10 }
  0x19   : >> { %256 = vst [vmem:[#allocation2 + $0xbc] sm:$0xf] %v206_v11  ;;  %v171_v12 = vld [vmem:[%s5973_s27 + $0x60] sm:$0xf]  ;;  %v172_v13 = vld [vmem:[%s5973_s27 + $0x68] sm:$0xf] }
  0x1a   : >> { %v203_v14 = vld [vmem:[%s5973_s27 + $0x160] sm:$0xf]  ;;  %221 = vst [vmem:[#allocation2 + $0x30] sm:$0xf] %v171_v12  ;;  %222 = vst [vmem:[#allocation2 + $0x34] sm:$0xf] %v172_v13  ;;  %484 = vrot.lane.b32.xlu0 %v373_v6, %s5924_s28  ;;  %480 = vrot.lane.b32.xlu1 %v371_v7, %s5924_s28 }
  0x1b   : >> { %v204_v15 = vld [vmem:[%s5973_s27 + $0x168] sm:$0xf]  ;;  %253 = vst [vmem:[#allocation2 + $0xb0] sm:$0xf] %v203_v14  ;;  %v169_v16 = vld [vmem:[%s5973_s27 + $0x50] sm:$0xf] }
  0x1c   : >> { %v170_v17 = vld [vmem:[%s5973_s27 + $0x58] sm:$0xf]  ;;  %254 = vst [vmem:[#allocation2 + $0xb4] sm:$0xf] %v204_v15  ;;  %219 = vst [vmem:[#allocation2 + $0x28] sm:$0xf] %v169_v16 }
  0x1d   : >> { %220 = vst [vmem:[#allocation2 + $0x2c] sm:$0xf] %v170_v17  ;;  %v201_v18 = vld [vmem:[%s5973_s27 + $0x150] sm:$0xf]  ;;  %v202_v19 = vld [vmem:[%s5973_s27 + $0x158] sm:$0xf] }
  0x1e   : >> { %251 = vst [vmem:[#allocation2 + $0xa8] sm:$0xf] %v201_v18  ;;  %252 = vst [vmem:[#allocation2 + $0xac] sm:$0xf] %v202_v19  ;;  %v369_v20 = vld [vmem:[%s5973_s27 + $0x38] sm:$0xff]  ;;  %v368_v21 = vld [vmem:[%s5973_s27 + $0x30] sm:$0xff] }
  0x1f   : >> { %v167_v22 = vld [vmem:[%s5973_s27 + $0x40] sm:$0xf]  ;;  %v168_v23 = vld [vmem:[%s5973_s27 + $0x48] sm:$0xf]  ;;  %v165_v26 = vld [vmem:[%s5973_s27 + $0x30] sm:$0xf]  ;;  %476 = vrot.lane.b32.xlu1 %v369_v20, %s5924_s28 }
  0x20   : >> { %217 = vst [vmem:[#allocation2 + $0x20] sm:$0xf] %v167_v22  ;;  %v199_v24 = vld [vmem:[%s5973_s27 + $0x140] sm:$0xf]  ;;  %v200_v25 = vld [vmem:[%s5973_s27 + $0x148] sm:$0xf]  ;;  %474 = vrot.lane.b32.xlu0 %v368_v21, %s5924_s28 }
  0x21   : >> { %218 = vst [vmem:[#allocation2 + $0x24] sm:$0xf] %v168_v23  ;;  %249 = vst [vmem:[#allocation2 + $0xa0] sm:$0xf] %v199_v24  ;;  %v166_v27 = vld [vmem:[%s5973_s27 + $0x38] sm:$0xf] }
  0x22   : >> { %250 = vst [vmem:[#allocation2 + $0xa4] sm:$0xf] %v200_v25  ;;  %v197_v28 = vld [vmem:[%s5973_s27 + $0x130] sm:$0xf]  ;;  %215 = vst [vmem:[#allocation2 + $0x18] sm:$0xf] %v165_v26 }
  0x23   : >> { %216 = vst [vmem:[#allocation2 + $0x1c] sm:$0xf] %v166_v27  ;;  %v198_v29 = vld [vmem:[%s5973_s27 + $0x138] sm:$0xf]  ;;  %247 = vst [vmem:[#allocation2 + $0x98] sm:$0xf] %v197_v28 }
  0x24   : >> { %v367_v30 = vld [vmem:[%s5973_s27 + $0x28] sm:$0xff]  ;;  %v5463_v31 = vld [vmem:[#allocation2 + $0x38] sm:$0xff]   ;;  %248 = vst [vmem:[#allocation2 + $0x9c] sm:$0xf] %v198_v29  ;;  %v5465_v33 = vld [vmem:[#allocation2 + $0x30] sm:$0xff]  }
  0x25   : >> { %v5464_v32 = vld [vmem:[#allocation2 + $0xb8] sm:$0xff]   ;;  %3449 = vmatpush1.bf16.msra.mxu0 %v5463_v31  ;;  %v5466_v34 = vld [vmem:[#allocation2 + $0xb0] sm:$0xff]   ;;  %472 = vrot.lane.b32.xlu1 %v367_v30, %s5924_s28  ;;  %v5467_v35 = vld [vmem:[#allocation2 + $0x28] sm:$0xff]  }
  0x26   : >> { %3626 = vmatpush1.bf16.msra.mxu1 %v5464_v32  ;;  %3450 = vmatprep.subr.bf16.mxu0 %v5923_v1  ;;  %v5468_v36 = vld [vmem:[#allocation2 + $0xa8] sm:$0xff]   ;;  %v366_v39 = vld [vmem:[%s5973_s27 + $0x20] sm:$0xff]  ;;  %v161_v44 = vld [vmem:[%s5973_s27 + $0x10] sm:$0xf] }
  0x27   : >> { %3627 = vmatprep.subr.bf16.mxu1 %v5923_v1  ;;  %470 = vrot.lane.b32.xlu0 %v366_v39, %s5924_s28  ;;  %v163_v40 = vld [vmem:[%s5973_s27 + $0x20] sm:$0xf]  ;;  %v164_v41 = vld [vmem:[%s5973_s27 + $0x28] sm:$0xf]  ;;  %v162_v45 = vld [vmem:[%s5973_s27 + $0x18] sm:$0xf] }
  0x28   : >> { %v5469_v37 = vld [vmem:[#allocation2 + $0x20] sm:$0xff]   ;;  %213 = vst [vmem:[#allocation2 + $0x10] sm:$0xf] %v163_v40  ;;  %214 = vst [vmem:[#allocation2 + $0x14] sm:$0xf] %v164_v41  ;;  %v365_v49 = vld [vmem:[%s5973_s27 + $0x18] sm:$0xff] }
  0x29   : >> { %3451 = vmatpush1.bf16.msra.mxu0 %v5465_v33  ;;  %v5470_v38 = vld [vmem:[#allocation2 + $0xa0] sm:$0xff]   ;;  %v196_v43 = vld [vmem:[%s5973_s27 + $0x128] sm:$0xf]  ;;  %211 = vst [vmem:[#allocation2 + $0x8] sm:$0xf] %v161_v44  ;;  %468 = vrot.lane.b32.xlu1 %v365_v49, %s5924_s28  ;;  %v364_v51 = vld [vmem:[%s5973_s27 + $0x10] sm:$0xff] }
  0x2a   : >> { %3628 = vmatpush1.bf16.msra.mxu1 %v5466_v34  ;;  %3452 = vmatprep.subr.bf16.mxu0 %v5923_v1  ;;  %v195_v42 = vld [vmem:[%s5973_s27 + $0x120] sm:$0xf]  ;;  %v5471_v46 = vld [vmem:[#allocation2 + $0x18] sm:$0xff]   ;;  %246 = vst [vmem:[#allocation2 + $0x94] sm:$0xf] %v196_v43  ;;  %v363_v60 = vld [vmem:[%s5973_s27 + $0x8] sm:$0xff] }
  0x2b   : >> { %3629 = vmatprep.subr.bf16.mxu1 %v5923_v1  ;;  %245 = vst [vmem:[#allocation2 + $0x90] sm:$0xf] %v195_v42  ;;  %212 = vst [vmem:[#allocation2 + $0xc] sm:$0xf] %v162_v45  ;;  %v193_v47 = vld [vmem:[%s5973_s27 + $0x110] sm:$0xf]  ;;  %466 = vrot.lane.b32.xlu0 %v364_v51, %s5924_s28 }
  0x2c   : >> { %v194_v48 = vld [vmem:[%s5973_s27 + $0x118] sm:$0xf]  ;;  %243 = vst [vmem:[#allocation2 + $0x88] sm:$0xf] %v193_v47  ;;  %v159_v52 = vld [vmem:[%s5973_s27] sm:$0xf] }
  0x2d   : >> { %3453 = vmatpush1.bf16.msra.mxu0 %v5467_v35  ;;  %v5472_v50 = vld [vmem:[#allocation2 + $0x98] sm:$0xff]   ;;  %244 = vst [vmem:[#allocation2 + $0x8c] sm:$0xf] %v194_v48  ;;  %v160_v53 = vld [vmem:[%s5973_s27 + $0x8] sm:$0xf]  ;;  %v362_v61 = vld [vmem:[%s5973_s27] sm:$0xff]  ;;  %464 = vrot.lane.b32.xlu1 %v363_v60, %s5924_s28 }
  0x2e   : >> { %3630 = vmatpush1.bf16.msra.mxu1 %v5468_v36  ;;  %3454 = vmatprep.subr.bf16.mxu0 %v5923_v1  ;;  %209 = vst [vmem:[#allocation2] sm:$0xf] %v159_v52  ;;  %210 = vst [vmem:[#allocation2 + $0x4] sm:$0xf] %v160_v53  ;;  %v191_v54 = vld [vmem:[%s5973_s27 + $0x100] sm:$0xf] }
  0x2f   : >> { %3631 = vmatprep.subr.bf16.mxu1 %v5923_v1  ;;  %v192_v55 = vld [vmem:[%s5973_s27 + $0x108] sm:$0xf]  ;;  %v189_v56 = vld [vmem:[%s5973_s27 + $0xf0] sm:$0xf]  ;;  %241 = vst [vmem:[#allocation2 + $0x80] sm:$0xf] %v191_v54  ;;  %462 = vrot.lane.b32.xlu0 %v362_v61, %s5924_s28 }
  0x30   : >> { %242 = vst [vmem:[#allocation2 + $0x84] sm:$0xf] %v192_v55  ;;  %v190_v57 = vld [vmem:[%s5973_s27 + $0xf8] sm:$0xf]  ;;  %239 = vst [vmem:[#allocation2 + $0x78] sm:$0xf] %v189_v56 }
  0x31   : >> { %3455 = vmatpush1.bf16.msra.mxu0 %v5469_v37  ;;  %v4874_v58 = vld [vmem:[%s5973_s27 + $0x370] sm:$0xf]  ;;  %v4875_v59 = vld [vmem:[%s5973_s27 + $0x378] sm:$0xf]  ;;  %240 = vst [vmem:[#allocation2 + $0x7c] sm:$0xf] %v190_v57 }
  0x32   : >> { %3632 = vmatpush1.bf16.msra.mxu1 %v5470_v38  ;;  %3456 = vmatprep.subr.bf16.mxu0 %v5923_v1  ;;  %324 = vst [vmem:[#allocation2 + $0xf8] sm:$0xf] %v4874_v58  ;;  %325 = vst [vmem:[#allocation2 + $0xfc] sm:$0xf] %v4875_v59  ;;  %v187_v62 = vld [vmem:[%s5973_s27 + $0xe0] sm:$0xf] }
  0x33   : >> { %3633 = vmatprep.subr.bf16.mxu1 %v5923_v1  ;;  %v188_v63 = vld [vmem:[%s5973_s27 + $0xe8] sm:$0xf]  ;;  %237 = vst [vmem:[#allocation2 + $0x70] sm:$0xf] %v187_v62  ;;  %v4872_v0 = vld [vmem:[%s5973_s27 + $0x360] sm:$0xf] }
  0x34   : >> { %v4873_v2 = vld [vmem:[%s5973_s27 + $0x368] sm:$0xf]  ;;  %v5473_v3 = vld [vmem:[#allocation2 + $0x10] sm:$0xff]   ;;  %238 = vst [vmem:[#allocation2 + $0x74] sm:$0xf] %v188_v63  ;;  %v389_v19 = vld [vmem:[%s5973_s27 + $0xd8] sm:$0xff] }
  0x35   : >> { %3457 = vmatpush1.bf16.msra.mxu0 %v5471_v46  ;;  %322 = vst [vmem:[#allocation2 + $0xf0] sm:$0xf] %v4872_v0  ;;  %323 = vst [vmem:[#allocation2 + $0xf4] sm:$0xf] %v4873_v2  ;;  %v5474_v4 = vld [vmem:[#allocation2 + $0x90] sm:$0xff]   ;;  %v5475_v5 = vld [vmem:[#allocation2 + $0x8] sm:$0xff]   ;;  %516 = vrot.lane.b32.xlu1 %v389_v19, %s5924_s28 }
  0x36   : >> { %3634 = vmatpush1.bf16.msra.mxu1 %v5472_v50  ;;  %3458 = vmatprep.subr.bf16.mxu0 %v5923_v1  ;;  %v5476_v6 = vld [vmem:[#allocation2 + $0x88] sm:$0xff]   ;;  %v5477_v7 = vld [vmem:[#allocation2] sm:$0xff]   ;;  %v185_v10 = vld [vmem:[%s5973_s27 + $0xd0] sm:$0xf] }
  0x37   : >> { %3635 = vmatprep.subr.bf16.mxu1 %v5923_v1  ;;  %v5478_v8 = vld [vmem:[#allocation2 + $0x80] sm:$0xff]   ;;  %v186_v11 = vld [vmem:[%s5973_s27 + $0xd8] sm:$0xf]  ;;  %v4870_v12 = vld [vmem:[%s5973_s27 + $0x350] sm:$0xf] }
  0x38   : >> { %v5479_v9 = vld [vmem:[#allocation2 + $0x78] sm:$0xff]   ;;  %235 = vst [vmem:[#allocation2 + $0x68] sm:$0xf] %v185_v10  ;;  %236 = vst [vmem:[#allocation2 + $0x6c] sm:$0xf] %v186_v11  ;;  %v388_v20 = vld [vmem:[%s5973_s27 + $0xd0] sm:$0xff] }
  0x39   : >> { %3459 = vmatpush1.bf16.msra.mxu0 %v5473_v3  ;;  %v5480_v13 = vld [vmem:[#allocation2 + $0xf8] sm:$0xff]   ;;  %320 = vst [vmem:[#allocation2 + $0xe8] sm:$0xf] %v4870_v12  ;;  %v183_v15 = vld [vmem:[%s5973_s27 + $0xc0] sm:$0xf]  ;;  %514 = vrot.lane.b32.xlu0 %v388_v20, %s5924_s28  ;;  %v387_v26 = vld [vmem:[%s5973_s27 + $0xc8] sm:$0xff] }
  0x3a   : >> { %3636 = vmatpush1.bf16.msra.mxu1 %v5474_v4  ;;  %3460 = vmatprep.subr.bf16.mxu0 %v5923_v1  ;;  %v4871_v14 = vld [vmem:[%s5973_s27 + $0x358] sm:$0xf]  ;;  %v184_v16 = vld [vmem:[%s5973_s27 + $0xc8] sm:$0xf]  ;;  %233 = vst [vmem:[#allocation2 + $0x60] sm:$0xf] %v183_v15 }
  0x3b   : >> { %3637 = vmatprep.subr.bf16.mxu1 %v5923_v1  ;;  %321 = vst [vmem:[#allocation2 + $0xec] sm:$0xf] %v4871_v14  ;;  %234 = vst [vmem:[#allocation2 + $0x64] sm:$0xf] %v184_v16  ;;  %v4868_v17 = vld [vmem:[%s5973_s27 + $0x340] sm:$0xf]  ;;  %512 = vrot.lane.b32.xlu1 %v387_v26, %s5924_s28 }
  0x3c   : >> { %v4869_v18 = vld [vmem:[%s5973_s27 + $0x348] sm:$0xf]  ;;  %318 = vst [vmem:[#allocation2 + $0xe0] sm:$0xf] %v4868_v17  ;;  %v181_v21 = vld [vmem:[%s5973_s27 + $0xb0] sm:$0xf] }
  0x3d   : >> { %3461 = vmatpush1.bf16.msra.mxu0 %v5475_v5  ;;  %319 = vst [vmem:[#allocation2 + $0xe4] sm:$0xf] %v4869_v18  ;;  %v182_v22 = vld [vmem:[%s5973_s27 + $0xb8] sm:$0xf]  ;;  %v5481_v23 = vld [vmem:[#allocation2 + $0x70] sm:$0xff]   ;;  %v386_v29 = vld [vmem:[%s5973_s27 + $0xc0] sm:$0xff] }
  0x3e   : >> { %3638 = vmatpush1.bf16.msra.mxu1 %v5476_v6  ;;  %3462 = vmatprep.subr.bf16.mxu0 %v5923_v1  ;;  %231 = vst [vmem:[#allocation2 + $0x58] sm:$0xf] %v181_v21  ;;  %232 = vst [vmem:[#allocation2 + $0x5c] sm:$0xf] %v182_v22  ;;  %v4866_v24 = vld [vmem:[%s5973_s27 + $0x330] sm:$0xf] }
  0x3f   : >> { %3639 = vmatprep.subr.bf16.mxu1 %v5923_v1  ;;  %v4867_v25 = vld [vmem:[%s5973_s27 + $0x338] sm:$0xf]  ;;  %316 = vst [vmem:[#allocation2 + $0xd8] sm:$0xf] %v4866_v24  ;;  %v179_v27 = vld [vmem:[%s5973_s27 + $0xa0] sm:$0xf]  ;;  %510 = vrot.lane.b32.xlu0 %v386_v29, %s5924_s28 }
  0x40   : >> { %317 = vst [vmem:[#allocation2 + $0xdc] sm:$0xf] %v4867_v25  ;;  %v180_v28 = vld [vmem:[%s5973_s27 + $0xa8] sm:$0xf]  ;;  %229 = vst [vmem:[#allocation2 + $0x50] sm:$0xf] %v179_v27 }
  0x41   : >> { %3463 = vmatpush1.bf16.msra.mxu0 %v5477_v7  ;;  %230 = vst [vmem:[#allocation2 + $0x54] sm:$0xf] %v180_v28  ;;  %v4864_v30 = vld [vmem:[%s5973_s27 + $0x320] sm:$0xf]  ;;  %v4865_v31 = vld [vmem:[%s5973_s27 + $0x328] sm:$0xf] }
  0x42   : >> { %3640 = vmatpush1.bf16.msra.mxu1 %v5478_v8  ;;  %3464 = vmatprep.subr.bf16.mxu0 %v5923_v1  ;;  %v5482_v32 = vld [vmem:[#allocation2 + $0xf0] sm:$0xff]   ;;  %314 = vst [vmem:[#allocation2 + $0xd0] sm:$0xf] %v4864_v30  ;;  %315 = vst [vmem:[#allocation2 + $0xd4] sm:$0xf] %v4865_v31  ;;  %v385_v35 = vld [vmem:[%s5973_s27 + $0xb8] sm:$0xff] }
  0x43   : >> { %3641 = vmatprep.subr.bf16.mxu1 %v5923_v1  ;;  %v177_v33 = vld [vmem:[%s5973_s27 + $0x90] sm:$0xf]  ;;  %v178_v34 = vld [vmem:[%s5973_s27 + $0x98] sm:$0xf]  ;;  %v5483_v37 = vld [vmem:[#allocation2 + $0x68] sm:$0xff]   ;;  %508 = vrot.lane.b32.xlu1 %v385_v35, %s5924_s28 }
  0x44   : >> { %227 = vst [vmem:[#allocation2 + $0x48] sm:$0xf] %v177_v33  ;;  %228 = vst [vmem:[#allocation2 + $0x4c] sm:$0xf] %v178_v34  ;;  %v384_v36 = vld [vmem:[%s5973_s27 + $0xb0] sm:$0xff]  ;;  %v5484_v38 = vld [vmem:[#allocation2 + $0xe8] sm:$0xff]  }
  0x45   : >> { %3465 = vmatpush2.bf16.msra.mxu0 %v5479_v9  ;;  %506 = vrot.lane.b32.xlu0 %v384_v36, %s5924_s28  ;;  %v5485_v39 = vld [vmem:[#allocation2 + $0x60] sm:$0xff]   ;;  %v5487_v41 = vld [vmem:[#allocation2 + $0x58] sm:$0xff]   ;;  %v4862_v43 = vld [vmem:[%s5973_s27 + $0x310] sm:$0xf] }
  0x46   : >> { %3642 = vmatpush2.bf16.msra.mxu1 %v5480_v13  ;;  %3466 = vmatprep.subr.bf16.mxu0 %v5923_v1  ;;  %v5486_v40 = vld [vmem:[#allocation2 + $0xe0] sm:$0xff]   ;;  %v4863_v44 = vld [vmem:[%s5973_s27 + $0x318] sm:$0xf]  ;;  %v383_v45 = vld [vmem:[%s5973_s27 + $0xa8] sm:$0xff]  ;;  %312 = vst [vmem:[#allocation2 + $0xc8] sm:$0xf] %v4862_v43 }
  0x47   : >> { %3643 = vmatprep.subr.bf16.mxu1 %v5923_v1  ;;  %v5488_v42 = vld [vmem:[#allocation2 + $0xd8] sm:$0xff]   ;;  %313 = vst [vmem:[#allocation2 + $0xcc] sm:$0xf] %v4863_v44  ;;  %504 = vrot.lane.b32.xlu1 %v383_v45, %s5924_s28  ;;  %v382_v46 = vld [vmem:[%s5973_s27 + $0xa0] sm:$0xff]  ;;  %v176_v48 = vld [vmem:[%s5973_s27 + $0x88] sm:$0xf] }
  0x48   : >> { %v175_v47 = vld [vmem:[%s5973_s27 + $0x80] sm:$0xf]  ;;  %226 = vst [vmem:[#allocation2 + $0x44] sm:$0xf] %v176_v48  ;;  %v208_v50 = vld [vmem:[%s5973_s27 + $0x188] sm:$0xf] }
  0x49   : >> { %3467 = vmatpush2.bf16.msra.mxu0 %v5481_v23  ;;  %225 = vst [vmem:[#allocation2 + $0x40] sm:$0xf] %v175_v47  ;;  %v207_v49 = vld [vmem:[%s5973_s27 + $0x180] sm:$0xf]  ;;  %v381_v51 = vld [vmem:[%s5973_s27 + $0x98] sm:$0xff]  ;;  %502 = vrot.lane.b32.xlu0 %v382_v46, %s5924_s28  ;;  %v380_v52 = vld [vmem:[%s5973_s27 + $0x90] sm:$0xff] }
  0x4a   : >> { %3644 = vmatpush2.bf16.msra.mxu1 %v5482_v32  ;;  %3468 = vmatprep.subr.bf16.mxu0 %v5923_v1  ;;  %257 = vst [vmem:[#allocation2 + $0xc0] sm:$0xf] %v207_v49  ;;  %258 = vst [vmem:[#allocation2 + $0xc4] sm:$0xf] %v208_v50  ;;  %v5489_v53 = vld [vmem:[#allocation2 + $0x50] sm:$0xff]   ;;  %v379_v55 = vld [vmem:[%s5973_s27 + $0x88] sm:$0xff] }
  0x4b   : >> { %3645 = vmatprep.subr.bf16.mxu1 %v5923_v1  ;;  %v5490_v54 = vld [vmem:[#allocation2 + $0xd0] sm:$0xff]   ;;  %500 = vrot.lane.b32.xlu1 %v381_v51, %s5924_s28  ;;  %v5491_v56 = vld [vmem:[#allocation2 + $0x48] sm:$0xff]   ;;  %v378_v57 = vld [vmem:[%s5973_s27 + $0x80] sm:$0xff] }
  0x4c   : >> { %v377_v58 = vld [vmem:[%s5973_s27 + $0x78] sm:$0xff]  ;;  %v376_v60 = vld [vmem:[%s5973_s27 + $0x70] sm:$0xff]  ;;  %v375_v63 = vld [vmem:[%s5973_s27 + $0x68] sm:$0xff] }
  0x4d   : >> { %3469 = vmatpush2.bf16.msra.mxu0 %v5483_v37  ;;  %498 = vrot.lane.b32.xlu0 %v380_v52, %s5924_s28  ;;  %v5495_v0 = vld [vmem:[%s7579_s1] ss:$52 sps:$4 sm:$0xff]   ;;  %v5498_v2 = vld [vmem:[%s7579_s1 + $0x8] ss:$52 sps:$4 sm:$0xff]   ;;  %v4890_v10 = vld [vmem:[%s5973_s27 + $0x3f0] sm:$0xf] }
  0x4e   : >> { %3646 = vmatpush2.bf16.msra.mxu1 %v5484_v38  ;;  %3470 = vmatprep.subr.bf16.mxu0 %v5923_v1  ;;  %v5492_v59 = vld [vmem:[#allocation2 + $0xc8] sm:$0xff]   ;;  %v374_v3 = vld [vmem:[%s5973_s27 + $0x60] sm:$0xff]  ;;  %v405_v6 = vld [vmem:[%s5973_s27 + $0x158] sm:$0xff]  ;;  %340 = vst [vmem:[#allocation2 + $0x138] sm:$0xf] %v4890_v10 }
  0x4f   : >> { %3647 = vmatprep.subr.bf16.mxu1 %v5923_v1  ;;  %496 = vrot.lane.b32.xlu1 %v379_v55, %s5924_s28  ;;  %v5501_v4 = vld [vmem:[%s7579_s1 + $0x6c] ss:$52 sps:$4 sm:$0xff]   ;;  %v5503_v5 = vld [vmem:[%s7579_s1 + $0x74] ss:$52 sps:$4 sm:$0xff]   ;;  %v4891_v11 = vld [vmem:[%s5973_s27 + $0x3f8] sm:$0xf] }
  0x50   : >> { %v5493_v61 = vld [vmem:[#allocation2 + $0x40] sm:$0xff]   ;;  %v404_v7 = vld [vmem:[%s5973_s27 + $0x150] sm:$0xff]  ;;  %v5505_v8 = vld [vmem:[%s7579_s1 + $0x68] ss:$52 sps:$4 sm:$0xff]   ;;  %341 = vst [vmem:[#allocation2 + $0x13c] sm:$0xf] %v4891_v11 }
  0x51   : >> { %3471 = vmatpush2.bf16.msra.mxu0 %v5485_v39  ;;  %494 = vrot.lane.b32.xlu0 %v378_v57, %s5924_s28  ;;  %v5494_v62 = vld [vmem:[#allocation2 + $0xc0] sm:$0xff]   ;;  %v403_v9 = vld [vmem:[%s5973_s27 + $0x148] sm:$0xff]  ;;  %v5509_v15 = vld [vmem:[%s7579_s1 + $0xdc] ss:$52 sps:$4 sm:$0xff]  }
  0x52   : >> { %3648 = vmatpush2.bf16.msra.mxu1 %v5486_v40  ;;  %3472 = vmatprep.subr.bf16.mxu0 %v5923_v1  ;;  %v5506_v12 = vld [vmem:[%s7579_s1 + $0x70] ss:$52 sps:$4 sm:$0xff]   ;;  %v5507_v14 = vld [vmem:[%s7579_s1 + $0xd4] ss:$52 sps:$4 sm:$0xff]   ;;  %v401_v16 = vld [vmem:[%s5973_s27 + $0x138] sm:$0xff] }
  0x53   : >> { %3649 = vmatprep.subr.bf16.mxu1 %v5923_v1  ;;  %492 = vrot.lane.b32.xlu1 %v377_v58, %s5924_s28  ;;  %v402_v13 = vld [vmem:[%s5973_s27 + $0x140] sm:$0xff]  ;;  %v400_v17 = vld [vmem:[%s5973_s27 + $0x130] sm:$0xff]  ;;  %v4889_v19 = vld [vmem:[%s5973_s27 + $0x3e8] sm:$0xf] }
  0x54   : >> { %v4888_v18 = vld [vmem:[%s5973_s27 + $0x3e0] sm:$0xf]  ;;  %339 = vst [vmem:[#allocation2 + $0x134] sm:$0xf] %v4889_v19  ;;  %v4937_v20 = vld [vmem:[%s5973_s27 + $0x3d8] sm:$0xff]  ;;  %v4936_v23 = vld [vmem:[%s5973_s27 + $0x3d0] sm:$0xff] }
  0x55   : >> { %3473 = vmatpush2.bf16.msra.mxu0 %v5487_v41  ;;  %490 = vrot.lane.b32.xlu0 %v376_v60, %s5924_s28  ;;  %338 = vst [vmem:[#allocation2 + $0x130] sm:$0xf] %v4888_v18  ;;  %v5511_v22 = vld [vmem:[%s7579_s1 + $0xd0] ss:$52 sps:$4 sm:$0xff]   ;;  %v5512_v24 = vld [vmem:[%s7579_s1 + $0xd8] ss:$52 sps:$4 sm:$0xff]  }
  0x56   : >> { %3650 = vmatpush2.bf16.msra.mxu1 %v5488_v42  ;;  %3474 = vmatprep.subr.bf16.mxu0 %v5923_v1  ;;  %v5513_v25 = vld [vmem:[%s7579_s1 + $0x13c] ss:$52 sps:$4 sm:$0xff]   ;;  %v5515_v26 = vld [vmem:[%s7579_s1 + $0x144] ss:$52 sps:$4 sm:$0xff]   ;;  %v399_v27 = vld [vmem:[%s5973_s27 + $0x128] sm:$0xff] }
  0x57   : >> { %3651 = vmatprep.subr.bf16.mxu1 %v5923_v1  ;;  %488 = vrot.lane.b32.xlu1 %v375_v63, %s5924_s28  ;;  %v5537_v21 = vld [vmem:[#allocation2 + $0x138] sm:$0xff]   ;;  %v4886_v28 = vld [vmem:[%s5973_s27 + $0x3d0] sm:$0xf]  ;;  %v398_v30 = vld [vmem:[%s5973_s27 + $0x120] sm:$0xff] }
  0x58   : >> { %v4887_v29 = vld [vmem:[%s5973_s27 + $0x3d8] sm:$0xf]  ;;  %336 = vst [vmem:[#allocation2 + $0x128] sm:$0xf] %v4886_v28  ;;  %v5518_v33 = vld [vmem:[%s7579_s1 + $0x140] ss:$52 sps:$4 sm:$0xff]  }
  0x59   : >> { %3475 = vmatpush2.bf16.msra.mxu0 %v5489_v53  ;;  %486 = vrot.lane.b32.xlu0 %v374_v3, %s5924_s28  ;;  %337 = vst [vmem:[#allocation2 + $0x12c] sm:$0xf] %v4887_v29  ;;  %v5517_v32 = vld [vmem:[%s7579_s1 + $0x138] ss:$52 sps:$4 sm:$0xff]   ;;  %v4934_v35 = vld [vmem:[%s5973_s27 + $0x3c0] sm:$0xff]  ;;  %v396_v42 = vld [vmem:[%s5973_s27 + $0x110] sm:$0xff] }
  0x5a   : >> { %3652 = vmatpush2.bf16.msra.mxu1 %v5490_v54  ;;  %3476 = vmatprep.subr.bf16.mxu0 %v5923_v1  ;;  %v4935_v34 = vld [vmem:[%s5973_s27 + $0x3c8] sm:$0xff]  ;;  %v4884_v36 = vld [vmem:[%s5973_s27 + $0x3c0] sm:$0xf]  ;;  %v5519_v38 = vld [vmem:[%s7579_s1 + $0x1a4] ss:$52 sps:$4 sm:$0xff]  }
  0x5b   : >> { %3653 = vmatprep.subr.bf16.mxu1 %v5923_v1  ;;  %548 = vrot.lane.b32.xlu1 %v405_v6, %s5924_s28  ;;  %v4885_v37 = vld [vmem:[%s5973_s27 + $0x3c8] sm:$0xf]  ;;  %334 = vst [vmem:[#allocation2 + $0x120] sm:$0xf] %v4884_v36  ;;  %v5521_v39 = vld [vmem:[%s7579_s1 + $0x1ac] ss:$52 sps:$4 sm:$0xff]  }
  0x5c   : >> { %v5545_v31 = vld [vmem:[#allocation2 + $0x130] sm:$0xff]   ;;  %335 = vst [vmem:[#allocation2 + $0x124] sm:$0xf] %v4885_v37  ;;  %v397_v40 = vld [vmem:[%s5973_s27 + $0x118] sm:$0xff]  ;;  %v5525_v49 = vld [vmem:[%s7579_s1 + $0x20c] ss:$52 sps:$4 sm:$0xff]  }
  0x5d   : >> { %3477 = vmatpush2.bf16.msra.mxu0 %v5491_v56  ;;  %546 = vrot.lane.b32.xlu0 %v404_v7, %s5924_s28  ;;  %v5523_v43 = vld [vmem:[%s7579_s1 + $0x1a0] ss:$52 sps:$4 sm:$0xff]   ;;  %v4933_v44 = vld [vmem:[%s5973_s27 + $0x3b8] sm:$0xff]  ;;  %v4882_v46 = vld [vmem:[%s5973_s27 + $0x3b0] sm:$0xf] }
  0x5e   : >> { %3654 = vmatpush2.bf16.msra.mxu1 %v5492_v59  ;;  %3478 = vmatprep.subr.bf16.mxu0 %v5923_v1  ;;  %v4932_v45 = vld [vmem:[%s5973_s27 + $0x3b0] sm:$0xff]  ;;  %332 = vst [vmem:[#allocation2 + $0x118] sm:$0xf] %v4882_v46  ;;  %v5524_v48 = vld [vmem:[%s7579_s1 + $0x1a8] ss:$52 sps:$4 sm:$0xff]   ;;  %v394_v53 = vld [vmem:[%s5973_s27 + $0x100] sm:$0xff] }
  0x5f   : >> { %3655 = vmatprep.subr.bf16.mxu1 %v5923_v1  ;;  %544 = vrot.lane.b32.xlu1 %v403_v9, %s5924_s28  ;;  %v4883_v50 = vld [vmem:[%s5973_s27 + $0x3b8] sm:$0xf]  ;;  %v5527_v51 = vld [vmem:[%s7579_s1 + $0x214] ss:$52 sps:$4 sm:$0xff]   ;;  %v4880_v55 = vld [vmem:[%s5973_s27 + $0x3a0] sm:$0xf] }
  0x60   : >> { %v5553_v41 = vld [vmem:[#allocation2 + $0x128] sm:$0xff]   ;;  %333 = vst [vmem:[#allocation2 + $0x11c] sm:$0xf] %v4883_v50  ;;  %v5530_v57 = vld [vmem:[%s7579_s1 + $0x210] ss:$52 sps:$4 sm:$0xff]   ;;  %v393_v63 = vld [vmem:[%s5973_s27 + $0xf8] sm:$0xff] }
  0x61   : >> { %3479 = vmatpush2.bf16.msra.mxu0 %v5493_v61  ;;  %542 = vrot.lane.b32.xlu0 %v402_v13, %s5924_s28  ;;  %v395_v52 = vld [vmem:[%s5973_s27 + $0x108] sm:$0xff]  ;;  %330 = vst [vmem:[#allocation2 + $0x110] sm:$0xf] %v4880_v55  ;;  %v4930_v59 = vld [vmem:[%s5973_s27 + $0x3a0] sm:$0xff]  ;;  %v392_v3 = vld [vmem:[%s5973_s27 + $0xf0] sm:$0xff] }
  0x62   : >> { %3656 = vmatpush2.bf16.msra.mxu1 %v5494_v62  ;;  %3802 = vmatprep.subr.bf16.mxu0 %v5923_v1  ;;  %v5529_v54 = vld [vmem:[%s7579_s1 + $0x208] ss:$52 sps:$4 sm:$0xff]   ;;  %v4911_v9 = vld [vmem:[%s5973_s27 + $0x498] sm:$0xf]  ;;  %v5535_v10 = vld [vmem:[%s7579_s1 + $0x270] ss:$52 sps:$4 sm:$0xff]  }
  0x63   : >> { %3979 = vmatprep.subr.bf16.mxu1 %v5923_v1  ;;  %540 = vrot.lane.b32.xlu1 %v401_v16, %s5924_s28  ;;  %v5561_v47 = vld [vmem:[#allocation2 + $0x120] sm:$0xff]   ;;  %v4881_v56 = vld [vmem:[%s5973_s27 + $0x3a8] sm:$0xf]  ;;  %v5533_v62 = vld [vmem:[%s7579_s1 + $0x27c] ss:$52 sps:$4 sm:$0xff]  }
  0x64   : >> { %3481 = vmatmul.mubr.bf16.vlgmr.msra.gmra.mxu0 %v5495_v0  ;;  %v4931_v58 = vld [vmem:[%s5973_s27 + $0x3a8] sm:$0xff]  ;;  %331 = vst [vmem:[#allocation2 + $0x114] sm:$0xf] %v4881_v56  ;;  %361 = vst [vmem:[#allocation2 + $0x18c] sm:$0xf] %v4911_v9  ;;  %v4928_v16 = vld [vmem:[%s5973_s27 + $0x390] sm:$0xff] }
  0x65   : >> { %3658 = vmatmul.mubr.bf16.vlgmr.msra.gmra.mxu1 %v5498_v2  ;;  %3488 = vmatprep.mubr.bf16.mxu0 %v5501_v4  ;;  %v5531_v60 = vld [vmem:[%s7579_s1 + $0x274] ss:$52 sps:$4 sm:$0xff]   ;;  %v4878_v4 = vld [vmem:[%s5973_s27 + $0x390] sm:$0xf]  ;;  %v5542_v36 = vld [vmem:[%s7579_s1 + $0x2d8] ss:$52 sps:$4 sm:$0xff]  }
  0x66   : >> { %3665 = vmatprep.mubr.bf16.mxu1 %v5503_v5  ;;  %538 = vrot.lane.b32.xlu0 %v400_v17, %s5924_s28  ;;  %v4879_v5 = vld [vmem:[%s5973_s27 + $0x398] sm:$0xf]  ;;  %328 = vst [vmem:[#allocation2 + $0x108] sm:$0xf] %v4878_v4  ;;  %v4876_v17 = vld [vmem:[%s5973_s27 + $0x380] sm:$0xf] }
  0x67   : >> { %3803 = vmatpush1.bf16.msra.mxu0 %v5537_v21  ;;  %913 = vrot.lane.b32.xlu1 %v4937_v20, %s5924_s28  ;;  %v5573_v61 = vld [vmem:[#allocation2 + $0x118] sm:$0xff]   ;;  %329 = vst [vmem:[#allocation2 + $0x10c] sm:$0xf] %v4879_v5  ;;  %v4877_v20 = vld [vmem:[%s5973_s27 + $0x388] sm:$0xf]  ;;  %v4918_v9 = vld [vmem:[%s5973_s27 + $0x340] sm:$0xff] }
  0x68   : >> { %3804 = vmatprep.subr.bf16.mxu0 %v5923_v1  ;;  %326 = vst [vmem:[#allocation2 + $0x100] sm:$0xf] %v4876_v17  ;;  %v4908_v21 = vld [vmem:[%s5973_s27 + $0x480] sm:$0xf]  ;;  %327 = vst [vmem:[#allocation2 + $0x104] sm:$0xf] %v4877_v20 }
  0x69   : >> { %358 = vst [vmem:[#allocation2 + $0x180] sm:$0xf] %v4908_v21  ;;  %v391_v29 = vld [vmem:[%s5973_s27 + $0xe8] sm:$0xff]  ;;  %v4907_v46 = vld [vmem:[%s5973_s27 + $0x478] sm:$0xf] }
  0x6a   : >> { %911 = vrot.lane.b32.xlu0 %v4936_v23, %s5924_s28  ;;  %v4927_v37 = vld [vmem:[%s5973_s27 + $0x388] sm:$0xff]  ;;  %357 = vst [vmem:[#allocation2 + $0x17c] sm:$0xf] %v4907_v46  ;;  %v5551_v56 = vld [vmem:[%s7579_s1 + $0x340] ss:$52 sps:$4 sm:$0xff]  }
  0x6b   : >> { %536 = vrot.lane.b32.xlu1 %v399_v27, %s5924_s28  ;;  %3805 = vmatpush1.bf16.msra.mxu0 %v5545_v31  ;;  %v5583_v11 = vld [vmem:[#allocation2 + $0x110] sm:$0xff]   ;;  %v4903_v5 = vld [vmem:[%s5973_s27 + $0x458] sm:$0xf]  ;;  %v5558_v17 = vld [vmem:[%s7579_s1 + $0x3a8] ss:$52 sps:$4 sm:$0xff]  }
  0x6c   : >> { %3489 = vmatmul.mubr.bf16.gmra.mxu0 %v5505_v8  ;;  %3806 = vmatprep.subr.bf16.mxu0 %v5923_v1  ;;  %v4910_v8 = vld [vmem:[%s5973_s27 + $0x490] sm:$0xf]  ;;  %353 = vst [vmem:[#allocation2 + $0x16c] sm:$0xf] %v4903_v5  ;;  %v4950_v5 = vld [vmem:[%s5973_s27 + $0x440] sm:$0xff] }
  0x6d   : >> { %3666 = vmatmul.mubr.bf16.gmra.mxu1 %v5506_v12  ;;  %3496 = vmatprep.mubr.bf16.mxu0 %v5507_v14  ;;  %360 = vst [vmem:[#allocation2 + $0x188] sm:$0xf] %v4910_v8  ;;  %v5536_v14 = vld [vmem:[%s7579_s1 + $0x278] ss:$52 sps:$4 sm:$0xff]   ;;  %v4902_v4 = vld [vmem:[%s5973_s27 + $0x450] sm:$0xf] }
  0x6e   : >> { %3673 = vmatprep.mubr.bf16.mxu1 %v5509_v15  ;;  %534 = vrot.lane.b32.xlu0 %v398_v30, %s5924_s28  ;;  %v4929_v15 = vld [vmem:[%s5973_s27 + $0x398] sm:$0xff]  ;;  %v390_v30 = vld [vmem:[%s5973_s27 + $0xe0] sm:$0xff]  ;;  %v4919_v8 = vld [vmem:[%s5973_s27 + $0x348] sm:$0xff]  ;;  %352 = vst [vmem:[#allocation2 + $0x168] sm:$0xf] %v4902_v4 }
  0x6f   : >> { %909 = vrot.lane.b32.xlu1 %v4935_v34, %s5924_s28  ;;  %3807 = vmatpush1.bf16.msra.mxu0 %v5553_v41  ;;  %v5559_v20 = vld [vmem:[%s7579_s1 + $0x3b0] ss:$52 sps:$4 sm:$0xff]  }
  0x70   : >> { %3808 = vmatprep.subr.bf16.mxu0 %v5923_v1 }
  0x72   : >> { %907 = vrot.lane.b32.xlu0 %v4934_v35, %s5924_s28 }
  0x73   : >> { %532 = vrot.lane.b32.xlu1 %v397_v40, %s5924_s28  ;;  %3809 = vmatpush1.bf16.msra.mxu0 %v5561_v47  ;;  %v5543_v40 = vld [vmem:[%s7579_s1 + $0x2e0] ss:$52 sps:$4 sm:$0xff]  }
  0x74   : >> { %3497 = vmatmul.mubr.bf16.gmra.mxu0 %v5511_v22  ;;  %3810 = vmatprep.subr.bf16.mxu0 %v5923_v1  ;;  %v4909_v22 = vld [vmem:[%s5973_s27 + $0x488] sm:$0xf]  ;;  %v5548_v47 = vld [vmem:[%s7579_s1 + $0x34c] ss:$52 sps:$4 sm:$0xff]  }
  0x75   : >> { %3674 = vmatmul.mubr.bf16.gmra.mxu1 %v5512_v24  ;;  %3504 = vmatprep.mubr.bf16.mxu0 %v5513_v25  ;;  %v5538_v25 = vld [vmem:[%s7579_s1 + $0x2dc] ss:$52 sps:$4 sm:$0xff]   ;;  %359 = vst [vmem:[#allocation2 + $0x184] sm:$0xf] %v4909_v22  ;;  %v4923_v22 = vld [vmem:[%s5973_s27 + $0x368] sm:$0xff] }
  0x76   : >> { %3681 = vmatprep.mubr.bf16.mxu1 %v5515_v26  ;;  %530 = vrot.lane.b32.xlu0 %v396_v42, %s5924_s28  ;;  %v5540_v26 = vld [vmem:[%s7579_s1 + $0x2e4] ss:$52 sps:$4 sm:$0xff]   ;;  %v5611_v46 = vld [vmem:[#allocation2 + $0x168] sm:$0xff]  }
  0x77   : >> { %905 = vrot.lane.b32.xlu1 %v4933_v44, %s5924_s28  ;;  %3811 = vmatpush1.bf16.msra.mxu0 %v5573_v61  ;;  %v5546_v44 = vld [vmem:[%s7579_s1 + $0x344] ss:$52 sps:$4 sm:$0xff]   ;;  %v5556_v61 = vld [vmem:[%s7579_s1 + $0x3b4] ss:$52 sps:$4 sm:$0xff]  }
  0x78   : >> { %3812 = vmatprep.subr.bf16.mxu0 %v5923_v1 }
  0x7a   : >> { %903 = vrot.lane.b32.xlu0 %v4932_v45, %s5924_s28 }
  0x7b   : >> { %528 = vrot.lane.b32.xlu1 %v395_v52, %s5924_s28  ;;  %3813 = vmatpush1.bf16.msra.mxu0 %v5583_v11  ;;  %v4921_v52 = vld [vmem:[%s5973_s27 + $0x358] sm:$0xff] }
  0x7c   : >> { %3505 = vmatmul.mubr.bf16.gmra.mxu0 %v5517_v32  ;;  %3814 = vmatprep.subr.bf16.mxu0 %v5923_v1 }
  0x7d   : >> { %3682 = vmatmul.mubr.bf16.gmra.mxu1 %v5518_v33  ;;  %3512 = vmatprep.mubr.bf16.mxu0 %v5519_v38  ;;  %v5591_v33 = vld [vmem:[#allocation2 + $0x108] sm:$0xff]   ;;  %v4926_v38 = vld [vmem:[%s5973_s27 + $0x380] sm:$0xff] }
  0x7e   : >> { %3689 = vmatprep.mubr.bf16.mxu1 %v5521_v39  ;;  %526 = vrot.lane.b32.xlu0 %v394_v53, %s5924_s28  ;;  %v4906_v39 = vld [vmem:[%s5973_s27 + $0x470] sm:$0xf]  ;;  %v4905_v53 = vld [vmem:[%s5973_s27 + $0x468] sm:$0xf] }
  0x7f   : >> { %901 = vrot.lane.b32.xlu1 %v4931_v58, %s5924_s28  ;;  %3815 = vmatpush1.bf16.msra.mxu0 %v5591_v33  ;;  %356 = vst [vmem:[#allocation2 + $0x178] sm:$0xf] %v4906_v39  ;;  %355 = vst [vmem:[#allocation2 + $0x174] sm:$0xf] %v4905_v53  ;;  %v4896_v33 = vld [vmem:[%s5973_s27 + $0x420] sm:$0xf] }
  0x80   : >> { %3816 = vmatprep.subr.bf16.mxu0 %v5923_v1  ;;  %346 = vst [vmem:[#allocation2 + $0x150] sm:$0xf] %v4896_v33  ;;  %v4953_v39 = vld [vmem:[%s5973_s27 + $0x458] sm:$0xff]  ;;  %v4914_v53 = vld [vmem:[%s5973_s27 + $0x320] sm:$0xff]  ;;  %v5595_v33 = vld [vmem:[%s7579_s1 + $0x5b4] ss:$52 sps:$4 sm:$0xff]  }
  0x82   : >> { %899 = vrot.lane.b32.xlu0 %v4930_v59, %s5924_s28 }
  0x83   : >> { %524 = vrot.lane.b32.xlu1 %v393_v63, %s5924_s28 }
  0x84   : >> { %3513 = vmatmul.mubr.bf16.gmra.mxu0 %v5523_v43  ;;  %v5593_v43 = vld [vmem:[#allocation2 + $0x100] sm:$0xff]  }
  0x85   : >> { %3690 = vmatmul.mubr.bf16.gmra.mxu1 %v5524_v48  ;;  %3520 = vmatprep.mubr.bf16.mxu0 %v5525_v49  ;;  %v4904_v49 = vld [vmem:[%s5973_s27 + $0x460] sm:$0xf] }
  0x86   : >> { %3697 = vmatprep.mubr.bf16.mxu1 %v5527_v51  ;;  %522 = vrot.lane.b32.xlu0 %v392_v3, %s5924_s28  ;;  %354 = vst [vmem:[#allocation2 + $0x170] sm:$0xf] %v4904_v49  ;;  %v4895_v49 = vld [vmem:[%s5973_s27 + $0x418] sm:$0xf] }
  0x87   : >> { %897 = vrot.lane.b32.xlu1 %v4929_v15, %s5924_s28  ;;  %3817 = vmatpush1.bf16.msra.mxu0 %v5593_v43  ;;  %v5592_v43 = vld [vmem:[#allocation2 + $0x188] sm:$0xff]   ;;  %345 = vst [vmem:[#allocation2 + $0x14c] sm:$0xf] %v4895_v49  ;;  %v4946_v49 = vld [vmem:[%s5973_s27 + $0x420] sm:$0xff] }
  0x88   : >> { %v483_v0 = vpop.permute.xlu0 %482  ;;  %v479_v2 = vpop.permute.xlu1 %478  ;;  %3818 = vmatprep.subr.bf16.mxu0 %v5923_v1 }
  0x89   : >> { %v572_v6 = vrot.slane %v483_v0, 4  ;;  %v570_v7 = vrot.slane %v479_v2, 4 }
  0x8a   : >> { %895 = vrot.lane.b32.xlu0 %v4928_v16, %s5924_s28 }
  0x8b   : >> { %v623_v12 = vsel %vm612_vm0, %v483_v0, %v572_v6  ;;  %v621_v13 = vsel %vm612_vm0, %v479_v2, %v570_v7  ;;  %520 = vrot.lane.b32.xlu1 %v391_v29, %s5924_s28  ;;  %v4924_v0 = vld [vmem:[%s5973_s27 + $0x370] sm:$0xff] }
  0x8c   : >> { %3521 = vmatmul.mubr.bf16.gmra.mxu0 %v5529_v54  ;;  %723 = vst [vmem:[#allocation2 + $0x1b8] sm:$0xf] %v623_v12  ;;  %721 = vst [vmem:[#allocation2 + $0x1b0] sm:$0xf] %v621_v13  ;;  %v485_v18 = vpop.permute.xlu0 %484  ;;  %v481_v19 = vpop.permute.xlu1 %480  ;;  %v4920_v54 = vld [vmem:[%s5973_s27 + $0x350] sm:$0xff]  ;;  %v5601_v12 = vld [vmem:[#allocation2 + $0x178] sm:$0xff]  }
  0x8d   : >> { %3698 = vmatmul.mubr.bf16.gmra.mxu1 %v5530_v57  ;;  %3528 = vmatprep.mubr.bf16.mxu0 %v5531_v60  ;;  %v573_v23 = vrot.slane %v485_v18, 4  ;;  %v571_v24 = vrot.slane %v481_v19, 4  ;;  %v5552_v57 = vld [vmem:[%s7579_s1 + $0x348] ss:$52 sps:$4 sm:$0xff]   ;;  %v5554_v60 = vld [vmem:[%s7579_s1 + $0x3ac] ss:$52 sps:$4 sm:$0xff]  }
  0x8e   : >> { %3705 = vmatprep.mubr.bf16.mxu1 %v5533_v62  ;;  %518 = vrot.lane.b32.xlu0 %v390_v30, %s5924_s28  ;;  %v4925_v62 = vld [vmem:[%s5973_s27 + $0x378] sm:$0xff]  ;;  %v4922_v30 = vld [vmem:[%s5973_s27 + $0x360] sm:$0xff] }
  0x8f   : >> { %v624_v27 = vsel %vm612_vm0, %v485_v18, %v573_v23  ;;  %v622_v28 = vsel %vm612_vm0, %v481_v19, %v571_v24  ;;  %893 = vrot.lane.b32.xlu1 %v4927_v37, %s5924_s28  ;;  %3819 = vmatpush2.bf16.msra.mxu0 %v5601_v12  ;;  %v4898_v23 = vld [vmem:[%s5973_s27 + $0x430] sm:$0xf]  ;;  %v5562_v24 = vld [vmem:[%s7579_s1 + $0x414] ss:$52 sps:$4 sm:$0xff]   ;;  %v5567_v37 = vld [vmem:[%s7579_s1 + $0x418] ss:$52 sps:$4 sm:$0xff]  }
  0x90   : >> { %724 = vst [vmem:[#allocation2 + $0x1bc] sm:$0xf] %v624_v27  ;;  %722 = vst [vmem:[#allocation2 + $0x1b4] sm:$0xf] %v622_v28  ;;  %3820 = vmatprep.subr.bf16.mxu0 %v5923_v1  ;;  %v4899_v27 = vld [vmem:[%s5973_s27 + $0x438] sm:$0xf] }
  0x91   : >> { %v477_v31 = vpop.permute.xlu1 %476  ;;  %348 = vst [vmem:[#allocation2 + $0x158] sm:$0xf] %v4898_v23  ;;  %349 = vst [vmem:[#allocation2 + $0x15c] sm:$0xf] %v4899_v27  ;;  %v4948_v23 = vld [vmem:[%s5973_s27 + $0x430] sm:$0xff] }
  0x92   : >> { %v475_v32 = vpop.permute.xlu0 %474  ;;  %v569_v34 = vrot.slane %v477_v31, 4  ;;  %891 = vrot.lane.b32.xlu0 %v4926_v38, %s5924_s28  ;;  %v4916_v38 = vld [vmem:[%s5973_s27 + $0x330] sm:$0xff] }
  0x93   : >> { %v568_v35 = vrot.slane %v475_v32, 4  ;;  %881 = vrot.lane.b32.xlu1 %v4921_v52, %s5924_s28 }
  0x94   : >> { %3529 = vmatmul.mubr.bf16.gmra.mxu0 %v5535_v10  ;;  %v620_v41 = vsel %vm612_vm0, %v477_v31, %v569_v34  ;;  %v4900_v10 = vld [vmem:[%s5973_s27 + $0x440] sm:$0xf]  ;;  %v4917_v31 = vld [vmem:[%s5973_s27 + $0x338] sm:$0xff]  ;;  %v4897_v34 = vld [vmem:[%s5973_s27 + $0x428] sm:$0xf] }
  0x95   : >> { %3706 = vmatmul.mubr.bf16.gmra.mxu1 %v5536_v14  ;;  %3536 = vmatprep.mubr.bf16.mxu0 %v5538_v25  ;;  %v619_v42 = vsel %vm612_vm0, %v475_v32, %v568_v35  ;;  %720 = vst [vmem:[#allocation2 + $0x1ac] sm:$0xf] %v620_v41  ;;  %350 = vst [vmem:[#allocation2 + $0x160] sm:$0xf] %v4900_v10  ;;  %v4901_v14 = vld [vmem:[%s5973_s27 + $0x448] sm:$0xf] }
  0x96   : >> { %3713 = vmatprep.mubr.bf16.mxu1 %v5540_v26  ;;  %719 = vst [vmem:[#allocation2 + $0x1a8] sm:$0xf] %v619_v42  ;;  %879 = vrot.lane.b32.xlu0 %v4920_v54, %s5924_s28  ;;  %351 = vst [vmem:[#allocation2 + $0x164] sm:$0xf] %v4901_v14  ;;  %v5564_v25 = vld [vmem:[%s7579_s1 + $0x41c] ss:$52 sps:$4 sm:$0xff]  }
  0x97   : >> { %v473_v45 = vpop.permute.xlu1 %472  ;;  %v5544_v50 = vld [vmem:[#allocation2 + $0x1b8] sm:$0xff]   ;;  %v5550_v55 = vld [vmem:[#allocation2 + $0x1b0] sm:$0xff]   ;;  %889 = vrot.lane.b32.xlu1 %v4925_v62, %s5924_s28  ;;  %347 = vst [vmem:[#allocation2 + $0x154] sm:$0xf] %v4897_v34  ;;  %v4892_v54 = vld [vmem:[%s5973_s27 + $0x400] sm:$0xf] }
  0x98   : >> { %v567_v48 = vrot.slane %v473_v45, 4  ;;  %3980 = vmatpush1.bf16.msra.mxu1 %v5544_v50  ;;  %v5603_v32 = vld [vmem:[#allocation2 + $0x170] sm:$0xff]   ;;  %v5571_v41 = vld [vmem:[%s7579_s1 + $0x484] ss:$52 sps:$4 sm:$0xff]   ;;  %342 = vst [vmem:[#allocation2 + $0x140] sm:$0xf] %v4892_v54 }
  0x99   : >> { %3981 = vmatprep.subr.bf16.mxu1 %v5923_v1  ;;  %v471_v58 = vpop.permute.xlu0 %470  ;;  %v5566_v35 = vld [vmem:[%s7579_s1 + $0x410] ss:$52 sps:$4 sm:$0xff]   ;;  %3821 = vmatpush2.bf16.msra.mxu0 %v5603_v32  ;;  %v5574_v50 = vld [vmem:[%s7579_s1 + $0x478] ss:$52 sps:$4 sm:$0xff]  }
  0x9a   : >> { %v618_v51 = vsel %vm612_vm0, %v473_v45, %v567_v48  ;;  %v566_v59 = vrot.slane %v471_v58, 4  ;;  %887 = vrot.lane.b32.xlu0 %v4924_v0, %s5924_s28  ;;  %3822 = vmatprep.subr.bf16.mxu0 %v5923_v1  ;;  %v4915_v45 = vld [vmem:[%s5973_s27 + $0x328] sm:$0xff]  ;;  %v4894_v48 = vld [vmem:[%s5973_s27 + $0x410] sm:$0xf] }
  0x9b   : >> { %718 = vst [vmem:[#allocation2 + $0x1a4] sm:$0xf] %v618_v51  ;;  %v469_v3 = vpop.permute.xlu1 %468  ;;  %877 = vrot.lane.b32.xlu1 %v4919_v8, %s5924_s28  ;;  %344 = vst [vmem:[#allocation2 + $0x148] sm:$0xf] %v4894_v48  ;;  %v5579_v0 = vld [vmem:[%s7579_s1 + $0x4ec] ss:$52 sps:$4 sm:$0xff]  }
  0x9c   : >> { %3537 = vmatmul.mubr.bf16.gmra.mxu0 %v5542_v36  ;;  %3982 = vmatpush1.bf16.msra.mxu1 %v5550_v55  ;;  %v617_v2 = vsel %vm612_vm0, %v471_v58, %v566_v59  ;;  %v565_v6 = vrot.slane %v469_v3, 4  ;;  %v5575_v55 = vld [vmem:[%s7579_s1 + $0x480] ss:$52 sps:$4 sm:$0xff]   ;;  %v5590_v32 = vld [vmem:[%s7579_s1 + $0x550] ss:$52 sps:$4 sm:$0xff]  }
  0x9d   : >> { %3714 = vmatmul.mubr.bf16.gmra.mxu1 %v5543_v40  ;;  %3544 = vmatprep.mubr.bf16.mxu0 %v5546_v44  ;;  %v5560_v63 = vld [vmem:[#allocation2 + $0x1a8] sm:$0xff]   ;;  %717 = vst [vmem:[#allocation2 + $0x1a0] sm:$0xf] %v617_v2  ;;  %v467_v7 = vpop.permute.xlu0 %466  ;;  %v5569_v40 = vld [vmem:[%s7579_s1 + $0x47c] ss:$52 sps:$4 sm:$0xff]   ;;  %v5594_v59 = vld [vmem:[#allocation2 + $0x180] sm:$0xff]  }
  0x9e   : >> { %3721 = vmatprep.mubr.bf16.mxu1 %v5548_v47  ;;  %3983 = vmatprep.subr.bf16.mxu1 %v5923_v1  ;;  %v564_v11 = vrot.slane %v467_v7, 4  ;;  %v616_v13 = vsel %vm612_vm0, %v469_v3, %v565_v6  ;;  %v4952_v44 = vld [vmem:[%s5973_s27 + $0x450] sm:$0xff]  ;;  %v4913_v6 = vld [vmem:[%s5973_s27 + $0x318] sm:$0xff]  ;;  %v5613_v8 = vld [vmem:[#allocation2 + $0x160] sm:$0xff]  }
  0x9f   : >> { %716 = vst [vmem:[#allocation2 + $0x19c] sm:$0xf] %v616_v13  ;;  %v465_v16 = vpop.permute.xlu1 %464  ;;  %875 = vrot.lane.b32.xlu0 %v4918_v9, %s5924_s28  ;;  %885 = vrot.lane.b32.xlu1 %v4923_v22, %s5924_s28  ;;  %v5581_v13 = vld [vmem:[%s7579_s1 + $0x4e0] ss:$52 sps:$4 sm:$0xff]   ;;  %v4949_v22 = vld [vmem:[%s5973_s27 + $0x438] sm:$0xff] }
  0xa0   : >> { %3984 = vmatpush1.bf16.msra.mxu1 %v5560_v63  ;;  %v615_v15 = vsel %vm612_vm0, %v467_v7, %v564_v11  ;;  %v563_v18 = vrot.slane %v465_v16, 4  ;;  %3823 = vmatpush2.bf16.msra.mxu0 %v5611_v46  ;;  %v5623_v46 = vld [vmem:[#allocation2 + $0x150] sm:$0xff]   ;;  %v5600_v54 = vld [vmem:[%s7579_s1 + $0x5b8] ss:$52 sps:$4 sm:$0xff]  }
  0xa1   : >> { %715 = vst [vmem:[#allocation2 + $0x198] sm:$0xf] %v615_v15  ;;  %3985 = vmatprep.subr.bf16.mxu1 %v5923_v1  ;;  %v463_v19 = vpop.permute.xlu0 %462  ;;  %3824 = vmatprep.subr.bf16.mxu0 %v5923_v1  ;;  %v5582_v15 = vld [vmem:[%s7579_s1 + $0x4e8] ss:$52 sps:$4 sm:$0xff]  }
  0xa2   : >> { %v562_v21 = vrot.slane %v463_v19, 4  ;;  %v614_v26 = vsel %vm612_vm0, %v465_v16, %v563_v18  ;;  %v5585_v18 = vld [vmem:[%s7579_s1 + $0x54c] ss:$52 sps:$4 sm:$0xff]  }
  0xa3   : >> { %714 = vst [vmem:[#allocation2 + $0x194] sm:$0xf] %v614_v26  ;;  %883 = vrot.lane.b32.xlu0 %v4922_v30, %s5924_s28  ;;  %873 = vrot.lane.b32.xlu1 %v4917_v31, %s5924_s28 }
  0xa4   : >> { %3545 = vmatmul.mubr.bf16.gmra.mxu0 %v5551_v56  ;;  %v5568_v28 = vld [vmem:[#allocation2 + $0x1a0] sm:$0xff]   ;;  %v613_v29 = vsel %vm612_vm0, %v463_v19, %v562_v21  ;;  %v5587_v21 = vld [vmem:[%s7579_s1 + $0x554] ss:$52 sps:$4 sm:$0xff]  }
  0xa5   : >> { %3722 = vmatmul.mubr.bf16.gmra.mxu1 %v5552_v57  ;;  %3552 = vmatprep.mubr.bf16.mxu0 %v5554_v60  ;;  %713 = vst [vmem:[#allocation2 + $0x190] sm:$0xf] %v613_v29  ;;  %v4893_v57 = vld [vmem:[%s5973_s27 + $0x408] sm:$0xf] }
  0xa6   : >> { %3729 = vmatprep.mubr.bf16.mxu1 %v5556_v61  ;;  %3986 = vmatpush1.bf16.msra.mxu1 %v5568_v28  ;;  %v4951_v60 = vld [vmem:[%s5973_s27 + $0x448] sm:$0xff]  ;;  %343 = vst [vmem:[#allocation2 + $0x144] sm:$0xf] %v4893_v57  ;;  %v5577_v61 = vld [vmem:[%s7579_s1 + $0x4e4] ss:$52 sps:$4 sm:$0xff]   ;;  %v408_v57 = vld [vmem:[%s5973_s27 + $0x170] sm:$0xff] }
  0xa7   : >> { %3987 = vmatprep.subr.bf16.mxu1 %v5923_v1  ;;  %871 = vrot.lane.b32.xlu0 %v4916_v38, %s5924_s28  ;;  %v517_v47 = vpop.permute.xlu1 %516  ;;  %v5589_v29 = vld [vmem:[%s7579_s1 + $0x548] ss:$52 sps:$4 sm:$0xff]   ;;  %v410_v38 = vld [vmem:[%s5973_s27 + $0x180] sm:$0xff] }
  0xa8   : >> { %v5576_v36 = vld [vmem:[#allocation2 + $0x198] sm:$0xff]   ;;  %945 = vrot.lane.b32.xlu1 %v4953_v39, %s5924_s28  ;;  %v589_v51 = vrot.slane %v517_v47, 4  ;;  %3825 = vmatpush2.bf16.msra.mxu0 %v5613_v8 }
  0xa9   : >> { %3826 = vmatprep.subr.bf16.mxu0 %v5923_v1  ;;  %v5597_v39 = vld [vmem:[%s7579_s1 + $0x5bc] ss:$52 sps:$4 sm:$0xff]  }
  0xaa   : >> { %3988 = vmatpush1.bf16.msra.mxu1 %v5576_v36  ;;  %v640_v58 = vsel %vm612_vm0, %v517_v47, %v589_v51  ;;  %v5599_v51 = vld [vmem:[%s7579_s1 + $0x5b0] ss:$52 sps:$4 sm:$0xff]  }
  0xab   : >> { %3989 = vmatprep.subr.bf16.mxu1 %v5923_v1  ;;  %v515_v52 = vpop.permute.xlu0 %514  ;;  %943 = vrot.lane.b32.xlu0 %v4952_v44, %s5924_s28  ;;  %740 = vst [vmem:[#allocation2 + $0x1fc] sm:$0xf] %v640_v58  ;;  %v4947_v44 = vld [vmem:[%s5973_s27 + $0x428] sm:$0xff] }
  0xac   : >> { %3553 = vmatmul.mubr.bf16.gmra.mxu0 %v5558_v17  ;;  %v5584_v42 = vld [vmem:[#allocation2 + $0x190] sm:$0xff]   ;;  %v588_v56 = vrot.slane %v515_v52, 4  ;;  %869 = vrot.lane.b32.xlu1 %v4915_v45, %s5924_s28 }
  0xad   : >> { %3730 = vmatmul.mubr.bf16.gmra.mxu1 %v5559_v20  ;;  %3560 = vmatprep.mubr.bf16.mxu0 %v5562_v24  ;;  %v513_v63 = vpop.permute.xlu1 %512  ;;  %v4912_v17 = vld [vmem:[%s5973_s27 + $0x310] sm:$0xff] }
  0xae   : >> { %3737 = vmatprep.mubr.bf16.mxu1 %v5564_v25  ;;  %3990 = vmatpush1.bf16.msra.mxu1 %v5584_v42  ;;  %v639_v62 = vsel %vm612_vm0, %v515_v52, %v588_v56  ;;  %v587_v2 = vrot.slane %v513_v63, 4  ;;  %v5621_v25 = vld [vmem:[#allocation2 + $0x158] sm:$0xff]  }
  0xaf   : >> { %3991 = vmatprep.subr.bf16.mxu1 %v5923_v1  ;;  %739 = vst [vmem:[#allocation2 + $0x1f8] sm:$0xf] %v639_v62  ;;  %867 = vrot.lane.b32.xlu0 %v4914_v53, %s5924_s28  ;;  %v409_v56 = vld [vmem:[%s5973_s27 + $0x178] sm:$0xff] }
  0xb0   : >> { %941 = vrot.lane.b32.xlu1 %v4951_v60, %s5924_s28  ;;  %v638_v7 = vsel %vm612_vm0, %v513_v63, %v587_v2  ;;  %3827 = vmatpush2.bf16.msra.mxu0 %v5621_v25  ;;  %v5607_v63 = vld [vmem:[%s7579_s1 + $0x624] ss:$52 sps:$4 sm:$0xff]  }
  0xb1   : >> { %v511_v3 = vpop.permute.xlu0 %510  ;;  %738 = vst [vmem:[#allocation2 + $0x1f4] sm:$0xf] %v638_v7  ;;  %3828 = vmatprep.subr.bf16.mxu0 %v5923_v1  ;;  %v406_v25 = vld [vmem:[%s5973_s27 + $0x160] sm:$0xff] }
  0xb2   : >> { %3992 = vmatpush1.bf16.msra.mxu1 %v5592_v43  ;;  %v586_v4 = vrot.slane %v511_v3, 4 }
  0xb3   : >> { %3993 = vmatprep.subr.bf16.mxu1 %v5923_v1  ;;  %939 = vrot.lane.b32.xlu0 %v4950_v5, %s5924_s28 }
  0xb4   : >> { %3561 = vmatmul.mubr.bf16.gmra.mxu0 %v5566_v35  ;;  %v637_v9 = vsel %vm612_vm0, %v511_v3, %v586_v4  ;;  %865 = vrot.lane.b32.xlu1 %v4913_v6, %s5924_s28  ;;  %v411_v35 = vld [vmem:[%s5973_s27 + $0x188] sm:$0xff] }
  0xb5   : >> { %3738 = vmatmul.mubr.bf16.gmra.mxu1 %v5567_v37  ;;  %3568 = vmatprep.mubr.bf16.mxu0 %v5569_v40  ;;  %v509_v10 = vpop.permute.xlu1 %508  ;;  %737 = vst [vmem:[#allocation2 + $0x1f0] sm:$0xf] %v637_v9  ;;  %v5631_v4 = vld [vmem:[#allocation2 + $0x148] sm:$0xff]   ;;  %v4945_v9 = vld [vmem:[%s5973_s27 + $0x418] sm:$0xff] }
  0xb6   : >> { %3745 = vmatprep.mubr.bf16.mxu1 %v5571_v41  ;;  %3994 = vmatpush1.bf16.msra.mxu1 %v5594_v59  ;;  %v585_v11 = vrot.slane %v509_v10, 4  ;;  %v5602_v20 = vld [vmem:[#allocation2 + $0x1f8] sm:$0xff]  }
  0xb7   : >> { %v507_v12 = vpop.permute.xlu0 %506  ;;  %3995 = vmatprep.subr.bf16.mxu1 %v5923_v1  ;;  %863 = vrot.lane.b32.xlu0 %v4912_v17, %s5924_s28  ;;  %v5615_v17 = vld [vmem:[%s7579_s1 + $0x684] ss:$52 sps:$4 sm:$0xff]  }
  0xb8   : >> { %v584_v14 = vrot.slane %v507_v12, 4  ;;  %v636_v16 = vsel %vm612_vm0, %v509_v10, %v585_v11  ;;  %937 = vrot.lane.b32.xlu1 %v4949_v22, %s5924_s28  ;;  %3829 = vmatpush2.bf16.msra.mxu0 %v5623_v46  ;;  %v5609_v10 = vld [vmem:[%s7579_s1 + $0x618] ss:$52 sps:$4 sm:$0xff]  }
  0xb9   : >> { %736 = vst [vmem:[#allocation2 + $0x1ec] sm:$0xf] %v636_v16  ;;  %v505_v24 = vpop.permute.xlu1 %504  ;;  %3830 = vmatprep.subr.bf16.mxu0 %v5923_v1 }
  0xba   : >> { %v635_v19 = vsel %vm612_vm0, %v507_v12, %v584_v14  ;;  %3996 = vmatpush2.bf16.msra.mxu1 %v5602_v20  ;;  %v583_v26 = vrot.slane %v505_v24, 4  ;;  %v5610_v14 = vld [vmem:[%s7579_s1 + $0x620] ss:$52 sps:$4 sm:$0xff]   ;;  %v407_v20 = vld [vmem:[%s5973_s27 + $0x168] sm:$0xff] }
  0xbb   : >> { %735 = vst [vmem:[#allocation2 + $0x1e8] sm:$0xf] %v635_v19  ;;  %3997 = vmatprep.subr.bf16.mxu1 %v5923_v1  ;;  %v503_v27 = vpop.permute.xlu0 %502  ;;  %935 = vrot.lane.b32.xlu0 %v4948_v23, %s5924_s28  ;;  %v5617_v23 = vld [vmem:[%s7579_s1 + $0x68c] ss:$52 sps:$4 sm:$0xff]  }
  0xbc   : >> { %3569 = vmatmul.mubr.bf16.gmra.mxu0 %v5574_v50  ;;  %v5604_v28 = vld [vmem:[#allocation2 + $0x1f0] sm:$0xff]   ;;  %v634_v30 = vsel %vm612_vm0, %v505_v24, %v583_v26  ;;  %v582_v31 = vrot.slane %v503_v27, 4  ;;  %560 = vrot.lane.b32.xlu1 %v411_v35, %s5924_s28  ;;  %v5620_v35 = vld [vmem:[%s7579_s1 + $0x688] ss:$52 sps:$4 sm:$0xff]  }
  0xbd   : >> { %3746 = vmatmul.mubr.bf16.gmra.mxu1 %v5575_v55  ;;  %3576 = vmatprep.mubr.bf16.mxu0 %v5577_v61  ;;  %734 = vst [vmem:[#allocation2 + $0x1e4] sm:$0xf] %v634_v30  ;;  %v501_v34 = vpop.permute.xlu1 %500  ;;  %v5605_v61 = vld [vmem:[%s7579_s1 + $0x61c] ss:$52 sps:$4 sm:$0xff]   ;;  %v4943_v30 = vld [vmem:[%s5973_s27 + $0x408] sm:$0xff] }
  0xbe   : >> { %3753 = vmatprep.mubr.bf16.mxu1 %v5579_v0  ;;  %3998 = vmatpush2.bf16.msra.mxu1 %v5604_v28  ;;  %v633_v36 = vsel %vm612_vm0, %v503_v27, %v582_v31  ;;  %v581_v37 = vrot.slane %v501_v34, 4 }
  0xbf   : >> { %3999 = vmatprep.subr.bf16.mxu1 %v5923_v1  ;;  %733 = vst [vmem:[#allocation2 + $0x1e0] sm:$0xf] %v633_v36  ;;  %v499_v40 = vpop.permute.xlu0 %498  ;;  %558 = vrot.lane.b32.xlu0 %v410_v38, %s5924_s28  ;;  %v4942_v36 = vld [vmem:[%s5973_s27 + $0x400] sm:$0xff] }
  0xc0   : >> { %v632_v42 = vsel %vm612_vm0, %v501_v34, %v581_v37  ;;  %v580_v43 = vrot.slane %v499_v40, 4  ;;  %933 = vrot.lane.b32.xlu1 %v4947_v44, %s5924_s28  ;;  %3831 = vmatpush2.bf16.msra.mxu0 %v5631_v4 }
  0xc1   : >> { %732 = vst [vmem:[#allocation2 + $0x1dc] sm:$0xf] %v632_v42  ;;  %v497_v45 = vpop.permute.xlu1 %496  ;;  %3832 = vmatprep.subr.bf16.mxu0 %v5923_v1  ;;  %v4941_v42 = vld [vmem:[%s5973_s27 + $0x3f8] sm:$0xff] }
  0xc2   : >> { %v5612_v41 = vld [vmem:[#allocation2 + $0x1e8] sm:$0xff]   ;;  %v631_v47 = vsel %vm612_vm0, %v499_v40, %v580_v43  ;;  %v579_v48 = vrot.slane %v497_v45, 4 }
  0xc3   : >> { %4000 = vmatpush2.bf16.msra.mxu1 %v5612_v41  ;;  %731 = vst [vmem:[#allocation2 + $0x1d8] sm:$0xf] %v631_v47  ;;  %v495_v50 = vpop.permute.xlu0 %494  ;;  %931 = vrot.lane.b32.xlu0 %v4946_v49, %s5924_s28  ;;  %v5625_v41 = vld [vmem:[%s7579_s1 + $0x6ec] ss:$52 sps:$4 sm:$0xff]  }
  0xc4   : >> { %3577 = vmatmul.mubr.bf16.gmra.mxu0 %v5581_v13  ;;  %4001 = vmatprep.subr.bf16.mxu1 %v5923_v1  ;;  %v630_v52 = vsel %vm612_vm0, %v497_v45, %v579_v48  ;;  %v578_v53 = vrot.slane %v495_v50, 4  ;;  %v4944_v13 = vld [vmem:[%s5973_s27 + $0x410] sm:$0xff] }
  0xc5   : >> { %3754 = vmatmul.mubr.bf16.gmra.mxu1 %v5582_v15  ;;  %3584 = vmatprep.mubr.bf16.mxu0 %v5585_v18  ;;  %730 = vst [vmem:[#allocation2 + $0x1d4] sm:$0xf] %v630_v52  ;;  %v493_v55 = vpop.permute.xlu1 %492  ;;  %v5633_v15 = vld [vmem:[#allocation2 + $0x140] sm:$0xff]   ;;  %v5627_v45 = vld [vmem:[%s7579_s1 + $0x6f4] ss:$52 sps:$4 sm:$0xff]  }
  0xc6   : >> { %3761 = vmatprep.mubr.bf16.mxu1 %v5587_v21  ;;  %v629_v58 = vsel %vm612_vm0, %v495_v50, %v578_v53  ;;  %v577_v59 = vrot.slane %v493_v55, 4  ;;  %v5614_v60 = vld [vmem:[#allocation2 + $0x1e0] sm:$0xff]   ;;  %556 = vrot.lane.b32.xlu1 %v409_v56, %s5924_s28  ;;  %v4940_v48 = vld [vmem:[%s5973_s27 + $0x3f0] sm:$0xff] }
  0xc7   : >> { %729 = vst [vmem:[#allocation2 + $0x1d0] sm:$0xf] %v629_v58  ;;  %v491_v62 = vpop.permute.xlu0 %490  ;;  %4002 = vmatpush2.bf16.msra.mxu1 %v5614_v60  ;;  %554 = vrot.lane.b32.xlu0 %v408_v57, %s5924_s28  ;;  %v5630_v56 = vld [vmem:[%s7579_s1 + $0x6f0] ss:$52 sps:$4 sm:$0xff]  }
  0xc8   : >> { %v628_v0 = vsel %vm612_vm0, %v493_v55, %v577_v59  ;;  %v576_v2 = vrot.slane %v491_v62, 4  ;;  %4003 = vmatprep.subr.bf16.mxu1 %v5923_v1  ;;  %3833 = vmatpush2.bf16.msra.mxu0 %v5633_v15  ;;  %v5629_v55 = vld [vmem:[%s7579_s1 + $0x6e8] ss:$52 sps:$4 sm:$0xff]   ;;  %v4938_v58 = vld [vmem:[%s5973_s27 + $0x3e0] sm:$0xff] }
  0xc9   : >> { %728 = vst [vmem:[#allocation2 + $0x1cc] sm:$0xf] %v628_v0  ;;  %v489_v3 = vpop.permute.xlu1 %488  ;;  %4156 = vmatprep.subr.bf16.mxu0 %v5923_v1  ;;  %v4961_v0 = vld [vmem:[%s5973_s27 + $0x498] sm:$0xff] }
  0xca   : >> { %v627_v5 = vsel %vm612_vm0, %v491_v62, %v576_v2  ;;  %v575_v6 = vrot.slane %v489_v3, 4  ;;  %v5622_v7 = vld [vmem:[#allocation2 + $0x1d8] sm:$0xff]   ;;  %929 = vrot.lane.b32.xlu1 %v4945_v9, %s5924_s28 }
  0xcb   : >> { %727 = vst [vmem:[#allocation2 + $0x1c8] sm:$0xf] %v627_v5  ;;  %v487_v8 = vpop.permute.xlu0 %486  ;;  %4004 = vmatpush2.bf16.msra.mxu1 %v5622_v7  ;;  %927 = vrot.lane.b32.xlu0 %v4944_v13, %s5924_s28  ;;  %v5640_v2 = vld [vmem:[%s7579_s1 + $0x1c] ss:$52 sps:$4 sm:$0xff]   ;;  %v5638_v13 = vld [vmem:[%s7579_s1 + $0x18] ss:$52 sps:$4 sm:$0xff]  }
  0xcc   : >> { %3585 = vmatmul.mubr.bf16.gmra.mxu0 %v5589_v29  ;;  %v626_v11 = vsel %vm612_vm0, %v489_v3, %v575_v6  ;;  %v574_v12 = vrot.slane %v487_v8, 4  ;;  %4005 = vmatprep.subr.bf16.mxu1 %v5923_v1  ;;  %v4960_v7 = vld [vmem:[%s5973_s27 + $0x490] sm:$0xff] }
  0xcd   : >> { %3762 = vmatmul.mubr.bf16.gmra.mxu1 %v5590_v32  ;;  %3592 = vmatprep.mubr.bf16.mxu0 %v5595_v33  ;;  %726 = vst [vmem:[#allocation2 + $0x1c4] sm:$0xf] %v626_v11  ;;  %v549_v19 = vpop.permute.xlu1 %548  ;;  %v5619_v33 = vld [vmem:[%s7579_s1 + $0x680] ss:$52 sps:$4 sm:$0xff]  }
  0xce   : >> { %3769 = vmatprep.mubr.bf16.mxu1 %v5597_v39  ;;  %v625_v16 = vsel %vm612_vm0, %v487_v8, %v574_v12  ;;  %v5624_v18 = vld [vmem:[#allocation2 + $0x1d0] sm:$0xff]   ;;  %v605_v21 = vrot.slane %v549_v19, 4  ;;  %552 = vrot.lane.b32.xlu1 %v407_v20, %s5924_s28 }
  0xcf   : >> { %725 = vst [vmem:[#allocation2 + $0x1c0] sm:$0xf] %v625_v16  ;;  %v547_v22 = vpop.permute.xlu0 %546  ;;  %4006 = vmatpush2.bf16.msra.mxu1 %v5624_v18  ;;  %550 = vrot.lane.b32.xlu0 %v406_v25, %s5924_s28  ;;  %v5635_v12 = vld [vmem:[%s7579_s1 + $0x10] ss:$52 sps:$4 sm:$0xff]  }
  0xd0   : >> { %v604_v24 = vrot.slane %v547_v22, 4  ;;  %4007 = vmatprep.subr.bf16.mxu1 %v5923_v1  ;;  %v656_v26 = vsel %vm612_vm0, %v549_v19, %v605_v21  ;;  %v5641_v16 = vld [vmem:[%s7579_s1 + $0x7c] ss:$52 sps:$4 sm:$0xff]   ;;  %v5643_v19 = vld [vmem:[%s7579_s1 + $0x84] ss:$52 sps:$4 sm:$0xff]  }
  0xd1   : >> { %756 = vst [vmem:[#allocation2 + $0x23c] sm:$0xf] %v656_v26  ;;  %v545_v29 = vpop.permute.xlu1 %544 }
  0xd2   : >> { %v5632_v27 = vld [vmem:[#allocation2 + $0x1c8] sm:$0xff]   ;;  %v655_v28 = vsel %vm612_vm0, %v547_v22, %v604_v24  ;;  %v603_v31 = vrot.slane %v545_v29, 4  ;;  %925 = vrot.lane.b32.xlu1 %v4943_v30, %s5924_s28 }
  0xd3   : >> { %755 = vst [vmem:[#allocation2 + $0x238] sm:$0xf] %v655_v28  ;;  %v543_v32 = vpop.permute.xlu0 %542  ;;  %4008 = vmatpush2.bf16.msra.mxu1 %v5632_v27  ;;  %923 = vrot.lane.b32.xlu0 %v4942_v36, %s5924_s28  ;;  %v4959_v28 = vld [vmem:[%s5973_s27 + $0x488] sm:$0xff] }
  0xd4   : >> { %3593 = vmatmul.mubr.bf16.gmra.mxu0 %v5599_v51  ;;  %v602_v34 = vrot.slane %v543_v32, 4  ;;  %4009 = vmatprep.subr.bf16.mxu1 %v5923_v1  ;;  %v654_v37 = vsel %vm612_vm0, %v545_v29, %v603_v31  ;;  %v4939_v51 = vld [vmem:[%s5973_s27 + $0x3e8] sm:$0xff] }
  0xd5   : >> { %3770 = vmatmul.mubr.bf16.gmra.mxu1 %v5600_v54  ;;  %3600 = vmatprep.mubr.bf16.mxu0 %v5605_v61  ;;  %754 = vst [vmem:[#allocation2 + $0x234] sm:$0xf] %v654_v37  ;;  %v541_v40 = vpop.permute.xlu1 %540  ;;  %v5637_v61 = vld [vmem:[%s7579_s1 + $0x14] ss:$52 sps:$4 sm:$0xff]   ;;  %v5645_v29 = vld [vmem:[%s7579_s1 + $0x78] ss:$52 sps:$4 sm:$0xff]  }
  0xd6   : >> { %3777 = vmatprep.mubr.bf16.mxu1 %v5607_v63  ;;  %v5634_v38 = vld [vmem:[#allocation2 + $0x1c0] sm:$0xff]   ;;  %v653_v39 = vsel %vm612_vm0, %v543_v32, %v602_v34  ;;  %v601_v43 = vrot.slane %v541_v40, 4  ;;  %921 = vrot.lane.b32.xlu1 %v4941_v42, %s5924_s28 }
  0xd7   : >> { %753 = vst [vmem:[#allocation2 + $0x230] sm:$0xf] %v653_v39  ;;  %4010 = vmatpush2.bf16.msra.mxu1 %v5634_v38  ;;  %919 = vrot.lane.b32.xlu0 %v4940_v48, %s5924_s28  ;;  %v4958_v32 = vld [vmem:[%s5973_s27 + $0x480] sm:$0xff] }
  0xd8   : >> { %v539_v44 = vpop.permute.xlu0 %538  ;;  %v652_v47 = vsel %vm612_vm0, %v541_v40, %v601_v43  ;;  %4333 = vmatprep.subr.bf16.mxu1 %v5923_v1  ;;  %v5649_v39 = vld [vmem:[%s7579_s1 + $0xec] ss:$52 sps:$4 sm:$0xff]  }
  0xd9   : >> { %v600_v46 = vrot.slane %v539_v44, 4  ;;  %752 = vst [vmem:[#allocation2 + $0x22c] sm:$0xf] %v652_v47  ;;  %v914_v50 = vpop.permute.xlu1 %913 }
  0xda   : >> { %v988_v52 = vrot.slane %v914_v50, 4  ;;  %917 = vrot.lane.b32.xlu1 %v4939_v51, %s5924_s28  ;;  %v5671_v21 = vld [vmem:[#allocation2 + $0x238] sm:$0xff]  }
  0xdb   : >> { %v651_v49 = vsel %vm612_vm0, %v539_v44, %v600_v46  ;;  %915 = vrot.lane.b32.xlu0 %v4938_v58, %s5924_s28 }
  0xdc   : >> { %3601 = vmatmul.mubr.bf16.gmra.mxu0 %v5609_v10  ;;  %751 = vst [vmem:[#allocation2 + $0x228] sm:$0xf] %v651_v49  ;;  %v912_v53 = vpop.permute.xlu0 %911  ;;  %v1038_v57 = vsel %vm612_vm0, %v914_v50, %v988_v52  ;;  %v5651_v50 = vld [vmem:[%s7579_s1 + $0xe0] ss:$52 sps:$4 sm:$0xff]   ;;  %v5652_v52 = vld [vmem:[%s7579_s1 + $0xe8] ss:$52 sps:$4 sm:$0xff]  }
  0xdd   : >> { %3778 = vmatmul.mubr.bf16.gmra.mxu1 %v5610_v14  ;;  %3608 = vmatprep.mubr.bf16.mxu0 %v5615_v17  ;;  %v987_v54 = vrot.slane %v912_v53, 4  ;;  %1138 = vst [vmem:[#allocation2 + $0x2bc] sm:$0xf] %v1038_v57  ;;  %v537_v60 = vpop.permute.xlu1 %536 }
  0xde   : >> { %3785 = vmatprep.mubr.bf16.mxu1 %v5617_v23  ;;  %v599_v62 = vrot.slane %v537_v60, 4  ;;  %961 = vrot.lane.b32.xlu1 %v4961_v0, %s5924_s28  ;;  %v5678_v31 = vld [vmem:[#allocation2 + $0x230] sm:$0xff]  }
  0xdf   : >> { %v1037_v59 = vsel %vm612_vm0, %v912_v53, %v987_v54  ;;  %959 = vrot.lane.b32.xlu0 %v4960_v7, %s5924_s28  ;;  %v5653_v53 = vld [vmem:[%s7579_s1 + $0x14c] ss:$52 sps:$4 sm:$0xff]  }
  0xe0   : >> { %1137 = vst [vmem:[#allocation2 + $0x2b8] sm:$0xf] %v1037_v59  ;;  %v535_v63 = vpop.permute.xlu0 %534  ;;  %v650_v4 = vsel %vm612_vm0, %v537_v60, %v599_v62  ;;  %v5655_v60 = vld [vmem:[%s7579_s1 + $0x154] ss:$52 sps:$4 sm:$0xff]  }
  0xe1   : >> { %v598_v3 = vrot.slane %v535_v63, 4  ;;  %750 = vst [vmem:[#allocation2 + $0x224] sm:$0xf] %v650_v4  ;;  %v910_v6 = vpop.permute.xlu1 %909 }
  0xe2   : >> { %v986_v8 = vrot.slane %v910_v6, 4  ;;  %957 = vrot.lane.b32.xlu1 %v4959_v28, %s5924_s28  ;;  %v4955_v28 = vld [vmem:[%s5973_s27 + $0x468] sm:$0xff] }
  0xe3   : >> { %v649_v5 = vsel %vm612_vm0, %v535_v63, %v598_v3  ;;  %955 = vrot.lane.b32.xlu0 %v4958_v32, %s5924_s28  ;;  %v5679_v43 = vld [vmem:[#allocation2 + $0x228] sm:$0xff]  }
  0xe4   : >> { %3609 = vmatmul.mubr.bf16.gmra.mxu0 %v5619_v33  ;;  %749 = vst [vmem:[#allocation2 + $0x220] sm:$0xf] %v649_v5  ;;  %v908_v9 = vpop.permute.xlu0 %907  ;;  %v1036_v11 = vsel %vm612_vm0, %v910_v6, %v986_v8  ;;  %v5646_v33 = vld [vmem:[%s7579_s1 + $0x80] ss:$52 sps:$4 sm:$0xff]   ;;  %v5657_v6 = vld [vmem:[%s7579_s1 + $0x148] ss:$52 sps:$4 sm:$0xff]  }
  0xe5   : >> { %3786 = vmatmul.mubr.bf16.gmra.mxu1 %v5620_v35  ;;  %3616 = vmatprep.mubr.bf16.mxu0 %v5625_v41  ;;  %v985_v10 = vrot.slane %v908_v9, 4  ;;  %1136 = vst [vmem:[#allocation2 + $0x2b4] sm:$0xf] %v1036_v11  ;;  %v533_v15 = vpop.permute.xlu1 %532  ;;  %v5647_v35 = vld [vmem:[%s7579_s1 + $0xe4] ss:$52 sps:$4 sm:$0xff]  }
  0xe6   : >> { %3793 = vmatprep.mubr.bf16.mxu1 %v5627_v45  ;;  %v597_v17 = vrot.slane %v533_v15, 4  ;;  %v5658_v8 = vld [vmem:[%s7579_s1 + $0x150] ss:$52 sps:$4 sm:$0xff]  }
  0xe7   : >> { %v1035_v14 = vsel %vm612_vm0, %v908_v9, %v985_v10  ;;  %v5686_v23 = vld [vmem:[#allocation2 + $0x2b8] sm:$0xff]   ;;  %v5659_v9 = vld [vmem:[%s7579_s1 + $0x1b4] ss:$52 sps:$4 sm:$0xff]  }
  0xe8   : >> { %1135 = vst [vmem:[#allocation2 + $0x2b0] sm:$0xf] %v1035_v14  ;;  %v531_v18 = vpop.permute.xlu0 %530  ;;  %v648_v22 = vsel %vm612_vm0, %v533_v15, %v597_v17 }
  0xe9   : >> { %v596_v20 = vrot.slane %v531_v18, 4  ;;  %748 = vst [vmem:[#allocation2 + $0x21c] sm:$0xf] %v648_v22  ;;  %v906_v25 = vpop.permute.xlu1 %905 }
  0xea   : >> { %v984_v26 = vrot.slane %v906_v25, 4 }
  0xeb   : >> { %v647_v24 = vsel %vm612_vm0, %v531_v18, %v596_v20  ;;  %v5687_v47 = vld [vmem:[#allocation2 + $0x220] sm:$0xff]   ;;  %v4957_v18 = vld [vmem:[%s5973_s27 + $0x478] sm:$0xff] }
  0xec   : >> { %3617 = vmatmul.mubr.bf16.gmra.mxu0 %v5629_v55  ;;  %747 = vst [vmem:[#allocation2 + $0x218] sm:$0xf] %v647_v24  ;;  %v904_v27 = vpop.permute.xlu0 %903  ;;  %v1034_v34 = vsel %vm612_vm0, %v906_v25, %v984_v26  ;;  %953 = vrot.lane.b32.xlu1 %v4957_v18, %s5924_s28  ;;  %v5663_v26 = vld [vmem:[%s7579_s1 + $0x1b0] ss:$52 sps:$4 sm:$0xff]   ;;  %v5684_v18 = vld [vmem:[%s7579_s1 + $0x2e8] ss:$52 sps:$4 sm:$0xff]  }
  0xed   : >> { %3794 = vmatmul.mubr.bf16.gmra.mxu1 %v5630_v56  ;;  %3834 = vmatprep.mubr.bf16.mxu0 %v5637_v61  ;;  %v983_v30 = vrot.slane %v904_v27, 4  ;;  %1134 = vst [vmem:[#allocation2 + $0x2ac] sm:$0xf] %v1034_v34  ;;  %v529_v37 = vpop.permute.xlu1 %528 }
  0xee   : >> { %4011 = vmatprep.mubr.bf16.mxu1 %v5640_v2  ;;  %v595_v40 = vrot.slane %v529_v37, 4 }
  0xef   : >> { %v1033_v36 = vsel %vm612_vm0, %v904_v27, %v983_v30  ;;  %v5694_v38 = vld [vmem:[#allocation2 + $0x2b0] sm:$0xff]   ;;  %v5664_v30 = vld [vmem:[%s7579_s1 + $0x1b8] ss:$52 sps:$4 sm:$0xff]  }
  0xf0   : >> { %1133 = vst [vmem:[#allocation2 + $0x2a8] sm:$0xf] %v1033_v36  ;;  %v527_v41 = vpop.permute.xlu0 %526  ;;  %v646_v44 = vsel %vm612_vm0, %v529_v37, %v595_v40  ;;  %949 = vrot.lane.b32.xlu1 %v4955_v28, %s5924_s28  ;;  %v5667_v36 = vld [vmem:[%s7579_s1 + $0x224] ss:$52 sps:$4 sm:$0xff]  }
  0xf1   : >> { %v594_v42 = vrot.slane %v527_v41, 4  ;;  %746 = vst [vmem:[#allocation2 + $0x214] sm:$0xf] %v646_v44  ;;  %v902_v46 = vpop.permute.xlu1 %901  ;;  %v5669_v44 = vld [vmem:[%s7579_s1 + $0x218] ss:$52 sps:$4 sm:$0xff]  }
  0xf2   : >> { %v982_v48 = vrot.slane %v902_v46, 4 }
  0xf3   : >> { %v645_v45 = vsel %vm612_vm0, %v527_v41, %v594_v42  ;;  %v5699_v62 = vld [vmem:[#allocation2 + $0x218] sm:$0xff]  }
  0xf4   : >> { %3835 = vmatmul.mubr.bf16.vlgmr.msra.gmra.mxu0 %v5635_v12  ;;  %745 = vst [vmem:[#allocation2 + $0x210] sm:$0xf] %v645_v45  ;;  %v900_v49 = vpop.permute.xlu0 %899  ;;  %v1032_v54 = vsel %vm612_vm0, %v902_v46, %v982_v48  ;;  %v5672_v48 = vld [vmem:[%s7579_s1 + $0x284] ss:$52 sps:$4 sm:$0xff]  }
  0xf5   : >> { %4012 = vmatmul.mubr.bf16.vlgmr.msra.gmra.mxu1 %v5638_v13  ;;  %3842 = vmatprep.mubr.bf16.mxu0 %v5641_v16  ;;  %v981_v51 = vrot.slane %v900_v49, 4  ;;  %1132 = vst [vmem:[#allocation2 + $0x2a4] sm:$0xf] %v1032_v54  ;;  %v525_v56 = vpop.permute.xlu1 %524  ;;  %v5661_v16 = vld [vmem:[%s7579_s1 + $0x1bc] ss:$52 sps:$4 sm:$0xff]  }
  0xf6   : >> { %4019 = vmatprep.mubr.bf16.mxu1 %v5643_v19  ;;  %4157 = vmatpush1.bf16.msra.mxu0 %v5671_v21  ;;  %v593_v58 = vrot.slane %v525_v56, 4  ;;  %v5674_v54 = vld [vmem:[%s7579_s1 + $0x28c] ss:$52 sps:$4 sm:$0xff]  }
  0xf7   : >> { %4158 = vmatprep.subr.bf16.mxu0 %v5923_v1  ;;  %4334 = vmatpush1.bf16.msra.mxu1 %v5686_v23  ;;  %v1031_v55 = vsel %vm612_vm0, %v900_v49, %v981_v51  ;;  %v5702_v57 = vld [vmem:[#allocation2 + $0x2a8] sm:$0xff]   ;;  %v4956_v23 = vld [vmem:[%s5973_s27 + $0x470] sm:$0xff] }
  0xf8   : >> { %4335 = vmatprep.subr.bf16.mxu1 %v5923_v1  ;;  %1131 = vst [vmem:[#allocation2 + $0x2a0] sm:$0xf] %v1031_v55  ;;  %v523_v59 = vpop.permute.xlu0 %522  ;;  %v644_v63 = vsel %vm612_vm0, %v525_v56, %v593_v58  ;;  %951 = vrot.lane.b32.xlu0 %v4956_v23, %s5924_s28  ;;  %v5688_v23 = vld [vmem:[%s7579_s1 + $0x354] ss:$52 sps:$4 sm:$0xff]  }
  0xf9   : >> { %v592_v61 = vrot.slane %v523_v59, 4  ;;  %744 = vst [vmem:[#allocation2 + $0x20c] sm:$0xf] %v644_v63  ;;  %v898_v2 = vpop.permute.xlu1 %897 }
  0xfa   : >> { %4159 = vmatpush1.bf16.msra.mxu0 %v5678_v31  ;;  %v980_v4 = vrot.slane %v898_v2, 4  ;;  %v5665_v31 = vld [vmem:[%s7579_s1 + $0x21c] ss:$52 sps:$4 sm:$0xff]  }
  0xfb   : >> { %4160 = vmatprep.subr.bf16.mxu0 %v5923_v1  ;;  %4336 = vmatpush1.bf16.msra.mxu1 %v5694_v38  ;;  %v643_v0 = vsel %vm612_vm0, %v523_v59, %v592_v61  ;;  %v5709_v3 = vld [vmem:[#allocation2 + $0x210] sm:$0xff]  }
  0xfc   : >> { %3843 = vmatmul.mubr.bf16.gmra.mxu0 %v5645_v29  ;;  %4337 = vmatprep.subr.bf16.mxu1 %v5923_v1  ;;  %743 = vst [vmem:[#allocation2 + $0x208] sm:$0xf] %v643_v0  ;;  %v896_v5 = vpop.permute.xlu0 %895  ;;  %v1030_v10 = vsel %vm612_vm0, %v898_v2, %v980_v4  ;;  %v4954_v29 = vld [vmem:[%s5973_s27 + $0x460] sm:$0xff]  ;;  %v5677_v0 = vld [vmem:[%s7579_s1 + $0x288] ss:$52 sps:$4 sm:$0xff]  }
  0xfd   : >> { %4020 = vmatmul.mubr.bf16.gmra.mxu1 %v5646_v33  ;;  %3850 = vmatprep.mubr.bf16.mxu0 %v5647_v35  ;;  %v979_v7 = vrot.slane %v896_v5, 4  ;;  %1130 = vst [vmem:[#allocation2 + $0x29c] sm:$0xf] %v1030_v10  ;;  %v521_v12 = vpop.permute.xlu1 %520  ;;  %v5680_v2 = vld [vmem:[%s7579_s1 + $0x2ec] ss:$52 sps:$4 sm:$0xff]  }
  0xfe   : >> { %4027 = vmatprep.mubr.bf16.mxu1 %v5649_v39  ;;  %4161 = vmatpush1.bf16.msra.mxu0 %v5679_v43  ;;  %v591_v14 = vrot.slane %v521_v12, 4 }
  0xff   : >> { %4162 = vmatprep.subr.bf16.mxu0 %v5923_v1  ;;  %4338 = vmatpush1.bf16.msra.mxu1 %v5702_v57  ;;  %v1029_v11 = vsel %vm612_vm0, %v896_v5, %v979_v7  ;;  %v5710_v13 = vld [vmem:[#allocation2 + $0x2a0] sm:$0xff]   ;;  %v5682_v7 = vld [vmem:[%s7579_s1 + $0x2f4] ss:$52 sps:$4 sm:$0xff]  }
 0x100   : >> { %4339 = vmatprep.subr.bf16.mxu1 %v5923_v1  ;;  %1129 = vst [vmem:[#allocation2 + $0x298] sm:$0xf] %v1029_v11  ;;  %v519_v15 = vpop.permute.xlu0 %518  ;;  %v642_v19 = vsel %vm612_vm0, %v521_v12, %v591_v14  ;;  %947 = vrot.lane.b32.xlu0 %v4954_v29, %s5924_s28 }
 0x101   : >> { %v590_v17 = vrot.slane %v519_v15, 4  ;;  %742 = vst [vmem:[#allocation2 + $0x204] sm:$0xf] %v642_v19  ;;  %v894_v21 = vpop.permute.xlu1 %893 }
 0x102   : >> { %4163 = vmatpush1.bf16.msra.mxu0 %v5687_v47  ;;  %v978_v24 = vrot.slane %v894_v21, 4  ;;  %v5670_v47 = vld [vmem:[%s7579_s1 + $0x220] ss:$52 sps:$4 sm:$0xff]  }
 0x103   : >> { %4164 = vmatprep.subr.bf16.mxu0 %v5923_v1  ;;  %4340 = vmatpush1.bf16.msra.mxu1 %v5710_v13  ;;  %v641_v20 = vsel %vm612_vm0, %v519_v15, %v590_v17  ;;  %v5717_v22 = vld [vmem:[#allocation2 + $0x208] sm:$0xff]  }
 0x104   : >> { %3851 = vmatmul.mubr.bf16.gmra.mxu0 %v5651_v50  ;;  %4341 = vmatprep.subr.bf16.mxu1 %v5923_v1  ;;  %741 = vst [vmem:[#allocation2 + $0x200] sm:$0xf] %v641_v20  ;;  %v892_v25 = vpop.permute.xlu0 %891  ;;  %v1028_v32 = vsel %vm612_vm0, %v894_v21, %v978_v24 }
 0x105   : >> { %4028 = vmatmul.mubr.bf16.gmra.mxu1 %v5652_v52  ;;  %3858 = vmatprep.mubr.bf16.mxu0 %v5653_v53  ;;  %v977_v27 = vrot.slane %v892_v25, 4  ;;  %1128 = vst [vmem:[#allocation2 + $0x294] sm:$0xf] %v1028_v32  ;;  %v882_v35 = vpop.permute.xlu1 %881  ;;  %v5690_v32 = vld [vmem:[%s7579_s1 + $0x35c] ss:$52 sps:$4 sm:$0xff]  }
 0x106   : >> { %4035 = vmatprep.mubr.bf16.mxu1 %v5655_v60  ;;  %4165 = vmatpush1.bf16.msra.mxu0 %v5699_v62  ;;  %v972_v37 = vrot.slane %v882_v35, 4  ;;  %v5676_v62 = vld [vmem:[%s7579_s1 + $0x280] ss:$52 sps:$4 sm:$0xff]  }
 0x107   : >> { %4166 = vmatprep.subr.bf16.mxu0 %v5923_v1  ;;  %v1027_v33 = vsel %vm612_vm0, %v892_v25, %v977_v27  ;;  %v5718_v34 = vld [vmem:[#allocation2 + $0x298] sm:$0xff]  }
 0x108   : >> { %1127 = vst [vmem:[#allocation2 + $0x290] sm:$0xf] %v1027_v33  ;;  %v880_v38 = vpop.permute.xlu0 %879  ;;  %4342 = vmatpush1.bf16.msra.mxu1 %v5718_v34  ;;  %v1022_v40 = vsel %vm612_vm0, %v882_v35, %v972_v37 }
 0x109   : >> { %v971_v39 = vrot.slane %v880_v38, 4  ;;  %4343 = vmatprep.subr.bf16.mxu1 %v5923_v1  ;;  %1122 = vst [vmem:[#allocation2 + $0x27c] sm:$0xf] %v1022_v40  ;;  %v890_v43 = vpop.permute.xlu1 %889 }
 0x10a   : >> { %4167 = vmatpush1.bf16.msra.mxu0 %v5709_v3  ;;  %v976_v45 = vrot.slane %v890_v43, 4 }
 0x10b   : >> { %4168 = vmatprep.subr.bf16.mxu0 %v5923_v1  ;;  %v5725_v41 = vld [vmem:[#allocation2 + $0x200] sm:$0xff]   ;;  %v1021_v42 = vsel %vm612_vm0, %v880_v38, %v971_v39 }
 0x10c   : >> { %3859 = vmatmul.mubr.bf16.gmra.mxu0 %v5657_v6  ;;  %1121 = vst [vmem:[#allocation2 + $0x278] sm:$0xf] %v1021_v42  ;;  %v888_v46 = vpop.permute.xlu0 %887  ;;  %v1026_v50 = vsel %vm612_vm0, %v890_v43, %v976_v45  ;;  %v5692_v45 = vld [vmem:[%s7579_s1 + $0x350] ss:$52 sps:$4 sm:$0xff]  }
 0x10d   : >> { %4036 = vmatmul.mubr.bf16.gmra.mxu1 %v5658_v8  ;;  %3866 = vmatprep.mubr.bf16.mxu0 %v5659_v9  ;;  %v975_v49 = vrot.slane %v888_v46, 4  ;;  %1126 = vst [vmem:[#allocation2 + $0x28c] sm:$0xf] %v1026_v50  ;;  %v878_v53 = vpop.permute.xlu1 %877  ;;  %v5695_v50 = vld [vmem:[%s7579_s1 + $0x3bc] ss:$52 sps:$4 sm:$0xff]  }
 0x10e   : >> { %4043 = vmatprep.mubr.bf16.mxu1 %v5661_v16  ;;  %4169 = vmatpush1.bf16.msra.mxu0 %v5717_v22  ;;  %v970_v55 = vrot.slane %v878_v53, 4  ;;  %v5685_v22 = vld [vmem:[%s7579_s1 + $0x2f0] ss:$52 sps:$4 sm:$0xff]  }
 0x10f   : >> { %4170 = vmatprep.subr.bf16.mxu0 %v5923_v1  ;;  %v5726_v51 = vld [vmem:[#allocation2 + $0x290] sm:$0xff]   ;;  %v1025_v52 = vsel %vm612_vm0, %v888_v46, %v975_v49  ;;  %v5693_v49 = vld [vmem:[%s7579_s1 + $0x358] ss:$52 sps:$4 sm:$0xff]  }
 0x110   : >> { %1125 = vst [vmem:[#allocation2 + $0x288] sm:$0xf] %v1025_v52  ;;  %4344 = vmatpush1.bf16.msra.mxu1 %v5726_v51  ;;  %v1020_v58 = vsel %vm612_vm0, %v878_v53, %v970_v55 }
 0x111   : >> { %v876_v56 = vpop.permute.xlu0 %875  ;;  %4345 = vmatprep.subr.bf16.mxu1 %v5923_v1  ;;  %1120 = vst [vmem:[#allocation2 + $0x274] sm:$0xf] %v1020_v58  ;;  %v886_v60 = vpop.permute.xlu1 %885 }
 0x112   : >> { %4171 = vmatpush1.bf16.msra.mxu0 %v5725_v41  ;;  %v969_v57 = vrot.slane %v876_v56, 4  ;;  %v974_v63 = vrot.slane %v886_v60, 4 }
 0x113   : >> { %4172 = vmatprep.subr.bf16.mxu0 %v5923_v1  ;;  %v5734_v61 = vld [vmem:[#allocation2 + $0x278] sm:$0xff]  }
 0x114   : >> { %3867 = vmatmul.mubr.bf16.gmra.mxu0 %v5663_v26  ;;  %v1019_v59 = vsel %vm612_vm0, %v876_v56, %v969_v57  ;;  %v1024_v3 = vsel %vm612_vm0, %v886_v60, %v974_v63  ;;  %v5697_v60 = vld [vmem:[%s7579_s1 + $0x3c4] ss:$52 sps:$4 sm:$0xff]  }
 0x115   : >> { %4044 = vmatmul.mubr.bf16.gmra.mxu1 %v5664_v30  ;;  %3874 = vmatprep.mubr.bf16.mxu0 %v5665_v31  ;;  %1119 = vst [vmem:[#allocation2 + $0x270] sm:$0xf] %v1019_v59  ;;  %1124 = vst [vmem:[#allocation2 + $0x284] sm:$0xf] %v1024_v3  ;;  %v884_v4 = vpop.permute.xlu0 %883  ;;  %v874_v5 = vpop.permute.xlu1 %873 }
 0x116   : >> { %4051 = vmatprep.mubr.bf16.mxu1 %v5667_v36  ;;  %4173 = vmatpush2.bf16.msra.mxu0 %v5734_v61  ;;  %v973_v8 = vrot.slane %v884_v4, 4  ;;  %v968_v9 = vrot.slane %v874_v5, 4 }
 0x117   : >> { %4174 = vmatprep.subr.bf16.mxu0 %v5923_v1  ;;  %v5733_v6 = vld [vmem:[#allocation2 + $0x288] sm:$0xff]  }
 0x118   : >> { %4346 = vmatpush1.bf16.msra.mxu1 %v5733_v6  ;;  %v1023_v11 = vsel %vm612_vm0, %v884_v4, %v973_v8  ;;  %v1018_v12 = vsel %vm612_vm0, %v874_v5, %v968_v9 }
 0x119   : >> { %4347 = vmatprep.subr.bf16.mxu1 %v5923_v1  ;;  %1123 = vst [vmem:[#allocation2 + $0x280] sm:$0xf] %v1023_v11  ;;  %1118 = vst [vmem:[#allocation2 + $0x26c] sm:$0xf] %v1018_v12  ;;  %v872_v14 = vpop.permute.xlu0 %871 }
 0x11a   : >> { %v967_v19 = vrot.slane %v872_v14, 4  ;;  %v946_v20 = vpop.permute.xlu1 %945 }
 0x11b   : >> { %v1004_v24 = vrot.slane %v946_v20, 4 }
 0x11c   : >> { %3875 = vmatmul.mubr.bf16.gmra.mxu0 %v5669_v44  ;;  %v5743_v15 = vld [vmem:[#allocation2 + $0x270] sm:$0xff]   ;;  %v1017_v26 = vsel %vm612_vm0, %v872_v14, %v967_v19  ;;  %v5705_v14 = vld [vmem:[%s7579_s1 + $0x424] ss:$52 sps:$4 sm:$0xff]  }
 0x11d   : >> { %4052 = vmatmul.mubr.bf16.gmra.mxu1 %v5670_v47  ;;  %3882 = vmatprep.mubr.bf16.mxu0 %v5672_v48  ;;  %1117 = vst [vmem:[#allocation2 + $0x268] sm:$0xf] %v1017_v26  ;;  %v1054_v28 = vsel %vm612_vm0, %v946_v20, %v1004_v24  ;;  %v944_v29 = vpop.permute.xlu0 %943 }
 0x11e   : >> { %4059 = vmatprep.mubr.bf16.mxu1 %v5674_v54  ;;  %4175 = vmatpush2.bf16.msra.mxu0 %v5743_v15  ;;  %1154 = vst [vmem:[#allocation2 + $0x2fc] sm:$0xf] %v1054_v28  ;;  %v1003_v33 = vrot.slane %v944_v29, 4  ;;  %v870_v34 = vpop.permute.xlu1 %869 }
 0x11f   : >> { %4176 = vmatprep.subr.bf16.mxu0 %v5923_v1  ;;  %v966_v36 = vrot.slane %v870_v34, 4 }
 0x120   : >> { %v1053_v38 = vsel %vm612_vm0, %v944_v29, %v1003_v33  ;;  %v5735_v39 = vld [vmem:[#allocation2 + $0x280] sm:$0xff]  }
 0x121   : >> { %1153 = vst [vmem:[#allocation2 + $0x2f8] sm:$0xf] %v1053_v38  ;;  %v1016_v41 = vsel %vm612_vm0, %v870_v34, %v966_v36  ;;  %v868_v42 = vpop.permute.xlu0 %867  ;;  %4348 = vmatpush1.bf16.msra.mxu1 %v5735_v39  ;;  %v5703_v39 = vld [vmem:[%s7579_s1 + $0x420] ss:$52 sps:$4 sm:$0xff]  }
 0x122   : >> { %1116 = vst [vmem:[#allocation2 + $0x264] sm:$0xf] %v1016_v41  ;;  %v965_v46 = vrot.slane %v868_v42, 4  ;;  %v942_v47 = vpop.permute.xlu1 %941  ;;  %4349 = vmatprep.subr.bf16.mxu1 %v5923_v1 }
 0x123   : >> { %v1002_v51 = vrot.slane %v942_v47, 4 }
 0x124   : >> { %v3482_v10 = vpop.f32.mrf.mxu0  ;;  %3883 = vmatmul.mubr.bf16.gmra.mxu0 %v5676_v62  ;;  %v1015_v53 = vsel %vm612_vm0, %v868_v42, %v965_v46  ;;  %v5751_v54 = vld [vmem:[#allocation2 + $0x268] sm:$0xff]  }
 0x125   : >> { %v3659_v13 = vpop.f32.mrf.mxu1  ;;  %4060 = vmatmul.mubr.bf16.gmra.mxu1 %v5677_v0  ;;  %3890 = vmatprep.mubr.bf16.mxu0 %v5680_v2  ;;  %1115 = vst [vmem:[#allocation2 + $0x260] sm:$0xf] %v1015_v53  ;;  %v1052_v56 = vsel %vm612_vm0, %v942_v47, %v1002_v51  ;;  %v940_v57 = vpop.permute.xlu0 %939  ;;  %v5706_v42 = vld [vmem:[%s7579_s1 + $0x428] ss:$52 sps:$4 sm:$0xff]  }
 0x126   : >> { %v6720_v16 = vadd.f32 %v3659_v13, %v3482_v10  ;;  %v3484_v17 = vpop.f32.mrf.mxu0  ;;  %4067 = vmatprep.mubr.bf16.mxu1 %v5682_v7  ;;  %1152 = vst [vmem:[#allocation2 + $0x2f4] sm:$0xf] %v1052_v56  ;;  %v1001_v61 = vrot.slane %v940_v57, 4  ;;  %v866_v62 = vpop.permute.xlu1 %865  ;;  %4177 = vmatpush2.bf16.msra.mxu0 %v5751_v54  ;;  %v5700_v10 = vld [vmem:[%s7579_s1 + $0x3b8] ss:$52 sps:$4 sm:$0xff]  }
 0x127   : >> { %v3661_v21 = vpop.f32.mrf.mxu1  ;;  %v964_v0 = vrot.slane %v866_v62, 4  ;;  %4178 = vmatprep.subr.bf16.mxu0 %v5923_v1  ;;  %v5701_v13 = vld [vmem:[%s7579_s1 + $0x3c0] ss:$52 sps:$4 sm:$0xff]  }
 0x128   : >> { %v3485_v25 = vpop.f32.mrf.mxu0  ;;  %v1051_v3 = vsel %vm612_vm0, %v940_v57, %v1001_v61  ;;  %v5742_v4 = vld [vmem:[#allocation2 + $0x2f8] sm:$0xff]  }
 0x129   : >> { %v3662_v27 = vpop.f32.mrf.mxu1  ;;  %1151 = vst [vmem:[#allocation2 + $0x2f0] sm:$0xf] %v1051_v3  ;;  %v1014_v6 = vsel %vm612_vm0, %v866_v62, %v964_v0  ;;  %v864_v7 = vpop.permute.xlu0 %863  ;;  %4350 = vmatpush2.bf16.msra.mxu1 %v5742_v4 }
 0x12a   : >> { %v6734_v30 = vadd.f32 %v3662_v27, %v3485_v25  ;;  %v3487_v31 = vpop.f32.mrf.mxu0  ;;  %1114 = vst [vmem:[#allocation2 + $0x25c] sm:$0xf] %v1014_v6  ;;  %v963_v11 = vrot.slane %v864_v7, 4  ;;  %4351 = vmatprep.subr.bf16.mxu1 %v5923_v1  ;;  %v5708_v25 = vld [vmem:[%s7579_s1 + $0x42c] ss:$52 sps:$4 sm:$0xff]  }
 0x12b   : >> { %v3664_v35 = vpop.f32.mrf.mxu1 }
 0x12c   : >> { %v3490_v37 = vpop.f32.mrf.mxu0  ;;  %3891 = vmatmul.mubr.bf16.gmra.mxu0 %v5684_v18  ;;  %v1013_v17 = vsel %vm612_vm0, %v864_v7, %v963_v11  ;;  %v938_v18 = vpop.permute.xlu1 %937  ;;  %v5753_v19 = vld [vmem:[#allocation2 + $0x260] sm:$0xff]   ;;  %v5711_v11 = vld [vmem:[%s7579_s1 + $0x488] ss:$52 sps:$4 sm:$0xff]  }
 0x12d   : >> { %v3667_v40 = vpop.f32.mrf.mxu1  ;;  %4068 = vmatmul.mubr.bf16.gmra.mxu1 %v5685_v22  ;;  %3898 = vmatprep.mubr.bf16.mxu0 %v5688_v23  ;;  %1113 = vst [vmem:[#allocation2 + $0x258] sm:$0xf] %v1013_v17  ;;  %v1000_v21 = vrot.slane %v938_v18, 4  ;;  %v936_v22 = vpop.permute.xlu0 %935  ;;  %v5721_v17 = vld [vmem:[%s7579_s1 + $0x4f4] ss:$52 sps:$4 sm:$0xff]  }
 0x12e   : >> { %v6741_v43 = vadd.f32 %v3667_v40, %v3490_v37  ;;  %v3492_v44 = vpop.f32.mrf.mxu0  ;;  %4075 = vmatprep.mubr.bf16.mxu1 %v5690_v32  ;;  %v999_v26 = vrot.slane %v936_v22, 4  ;;  %4179 = vmatpush2.bf16.msra.mxu0 %v5753_v19 }
 0x12f   : >> { %v3669_v48 = vpop.f32.mrf.mxu1  ;;  %v1050_v28 = vsel %vm612_vm0, %v938_v18, %v1000_v21  ;;  %4180 = vmatprep.subr.bf16.mxu0 %v5923_v1  ;;  %v5713_v44 = vld [vmem:[%s7579_s1 + $0x48c] ss:$52 sps:$4 sm:$0xff]  }
 0x130   : >> { %v3493_v52 = vpop.f32.mrf.mxu0  ;;  %1150 = vst [vmem:[#allocation2 + $0x2ec] sm:$0xf] %v1050_v28  ;;  %v1049_v31 = vsel %vm612_vm0, %v936_v22, %v999_v26  ;;  %v561_v32 = vpop.permute.xlu1 %560  ;;  %v5744_v33 = vld [vmem:[#allocation2 + $0x2f0] sm:$0xff]  }
 0x131   : >> { %v3670_v55 = vpop.f32.mrf.mxu1  ;;  %1149 = vst [vmem:[#allocation2 + $0x2e8] sm:$0xf] %v1049_v31  ;;  %v611_v35 = vrot.slane %v561_v32, 4  ;;  %v559_v36 = vpop.permute.xlu0 %558  ;;  %4352 = vmatpush2.bf16.msra.mxu1 %v5744_v33 }
 0x132   : >> { %v6755_v58 = vadd.f32 %v3670_v55, %v3493_v52  ;;  %v3495_v59 = vpop.f32.mrf.mxu0  ;;  %v610_v40 = vrot.slane %v559_v36, 4  ;;  %4353 = vmatprep.subr.bf16.mxu1 %v5923_v1  ;;  %v5716_v55 = vld [vmem:[%s7579_s1 + $0x494] ss:$52 sps:$4 sm:$0xff]  }
 0x133   : >> { %v3672_v63 = vpop.f32.mrf.mxu1 }
 0x134   : >> { %v3498_v2 = vpop.f32.mrf.mxu0  ;;  %3899 = vmatmul.mubr.bf16.gmra.mxu0 %v5692_v45  ;;  %v662_v45 = vsel %vm612_vm0, %v561_v32, %v611_v35  ;;  %v661_v47 = vsel %vm612_vm0, %v559_v36, %v610_v40  ;;  %v934_v48 = vpop.permute.xlu1 %933  ;;  %v5719_v40 = vld [vmem:[%s7579_s1 + $0x4f0] ss:$52 sps:$4 sm:$0xff]  }
 0x135   : >> { %v3675_v5 = vpop.f32.mrf.mxu1  ;;  %4076 = vmatmul.mubr.bf16.gmra.mxu1 %v5693_v49  ;;  %3906 = vmatprep.mubr.bf16.mxu0 %v5695_v50  ;;  %762 = vst [vmem:[#allocation2 + $0x254] sm:$0xf] %v662_v45  ;;  %v5761_v49 = vld [vmem:[#allocation2 + $0x258] sm:$0xff]   ;;  %761 = vst [vmem:[#allocation2 + $0x250] sm:$0xf] %v661_v47  ;;  %v998_v51 = vrot.slane %v934_v48, 4  ;;  %v932_v52 = vpop.permute.xlu0 %931 }
 0x136   : >> { %v6763_v8 = vadd.f32 %v3675_v5, %v3498_v2  ;;  %v3500_v9 = vpop.f32.mrf.mxu0  ;;  %4083 = vmatprep.mubr.bf16.mxu1 %v5697_v60  ;;  %v997_v56 = vrot.slane %v932_v52, 4  ;;  %4181 = vmatpush2.bf16.msra.mxu0 %v5761_v49  ;;  %v5729_v45 = vld [vmem:[%s7579_s1 + $0x55c] ss:$52 sps:$4 sm:$0xff]  }
 0x137   : >> { %v3677_v12 = vpop.f32.mrf.mxu1  ;;  %v1048_v59 = vsel %vm612_vm0, %v934_v48, %v998_v51  ;;  %4182 = vmatprep.subr.bf16.mxu0 %v5923_v1 }
 0x138   : >> { %v3501_v15 = vpop.f32.mrf.mxu0  ;;  %1148 = vst [vmem:[#allocation2 + $0x2e4] sm:$0xf] %v1048_v59  ;;  %v1047_v61 = vsel %vm612_vm0, %v932_v52, %v997_v56  ;;  %v557_v62 = vpop.permute.xlu1 %556  ;;  %v5752_v63 = vld [vmem:[#allocation2 + $0x2e8] sm:$0xff]  }
 0x139   : >> { %v3678_v20 = vpop.f32.mrf.mxu1  ;;  %1147 = vst [vmem:[#allocation2 + $0x2e0] sm:$0xf] %v1047_v61  ;;  %v609_v2 = vrot.slane %v557_v62, 4  ;;  %v555_v3 = vpop.permute.xlu0 %554  ;;  %4354 = vmatpush2.bf16.msra.mxu1 %v5752_v63 }
 0x13a   : >> { %v6776_v23 = vadd.f32 %v3678_v20, %v3501_v15  ;;  %v3503_v24 = vpop.f32.mrf.mxu0  ;;  %v608_v6 = vrot.slane %v555_v3, 4  ;;  %4355 = vmatprep.subr.bf16.mxu1 %v5923_v1  ;;  %v5714_v15 = vld [vmem:[%s7579_s1 + $0x490] ss:$52 sps:$4 sm:$0xff]  }
 0x13b   : >> { %v3680_v27 = vpop.f32.mrf.mxu1  ;;  %v660_v9 = vsel %vm612_vm0, %v557_v62, %v609_v2  ;;  %v5724_v20 = vld [vmem:[%s7579_s1 + $0x4fc] ss:$52 sps:$4 sm:$0xff]  }
 0x13c   : >> { %v3506_v29 = vpop.f32.mrf.mxu0  ;;  %3907 = vmatmul.mubr.bf16.gmra.mxu0 %v5700_v10  ;;  %760 = vst [vmem:[#allocation2 + $0x24c] sm:$0xf] %v660_v9  ;;  %v659_v12 = vsel %vm612_vm0, %v555_v3, %v608_v6  ;;  %v930_v21 = vpop.permute.xlu1 %929  ;;  %v5727_v9 = vld [vmem:[%s7579_s1 + $0x558] ss:$52 sps:$4 sm:$0xff]  }
 0x13d   : >> { %v3683_v34 = vpop.f32.mrf.mxu1  ;;  %4084 = vmatmul.mubr.bf16.gmra.mxu1 %v5701_v13  ;;  %3914 = vmatprep.mubr.bf16.mxu0 %v5705_v14  ;;  %v5763_v13 = vld [vmem:[#allocation2 + $0x250] sm:$0xff]   ;;  %759 = vst [vmem:[#allocation2 + $0x248] sm:$0xf] %v659_v12  ;;  %v996_v24 = vrot.slane %v930_v21, 4 }
 0x13e   : >> { %v6784_v37 = vadd.f32 %v3683_v34, %v3506_v29  ;;  %v3508_v38 = vpop.f32.mrf.mxu0  ;;  %4091 = vmatprep.mubr.bf16.mxu1 %v5708_v25  ;;  %4183 = vmatpush2.bf16.msra.mxu0 %v5763_v13  ;;  %v928_v25 = vpop.permute.xlu0 %927  ;;  %v5730_v12 = vld [vmem:[%s7579_s1 + $0x560] ss:$52 sps:$4 sm:$0xff]   ;;  %v5738_v13 = vld [vmem:[%s7579_s1 + $0x5c4] ss:$52 sps:$4 sm:$0xff]  }
 0x13f   : >> { %v3685_v41 = vpop.f32.mrf.mxu1  ;;  %4184 = vmatprep.subr.bf16.mxu0 %v5923_v1  ;;  %v995_v27 = vrot.slane %v928_v25, 4  ;;  %v1046_v31 = vsel %vm612_vm0, %v930_v21, %v996_v24 }
 0x140   : >> { %v3509_v46 = vpop.f32.mrf.mxu0  ;;  %v5754_v28 = vld [vmem:[#allocation2 + $0x2e0] sm:$0xff]   ;;  %1146 = vst [vmem:[#allocation2 + $0x2dc] sm:$0xf] %v1046_v31  ;;  %v553_v35 = vpop.permute.xlu1 %552 }
 0x141   : >> { %v3686_v50 = vpop.f32.mrf.mxu1  ;;  %v1045_v34 = vsel %vm612_vm0, %v928_v25, %v995_v27  ;;  %4356 = vmatpush2.bf16.msra.mxu1 %v5754_v28  ;;  %v607_v38 = vrot.slane %v553_v35, 4 }
 0x142   : >> { %v6798_v53 = vadd.f32 %v3686_v50, %v3509_v46  ;;  %v3511_v54 = vpop.f32.mrf.mxu0  ;;  %1145 = vst [vmem:[#allocation2 + $0x2d8] sm:$0xf] %v1045_v34  ;;  %4357 = vmatprep.subr.bf16.mxu1 %v5923_v1  ;;  %v551_v47 = vpop.permute.xlu0 %550  ;;  %v5732_v50 = vld [vmem:[%s7579_s1 + $0x564] ss:$52 sps:$4 sm:$0xff]  }
 0x143   : >> { %v3688_v57 = vpop.f32.mrf.mxu1  ;;  %v658_v46 = vsel %vm612_vm0, %v553_v35, %v607_v38  ;;  %v606_v51 = vrot.slane %v551_v47, 4 }
 0x144   : >> { %v3514_v60 = vpop.f32.mrf.mxu0  ;;  %3915 = vmatmul.mubr.bf16.gmra.mxu0 %v5703_v39  ;;  %v5771_v41 = vld [vmem:[#allocation2 + $0x248] sm:$0xff]   ;;  %758 = vst [vmem:[#allocation2 + $0x244] sm:$0xf] %v658_v46  ;;  %v926_v52 = vpop.permute.xlu1 %925 }
 0x145   : >> { %v3691_v0 = vpop.f32.mrf.mxu1  ;;  %4092 = vmatmul.mubr.bf16.gmra.mxu1 %v5706_v42  ;;  %3922 = vmatprep.mubr.bf16.mxu0 %v5713_v44  ;;  %v5722_v44 = vld [vmem:[%s7579_s1 + $0x4f8] ss:$52 sps:$4 sm:$0xff]   ;;  %v657_v57 = vsel %vm612_vm0, %v551_v47, %v606_v51 }
 0x146   : >> { %v6806_v4 = vadd.f32 %v3691_v0, %v3514_v60  ;;  %v3516_v5 = vpop.f32.mrf.mxu0  ;;  %4099 = vmatprep.mubr.bf16.mxu1 %v5716_v55  ;;  %4185 = vmatpush2.bf16.msra.mxu0 %v5771_v41  ;;  %v994_v55 = vrot.slane %v926_v52, 4  ;;  %757 = vst [vmem:[#allocation2 + $0x240] sm:$0xf] %v657_v57  ;;  %v924_v61 = vpop.permute.xlu0 %923 }
 0x147   : >> { %v3693_v7 = vpop.f32.mrf.mxu1  ;;  %4186 = vmatprep.subr.bf16.mxu0 %v5923_v1  ;;  %v993_v0 = vrot.slane %v924_v61, 4 }
 0x148   : >> { %v3517_v10 = vpop.f32.mrf.mxu0  ;;  %v1044_v60 = vsel %vm612_vm0, %v926_v52, %v994_v55  ;;  %v922_v2 = vpop.permute.xlu1 %921 }
 0x149   : >> { %v3694_v14 = vpop.f32.mrf.mxu1  ;;  %1144 = vst [vmem:[#allocation2 + $0x2d4] sm:$0xf] %v1044_v60  ;;  %v5762_v3 = vld [vmem:[#allocation2 + $0x2d8] sm:$0xff]   ;;  %v992_v6 = vrot.slane %v922_v2, 4 }
 0x14a   : >> { %v6820_v18 = vadd.f32 %v3694_v14, %v3517_v10  ;;  %v3519_v19 = vpop.f32.mrf.mxu0  ;;  %v1043_v10 = vsel %vm612_vm0, %v924_v61, %v993_v0  ;;  %4358 = vmatpush2.bf16.msra.mxu1 %v5762_v3 }
 0x14b   : >> { %v3696_v22 = vpop.f32.mrf.mxu1  ;;  %1143 = vst [vmem:[#allocation2 + $0x2d0] sm:$0xf] %v1043_v10  ;;  %v1042_v14 = vsel %vm612_vm0, %v922_v2, %v992_v6  ;;  %4359 = vmatprep.subr.bf16.mxu1 %v5923_v1 }
 0x14c   : >> { %v3522_v26 = vpop.f32.mrf.mxu0  ;;  %3923 = vmatmul.mubr.bf16.gmra.mxu0 %v5711_v11  ;;  %1142 = vst [vmem:[#allocation2 + $0x2cc] sm:$0xf] %v1042_v14  ;;  %v918_v22 = vpop.permute.xlu1 %917 }
 0x14d   : >> { %v3699_v29 = vpop.f32.mrf.mxu1  ;;  %4100 = vmatmul.mubr.bf16.gmra.mxu1 %v5714_v15  ;;  %3930 = vmatprep.mubr.bf16.mxu0 %v5721_v17  ;;  %v920_v15 = vpop.permute.xlu0 %919  ;;  %v990_v25 = vrot.slane %v918_v22, 4 }
 0x14e   : >> { %v6827_v32 = vadd.f32 %v3699_v29, %v3522_v26  ;;  %v3524_v33 = vpop.f32.mrf.mxu0  ;;  %4107 = vmatprep.mubr.bf16.mxu1 %v5724_v20  ;;  %v5741_v20 = vld [vmem:[%s7579_s1 + $0x5cc] ss:$52 sps:$4 sm:$0xff]   ;;  %v991_v21 = vrot.slane %v920_v15, 4 }
 0x14f   : >> { %v3701_v36 = vpop.f32.mrf.mxu1  ;;  %v6868_v26 = vld [vmem:[#allocation2 + $0x320] ss:$0 sps:$4 sm:$0xff]   ;;  %v1040_v33 = vsel %vm612_vm0, %v918_v22, %v990_v25 }
 0x150   : >> { %v3525_v39 = vpop.f32.mrf.mxu0  ;;  %v1041_v28 = vsel %vm612_vm0, %v920_v15, %v991_v21  ;;  %v5773_v29 = vld [vmem:[#allocation2 + $0x240] sm:$0xff]   ;;  %1140 = vst [vmem:[#allocation2 + $0x2c4] sm:$0xf] %v1040_v33 }
 0x151   : >> { %v3702_v42 = vpop.f32.mrf.mxu1  ;;  %1141 = vst [vmem:[#allocation2 + $0x2c8] sm:$0xf] %v1041_v28  ;;  %v916_v34 = vpop.permute.xlu0 %915  ;;  %4187 = vmatpush2.bf16.msra.mxu0 %v5773_v29 }
 0x152   : >> { %v6841_v48 = vadd.f32 %v3702_v42, %v3525_v39  ;;  %v3527_v49 = vpop.f32.mrf.mxu0  ;;  %v989_v38 = vrot.slane %v916_v34, 4  ;;  %v962_v39 = vpop.permute.xlu1 %961  ;;  %5440 = vmatprep.subr.msk.bf16.mxu0 %vm3444_vm1, %v6868_v26  ;;  %v5764_v46 = vld [vmem:[#allocation2 + $0x2d0] sm:$0xff]  }
 0x153   : >> { %v3704_v54 = vpop.f32.mrf.mxu1  ;;  %v1012_v41 = vrot.slane %v962_v39, 4  ;;  %v5739_v49 = vld [vmem:[%s7579_s1 + $0x5c8] ss:$52 sps:$4 sm:$0xff]   ;;  %4360 = vmatpush2.bf16.msra.mxu1 %v5764_v46 }
 0x154   : >> { %v3530_v56 = vpop.f32.mrf.mxu0  ;;  %3931 = vmatmul.mubr.bf16.gmra.mxu0 %v5719_v40  ;;  %4361 = vmatprep.subr.bf16.mxu1 %v5923_v1 }
 0x155   : >> { %v3707_v59 = vpop.f32.mrf.mxu1  ;;  %4108 = vmatmul.mubr.bf16.gmra.mxu1 %v5722_v44  ;;  %3938 = vmatprep.mubr.bf16.mxu0 %v5729_v45  ;;  %v5736_v44 = vld [vmem:[%s7579_s1 + $0x5c0] ss:$52 sps:$4 sm:$0xff]   ;;  %v1039_v45 = vsel %vm612_vm0, %v916_v34, %v989_v38  ;;  %v1062_v51 = vsel %vm612_vm0, %v962_v39, %v1012_v41  ;;  %v960_v52 = vpop.permute.xlu0 %959  ;;  %v5758_v39 = vld [vmem:[%s7579_s1 + $0x698] ss:$52 sps:$4 sm:$0xff]  }
 0x156   : >> { %v6849_v62 = vadd.f32 %v3707_v59, %v3530_v56  ;;  %v3532_v63 = vpop.f32.mrf.mxu0  ;;  %4115 = vmatprep.mubr.bf16.mxu1 %v5732_v50  ;;  %v5747_v50 = vld [vmem:[%s7579_s1 + $0x62c] ss:$52 sps:$4 sm:$0xff]   ;;  %1139 = vst [vmem:[#allocation2 + $0x2c0] sm:$0xf] %v1039_v45  ;;  %v5750_v56 = vld [vmem:[%s7579_s1 + $0x634] ss:$52 sps:$4 sm:$0xff]   ;;  %v958_v15 = vpop.permute.xlu1 %957 }
 0x157   : >> { %v3709_v5 = vpop.f32.mrf.mxu1  ;;  %1162 = vst [vmem:[#allocation2 + $0x31c] sm:$0xf] %v1062_v51  ;;  %v1011_v57 = vrot.slane %v960_v52, 4 }
 0x158   : >> { %v3533_v7 = vpop.f32.mrf.mxu0  ;;  %v5772_v61 = vld [vmem:[#allocation2 + $0x2c8] sm:$0xff]  }
 0x159   : >> { %v3710_v11 = vpop.f32.mrf.mxu1  ;;  %v1061_v63 = vsel %vm612_vm0, %v960_v52, %v1011_v57  ;;  %4362 = vmatpush2.bf16.msra.mxu1 %v5772_v61  ;;  %v956_v21 = vpop.permute.xlu0 %955  ;;  %v5768_v57 = vld [vmem:[%s7579_s1 + $0x700] ss:$52 sps:$4 sm:$0xff]  }
 0x15a   : >> { %v6863_v17 = vadd.f32 %v3710_v11, %v3533_v7  ;;  %v3535_v19 = vpop.f32.mrf.mxu0  ;;  %1161 = vst [vmem:[#allocation2 + $0x318] sm:$0xf] %v1061_v63  ;;  %4363 = vmatprep.subr.bf16.mxu1 %v5923_v1  ;;  %v5745_v7 = vld [vmem:[%s7579_s1 + $0x628] ss:$52 sps:$4 sm:$0xff]   ;;  %v5748_v11 = vld [vmem:[%s7579_s1 + $0x630] ss:$52 sps:$4 sm:$0xff]  }
 0x15b   : >> { %v3712_v24 = vpop.f32.mrf.mxu1  ;;  %v5760_v1 = vld [vmem:[%s7579_s1 + $0x69c] ss:$52 sps:$4 sm:$0xff]   ;;  %v5780_v63 = vld [vmem:[%s7579_s1 + $0x2c] ss:$52 sps:$4 sm:$0xff]  }
 0x15c   : >> { %v3538_v27 = vpop.f32.mrf.mxu0  ;;  %3939 = vmatmul.mubr.bf16.gmra.mxu0 %v5727_v9  ;;  %v1009_v24 = vrot.slane %v956_v21, 4 }
 0x15d   : >> { %v3715_v31 = vpop.f32.mrf.mxu1  ;;  %4116 = vmatmul.mubr.bf16.gmra.mxu1 %v5730_v12  ;;  %3946 = vmatprep.mubr.bf16.mxu0 %v5738_v13  ;;  %v5774_v9 = vld [vmem:[#allocation2 + $0x2c0] sm:$0xff]   ;;  %v5757_v12 = vld [vmem:[%s7579_s1 + $0x694] ss:$52 sps:$4 sm:$0xff]  }
 0x15e   : >> { %v6872_v35 = vadd.f32 %v3715_v31, %v3538_v27  ;;  %v3540_v36 = vpop.f32.mrf.mxu0  ;;  %4123 = vmatprep.mubr.bf16.mxu1 %v5741_v20  ;;  %4364 = vmatpush2.bf16.msra.mxu1 %v5774_v9  ;;  %v1010_v20 = vrot.slane %v958_v15, 4  ;;  %v1059_v31 = vsel %vm612_vm0, %v956_v21, %v1009_v24  ;;  %v954_v9 = vpop.permute.xlu1 %953 }
 0x15f   : >> { %v3717_v40 = vpop.f32.mrf.mxu1  ;;  %5441 = vmatprep.subr.msk.bf16.mxu1 %vm3444_vm1, %v6868_v26  ;;  %1159 = vst [vmem:[#allocation2 + $0x310] sm:$0xf] %v1059_v31  ;;  %v5755_v36 = vld [vmem:[%s7579_s1 + $0x690] ss:$52 sps:$4 sm:$0xff]  }
 0x160   : >> { %v3541_v42 = vpop.f32.mrf.mxu0  ;;  %v1060_v27 = vsel %vm612_vm0, %v958_v15, %v1010_v20  ;;  %v5767_v40 = vld [vmem:[%s7579_s1 + $0x6fc] ss:$52 sps:$4 sm:$0xff]  }
 0x161   : >> { %v3718_v47 = vpop.f32.mrf.mxu1  ;;  %1160 = vst [vmem:[#allocation2 + $0x314] sm:$0xf] %v1060_v27  ;;  %v5778_v15 = vld [vmem:[%s7579_s1 + $0x28] ss:$52 sps:$4 sm:$0xff]  }
 0x162   : >> { %v6887_v54 = vadd.f32 %v3718_v47, %v3541_v42  ;;  %v3543_v55 = vpop.f32.mrf.mxu0 }
 0x163   : >> { %v3720_v59 = vpop.f32.mrf.mxu1  ;;  %v5765_v55 = vld [vmem:[%s7579_s1 + $0x6f8] ss:$52 sps:$4 sm:$0xff]  }
 0x164   : >> { %v3546_v60 = vpop.f32.mrf.mxu0  ;;  %3947 = vmatmul.mubr.bf16.gmra.mxu0 %v5736_v44  ;;  %v5770_v44 = vld [vmem:[%s7579_s1 + $0x704] ss:$52 sps:$4 sm:$0xff]  }
 0x165   : >> { %v3723_v0 = vpop.f32.mrf.mxu1  ;;  %4124 = vmatmul.mubr.bf16.gmra.mxu1 %v5739_v49  ;;  %3954 = vmatprep.mubr.bf16.mxu0 %v5747_v50  ;;  %v5777_v59 = vld [vmem:[%s7579_s1 + $0x24] ss:$52 sps:$4 sm:$0xff]  }
 0x166   : >> { %v6894_v2 = vadd.f32 %v3723_v0, %v3546_v60  ;;  %v3548_v3 = vpop.f32.mrf.mxu0  ;;  %4131 = vmatprep.mubr.bf16.mxu1 %v5750_v56 }
 0x167   : >> { %v3725_v5 = vpop.f32.mrf.mxu1 }
 0x168   : >> { %v3549_v6 = vpop.f32.mrf.mxu0 }
 0x169   : >> { %v3726_v10 = vpop.f32.mrf.mxu1 }
 0x16a   : >> { %v6906_v13 = vadd.f32 %v3726_v10, %v3549_v6  ;;  %v3551_v14 = vpop.f32.mrf.mxu0  ;;  %v952_v21 = vpop.permute.xlu0 %951 }
 0x16b   : >> { %v3728_v19 = vpop.f32.mrf.mxu1  ;;  %v5775_v14 = vld [vmem:[%s7579_s1 + $0x20] ss:$52 sps:$4 sm:$0xff]   ;;  %v1007_v27 = vrot.slane %v952_v21, 4 }
 0x16c   : >> { %v3554_v22 = vpop.f32.mrf.mxu0  ;;  %3955 = vmatmul.mubr.bf16.gmra.mxu0 %v5745_v7  ;;  %v5783_v19 = vld [vmem:[%s7579_s1 + $0x8c] ss:$52 sps:$4 sm:$0xff]  }
 0x16d   : >> { %v3731_v25 = vpop.f32.mrf.mxu1  ;;  %4132 = vmatmul.mubr.bf16.gmra.mxu1 %v5748_v11  ;;  %3962 = vmatprep.mubr.bf16.mxu0 %v5757_v12  ;;  %v1008_v11 = vrot.slane %v954_v9, 4 }
 0x16e   : >> { %v6914_v28 = vadd.f32 %v3731_v25, %v3554_v22  ;;  %v3556_v29 = vpop.f32.mrf.mxu0  ;;  %4139 = vmatprep.mubr.bf16.mxu1 %v5760_v1  ;;  %v5786_v25 = vld [vmem:[%s7579_s1 + $0x94] ss:$52 sps:$4 sm:$0xff]  }
 0x16f   : >> { %v3733_v33 = vpop.f32.mrf.mxu1  ;;  %v1058_v20 = vsel %vm612_vm0, %v954_v9, %v1008_v11  ;;  %v950_v29 = vpop.permute.xlu1 %949 }
 0x170   : >> { %v3557_v34 = vpop.f32.mrf.mxu0  ;;  %1158 = vst [vmem:[#allocation2 + $0x30c] sm:$0xf] %v1058_v20  ;;  %v3446_v33 = vsel %vm3444_vm1, %v6868_v26, 0  ;;  %v5790_v20 = vld [vmem:[%s7579_s1 + $0xf8] ss:$52 sps:$4 sm:$0xff]  }
 0x171   : >> { %v3734_v38 = vpop.f32.mrf.mxu1 }
 0x172   : >> { %v6926_v41 = vadd.f32 %v3734_v38, %v3557_v34  ;;  %v3559_v42 = vpop.f32.mrf.mxu0  ;;  %v5836_v34 = vld [vmem:[#allocation2 + $0x318] sm:$0xff]  }
 0x173   : >> { %v3736_v45 = vpop.f32.mrf.mxu1 }
 0x174   : >> { %v3562_v46 = vpop.f32.mrf.mxu0  ;;  %3963 = vmatmul.mubr.bf16.gmra.mxu0 %v5755_v36  ;;  %v1006_v36 = vrot.slane %v950_v29, 4 }
 0x175   : >> { %v3739_v47 = vpop.f32.mrf.mxu1  ;;  %4140 = vmatmul.mubr.bf16.gmra.mxu1 %v5758_v39  ;;  %3970 = vmatprep.mubr.bf16.mxu0 %v5767_v40  ;;  %v1057_v39 = vsel %vm612_vm0, %v952_v21, %v1007_v27  ;;  %v5795_v21 = vld [vmem:[%s7579_s1 + $0x15c] ss:$52 sps:$4 sm:$0xff]   ;;  %v5798_v27 = vld [vmem:[%s7579_s1 + $0x164] ss:$52 sps:$4 sm:$0xff]  }
 0x176   : >> { %v6931_v49 = vadd.f32 %v3739_v47, %v3562_v46  ;;  %v3564_v50 = vpop.f32.mrf.mxu0  ;;  %4147 = vmatprep.mubr.bf16.mxu1 %v5770_v44  ;;  %1157 = vst [vmem:[#allocation2 + $0x308] sm:$0xf] %v1057_v39  ;;  %v1056_v42 = vsel %vm612_vm0, %v950_v29, %v1006_v36  ;;  %v948_v44 = vpop.permute.xlu0 %947 }
 0x177   : >> { %v3741_v51 = vpop.f32.mrf.mxu1  ;;  %1156 = vst [vmem:[#allocation2 + $0x304] sm:$0xf] %v1056_v42  ;;  %v1005_v26 = vrot.slane %v948_v44, 4  ;;  %v5861_v50 = vld [vmem:[#allocation2 + $0x310] sm:$0xff]  }
 0x178   : >> { %v3565_v52 = vpop.f32.mrf.mxu0 }
 0x179   : >> { %v3742_v56 = vpop.f32.mrf.mxu1 }
 0x17a   : >> { %v6942_v60 = vadd.f32 %v3742_v56, %v3565_v52  ;;  %v3567_v61 = vpop.f32.mrf.mxu0  ;;  %v5781_v52 = vld [vmem:[%s7579_s1 + $0x88] ss:$52 sps:$4 sm:$0xff]  }
 0x17b   : >> { %v3744_v0 = vpop.f32.mrf.mxu1 }
 0x17c   : >> { %v3570_v3 = vpop.f32.mrf.mxu0  ;;  %3971 = vmatmul.mubr.bf16.gmra.mxu0 %v5765_v55  ;;  %v1055_v55 = vsel %vm612_vm0, %v948_v44, %v1005_v26  ;;  %v5792_v0 = vld [vmem:[%s7579_s1 + $0xfc] ss:$52 sps:$4 sm:$0xff]   ;;  %v5796_v44 = vld [vmem:[%s7579_s1 + $0x160] ss:$52 sps:$4 sm:$0xff]  }
 0x17d   : >> { %v3747_v5 = vpop.f32.mrf.mxu1  ;;  %4148 = vmatmul.mubr.bf16.gmra.mxu1 %v5768_v57  ;;  %4188 = vmatprep.mubr.bf16.mxu0 %v5777_v59  ;;  %v5784_v57 = vld [vmem:[%s7579_s1 + $0x90] ss:$52 sps:$4 sm:$0xff]   ;;  %v5789_v59 = vld [vmem:[%s7579_s1 + $0xf4] ss:$52 sps:$4 sm:$0xff]   ;;  %1155 = vst [vmem:[#allocation2 + $0x300] sm:$0xf] %v1055_v55 }
 0x17e   : >> { %v6947_v6 = vadd.f32 %v3747_v5, %v3570_v3  ;;  %v3572_v7 = vpop.f32.mrf.mxu0  ;;  %4365 = vmatprep.mubr.bf16.mxu1 %v5780_v63 }
 0x17f   : >> { %v3749_v10 = vpop.f32.mrf.mxu1  ;;  %v5880_v7 = vld [vmem:[#allocation2 + $0x308] sm:$0xff]  }
 0x180   : >> { %v3573_v12 = vpop.f32.mrf.mxu0 }
 0x181   : >> { %v3750_v1 = vpop.f32.mrf.mxu1 }
 0x182   : >> { %v6959_v22 = vadd.f32 %v3750_v1, %v3573_v12  ;;  %v3575_v24 = vpop.f32.mrf.mxu0  ;;  %v5787_v1 = vld [vmem:[%s7579_s1 + $0xf0] ss:$52 sps:$4 sm:$0xff]  }
 0x183   : >> { %v3752_v31 = vpop.f32.mrf.mxu1 }
 0x184   : >> { %v3578_v38 = vpop.f32.mrf.mxu0  ;;  %4189 = vmatmul.mubr.bf16.vlgmr.msra.gmra.mxu0 %v5775_v14 }
 0x185   : >> { %v3755_v40 = vpop.f32.mrf.mxu1  ;;  %4366 = vmatmul.mubr.bf16.vlgmr.msra.gmra.mxu1 %v5778_v15  ;;  %4196 = vmatprep.mubr.bf16.mxu0 %v5783_v19  ;;  %v5887_v15 = vld [vmem:[#allocation2 + $0x300] sm:$0xff]  }
 0x186   : >> { %v6968_v45 = vadd.f32 %v3755_v40, %v3578_v38  ;;  %v3580_v46 = vpop.f32.mrf.mxu0  ;;  %4373 = vmatprep.mubr.bf16.mxu1 %v5786_v25  ;;  %5385 = vmatpush3.bf16.msra.mxu0 %v3446_v33  ;;  %v5793_v40 = vld [vmem:[%s7579_s1 + $0x158] ss:$52 sps:$4 sm:$0xff]  }
 0x187   : >> { %v3757_v47 = vpop.f32.mrf.mxu1  ;;  %5435 = vmatpush3.bf16.msra.mxu1 %v3446_v33  ;;  %5386 = vmatprep.subr.bf16.mxu0 %v5836_v34  ;;  %v5801_v46 = vld [vmem:[%s7579_s1 + $0x1c4] ss:$52 sps:$4 sm:$0xff]  }
 0x188   : >> { %v3581_v51 = vpop.f32.mrf.mxu0  ;;  %5431 = vmatprep.subr.bf16.mxu1 %v5836_v34 }
 0x189   : >> { %v3758_v56 = vpop.f32.mrf.mxu1 }
 0x18a   : >> { %v6980_v61 = vadd.f32 %v3758_v56, %v3581_v51  ;;  %v3583_v63 = vpop.f32.mrf.mxu0  ;;  %5387 = vmatpush3.bf16.msra.mxu0 %v5836_v34 }
 0x18b   : >> { %v3760_v3 = vpop.f32.mrf.mxu1  ;;  %5436 = vmatpush3.bf16.msra.mxu1 %v5836_v34  ;;  %5388 = vmatprep.subr.bf16.mxu0 %v5861_v50 }
 0x18c   : >> { %v3586_v5 = vpop.f32.mrf.mxu0  ;;  %4197 = vmatmul.mubr.bf16.gmra.mxu0 %v5781_v52  ;;  %5432 = vmatprep.subr.bf16.mxu1 %v5861_v50 }
 0x18d   : >> { %v3763_v9 = vpop.f32.mrf.mxu1  ;;  %4374 = vmatmul.mubr.bf16.gmra.mxu1 %v5784_v57  ;;  %4204 = vmatprep.mubr.bf16.mxu0 %v5789_v59 }
 0x18e   : >> { %v6985_v10 = vadd.f32 %v3763_v9, %v3586_v5  ;;  %v3588_v11 = vpop.f32.mrf.mxu0  ;;  %4381 = vmatprep.mubr.bf16.mxu1 %v5792_v0  ;;  %5389 = vmatpush3.bf16.msra.mxu0 %v5861_v50  ;;  %v5799_v0 = vld [vmem:[%s7579_s1 + $0x1c0] ss:$52 sps:$4 sm:$0xff]   ;;  %v5802_v5 = vld [vmem:[%s7579_s1 + $0x1c8] ss:$52 sps:$4 sm:$0xff]  }
 0x18f   : >> { %v3765_v12 = vpop.f32.mrf.mxu1  ;;  %5437 = vmatpush3.bf16.msra.mxu1 %v5861_v50  ;;  %5390 = vmatprep.subr.bf16.mxu0 %v5880_v7  ;;  %v5804_v50 = vld [vmem:[%s7579_s1 + $0x1cc] ss:$52 sps:$4 sm:$0xff]  }
 0x190   : >> { %v3589_v14 = vpop.f32.mrf.mxu0  ;;  %5433 = vmatprep.subr.bf16.mxu1 %v5880_v7  ;;  %v5810_v12 = vld [vmem:[%s7579_s1 + $0x234] ss:$52 sps:$4 sm:$0xff]  }
 0x191   : >> { %v3766_v19 = vpop.f32.mrf.mxu1 }
 0x192   : >> { %v6996_v24 = vadd.f32 %v3766_v19, %v3589_v14  ;;  %v3591_v25 = vpop.f32.mrf.mxu0  ;;  %5391 = vmatpush3.bf16.msra.mxu0 %v5880_v7 }
 0x193   : >> { %v3768_v29 = vpop.f32.mrf.mxu1  ;;  %5438 = vmatpush3.bf16.msra.mxu1 %v5880_v7  ;;  %5392 = vmatprep.subr.bf16.mxu0 %v5887_v15  ;;  %v5807_v7 = vld [vmem:[%s7579_s1 + $0x22c] ss:$52 sps:$4 sm:$0xff]  }
 0x194   : >> { %v3594_v31 = vpop.f32.mrf.mxu0  ;;  %4205 = vmatmul.mubr.bf16.gmra.mxu0 %v5787_v1  ;;  %5434 = vmatprep.subr.bf16.mxu1 %v5887_v15 }
 0x195   : >> { %v3771_v33 = vpop.f32.mrf.mxu1  ;;  %4382 = vmatmul.mubr.bf16.gmra.mxu1 %v5790_v20  ;;  %4212 = vmatprep.mubr.bf16.mxu0 %v5795_v21 }
 0x196   : >> { %v7001_v34 = vadd.f32 %v3771_v33, %v3594_v31  ;;  %v3596_v36 = vpop.f32.mrf.mxu0  ;;  %4389 = vmatprep.mubr.bf16.mxu1 %v5798_v27  ;;  %5393 = vmatpush3.bf16.msra.mxu0 %v5887_v15  ;;  %v5805_v27 = vld [vmem:[%s7579_s1 + $0x228] ss:$52 sps:$4 sm:$0xff]   ;;  %v5808_v31 = vld [vmem:[%s7579_s1 + $0x230] ss:$52 sps:$4 sm:$0xff]  }
 0x197   : >> { %v3773_v38 = vpop.f32.mrf.mxu1  ;;  %5439 = vmatpush3.bf16.msra.mxu1 %v5887_v15  ;;  %v5813_v33 = vld [vmem:[%s7579_s1 + $0x294] ss:$52 sps:$4 sm:$0xff]  }
 0x198   : >> { %v3597_v39 = vpop.f32.mrf.mxu0 }
 0x199   : >> { %v3774_v42 = vpop.f32.mrf.mxu1 }
 0x19a   : >> { %v7012_v26 = vadd.f32 %v3774_v42, %v3597_v39  ;;  %v3599_v47 = vpop.f32.mrf.mxu0  ;;  %v5816_v39 = vld [vmem:[%s7579_s1 + $0x29c] ss:$52 sps:$4 sm:$0xff]  }
 0x19b   : >> { %v3776_v51 = vpop.f32.mrf.mxu1 }
 0x19c   : >> { %v3602_v52 = vpop.f32.mrf.mxu0  ;;  %4213 = vmatmul.mubr.bf16.gmra.mxu0 %v5793_v40 }
 0x19d   : >> { %v3779_v55 = vpop.f32.mrf.mxu1  ;;  %4390 = vmatmul.mubr.bf16.gmra.mxu1 %v5796_v44  ;;  %4220 = vmatprep.mubr.bf16.mxu0 %v5801_v46 }
 0x19e   : >> { %v7017_v56 = vadd.f32 %v3779_v55, %v3602_v52  ;;  %v3604_v57 = vpop.f32.mrf.mxu0  ;;  %4397 = vmatprep.mubr.bf16.mxu1 %v5804_v50  ;;  %v5811_v52 = vld [vmem:[%s7579_s1 + $0x290] ss:$52 sps:$4 sm:$0xff]  }
 0x19f   : >> { %v3781_v59 = vpop.f32.mrf.mxu1  ;;  %v5814_v57 = vld [vmem:[%s7579_s1 + $0x298] ss:$52 sps:$4 sm:$0xff]  }
 0x1a0   : >> { %v3605_v63 = vpop.f32.mrf.mxu0  ;;  %v5820_v59 = vld [vmem:[%s7579_s1 + $0x2fc] ss:$52 sps:$4 sm:$0xff]  }
 0x1a1   : >> { %v3782_v3 = vpop.f32.mrf.mxu1 }
 0x1a2   : >> { %v7028_v9 = vadd.f32 %v3782_v3, %v3605_v63  ;;  %v3607_v11 = vpop.f32.mrf.mxu0  ;;  %v5823_v3 = vld [vmem:[%s7579_s1 + $0x304] ss:$52 sps:$4 sm:$0xff]  }
 0x1a3   : >> { %v3784_v14 = vpop.f32.mrf.mxu1 }
 0x1a4   : >> { %v3610_v1 = vpop.f32.mrf.mxu0  ;;  %4221 = vmatmul.mubr.bf16.gmra.mxu0 %v5799_v0 }
 0x1a5   : >> { %v3787_v15 = vpop.f32.mrf.mxu1  ;;  %4398 = vmatmul.mubr.bf16.gmra.mxu1 %v5802_v5  ;;  %4228 = vmatprep.mubr.bf16.mxu0 %v5807_v7 }
 0x1a6   : >> { %v7033_v19 = vadd.f32 %v3787_v15, %v3610_v1  ;;  %v3612_v20 = vpop.f32.mrf.mxu0  ;;  %4405 = vmatprep.mubr.bf16.mxu1 %v5810_v12 }
 0x1a7   : >> { %v3789_v21 = vpop.f32.mrf.mxu1 }
 0x1a8   : >> { %v3613_v25 = vpop.f32.mrf.mxu0  ;;  %v5818_v21 = vld [vmem:[%s7579_s1 + $0x2f8] ss:$52 sps:$4 sm:$0xff]  }
 0x1a9   : >> { %v3790_v29 = vpop.f32.mrf.mxu1 }
 0x1aa   : >> { %v7044_v36 = vadd.f32 %v3790_v29, %v3613_v25  ;;  %v3615_v38 = vpop.f32.mrf.mxu0  ;;  %v5826_v29 = vld [vmem:[%s7579_s1 + $0x364] ss:$52 sps:$4 sm:$0xff]  }
 0x1ab   : >> { %v3792_v40 = vpop.f32.mrf.mxu1 }
 0x1ac   : >> { %v3618_v42 = vpop.f32.mrf.mxu0  ;;  %4229 = vmatmul.mubr.bf16.gmra.mxu0 %v5805_v27 }
 0x1ad   : >> { %v3795_v44 = vpop.f32.mrf.mxu1  ;;  %4406 = vmatmul.mubr.bf16.gmra.mxu1 %v5808_v31  ;;  %4236 = vmatprep.mubr.bf16.mxu0 %v5813_v33  ;;  %v5829_v33 = vld [vmem:[%s7579_s1 + $0x36c] ss:$52 sps:$4 sm:$0xff]  }
 0x1ae   : >> { %v7049_v46 = vadd.f32 %v3795_v44, %v3618_v42  ;;  %v3620_v47 = vpop.f32.mrf.mxu0  ;;  %4413 = vmatprep.mubr.bf16.mxu1 %v5816_v39 }
 0x1af   : >> { %v3797_v50 = vpop.f32.mrf.mxu1 }
 0x1b0   : >> { %v3621_v51 = vpop.f32.mrf.mxu0 }
 0x1b1   : >> { %v3798_v55 = vpop.f32.mrf.mxu1 }
 0x1b2   : >> { %v7060_v63 = vadd.f32 %v3798_v55, %v3621_v51  ;;  %v3623_v0 = vpop.f32.mrf.mxu0 }
 0x1b3   : >> { %v3800_v5 = vpop.f32.mrf.mxu1 }
 0x1b4   : >> { %v3836_v7 = vpop.f32.mrf.mxu0  ;;  %4237 = vmatmul.mubr.bf16.gmra.mxu0 %v5811_v52  ;;  %v5824_v52 = vld [vmem:[%s7579_s1 + $0x360] ss:$52 sps:$4 sm:$0xff]  }
 0x1b5   : >> { %v3837_v11 = vadd.f32 %v3836_v7, %v6720_v16  ;;  %v4013_v12 = vpop.f32.mrf.mxu1  ;;  %4414 = vmatmul.mubr.bf16.gmra.mxu1 %v5814_v57  ;;  %4244 = vmatprep.mubr.bf16.mxu0 %v5820_v59  ;;  %v5821_v16 = vld [vmem:[%s7579_s1 + $0x300] ss:$52 sps:$4 sm:$0xff]  }
 0x1b6   : >> { %v3838_v14 = vpop.f32.mrf.mxu0  ;;  %4421 = vmatprep.mubr.bf16.mxu1 %v5823_v3  ;;  %v5832_v59 = vld [vmem:[%s7579_s1 + $0x3cc] ss:$52 sps:$4 sm:$0xff]   ;;  %v5835_v3 = vld [vmem:[%s7579_s1 + $0x3d4] ss:$52 sps:$4 sm:$0xff]  }
 0x1b7   : >> { %v7066_v1 = vadd.f32 %v4013_v12, %v3837_v11  ;;  %v4015_v15 = vpop.f32.mrf.mxu1 }
 0x1b8   : >> { %v3839_v20 = vpop.f32.mrf.mxu0 }
 0x1b9   : >> { %v3840_v25 = vadd.f32 %v3839_v20, %v6734_v30  ;;  %v4016_v27 = vpop.f32.mrf.mxu1 }
 0x1ba   : >> { %v3841_v31 = vpop.f32.mrf.mxu0 }
 0x1bb   : >> { %v7081_v38 = vadd.f32 %v4016_v27, %v3840_v25  ;;  %v4018_v39 = vpop.f32.mrf.mxu1  ;;  %v5830_v25 = vld [vmem:[%s7579_s1 + $0x3c8] ss:$52 sps:$4 sm:$0xff]  }
 0x1bc   : >> { %v3844_v40 = vpop.f32.mrf.mxu0  ;;  %4245 = vmatmul.mubr.bf16.gmra.mxu0 %v5818_v21 }
 0x1bd   : >> { %v3845_v30 = vadd.f32 %v3844_v40, %v6741_v43  ;;  %v4021_v42 = vpop.f32.mrf.mxu1  ;;  %4422 = vmatmul.mubr.bf16.gmra.mxu1 %v5821_v16  ;;  %4252 = vmatprep.mubr.bf16.mxu0 %v5826_v29  ;;  %v5827_v43 = vld [vmem:[%s7579_s1 + $0x368] ss:$52 sps:$4 sm:$0xff]  }
 0x1be   : >> { %v3846_v44 = vpop.f32.mrf.mxu0  ;;  %4429 = vmatprep.mubr.bf16.mxu1 %v5829_v33  ;;  %v5839_v29 = vld [vmem:[%s7579_s1 + $0x434] ss:$52 sps:$4 sm:$0xff]   ;;  %v5842_v33 = vld [vmem:[%s7579_s1 + $0x43c] ss:$52 sps:$4 sm:$0xff]  }
 0x1bf   : >> { %v7084_v47 = vadd.f32 %v4021_v42, %v3845_v30  ;;  %v4023_v50 = vpop.f32.mrf.mxu1 }
 0x1c0   : >> { %v3847_v51 = vpop.f32.mrf.mxu0 }
 0x1c1   : >> { %v3848_v55 = vadd.f32 %v3847_v51, %v6755_v58  ;;  %v4024_v57 = vpop.f32.mrf.mxu1 }
 0x1c2   : >> { %v3849_v0 = vpop.f32.mrf.mxu0 }
 0x1c3   : >> { %v7099_v5 = vadd.f32 %v4024_v57, %v3848_v55  ;;  %v4026_v7 = vpop.f32.mrf.mxu1  ;;  %v5837_v55 = vld [vmem:[%s7579_s1 + $0x430] ss:$52 sps:$4 sm:$0xff]  }
 0x1c4   : >> { %v3852_v11 = vpop.f32.mrf.mxu0  ;;  %4253 = vmatmul.mubr.bf16.gmra.mxu0 %v5824_v52 }
 0x1c5   : >> { %v3853_v58 = vadd.f32 %v3852_v11, %v6763_v8  ;;  %v4029_v12 = vpop.f32.mrf.mxu1  ;;  %4430 = vmatmul.mubr.bf16.gmra.mxu1 %v5827_v43  ;;  %4260 = vmatprep.mubr.bf16.mxu0 %v5832_v59  ;;  %v5833_v8 = vld [vmem:[%s7579_s1 + $0x3d0] ss:$52 sps:$4 sm:$0xff]  }
 0x1c6   : >> { %v3854_v14 = vpop.f32.mrf.mxu0  ;;  %4437 = vmatprep.mubr.bf16.mxu1 %v5835_v3  ;;  %v5845_v59 = vld [vmem:[%s7579_s1 + $0x49c] ss:$52 sps:$4 sm:$0xff]   ;;  %v5848_v3 = vld [vmem:[%s7579_s1 + $0x4a4] ss:$52 sps:$4 sm:$0xff]  }
 0x1c7   : >> { %v7102_v15 = vadd.f32 %v4029_v12, %v3853_v58  ;;  %v4031_v20 = vpop.f32.mrf.mxu1 }
 0x1c8   : >> { %v3855_v21 = vpop.f32.mrf.mxu0 }
 0x1c9   : >> { %v3856_v27 = vadd.f32 %v3855_v21, %v6776_v23  ;;  %v4032_v16 = vpop.f32.mrf.mxu1 }
 0x1ca   : >> { %v3857_v31 = vpop.f32.mrf.mxu0 }
 0x1cb   : >> { %v7117_v39 = vadd.f32 %v4032_v16, %v3856_v27  ;;  %v4034_v40 = vpop.f32.mrf.mxu1  ;;  %v5843_v27 = vld [vmem:[%s7579_s1 + $0x498] ss:$52 sps:$4 sm:$0xff]  }
 0x1cc   : >> { %v3860_v30 = vpop.f32.mrf.mxu0  ;;  %4261 = vmatmul.mubr.bf16.gmra.mxu0 %v5830_v25 }
 0x1cd   : >> { %v3861_v23 = vadd.f32 %v3860_v30, %v6784_v37  ;;  %v4037_v42 = vpop.f32.mrf.mxu1  ;;  %4438 = vmatmul.mubr.bf16.gmra.mxu1 %v5833_v8  ;;  %4268 = vmatprep.mubr.bf16.mxu0 %v5839_v29  ;;  %v5840_v37 = vld [vmem:[%s7579_s1 + $0x438] ss:$52 sps:$4 sm:$0xff]  }
 0x1ce   : >> { %v3862_v44 = vpop.f32.mrf.mxu0  ;;  %4445 = vmatprep.mubr.bf16.mxu1 %v5842_v33  ;;  %v5851_v29 = vld [vmem:[%s7579_s1 + $0x504] ss:$52 sps:$4 sm:$0xff]   ;;  %v5854_v33 = vld [vmem:[%s7579_s1 + $0x50c] ss:$52 sps:$4 sm:$0xff]  }
 0x1cf   : >> { %v7120_v50 = vadd.f32 %v4037_v42, %v3861_v23  ;;  %v4039_v51 = vpop.f32.mrf.mxu1 }
 0x1d0   : >> { %v3863_v52 = vpop.f32.mrf.mxu0 }
 0x1d1   : >> { %v3864_v57 = vadd.f32 %v3863_v52, %v6798_v53  ;;  %v4040_v43 = vpop.f32.mrf.mxu1 }
 0x1d2   : >> { %v3865_v0 = vpop.f32.mrf.mxu0 }
 0x1d3   : >> { %v7135_v7 = vadd.f32 %v4040_v43, %v3864_v57  ;;  %v4042_v11 = vpop.f32.mrf.mxu1  ;;  %v5849_v57 = vld [vmem:[%s7579_s1 + $0x500] ss:$52 sps:$4 sm:$0xff]  }
 0x1d4   : >> { %v3868_v58 = vpop.f32.mrf.mxu0  ;;  %4269 = vmatmul.mubr.bf16.gmra.mxu0 %v5837_v55 }
 0x1d5   : >> { %v3869_v53 = vadd.f32 %v3868_v58, %v6806_v4  ;;  %v4045_v12 = vpop.f32.mrf.mxu1  ;;  %4446 = vmatmul.mubr.bf16.gmra.mxu1 %v5840_v37  ;;  %4276 = vmatprep.mubr.bf16.mxu0 %v5845_v59  ;;  %v5846_v4 = vld [vmem:[%s7579_s1 + $0x4a0] ss:$52 sps:$4 sm:$0xff]  }
 0x1d6   : >> { %v3870_v14 = vpop.f32.mrf.mxu0  ;;  %4453 = vmatprep.mubr.bf16.mxu1 %v5848_v3  ;;  %v5857_v59 = vld [vmem:[%s7579_s1 + $0x56c] ss:$52 sps:$4 sm:$0xff]   ;;  %v5860_v3 = vld [vmem:[%s7579_s1 + $0x574] ss:$52 sps:$4 sm:$0xff]  }
 0x1d7   : >> { %v7138_v20 = vadd.f32 %v4045_v12, %v3869_v53  ;;  %v4047_v21 = vpop.f32.mrf.mxu1 }
 0x1d8   : >> { %v3871_v25 = vpop.f32.mrf.mxu0 }
 0x1d9   : >> { %v3872_v16 = vadd.f32 %v3871_v25, %v6820_v18  ;;  %v4048_v8 = vpop.f32.mrf.mxu1 }
 0x1da   : >> { %v3873_v31 = vpop.f32.mrf.mxu0 }
 0x1db   : >> { %v7153_v40 = vadd.f32 %v4048_v8, %v3872_v16  ;;  %v4050_v30 = vpop.f32.mrf.mxu1  ;;  %v5855_v16 = vld [vmem:[%s7579_s1 + $0x568] ss:$52 sps:$4 sm:$0xff]  }
 0x1dc   : >> { %v3876_v23 = vpop.f32.mrf.mxu0  ;;  %4277 = vmatmul.mubr.bf16.gmra.mxu0 %v5843_v27 }
 0x1dd   : >> { %v3877_v18 = vadd.f32 %v3876_v23, %v6827_v32  ;;  %v4053_v42 = vpop.f32.mrf.mxu1  ;;  %4454 = vmatmul.mubr.bf16.gmra.mxu1 %v5846_v4  ;;  %4284 = vmatprep.mubr.bf16.mxu0 %v5851_v29  ;;  %v5852_v32 = vld [vmem:[%s7579_s1 + $0x508] ss:$52 sps:$4 sm:$0xff]  }
 0x1de   : >> { %v3878_v44 = vpop.f32.mrf.mxu0  ;;  %4461 = vmatprep.mubr.bf16.mxu1 %v5854_v33  ;;  %v5864_v29 = vld [vmem:[%s7579_s1 + $0x5d4] ss:$52 sps:$4 sm:$0xff]   ;;  %v5867_v33 = vld [vmem:[%s7579_s1 + $0x5dc] ss:$52 sps:$4 sm:$0xff]  }
 0x1df   : >> { %v7156_v51 = vadd.f32 %v4053_v42, %v3877_v18  ;;  %v4055_v52 = vpop.f32.mrf.mxu1 }
 0x1e0   : >> { %v3879_v55 = vpop.f32.mrf.mxu0 }
 0x1e1   : >> { %v3880_v43 = vadd.f32 %v3879_v55, %v6841_v48  ;;  %v4056_v37 = vpop.f32.mrf.mxu1 }
 0x1e2   : >> { %v3881_v0 = vpop.f32.mrf.mxu0 }
 0x1e3   : >> { %v7171_v11 = vadd.f32 %v4056_v37, %v3880_v43  ;;  %v4058_v58 = vpop.f32.mrf.mxu1  ;;  %v5862_v43 = vld [vmem:[%s7579_s1 + $0x5d0] ss:$52 sps:$4 sm:$0xff]  }
 0x1e4   : >> { %v3884_v53 = vpop.f32.mrf.mxu0  ;;  %4285 = vmatmul.mubr.bf16.gmra.mxu0 %v5849_v57 }
 0x1e5   : >> { %v3885_v48 = vadd.f32 %v3884_v53, %v6849_v62  ;;  %v4061_v12 = vpop.f32.mrf.mxu1  ;;  %4462 = vmatmul.mubr.bf16.gmra.mxu1 %v5852_v32  ;;  %4292 = vmatprep.mubr.bf16.mxu0 %v5857_v59  ;;  %v5858_v62 = vld [vmem:[%s7579_s1 + $0x570] ss:$52 sps:$4 sm:$0xff]  }
 0x1e6   : >> { %v3886_v14 = vpop.f32.mrf.mxu0  ;;  %4469 = vmatprep.mubr.bf16.mxu1 %v5860_v3  ;;  %v5870_v59 = vld [vmem:[%s7579_s1 + $0x63c] ss:$52 sps:$4 sm:$0xff]   ;;  %v5873_v3 = vld [vmem:[%s7579_s1 + $0x644] ss:$52 sps:$4 sm:$0xff]  }
 0x1e7   : >> { %v7174_v21 = vadd.f32 %v4061_v12, %v3885_v48  ;;  %v4063_v25 = vpop.f32.mrf.mxu1 }
 0x1e8   : >> { %v3887_v27 = vpop.f32.mrf.mxu0 }
 0x1e9   : >> { %v3888_v8 = vadd.f32 %v3887_v27, %v6863_v17  ;;  %v4064_v4 = vpop.f32.mrf.mxu1 }
 0x1ea   : >> { %v3889_v31 = vpop.f32.mrf.mxu0 }
 0x1eb   : >> { %v7189_v30 = vadd.f32 %v4064_v4, %v3888_v8  ;;  %v4066_v23 = vpop.f32.mrf.mxu1  ;;  %v5868_v8 = vld [vmem:[%s7579_s1 + $0x638] ss:$52 sps:$4 sm:$0xff]  }
 0x1ec   : >> { %v3892_v18 = vpop.f32.mrf.mxu0  ;;  %4293 = vmatmul.mubr.bf16.gmra.mxu0 %v5855_v16 }
 0x1ed   : >> { %v3893_v17 = vadd.f32 %v3892_v18, %v6872_v35  ;;  %v4069_v42 = vpop.f32.mrf.mxu1  ;;  %4470 = vmatmul.mubr.bf16.gmra.mxu1 %v5858_v62  ;;  %4300 = vmatprep.mubr.bf16.mxu0 %v5864_v29  ;;  %v5865_v35 = vld [vmem:[%s7579_s1 + $0x5d8] ss:$52 sps:$4 sm:$0xff]  }
 0x1ee   : >> { %v3894_v44 = vpop.f32.mrf.mxu0  ;;  %4477 = vmatprep.mubr.bf16.mxu1 %v5867_v33  ;;  %v5876_v29 = vld [vmem:[%s7579_s1 + $0x6a4] ss:$52 sps:$4 sm:$0xff]   ;;  %v5879_v33 = vld [vmem:[%s7579_s1 + $0x6ac] ss:$52 sps:$4 sm:$0xff]  }
 0x1ef   : >> { %v7192_v52 = vadd.f32 %v4069_v42, %v3893_v17  ;;  %v4071_v55 = vpop.f32.mrf.mxu1 }
 0x1f0   : >> { %v3895_v57 = vpop.f32.mrf.mxu0 }
 0x1f1   : >> { %v3896_v37 = vadd.f32 %v3895_v57, %v6887_v54  ;;  %v4072_v32 = vpop.f32.mrf.mxu1 }
 0x1f2   : >> { %v3897_v0 = vpop.f32.mrf.mxu0 }
 0x1f3   : >> { %v7207_v58 = vadd.f32 %v4072_v32, %v3896_v37  ;;  %v4074_v53 = vpop.f32.mrf.mxu1  ;;  %v5874_v37 = vld [vmem:[%s7579_s1 + $0x6a0] ss:$52 sps:$4 sm:$0xff]  }
 0x1f4   : >> { %v3900_v48 = vpop.f32.mrf.mxu0  ;;  %4301 = vmatmul.mubr.bf16.gmra.mxu0 %v5862_v43 }
 0x1f5   : >> { %v3901_v54 = vadd.f32 %v3900_v48, %v6894_v2  ;;  %v4077_v12 = vpop.f32.mrf.mxu1  ;;  %4478 = vmatmul.mubr.bf16.gmra.mxu1 %v5865_v35  ;;  %4308 = vmatprep.mubr.bf16.mxu0 %v5870_v59  ;;  %v5871_v2 = vld [vmem:[%s7579_s1 + $0x640] ss:$52 sps:$4 sm:$0xff]  }
 0x1f6   : >> { %v3902_v14 = vpop.f32.mrf.mxu0  ;;  %4485 = vmatprep.mubr.bf16.mxu1 %v5873_v3  ;;  %v5883_v59 = vld [vmem:[%s7579_s1 + $0x70c] ss:$52 sps:$4 sm:$0xff]   ;;  %v5886_v3 = vld [vmem:[%s7579_s1 + $0x714] ss:$52 sps:$4 sm:$0xff]  }
 0x1f7   : >> { %v7210_v25 = vadd.f32 %v4077_v12, %v3901_v54  ;;  %v4079_v27 = vpop.f32.mrf.mxu1 }
 0x1f8   : >> { %v3903_v16 = vpop.f32.mrf.mxu0 }
 0x1f9   : >> { %v3904_v4 = vadd.f32 %v3903_v16, %v6906_v13  ;;  %v4080_v62 = vpop.f32.mrf.mxu1 }
 0x1fa   : >> { %v3905_v31 = vpop.f32.mrf.mxu0 }
 0x1fb   : >> { %v7225_v23 = vadd.f32 %v4080_v62, %v3904_v4  ;;  %v4082_v18 = vpop.f32.mrf.mxu1  ;;  %v5881_v4 = vld [vmem:[%s7579_s1 + $0x708] ss:$52 sps:$4 sm:$0xff]  }
 0x1fc   : >> { %v3908_v17 = vpop.f32.mrf.mxu0  ;;  %4309 = vmatmul.mubr.bf16.gmra.mxu0 %v5868_v8 }
 0x1fd   : >> { %v3909_v13 = vadd.f32 %v3908_v17, %v6914_v28  ;;  %v4085_v42 = vpop.f32.mrf.mxu1  ;;  %4486 = vmatmul.mubr.bf16.gmra.mxu1 %v5871_v2  ;;  %4316 = vmatprep.mubr.bf16.mxu0 %v5876_v29  ;;  %v5877_v28 = vld [vmem:[%s7579_s1 + $0x6a8] ss:$52 sps:$4 sm:$0xff]   ;;  %v5888_v29 = vld [vmem:[%s7579_s1 + $0x30] ss:$52 sps:$4 sm:$0xff]  }
 0x1fe   : >> { %v3910_v44 = vpop.f32.mrf.mxu0  ;;  %4493 = vmatprep.mubr.bf16.mxu1 %v5879_v33  ;;  %v5889_v33 = vld [vmem:[%s7579_s1 + $0x440] ss:$52 sps:$4 sm:$0xff]  }
 0x1ff   : >> { %v7228_v55 = vadd.f32 %v4085_v42, %v3909_v13  ;;  %v4087_v57 = vpop.f32.mrf.mxu1 }
 0x200   : >> { %v3911_v43 = vpop.f32.mrf.mxu0 }
 0x201   : >> { %v3912_v32 = vadd.f32 %v3911_v43, %v6926_v41  ;;  %v4088_v35 = vpop.f32.mrf.mxu1 }
 0x202   : >> { %v3913_v0 = vpop.f32.mrf.mxu0 }
 0x203   : >> { %v7243_v53 = vadd.f32 %v4088_v35, %v3912_v32  ;;  %v4090_v48 = vpop.f32.mrf.mxu1  ;;  %v5890_v32 = vld [vmem:[%s7579_s1 + $0x98] ss:$52 sps:$4 sm:$0xff]  }
 0x204   : >> { %v3916_v54 = vpop.f32.mrf.mxu0  ;;  %4317 = vmatmul.mubr.bf16.gmra.mxu0 %v5874_v37 }
 0x205   : >> { %v3917_v41 = vadd.f32 %v3916_v54, %v6931_v49  ;;  %v4093_v12 = vpop.f32.mrf.mxu1  ;;  %4494 = vmatmul.mubr.bf16.gmra.mxu1 %v5877_v28  ;;  %4324 = vmatprep.mubr.bf16.mxu0 %v5883_v59  ;;  %v5884_v49 = vld [vmem:[%s7579_s1 + $0x710] ss:$52 sps:$4 sm:$0xff]   ;;  %v5892_v59 = vld [vmem:[%s7579_s1 + $0x100] ss:$52 sps:$4 sm:$0xff]  }
 0x206   : >> { %v3918_v14 = vpop.f32.mrf.mxu0  ;;  %4501 = vmatprep.mubr.bf16.mxu1 %v5886_v3  ;;  %v5893_v3 = vld [vmem:[%s7579_s1 + $0x510] ss:$52 sps:$4 sm:$0xff]  }
 0x207   : >> { %v7246_v27 = vadd.f32 %v4093_v12, %v3917_v41  ;;  %v4095_v16 = vpop.f32.mrf.mxu1 }
 0x208   : >> { %v3919_v8 = vpop.f32.mrf.mxu0 }
 0x209   : >> { %v3920_v62 = vadd.f32 %v3919_v8, %v6942_v60  ;;  %v4096_v2 = vpop.f32.mrf.mxu1 }
 0x20a   : >> { %v3921_v31 = vpop.f32.mrf.mxu0 }
 0x20b   : >> { %v7261_v18 = vadd.f32 %v4096_v2, %v3920_v62  ;;  %v4098_v17 = vpop.f32.mrf.mxu1  ;;  %v5894_v62 = vld [vmem:[%s7579_s1 + $0x168] ss:$52 sps:$4 sm:$0xff]  }
 0x20c   : >> { %v3924_v13 = vpop.f32.mrf.mxu0  ;;  %4325 = vmatmul.mubr.bf16.gmra.mxu0 %v5881_v4 }
 0x20d   : >> { %v3925_v60 = vadd.f32 %v3924_v13, %v6947_v6  ;;  %v4101_v42 = vpop.f32.mrf.mxu1  ;;  %4502 = vmatmul.mubr.bf16.gmra.mxu1 %v5884_v49  ;;  %5394 = vmatprep.mubr.msk.bf16.mxu0 %vm3389_vm2, %v5888_v29  ;;  %v5891_v6 = vld [vmem:[%s7579_s1 + $0x4a8] ss:$52 sps:$4 sm:$0xff]   ;;  %v5896_v29 = vld [vmem:[%s7579_s1 + $0x1d0] ss:$52 sps:$4 sm:$0xff]  }
 0x20e   : >> { %v3926_v44 = vpop.f32.mrf.mxu0  ;;  %5414 = vmatprep.mubr.msk.bf16.mxu1 %vm3389_vm2, %v5889_v33  ;;  %v5897_v33 = vld [vmem:[%s7579_s1 + $0x5e0] ss:$52 sps:$4 sm:$0xff]  }
 0x20f   : >> { %v7266_v57 = vadd.f32 %v4101_v42, %v3925_v60  ;;  %v4103_v43 = vpop.f32.mrf.mxu1 }
 0x210   : >> { %v3927_v37 = vpop.f32.mrf.mxu0 }
 0x211   : >> { %v3928_v35 = vadd.f32 %v3927_v37, %v6959_v22  ;;  %v4104_v28 = vpop.f32.mrf.mxu1 }
 0x212   : >> { %v3929_v0 = vpop.f32.mrf.mxu0 }
 0x213   : >> { %v7281_v48 = vadd.f32 %v4104_v28, %v3928_v35  ;;  %v4106_v54 = vpop.f32.mrf.mxu1  ;;  %v5898_v35 = vld [vmem:[%s7579_s1 + $0x238] ss:$52 sps:$4 sm:$0xff]  }
 0x214   : >> { %v3932_v41 = vpop.f32.mrf.mxu0  ;;  %5395 = vmatmul.mubr.msk.bf16.vlgmr.msra.gmra.mxu0 %vm3389_vm2, %v5890_v32 }
 0x215   : >> { %v3933_v22 = vadd.f32 %v3932_v41, %v6968_v45  ;;  %v4109_v12 = vpop.f32.mrf.mxu1  ;;  %5415 = vmatmul.mubr.msk.bf16.vlgmr.msra.gmra.mxu1 %vm3389_vm2, %v5891_v6  ;;  %5398 = vmatprep.mubr.msk.bf16.mxu0 %vm3389_vm2, %v5892_v59  ;;  %v5895_v45 = vld [vmem:[%s7579_s1 + $0x578] ss:$52 sps:$4 sm:$0xff]   ;;  %v5900_v59 = vld [vmem:[%s7579_s1 + $0x2a0] ss:$52 sps:$4 sm:$0xff]  }
 0x216   : >> { %v3934_v14 = vpop.f32.mrf.mxu0  ;;  %5418 = vmatprep.mubr.msk.bf16.mxu1 %vm3389_vm2, %v5893_v3  ;;  %v5901_v3 = vld [vmem:[%s7579_s1 + $0x6b0] ss:$52 sps:$4 sm:$0xff]  }
 0x217   : >> { %v7288_v16 = vadd.f32 %v4109_v12, %v3933_v22  ;;  %v4111_v8 = vpop.f32.mrf.mxu1 }
 0x218   : >> { %v3935_v4 = vpop.f32.mrf.mxu0 }
 0x219   : >> { %v3936_v2 = vadd.f32 %v3935_v4, %v6980_v61  ;;  %v4112_v49 = vpop.f32.mrf.mxu1 }
 0x21a   : >> { %v3937_v31 = vpop.f32.mrf.mxu0 }
 0x21b   : >> { %v7303_v17 = vadd.f32 %v4112_v49, %v3936_v2  ;;  %v4114_v13 = vpop.f32.mrf.mxu1  ;;  %v5902_v2 = vld [vmem:[%s7579_s1 + $0x308] ss:$52 sps:$4 sm:$0xff]  }
 0x21c   : >> { %v3940_v60 = vpop.f32.mrf.mxu0  ;;  %5399 = vmatmul.mubr.msk.bf16.gmra.mxu0 %vm3389_vm2, %v5894_v62 }
 0x21d   : >> { %v3941_v61 = vadd.f32 %v3940_v60, %v6985_v10  ;;  %v4117_v42 = vpop.f32.mrf.mxu1  ;;  %5419 = vmatmul.mubr.msk.bf16.gmra.mxu1 %vm3389_vm2, %v5895_v45  ;;  %5402 = vmatprep.mubr.msk.bf16.mxu0 %vm3389_vm2, %v5896_v29  ;;  %v5899_v10 = vld [vmem:[%s7579_s1 + $0x648] ss:$52 sps:$4 sm:$0xff]   ;;  %v5904_v29 = vld [vmem:[%s7579_s1 + $0x370] ss:$52 sps:$4 sm:$0xff]  }
 0x21e   : >> { %v3942_v44 = vpop.f32.mrf.mxu0  ;;  %5422 = vmatprep.mubr.msk.bf16.mxu1 %vm3389_vm2, %v5897_v33 }
 0x21f   : >> { %v7310_v43 = vadd.f32 %v4117_v42, %v3941_v61  ;;  %v4119_v37 = vpop.f32.mrf.mxu1 }
 0x220   : >> { %v3943_v32 = vpop.f32.mrf.mxu0 }
 0x221   : >> { %v3944_v28 = vadd.f32 %v3943_v32, %v6996_v24  ;;  %v4120_v6 = vpop.f32.mrf.mxu1 }
 0x222   : >> { %v3945_v0 = vpop.f32.mrf.mxu0 }
 0x223   : >> { %v7325_v54 = vadd.f32 %v4120_v6, %v3944_v28  ;;  %v4122_v41 = vpop.f32.mrf.mxu1 }
 0x224   : >> { %v3948_v22 = vpop.f32.mrf.mxu0  ;;  %5403 = vmatmul.mubr.msk.bf16.gmra.mxu0 %vm3389_vm2, %v5898_v35  ;;  %v5905_v35 = vld [vmem:[%s7579_s1 + $0x3d8] ss:$52 sps:$4 sm:$0xff]  }
 0x225   : >> { %v3949_v24 = vadd.f32 %v3948_v22, %v7001_v34  ;;  %v4125_v12 = vpop.f32.mrf.mxu1  ;;  %5423 = vmatmul.mubr.msk.bf16.gmra.mxu1 %vm3389_vm2, %v5899_v10  ;;  %5406 = vmatprep.mubr.msk.bf16.mxu0 %vm3389_vm2, %v5900_v59  ;;  %v5903_v34 = vld [vmem:[%s7579_s1 + $0x718] ss:$52 sps:$4 sm:$0xff]  }
 0x226   : >> { %v3950_v14 = vpop.f32.mrf.mxu0  ;;  %5426 = vmatprep.mubr.msk.bf16.mxu1 %vm3389_vm2, %v5901_v3 }
 0x227   : >> { %v7332_v8 = vadd.f32 %v4125_v12, %v3949_v24  ;;  %v4127_v4 = vpop.f32.mrf.mxu1 }
 0x228   : >> { %v3951_v62 = vpop.f32.mrf.mxu0 }
 0x229   : >> { %v3952_v49 = vadd.f32 %v3951_v62, %v7012_v26  ;;  %v4128_v45 = vpop.f32.mrf.mxu1 }
 0x22a   : >> { %v3953_v31 = vpop.f32.mrf.mxu0 }
 0x22b   : >> { %v7344_v33 = vadd.f32 %v4128_v45, %v3952_v49  ;;  %v4130_v13 = vpop.f32.mrf.mxu1 }
 0x22c   : >> { %v3956_v60 = vpop.f32.mrf.mxu0  ;;  %5407 = vmatmul.mubr.msk.bf16.gmra.mxu0 %vm3389_vm2, %v5902_v2 }
 0x22d   : >> { %v3957_v61 = vadd.f32 %v3956_v60, %v7017_v56  ;;  %v4133_v42 = vpop.f32.mrf.mxu1  ;;  %5427 = vmatmul.mubr.msk.bf16.gmra.mxu1 %vm3389_vm2, %v5903_v34  ;;  %5410 = vmatprep.mubr.msk.bf16.mxu0 %vm3389_vm2, %v5904_v29 }
 0x22e   : >> { %v3958_v26 = vpop.f32.mrf.mxu0 }
 0x22f   : >> { %v7350_v44 = vadd.f32 %v4133_v42, %v3957_v61  ;;  %v4135_v37 = vpop.f32.mrf.mxu1 }
 0x230   : >> { %v3959_v32 = vpop.f32.mrf.mxu0 }
 0x231   : >> { %v3960_v28 = vadd.f32 %v3959_v32, %v7028_v9  ;;  %v4136_v6 = vpop.f32.mrf.mxu1 }
 0x232   : >> { %v3961_v10 = vpop.f32.mrf.mxu0 }
 0x233   : >> { %v7356_v59 = vadd.f32 %v4136_v6, %v3960_v28  ;;  %v4138_v56 = vpop.f32.mrf.mxu1 }
 0x234   : >> { %v3964_v0 = vpop.f32.mrf.mxu0  ;;  %5411 = vmatmul.mubr.msk.bf16.gmra.mxu0 %vm3389_vm2, %v5905_v35 }
 0x235   : >> { %v3965_v3 = vadd.f32 %v3964_v0, %v7033_v19  ;;  %v4141_v41 = vpop.f32.mrf.mxu1 }
 0x236   : >> { %v3966_v22 = vpop.f32.mrf.mxu0 }
 0x237   : >> { %v7360_v24 = vadd.f32 %v4141_v41, %v3965_v3  ;;  %v4143_v12 = vpop.f32.mrf.mxu1 }
 0x238   : >> { %v3967_v14 = vpop.f32.mrf.mxu0 }
 0x239   : >> { %v3968_v4 = vadd.f32 %v3967_v14, %v7044_v36  ;;  %v4144_v62 = vpop.f32.mrf.mxu1 }
 0x23a   : >> { %v3969_v9 = vpop.f32.mrf.mxu0 }
 0x23b   : >> { %v7363_v2 = vadd.f32 %v4144_v62, %v3968_v4  ;;  %v4146_v49 = vpop.f32.mrf.mxu1 }
 0x23c   : >> { %v3972_v45 = vpop.f32.mrf.mxu0 }
 0x23d   : >> { %v3973_v34 = vadd.f32 %v3972_v45, %v7049_v46  ;;  %v4149_v29 = vpop.f32.mrf.mxu1 }
 0x23e   : >> { %v3974_v31 = vpop.f32.mrf.mxu0 }
 0x23f   : >> { %v7366_v13 = vadd.f32 %v4149_v29, %v3973_v34  ;;  %v4151_v19 = vpop.f32.mrf.mxu1 }
 0x240   : >> { %v3975_v60 = vpop.f32.mrf.mxu0 }
 0x241   : >> { %v3976_v61 = vadd.f32 %v3975_v60, %v7060_v63  ;;  %v4152_v42 = vpop.f32.mrf.mxu1 }
 0x242   : >> { %v3977_v26 = vpop.f32.mrf.mxu0 }
 0x243   : >> { %v7369_v37 = vadd.f32 %v4152_v42, %v3976_v61  ;;  %v4154_v36 = vpop.f32.mrf.mxu1 }
 0x244   : >> { %v4190_v32 = vpop.f32.mrf.mxu0 }
 0x245   : >> { %v4191_v35 = vadd.f32 %v4190_v32, %v7066_v1  ;;  %v4367_v28 = vpop.f32.mrf.mxu1 }
 0x246   : >> { %v4192_v6 = vpop.f32.mrf.mxu0 }
 0x247   : >> { %v7372_v10 = vadd.f32 %v4367_v28, %v4191_v35  ;;  %v4369_v46 = vpop.f32.mrf.mxu1 }
 0x248   : >> { %v4193_v56 = vpop.f32.mrf.mxu0 }
 0x249   : >> { %v4194_v0 = vadd.f32 %v4193_v56, %v7081_v38  ;;  %v4370_v3 = vpop.f32.mrf.mxu1 }
 0x24a   : >> { %v4195_v41 = vpop.f32.mrf.mxu0 }
 0x24b   : >> { %v7375_v22 = vadd.f32 %v4370_v3, %v4194_v0  ;;  %v4372_v63 = vpop.f32.mrf.mxu1 }
 0x24c   : >> { %v4198_v12 = vpop.f32.mrf.mxu0 }
 0x24d   : >> { %v4199_v14 = vadd.f32 %v4198_v12, %v7084_v47  ;;  %v4375_v4 = vpop.f32.mrf.mxu1 }
 0x24e   : >> { %v4200_v62 = vpop.f32.mrf.mxu0 }
 0x24f   : >> { %v7378_v9 = vadd.f32 %v4375_v4, %v4199_v14  ;;  %v4377_v1 = vpop.f32.mrf.mxu1 }
 0x250   : >> { %v4201_v49 = vpop.f32.mrf.mxu0 }
 0x251   : >> { %v4202_v45 = vadd.f32 %v4201_v49, %v7099_v5  ;;  %v4378_v34 = vpop.f32.mrf.mxu1 }
 0x252   : >> { %v4203_v29 = vpop.f32.mrf.mxu0 }
 0x253   : >> { %v7381_v31 = vadd.f32 %v4378_v34, %v4202_v45  ;;  %v4380_v38 = vpop.f32.mrf.mxu1 }
 0x254   : >> { %v4206_v19 = vpop.f32.mrf.mxu0 }
 0x255   : >> { %v4207_v60 = vadd.f32 %v4206_v19, %v7102_v15  ;;  %v4383_v61 = vpop.f32.mrf.mxu1 }
 0x256   : >> { %v4208_v42 = vpop.f32.mrf.mxu0 }
 0x257   : >> { %v7384_v26 = vadd.f32 %v4383_v61, %v4207_v60  ;;  %v4385_v47 = vpop.f32.mrf.mxu1 }
 0x258   : >> { %v4209_v36 = vpop.f32.mrf.mxu0 }
 0x259   : >> { %v4210_v32 = vadd.f32 %v4209_v36, %v7117_v39  ;;  %v4386_v35 = vpop.f32.mrf.mxu1 }
 0x25a   : >> { %v4211_v28 = vpop.f32.mrf.mxu0 }
 0x25b   : >> { %v7387_v6 = vadd.f32 %v4386_v35, %v4210_v32  ;;  %v4388_v5 = vpop.f32.mrf.mxu1 }
 0x25c   : >> { %v4214_v46 = vpop.f32.mrf.mxu0 }
 0x25d   : >> { %v4215_v56 = vadd.f32 %v4214_v46, %v7120_v50  ;;  %v4391_v0 = vpop.f32.mrf.mxu1 }
 0x25e   : >> { %v4216_v3 = vpop.f32.mrf.mxu0 }
 0x25f   : >> { %v7390_v41 = vadd.f32 %v4391_v0, %v4215_v56  ;;  %v4393_v15 = vpop.f32.mrf.mxu1 }
 0x260   : >> { %v4217_v63 = vpop.f32.mrf.mxu0 }
 0x261   : >> { %v4218_v12 = vadd.f32 %v4217_v63, %v7135_v7  ;;  %v4394_v14 = vpop.f32.mrf.mxu1 }
 0x262   : >> { %v4219_v4 = vpop.f32.mrf.mxu0 }
 0x263   : >> { %v7393_v62 = vadd.f32 %v4394_v14, %v4218_v12  ;;  %v4396_v39 = vpop.f32.mrf.mxu1 }
 0x264   : >> { %v4222_v1 = vpop.f32.mrf.mxu0 }
 0x265   : >> { %7581 = vst [vmem:[#allocation3_spill] sm:$0xff] %v7393_v62  ;;  %v4223_v49 = vadd.f32 %v4222_v1, %v7138_v20  ;;  %v4399_v45 = vpop.f32.mrf.mxu1 }
 0x266   : >> { %v4224_v34 = vpop.f32.mrf.mxu0 }
 0x267   : >> { %v7396_v29 = vadd.f32 %v4399_v45, %v4223_v49  ;;  %v4401_v50 = vpop.f32.mrf.mxu1 }
 0x268   : >> { %v4225_v38 = vpop.f32.mrf.mxu0 }
 0x269   : >> { %7582 = vst [vmem:[#allocation4_spill] sm:$0xff] %v7396_v29  ;;  %v4226_v19 = vadd.f32 %v4225_v38, %v7153_v40  ;;  %v4402_v60 = vpop.f32.mrf.mxu1 }
 0x26a   : >> { %v4227_v61 = vpop.f32.mrf.mxu0 }
 0x26b   : >> { %v7399_v42 = vadd.f32 %v4402_v60, %v4226_v19  ;;  %v4404_v7 = vpop.f32.mrf.mxu1 }
 0x26c   : >> { %v4230_v47 = vpop.f32.mrf.mxu0 }
 0x26d   : >> { %v4231_v36 = vadd.f32 %v4230_v47, %v7156_v51  ;;  %v4407_v32 = vpop.f32.mrf.mxu1 }
 0x26e   : >> { %v4232_v35 = vpop.f32.mrf.mxu0 }
 0x26f   : >> { %v7402_v28 = vadd.f32 %v4407_v32, %v4231_v36  ;;  %v4409_v20 = vpop.f32.mrf.mxu1 }
 0x270   : >> { %v4233_v5 = vpop.f32.mrf.mxu0 }
 0x271   : >> { %v4234_v46 = vadd.f32 %v4233_v5, %v7171_v11  ;;  %v4410_v56 = vpop.f32.mrf.mxu1 }
 0x272   : >> { %v4235_v0 = vpop.f32.mrf.mxu0 }
 0x273   : >> { %v7405_v3 = vadd.f32 %v4410_v56, %v4234_v46  ;;  %v4412_v40 = vpop.f32.mrf.mxu1 }
 0x274   : >> { %v4238_v15 = vpop.f32.mrf.mxu0 }
 0x275   : >> { %v4239_v63 = vadd.f32 %v4238_v15, %v7174_v21  ;;  %v4415_v12 = vpop.f32.mrf.mxu1 }
 0x276   : >> { %v4240_v14 = vpop.f32.mrf.mxu0 }
 0x277   : >> { %v7408_v4 = vadd.f32 %v4415_v12, %v4239_v63  ;;  %v4417_v51 = vpop.f32.mrf.mxu1 }
 0x278   : >> { %v4241_v39 = vpop.f32.mrf.mxu0 }
 0x279   : >> { %v4242_v1 = vadd.f32 %v4241_v39, %v7189_v30  ;;  %v4418_v49 = vpop.f32.mrf.mxu1 }
 0x27a   : >> { %v4243_v45 = vpop.f32.mrf.mxu0 }
 0x27b   : >> { %v7411_v34 = vadd.f32 %v4418_v49, %v4242_v1  ;;  %v4420_v11 = vpop.f32.mrf.mxu1 }
 0x27c   : >> { %v4246_v50 = vpop.f32.mrf.mxu0 }
 0x27d   : >> { %v4247_v38 = vadd.f32 %v4246_v50, %v7192_v52  ;;  %v4423_v19 = vpop.f32.mrf.mxu1 }
 0x27e   : >> { %v4248_v60 = vpop.f32.mrf.mxu0 }
 0x27f   : >> { %v7414_v61 = vadd.f32 %v4423_v19, %v4247_v38  ;;  %v4425_v21 = vpop.f32.mrf.mxu1 }
 0x280   : >> { %v4249_v7 = vpop.f32.mrf.mxu0 }
 0x281   : >> { %v4250_v47 = vadd.f32 %v4249_v7, %v7207_v58  ;;  %v4426_v36 = vpop.f32.mrf.mxu1 }
 0x282   : >> { %v4251_v32 = vpop.f32.mrf.mxu0 }
 0x283   : >> { %v7417_v35 = vadd.f32 %v4426_v36, %v4250_v47  ;;  %v4428_v30 = vpop.f32.mrf.mxu1 }
 0x284   : >> { %v4254_v20 = vpop.f32.mrf.mxu0 }
 0x285   : >> { %v4255_v5 = vadd.f32 %v4254_v20, %v7210_v25  ;;  %v4431_v46 = vpop.f32.mrf.mxu1 }
 0x286   : >> { %v4256_v56 = vpop.f32.mrf.mxu0 }
 0x287   : >> { %v7420_v0 = vadd.f32 %v4431_v46, %v4255_v5  ;;  %v4433_v52 = vpop.f32.mrf.mxu1 }
 0x288   : >> { %v4257_v40 = vpop.f32.mrf.mxu0 }
 0x289   : >> { %7583 = vst [vmem:[#allocation5_spill] sm:$0xff] %v7420_v0  ;;  %v4258_v15 = vadd.f32 %v4257_v40, %v7225_v23  ;;  %v4434_v63 = vpop.f32.mrf.mxu1 }
 0x28a   : >> { %v4259_v12 = vpop.f32.mrf.mxu0 }
 0x28b   : >> { %v7423_v14 = vadd.f32 %v4434_v63, %v4258_v15  ;;  %v4436_v58 = vpop.f32.mrf.mxu1 }
 0x28c   : >> { %v4262_v51 = vpop.f32.mrf.mxu0 }
 0x28d   : >> { %7584 = vst [vmem:[#allocation6_spill] sm:$0xff] %v7423_v14  ;;  %v4263_v39 = vadd.f32 %v4262_v51, %v7228_v55  ;;  %v4439_v1 = vpop.f32.mrf.mxu1 }
 0x28e   : >> { %v4264_v49 = vpop.f32.mrf.mxu0 }
 0x28f   : >> { %v7426_v45 = vadd.f32 %v4439_v1, %v4263_v39  ;;  %v4441_v25 = vpop.f32.mrf.mxu1 }
 0x290   : >> { %v4265_v11 = vpop.f32.mrf.mxu0 }
 0x291   : >> { %7585 = vst [vmem:[#allocation7_spill] sm:$0xff] %v7426_v45  ;;  %v4266_v50 = vadd.f32 %v4265_v11, %v7243_v53  ;;  %v4442_v38 = vpop.f32.mrf.mxu1 }
 0x292   : >> { %v4267_v19 = vpop.f32.mrf.mxu0 }
 0x293   : >> { %v7429_v60 = vadd.f32 %v4442_v38, %v4266_v50  ;;  %v4444_v23 = vpop.f32.mrf.mxu1 }
 0x294   : >> { %v4270_v21 = vpop.f32.mrf.mxu0 }
 0x295   : >> { %7586 = vst [vmem:[#allocation8_spill] sm:$0xff] %v7429_v60  ;;  %v4271_v7 = vadd.f32 %v4270_v21, %v7246_v27  ;;  %v4447_v47 = vpop.f32.mrf.mxu1 }
 0x296   : >> { %v4272_v36 = vpop.f32.mrf.mxu0 }
 0x297   : >> { %v7432_v32 = vadd.f32 %v4447_v47, %v4271_v7  ;;  %v4449_v55 = vpop.f32.mrf.mxu1 }
 0x298   : >> { %v4273_v30 = vpop.f32.mrf.mxu0 }
 0x299   : >> { %v4274_v20 = vadd.f32 %v4273_v30, %v7261_v18  ;;  %v4450_v5 = vpop.f32.mrf.mxu1 }
 0x29a   : >> { %v4275_v46 = vpop.f32.mrf.mxu0 }
 0x29b   : >> { %v7435_v56 = vadd.f32 %v4450_v5, %v4274_v20  ;;  %v4452_v53 = vpop.f32.mrf.mxu1 }
 0x29c   : >> { %v4278_v52 = vpop.f32.mrf.mxu0 }
 0x29d   : >> { %v4279_v40 = vadd.f32 %v4278_v52, %v7266_v57  ;;  %v4455_v15 = vpop.f32.mrf.mxu1 }
 0x29e   : >> { %v4280_v63 = vpop.f32.mrf.mxu0 }
 0x29f   : >> { %v7438_v12 = vadd.f32 %v4455_v15, %v4279_v40  ;;  %v4457_v27 = vpop.f32.mrf.mxu1 }
 0x2a0   : >> { %v4281_v58 = vpop.f32.mrf.mxu0 }
 0x2a1   : >> { %v4282_v51 = vadd.f32 %v4281_v58, %v7281_v48  ;;  %v4458_v39 = vpop.f32.mrf.mxu1 }
 0x2a2   : >> { %v4283_v1 = vpop.f32.mrf.mxu0 }
 0x2a3   : >> { %v7441_v49 = vadd.f32 %v4458_v39, %v4282_v51  ;;  %v4460_v18 = vpop.f32.mrf.mxu1 }
 0x2a4   : >> { %v4286_v25 = vpop.f32.mrf.mxu0 }
 0x2a5   : >> { %v4287_v11 = vadd.f32 %v4286_v25, %v7288_v16  ;;  %v4463_v50 = vpop.f32.mrf.mxu1 }
 0x2a6   : >> { %v4288_v38 = vpop.f32.mrf.mxu0 }
 0x2a7   : >> { %v7444_v19 = vadd.f32 %v4463_v50, %v4287_v11  ;;  %v4465_v57 = vpop.f32.mrf.mxu1 }
 0x2a8   : >> { %v4289_v23 = vpop.f32.mrf.mxu0 }
 0x2a9   : >> { %7587 = vst [vmem:[#allocation9_spill] sm:$0xff] %v7444_v19  ;;  %v4290_v21 = vadd.f32 %v4289_v23, %v7303_v17  ;;  %v4466_v7 = vpop.f32.mrf.mxu1 }
 0x2aa   : >> { %v4291_v47 = vpop.f32.mrf.mxu0 }
 0x2ab   : >> { %v7447_v36 = vadd.f32 %v4466_v7, %v4290_v21  ;;  %v4468_v48 = vpop.f32.mrf.mxu1 }
 0x2ac   : >> { %v4294_v55 = vpop.f32.mrf.mxu0 }
 0x2ad   : >> { %v4295_v30 = vadd.f32 %v4294_v55, %v7310_v43  ;;  %v4471_v20 = vpop.f32.mrf.mxu1 }
 0x2ae   : >> { %v4296_v5 = vpop.f32.mrf.mxu0 }
 0x2af   : >> { %v7450_v46 = vadd.f32 %v4471_v20, %v4295_v30  ;;  %v4473_v16 = vpop.f32.mrf.mxu1 }
 0x2b0   : >> { %v4297_v53 = vpop.f32.mrf.mxu0 }
 0x2b1   : >> { %v4298_v52 = vadd.f32 %v4297_v53, %v7325_v54  ;;  %v4474_v40 = vpop.f32.mrf.mxu1 }
 0x2b2   : >> { %v4299_v15 = vpop.f32.mrf.mxu0 }
 0x2b3   : >> { %v7453_v63 = vadd.f32 %v4474_v40, %v4298_v52  ;;  %v4476_v17 = vpop.f32.mrf.mxu1 }
 0x2b4   : >> { %v4302_v27 = vpop.f32.mrf.mxu0 }
 0x2b5   : >> { %7588 = vst [vmem:[#allocation10_spill] sm:$0xff] %v7453_v63  ;;  %v4303_v58 = vadd.f32 %v4302_v27, %v7332_v8  ;;  %v4479_v51 = vpop.f32.mrf.mxu1 }
 0x2b6   : >> { %v4304_v39 = vpop.f32.mrf.mxu0 }
 0x2b7   : >> { %v7456_v1 = vadd.f32 %v4479_v51, %v4303_v58  ;;  %v4481_v43 = vpop.f32.mrf.mxu1 }
 0x2b8   : >> { %v4305_v18 = vpop.f32.mrf.mxu0 }
 0x2b9   : >> { %7589 = vst [vmem:[#allocation11_spill] sm:$0xff] %v7456_v1  ;;  %v7458_v25 = vpop.f32.mrf.mxu1 }
 0x2ba   : >> { %v4307_v11 = vpop.f32.mrf.mxu0 }
 0x2bb   : >> { %v4484_v50 = vpop.f32.mrf.mxu1 }
 0x2bc   : >> { %v4310_v38 = vpop.f32.mrf.mxu0 }
 0x2bd   : >> { %v4487_v54 = vpop.f32.mrf.mxu1 }
 0x2be   : >> { %v4312_v57 = vpop.f32.mrf.mxu0 }
 0x2bf   : >> { %v4489_v23 = vpop.f32.mrf.mxu1 }
 0x2c0   : >> { %v4313_v21 = vpop.f32.mrf.mxu0 }
 0x2c1   : >> { %v4490_v7 = vpop.f32.mrf.mxu1  ;;  %v4314_v0 = vadd.f32 %v4313_v21, %v7356_v59 }
 0x2c2   : >> { %v4315_v47 = vpop.f32.mrf.mxu0 }
 0x2c3   : >> { %v4492_v48 = vpop.f32.mrf.mxu1  ;;  %v4491_v59 = vadd.f32 %v4490_v7, %v4314_v0 }
 0x2c4   : >> { %v4318_v55 = vpop.f32.mrf.mxu0 }
 0x2c5   : >> { %v7460_v8 = vpop.f32.mrf.mxu1 }
 0x2c6   : >> { %v4320_v30 = vpop.f32.mrf.mxu0 }
 0x2c7   : >> { %v4497_v20 = vpop.f32.mrf.mxu1 }
 0x2c8   : >> { %v7462_v5 = vpop.f32.mrf.mxu0 }
 0x2c9   : >> { %v7464_v16 = vpop.f32.mrf.mxu1 }
 0x2ca   : >> { %v4323_v53 = vpop.f32.mrf.mxu0 }
 0x2cb   : >> { %v4500_v52 = vpop.f32.mrf.mxu1 }
 0x2cc   : >> { %v4326_v40 = vpop.f32.mrf.mxu0 }
 0x2cd   : >> { %v4503_v15 = vpop.f32.mrf.mxu1 }
 0x2ce   : >> { %v4328_v17 = vpop.f32.mrf.mxu0 }
 0x2cf   : >> { %v4505_v27 = vpop.f32.mrf.mxu1 }
 0x2d0   : >> { %v4329_v58 = vpop.f32.mrf.mxu0  ;;  %v4311_v27 = vadd.f32 %v4310_v38, %v7350_v44 }
 0x2d1   : >> { %v7466_v51 = vpop.f32.mrf.mxu1  ;;  %v4330_v0 = vadd.f32 %v4329_v58, %v7369_v37  ;;  %v4322_v37 = vadd.f32 %v7462_v5, %v7363_v2 }
 0x2d2   : >> { %v4331_v39 = vpop.f32.mrf.mxu0  ;;  %v4488_v29 = vadd.f32 %v4487_v54, %v4311_v27 }
 0x2d3   : >> { %v4508_v43 = vpop.f32.mrf.mxu1  ;;  %v4507_v2 = vadd.f32 %v7466_v51, %v4330_v0 }
 0x2d4   : >> { %v5396_v11 = vpop.f32.mrf.mxu0 }
 0x2d5   : >> { %v5416_v50 = vpop.f32.mrf.mxu1 }
 0x2d6   : >> { %v4544_v57 = vpop.f32.mrf.mxu0 }
 0x2d7   : >> { %v4624_v23 = vpop.f32.mrf.mxu1 }
 0x2d8   : >> { %v5397_v47 = vpop.f32.mrf.mxu0 }
 0x2d9   : >> { %v5417_v48 = vpop.f32.mrf.mxu1 }
 0x2da   : >> { %v4547_v30 = vpop.f32.mrf.mxu0 }
 0x2db   : >> { %v4627_v20 = vpop.f32.mrf.mxu1  ;;  %v7483_v45 = vadd.f32 %v4547_v30, %v7375_v22  ;;  %v4327_v22 = vadd.f32 %v4326_v40, %v7366_v13  ;;  %v7508_v13 = vadd.f32 %v4544_v57, %v7372_v10 }
 0x2dc   : >> { %v7468_v14 = vpop.f32.mrf.mxu0  ;;  %v4628_v44 = vadd.f32 %v4627_v20, %v7435_v56 }
 0x2dd   : >> { %v7470_v53 = vpop.f32.mrf.mxu1 }
 0x2de   : >> { %v7472_v52 = vpop.f32.mrf.mxu0 }
 0x2df   : >> { %v7474_v17 = vpop.f32.mrf.mxu1 }
 0x2e0   : >> { %7590 = vst [vmem:[#allocation12_spill] sm:$0xff] %v7474_v17  ;;  %v7477_v39 = vpop.f32.mrf.mxu0  ;;  %v4306_v17 = vadd.f32 %v4305_v18, %v7344_v33 }
 0x2e1   : >> { %7591 = vst [vmem:[#allocation13_spill] sm:$0xff] %v7477_v39  ;;  %v7479_v43 = vpop.f32.mrf.mxu1 }
 0x2e2   : >> { %v4563_v60 = vpop.f32.mrf.mxu0  ;;  %v4483_v56 = vadd.f32 %v7458_v25, %v4306_v17  ;;  %v4504_v25 = vadd.f32 %v4503_v15, %v4327_v22 }
 0x2e3   : >> { %v4643_v1 = vpop.f32.mrf.mxu1  ;;  %v4564_v10 = vadd.f32 %v4563_v60, %v7387_v6  ;;  %v4556_v6 = vadd.f32 %v5397_v47, %v7381_v31 }
 0x2e4   : >> { %v5404_v62 = vpop.f32.mrf.mxu0 }
 0x2e5   : >> { %v7486_v63 = vadd.f32 %v5404_v62, %v7402_v28  ;;  %v5424_v19 = vpop.f32.mrf.mxu1  ;;  %v4553_v62 = vadd.f32 %v5396_v11, %v7378_v9 }
 0x2e6   : >> { %v4665_v38 = vadd.f32 %v5424_v19, %v4488_v29  ;;  %v7490_v39 = vpop.f32.mrf.mxu0  ;;  %v4319_v29 = vadd.f32 %v4318_v55, %v7360_v24  ;;  %v7502_v19 = vadd.f32 %v5416_v50, %v7438_v12  ;;  %v4625_v24 = vadd.f32 %v4624_v23, %v7432_v32 }
 0x2e7   : >> { %v4688_v54 = vmax.f32 %v7483_v45, %v7486_v63  ;;  %v7494_v27 = vpop.f32.mrf.mxu1  ;;  %v7524_v32 = vadd.f32 %v4643_v1, %v7447_v36 }
 0x2e8   : >> { %v4699_v21 = vmax.f32 %v4628_v44, %v4665_v38  ;;  %v5405_v30 = vpop.f32.mrf.mxu0  ;;  %v4496_v15 = vadd.f32 %v7460_v8, %v4319_v29  ;;  %v4499_v38 = vadd.f32 %v7464_v16, %v4322_v37  ;;  %v4561_v16 = vadd.f32 %v7472_v52, %v7384_v26  ;;  %v7595_v26 = vld [vmem:[#allocation7_spill] sm:$0xff] }
 0x2e9   : >> { %v4588_v28 = vadd.f32 %v5405_v30, %v7405_v3  ;;  %v5425_v33 = vpop.f32.mrf.mxu1 }
 0x2ea   : >> { %v7504_v18 = vadd.f32 %v5425_v33, %v4491_v59  ;;  %v4579_v20 = vpop.f32.mrf.mxu0  ;;  %v4569_v59 = vadd.f32 %v7468_v14, %v7390_v41  ;;  %v7593_v33 = vld [vmem:[#allocation12_spill] sm:$0xff] }
 0x2eb   : >> { %v4689_v7 = vmax.f32 %v4553_v62, %v4588_v28  ;;  %v7511_v9 = vadd.f32 %v4579_v20, %v7399_v42  ;;  %v4659_v3 = vpop.f32.mrf.mxu1 }
 0x2ec   : >> { %v4700_v12 = vmax.f32 %v7502_v19, %v7504_v18  ;;  %v4660_v55 = vadd.f32 %v4659_v3, %v4483_v56  ;;  %v5408_v40 = vpop.f32.mrf.mxu0  ;;  %v7594_v18 = vld [vmem:[#allocation10_spill] sm:$0xff] }
 0x2ed   : >> { %v4687_v58 = vmax.f32 %v7508_v13, %v7511_v9  ;;  %v4601_v42 = vadd.f32 %v5408_v40, %v7414_v61  ;;  %v5428_v11 = vpop.f32.mrf.mxu1  ;;  %v4636_v61 = vadd.f32 %v5417_v48, %v7441_v49  ;;  %v4652_v20 = vadd.f32 %v7479_v43, %v7594_v18 }
 0x2ee   : >> { %v4698_v50 = vmax.f32 %v4625_v24, %v4660_v55  ;;  %v7526_v57 = vadd.f32 %v5428_v11, %v4504_v25  ;;  %v4592_v23 = vpop.f32.mrf.mxu0 }
 0x2ef   : >> { %v4692_v60 = vmax.f32 %v4564_v10, %v4601_v42  ;;  %v4593_v5 = vadd.f32 %v4592_v23, %v7408_v4  ;;  %v4672_v17 = vpop.f32.mrf.mxu1  ;;  %v4649_v4 = vadd.f32 %v7470_v53, %v7450_v46  ;;  %v7598_v10 = vld [vmem:[#allocation5_spill] sm:$0xff]  ;;  %v7599_v23 = vld [vmem:[#allocation4_spill] sm:$0xff] }
 0x2f0   : >> { %v4707_v44 = vmax.f32 %v4689_v7, %v4698_v50  ;;  %v4703_v36 = vmax.f32 %v7524_v32, %v7526_v57  ;;  %v4673_v1 = vadd.f32 %v4672_v17, %v4496_v15  ;;  %v5409_v8 = vpop.f32.mrf.mxu0  ;;  %v7597_v7 = vld [vmem:[#allocation13_spill] sm:$0xff] }
 0x2f1   : >> { %v4690_v51 = vmax.f32 %v4556_v6, %v4593_v5  ;;  %v4604_v31 = vadd.f32 %v5409_v8, %v7417_v35  ;;  %v5429_v47 = vpop.f32.mrf.mxu1  ;;  %v7592_v35 = vld [vmem:[#allocation9_spill] sm:$0xff]  ;;  %v7600_v6 = vld [vmem:[#allocation11_spill] sm:$0xff]  ;;  %v7601_v5 = vld [vmem:[#allocation8_spill] sm:$0xff] }
 0x2f2   : >> { %v4716_v22 = vmul.f32 0.01, %v4707_v44  ;;  %v4701_v49 = vmax.f32 %v4636_v61, %v4673_v1  ;;  %v4684_v48 = vadd.f32 %v5429_v47, %v4507_v2  ;;  %v4595_v30 = vpop.f32.mrf.mxu0  ;;  %v4641_v56 = vadd.f32 %v7593_v33, %v7592_v35 }
 0x2f3   : >> { %v4708_v62 = vmax.f32 %v4690_v51, %v4699_v21  ;;  %v4693_v28 = vmax.f32 %v4569_v59, %v4604_v31  ;;  %v4596_v41 = vadd.f32 %v4595_v30, %v7411_v34  ;;  %v4675_v14 = vpop.f32.mrf.mxu1  ;;  %v7596_v21 = vld [vmem:[#allocation3_spill] sm:$0xff]  ;;  %v4577_v2 = vadd.f32 %v7490_v39, %v7599_v23 }
 0x2f4   : >> { %v4710_v29 = vmax.f32 %v4692_v60, %v4701_v49  ;;  %v4704_v46 = vmax.f32 %v4649_v4, %v4684_v48  ;;  %v4676_v53 = vadd.f32 %v4675_v14, %v4499_v38  ;;  %v5412_v19 = vpop.f32.mrf.mxu0  ;;  %v4572_v34 = vadd.f32 %v7597_v7, %v7596_v21  ;;  %v7602_v38 = vld [vmem:[#allocation6_spill] sm:$0xff] }
 0x2f5   : >> { %v4717_v0 = vmul.f32 0.01, %v4708_v62  ;;  %v4691_v13 = vmax.f32 %v4561_v16, %v4596_v41  ;;  %v4617_v52 = vadd.f32 %v5412_v19, %v7595_v26  ;;  %v4725_v9 = vmax.f32 %v4707_v44, %v4716_v22 }
 0x2f6   : >> { %v4719_v3 = vmul.f32 0.01, %v4710_v29  ;;  %v4702_v25 = vmax.f32 %v4641_v56, %v4676_v53  ;;  %v4608_v24 = vpop.f32.mrf.mxu0  ;;  %v4657_v60 = vadd.f32 %v7494_v27, %v7600_v6 }
 0x2f7   : >> { %v4726_v55 = vmax.f32 %v4708_v62, %v4717_v0  ;;  %v4709_v40 = vmax.f32 %v4691_v13, %v4700_v12  ;;  %v4696_v37 = vmax.f32 %v4617_v52, %v4652_v20  ;;  %v4609_v42 = vadd.f32 %v4608_v24, %v7598_v10 }
 0x2f8   : >> { %v4711_v43 = vmax.f32 %v4693_v28, %v4702_v25  ;;  %v5413_v11 = vpop.f32.mrf.mxu0  ;;  %v4728_v12 = vmax.f32 %v4710_v29, %v4719_v3 }
 0x2f9   : >> { %v5346_v15 = vpack.c.bf16 %v4726_v55, %v4725_v9  ;;  %v4718_v32 = vmul.f32 0.01, %v4709_v40  ;;  %v4705_v50 = vmax.f32 %v4687_v58, %v4696_v37  ;;  %v4694_v57 = vmax.f32 %v4572_v34, %v4609_v42 }
 0x2fa   : >> { %v4620_v17 = vadd.f32 %v5413_v11, %v7601_v5  ;;  %v4611_v61 = vpop.f32.mrf.mxu0  ;;  %v4720_v1 = vmul.f32 0.01, %v4711_v43 }
 0x2fb   : >> { %5358 = vst [vmem:[%s7556_s4 + $0x8] sm:$0xff] %v5346_v15   ;;  %v4727_v44 = vmax.f32 %v4709_v40, %v4718_v32  ;;  %v4712_v8 = vmax.f32 %v4694_v57, %v4703_v36  ;;  %v4612_v59 = vadd.f32 %v4611_v61, %v7602_v38  ;;  %v4714_v39 = vmul.f32 0.01, %v4705_v50 }
 0x2fc   : >> { %v4697_v58 = vmax.f32 %v4620_v17, %v4657_v60  ;;  %v4729_v4 = vmax.f32 %v4711_v43, %v4720_v1 }
 0x2fd   : >> { %v5351_v51 = vpack.c.bf16 %v4728_v12, %v4727_v44  ;;  %v4721_v31 = vmul.f32 0.01, %v4712_v8  ;;  %v4695_v47 = vmax.f32 %v4577_v2, %v4612_v59  ;;  %v4723_v16 = vmax.f32 %v4705_v50, %v4714_v39 }
 0x2fe   : >> { %v4706_v27 = vmax.f32 %v4688_v54, %v4697_v58 }
 0x2ff   : >> { %5359 = vst [vmem:[%s7556_s4 + $0x10] sm:$0xff] %v5351_v51   ;;  %v4730_v22 = vmax.f32 %v4712_v8, %v4721_v31  ;;  %v4713_v49 = vmax.f32 %v4695_v47, %v4704_v46 }
 0x300   : >> { %v4715_v48 = vmul.f32 0.01, %v4706_v27 }
 0x301   : >> { %v5356_v36 = vpack.c.bf16 %v4730_v22, %v4729_v4  ;;  %v4722_v30 = vmul.f32 0.01, %v4713_v49 }
 0x302   : >> { %v4724_v62 = vmax.f32 %v4706_v27, %v4715_v48 }
 0x303   : >> { %5360 = vst [vmem:[%s7556_s4 + $0x18] sm:$0xff] %v5356_v36   ;;  %v4731_v28 = vmax.f32 %v4713_v49, %v4722_v30  ;;  %151 = sbr.rel (!%p149_p4) target bundleno = 16 (0x10), region = 68 }
 0x304   : >> { %v5341_v41 = vpack.c.bf16 %v4724_v62, %v4723_v16 }
 0x305   : >> { %v5337_v14 = vpack.c.bf16 %v4731_v28, %v4731_v28 }
 0x306   : >> { %5342 = vst [vmem:[%s7556_s4] sm:$0xff] %v5341_v41  }
 0x307   : >> { %4782 = vst [vmem:[%s7556_s4 + $0x20] sm:$0xf] %v5337_v14 }
 0x308 PF: > { %s12_s9 = sadd.s32 1, %s5916_s9  }
 0x309   : > { %p9_p5 = scmp.ge.s32.totalorder %s12_s9, 4  }
 0x30b   :  { %11 = sbr.rel (!%p9_p5) target bundleno = 1 (0x1), region = 79 }

</bundles_post_ra>
